<compile_context>
chip_gen: v5e
topology: v5e:2x2
jax: 0.10.0
libtpu: 0.0.40
codegen_flags: <defaults>
</compile_context>

<pallas_src>
import functools

import jax
import jax.numpy as jnp
from jax import lax
from jax.experimental import pallas as pl
from jax.experimental.pallas import tpu as pltpu

NB_SENSOR_CHANNELS = 36
N_FILTERS = 64
N_HIDDEN = 128
N_CLASSES = 9
FILTER_SIZE = 5
WINDOW_LEN = 24                       # 24 - 4*(5-1) = 8
SEQ_AFTER_CONV = 8

_P = WINDOW_LEN                       # uniform per-batch row stride (8-aligned)
_L1 = WINDOW_LEN - (FILTER_SIZE - 1)  # 20
_L2 = _L1 - (FILTER_SIZE - 1)         # 16
_L3 = _L2 - (FILTER_SIZE - 1)         # 12
_L4 = _L3 - (FILTER_SIZE - 1)         # 8


# ----------------------------- fused kernel --------------------------------

def _har_fused_kernel(
    x_ref,                              # (B*24, 36)  channels-last rows b*24+l
    w1_ref, b1_ref,                     # (5, 36, 64), (1, 64)
    w2_ref, b2_ref,                     # (5, 64, 64), (1, 64)
    w3_ref, b3_ref,                     # (5, 64, 64), (1, 64)
    w4_ref, b4_ref,                     # (5, 64, 64) [k, co, ci], (64, 1)
    wih1_ref, whh1_ref, bl1_ref,        # (64, 512), (128, 512), (1, 512)
    wih2_ref, whh2_ref, bl2_ref,        # (128, 512), (128, 512), (1, 512)
    fcw_ref, fcb_ref,                   # (128, 9), (1, 9)
    h0_ref, c0_ref,                     # (B, 128)
    out_ref, hT_ref, cT_ref,            # (B, 9), (B, 128), (B, 128)
    h1_sc, h2_sc, h3_sc,                # (B*24, 64)  conv activations, LC rows
    y4t_sc,                             # (B*64, 8)   conv4 in (channel, pos) order
    x_sc,                               # (8*B, 64)   LSTM input, raw-view row order
    gx_sc,                              # (8*B, 512)  hoisted input projections
    y1_sc,                              # (8*B, 128)  LSTM-1 outputs (seq-major)
    sel_sc,                             # (B, 128)    rows used by [:, -1, :]
):
    B = h0_ref.shape[0]
    K = FILTER_SIZE
    H = N_HIDDEN
    T = SEQ_AFTER_CONV

    # ---------------- conv1..conv3: tap-accumulation, batch folded into M ----
    def conv_taps(src, dst, w_ref, b_ref, l_out):
        rows = (B - 1) * _P + l_out      # last row ever needed downstream
        acc = jnp.dot(src[0:rows, :], w_ref[0],
                      preferred_element_type=jnp.float32)
        for k in range(1, K):
            acc = acc + jnp.dot(src[k:k + rows, :], w_ref[k],
                                preferred_element_type=jnp.float32)
        dst[0:rows, :] = jnp.maximum(acc + b_ref[...], 0.0)

    conv_taps(x_ref, h1_sc, w1_ref, b1_ref, _L1)
    conv_taps(h1_sc, h2_sc, w2_ref, b2_ref, _L2)
    conv_taps(h2_sc, h3_sc, w3_ref, b3_ref, _L3)

    # ---------------- conv4 in (channel, position) orientation ---------------
    # y4t_sc[b*64 + c, l] = relu(conv4[b, c, l])
    # TODO(synk): for very large B this Python loop unrolls B times; switch to a
    # fori_loop / grid axis if B grows beyond ~32.
    for b in range(B):
        base = b * _P
        yt = lax.dot_general(
            w4_ref[0], h3_sc[base:base + _L4, :],
            dimension_numbers=(((1,), (1,)), ((), ())),
            preferred_element_type=jnp.float32)
        for k in range(1, K):
            yt = yt + lax.dot_general(
                w4_ref[k], h3_sc[base + k:base + k + _L4, :],
                dimension_numbers=(((1,), (1,)), ((), ())),
                preferred_element_type=jnp.float32)
        y4t_sc[b * N_FILTERS:(b + 1) * N_FILTERS, :] = jnp.maximum(
            yt + b4_ref[...], 0.0)

    # ---------------- raw-memory `view(8, -1, 64)` scramble ------------------
    # x_sc[b*8 + i, j*8 + l] = relu(conv4[b, i*8 + j, l]) = y4t_sc[8*(b*8+i)+j, l]
    # -> for each j: one stride-8 sublane read, one 8-lane column-block store.
    for j in range(8):
        x_sc[:, j * 8:(j + 1) * 8] = y4t_sc[pl.ds(j, 8 * B, stride=8), :]

    # ---------------- LSTMs (PyTorch gate order i, f, g, o) ------------------
    def lstm_gates(g, c):
        i_g = jax.nn.sigmoid(g[:, 0 * H:1 * H])
        f_g = jax.nn.sigmoid(g[:, 1 * H:2 * H])
        g_g = jnp.tanh(g[:, 2 * H:3 * H])
        o_g = jax.nn.sigmoid(g[:, 3 * H:4 * H])
        c_new = f_g * c + i_g * g_g
        h_new = o_g * jnp.tanh(c_new)
        return h_new, c_new

    # Layer 1 (initial state = the `hidden` argument).
    gx_sc[...] = (jnp.dot(x_sc[...], wih1_ref[...],
                          preferred_element_type=jnp.float32) + bl1_ref[...])
    h = h0_ref[...]
    c = c0_ref[...]
    for t in range(T):
        g = gx_sc[t * B:(t + 1) * B, :] + jnp.dot(
            h, whh1_ref[...], preferred_element_type=jnp.float32)
        h, c = lstm_gates(g, c)
        y1_sc[t * B:(t + 1) * B, :] = h

    # Layer 2: PyTorch does `x, hidden = lstm1(x, hidden); x, hidden = lstm2(x, hidden)`,
    # so lstm2's INITIAL state is lstm1's FINAL state -> the two time loops are
    # inherently sequential (cannot be interleaved).
    gx_sc[...] = (jnp.dot(y1_sc[...], wih2_ref[...],
                          preferred_element_type=jnp.float32) + bl2_ref[...])
    for t in range(T):
        g = gx_sc[t * B:(t + 1) * B, :] + jnp.dot(
            h, whh2_ref[...], preferred_element_type=jnp.float32)
        h, c = lstm_gates(g, c)
        # Rows consumed by `fc(...).view(batch, -1, n_classes)[:, -1, :]`:
        # flat row r = b*8 + 7 of the (8*B, H) seq-major flattening,
        # i.e. timestep r // B, batch lane r % B.
        for bsel in range(B):
            r = bsel * 8 + 7
            if r // B == t:
                sel_sc[bsel:bsel + 1, :] = h[r % B:r % B + 1, :]

    # TODO(synk): nn.Dropout(p=0.5) is identity in eval mode; the train-mode
    # random mask is not implemented (kept deterministic).
    out_ref[...] = (jnp.dot(sel_sc[...], fcw_ref[...],
                            preferred_element_type=jnp.float32) + fcb_ref[...])
    hT_ref[...] = h
    cT_ref[...] = c


# ----------------------------- wrapper --------------------------------------

_VMEM_SPEC = pl.BlockSpec(memory_space=pltpu.MemorySpace.VMEM)
_NUM_INPUTS = 1 + 16 + 2     # x, 16 params, h0, c0


def _har_fused_call(x_rows, params, h0, c0):
    B = h0.shape[0]
    return pl.pallas_call(
        _har_fused_kernel,
        out_shape=(jax.ShapeDtypeStruct((B, N_CLASSES), jnp.float32),
                   jax.ShapeDtypeStruct((B, N_HIDDEN), jnp.float32),
                   jax.ShapeDtypeStruct((B, N_HIDDEN), jnp.float32)),
        in_specs=[_VMEM_SPEC] * _NUM_INPUTS,
        out_specs=(_VMEM_SPEC, _VMEM_SPEC, _VMEM_SPEC),
        scratch_shapes=[
            pltpu.VMEM((B * _P, N_FILTERS), jnp.float32),                 # h1
            pltpu.VMEM((B * _P, N_FILTERS), jnp.float32),                 # h2
            pltpu.VMEM((B * _P, N_FILTERS), jnp.float32),                 # h3
            pltpu.VMEM((B * N_FILTERS, SEQ_AFTER_CONV), jnp.float32),     # y4t
            pltpu.VMEM((SEQ_AFTER_CONV * B, N_FILTERS), jnp.float32),     # x_lstm
            pltpu.VMEM((SEQ_AFTER_CONV * B, 4 * N_HIDDEN), jnp.float32),  # gx
            pltpu.VMEM((SEQ_AFTER_CONV * B, N_HIDDEN), jnp.float32),      # y1
            pltpu.VMEM((B, N_HIDDEN), jnp.float32),                       # sel
        ],
    )(x_rows, *params, h0, c0)


@functools.partial(jax.jit, static_argnames=("batch_size",))
def har_forward(x_ncl, hidden, params, batch_size):
    """x_ncl: (B, 36, 24) NCL like the PyTorch module; hidden: ((1,B,H),(1,B,H))."""
    del batch_size  # equals x_ncl.shape[0]; the view semantics are baked in-kernel
    B = x_ncl.shape[0]
    # Only host-side glue: channels-last + flatten to rows b*24 + l.
    x_rows = jnp.transpose(x_ncl, (0, 2, 1)).reshape(
        B * WINDOW_LEN, NB_SENSOR_CHANNELS)
    h0, c0 = hidden
    logits, h_n, c_n = _har_fused_call(x_rows, params, h0[0], c0[0])
    return logits, (h_n[None], c_n[None])


# ----------------------------- parameters ----------------------------------

def init_params(key):
    """Deterministic params in PyTorch layouts, converted to kernel layouts."""
    def unif(k, shape, fan_in):
        bound = 1.0 / jnp.sqrt(jnp.float32(fan_in))
        return jax.random.uniform(k, shape, jnp.float32, -bound, bound)

    keys = list(jax.random.split(key, 18))
    kit = iter(keys)

    def conv_torch(cin):
        fan = cin * FILTER_SIZE
        w = unif(next(kit), (N_FILTERS, cin, FILTER_SIZE), fan)
        b = unif(next(kit), (N_FILTERS,), fan)
        return w, b

    w1t, b1t = conv_torch(NB_SENSOR_CHANNELS)
    w2t, b2t = conv_torch(N_FILTERS)
    w3t, b3t = conv_torch(N_FILTERS)
    w4t, b4t = conv_torch(N_FILTERS)

    def taps_ci_co(w):               # (Cout, Cin, K) -> (K, Cin, Cout)
        return jnp.transpose(w, (2, 1, 0))

    w4_taps = jnp.transpose(w4t, (2, 0, 1))     # (K, Cout, Cin) for A.B^T form

    def lstm_torch(in_dim):
        H = N_HIDDEN
        w_ih = unif(next(kit), (4 * H, in_dim), H)
        w_hh = unif(next(kit), (4 * H, H), H)
        b_ih = unif(next(kit), (4 * H,), H)
        b_hh = unif(next(kit), (4 * H,), H)
        return (jnp.transpose(w_ih), jnp.transpose(w_hh),
                (b_ih + b_hh).reshape(1, 4 * H))

    l1 = lstm_torch(N_FILTERS)
    l2 = lstm_torch(N_HIDDEN)

    fc_w = unif(next(kit), (N_CLASSES, N_HIDDEN), N_HIDDEN)
    fc_b = unif(next(kit), (N_CLASSES,), N_HIDDEN)

    return (taps_ci_co(w1t), b1t.reshape(1, N_FILTERS),
            taps_ci_co(w2t), b2t.reshape(1, N_FILTERS),
            taps_ci_co(w3t), b3t.reshape(1, N_FILTERS),
            w4_taps, b4t.reshape(N_FILTERS, 1),
            *l1, *l2,
            jnp.transpose(fc_w), fc_b.reshape(1, N_CLASSES))


# ----------------------------- main ------------------------------------------

if __name__ == "__main__":
    B = 2
    key = jax.random.PRNGKey(0)
    k_par, k_x = jax.random.split(key)

    params = init_params(k_par)
    assert len(params) == 16
    x = jax.random.normal(k_x, (B, NB_SENSOR_CHANNELS, WINDOW_LEN),
                          dtype=jnp.float32)
    hidden = (jnp.zeros((1, B, N_HIDDEN), jnp.float32),
              jnp.zeros((1, B, N_HIDDEN), jnp.float32))

    out, (h_n, c_n) = har_forward(x, hidden, params, batch_size=B)
    jax.block_until_ready((out, h_n, c_n))

    assert out.shape == (B, N_CLASSES)
    assert h_n.shape == (1, B, N_HIDDEN) and c_n.shape == (1, B, N_HIDDEN)
    assert bool(jnp.all(jnp.isfinite(out)))
    print("KERNEL_OK")
</pallas_src>

<mosaic_0001>
module attributes {stable_mosaic.version = 11 : i64} {
  func.func @_har_fused_kernel(%arg0: memref<48x36xf32, #tpu.memory_space<vmem>>, %arg1: memref<5x36x64xf32, #tpu.memory_space<vmem>>, %arg2: memref<1x64xf32, #tpu.memory_space<vmem>>, %arg3: memref<5x64x64xf32, #tpu.memory_space<vmem>>, %arg4: memref<1x64xf32, #tpu.memory_space<vmem>>, %arg5: memref<5x64x64xf32, #tpu.memory_space<vmem>>, %arg6: memref<1x64xf32, #tpu.memory_space<vmem>>, %arg7: memref<5x64x64xf32, #tpu.memory_space<vmem>>, %arg8: memref<64x1xf32, #tpu.memory_space<vmem>>, %arg9: memref<64x512xf32, #tpu.memory_space<vmem>>, %arg10: memref<128x512xf32, #tpu.memory_space<vmem>>, %arg11: memref<1x512xf32, #tpu.memory_space<vmem>>, %arg12: memref<128x512xf32, #tpu.memory_space<vmem>>, %arg13: memref<128x512xf32, #tpu.memory_space<vmem>>, %arg14: memref<1x512xf32, #tpu.memory_space<vmem>>, %arg15: memref<128x9xf32, #tpu.memory_space<vmem>>, %arg16: memref<1x9xf32, #tpu.memory_space<vmem>>, %arg17: memref<2x128xf32, #tpu.memory_space<vmem>>, %arg18: memref<2x128xf32, #tpu.memory_space<vmem>>, %arg19: memref<2x9xf32, #tpu.memory_space<vmem>>, %arg20: memref<2x128xf32, #tpu.memory_space<vmem>>, %arg21: memref<2x128xf32, #tpu.memory_space<vmem>>, %arg22: memref<48x64xf32, #tpu.memory_space<vmem>>, %arg23: memref<48x64xf32, #tpu.memory_space<vmem>>, %arg24: memref<48x64xf32, #tpu.memory_space<vmem>>, %arg25: memref<128x8xf32, #tpu.memory_space<vmem>>, %arg26: memref<16x64xf32, #tpu.memory_space<vmem>>, %arg27: memref<16x512xf32, #tpu.memory_space<vmem>>, %arg28: memref<16x128xf32, #tpu.memory_space<vmem>>, %arg29: memref<2x128xf32, #tpu.memory_space<vmem>>) attributes {dimension_semantics = [], scalar_prefetch = 0 : i64, scratch_operands = 8 : i64, tpu.core_type = #tpu.core_type<tc>} {
    %c0 = arith.constant 0 : index
    %c0_0 = arith.constant 0 : index
    %0 = vector.load %arg0[%c0, %c0_0] : memref<48x36xf32, #tpu.memory_space<vmem>>, vector<44x36xf32>
    %c0_1 = arith.constant 0 : index
    %c0_2 = arith.constant 0 : index
    %c0_3 = arith.constant 0 : index
    %1 = vector.load %arg1[%c0_1, %c0_2, %c0_3] : memref<5x36x64xf32, #tpu.memory_space<vmem>>, vector<1x36x64xf32>
    %2 = vector.shape_cast %1 : vector<1x36x64xf32> to vector<36x64xf32>
    %cst = arith.constant dense<0.000000e+00> : vector<44x64xf32>
    %3 = tpu.matmul %0, %2, %cst {dimension_numbers = #tpu.dot_dimension_numbers<[1], [0], [0], [1], [0, 0, 1, 1], [], []>} : vector<44x36xf32>, vector<36x64xf32>, vector<44x64xf32> -> vector<44x64xf32>
    %c1 = arith.constant 1 : index
    %c0_4 = arith.constant 0 : index
    %4 = vector.load %arg0[%c1, %c0_4] : memref<48x36xf32, #tpu.memory_space<vmem>>, vector<44x36xf32>
    %c1_5 = arith.constant 1 : index
    %c0_6 = arith.constant 0 : index
    %c0_7 = arith.constant 0 : index
    %5 = vector.load %arg1[%c1_5, %c0_6, %c0_7] : memref<5x36x64xf32, #tpu.memory_space<vmem>>, vector<1x36x64xf32>
    %6 = vector.shape_cast %5 : vector<1x36x64xf32> to vector<36x64xf32>
    %cst_8 = arith.constant dense<0.000000e+00> : vector<44x64xf32>
    %7 = tpu.matmul %4, %6, %cst_8 {dimension_numbers = #tpu.dot_dimension_numbers<[1], [0], [0], [1], [0, 0, 1, 1], [], []>} : vector<44x36xf32>, vector<36x64xf32>, vector<44x64xf32> -> vector<44x64xf32>
    %8 = arith.addf %3, %7 : vector<44x64xf32>
    %c2 = arith.constant 2 : index
    %c0_9 = arith.constant 0 : index
    %9 = vector.load %arg0[%c2, %c0_9] : memref<48x36xf32, #tpu.memory_space<vmem>>, vector<44x36xf32>
    %c2_10 = arith.constant 2 : index
    %c0_11 = arith.constant 0 : index
    %c0_12 = arith.constant 0 : index
    %10 = vector.load %arg1[%c2_10, %c0_11, %c0_12] : memref<5x36x64xf32, #tpu.memory_space<vmem>>, vector<1x36x64xf32>
    %11 = vector.shape_cast %10 : vector<1x36x64xf32> to vector<36x64xf32>
    %cst_13 = arith.constant dense<0.000000e+00> : vector<44x64xf32>
    %12 = tpu.matmul %9, %11, %cst_13 {dimension_numbers = #tpu.dot_dimension_numbers<[1], [0], [0], [1], [0, 0, 1, 1], [], []>} : vector<44x36xf32>, vector<36x64xf32>, vector<44x64xf32> -> vector<44x64xf32>
    %13 = arith.addf %8, %12 : vector<44x64xf32>
    %c3 = arith.constant 3 : index
    %c0_14 = arith.constant 0 : index
    %14 = vector.load %arg0[%c3, %c0_14] : memref<48x36xf32, #tpu.memory_space<vmem>>, vector<44x36xf32>
    %c3_15 = arith.constant 3 : index
    %c0_16 = arith.constant 0 : index
    %c0_17 = arith.constant 0 : index
    %15 = vector.load %arg1[%c3_15, %c0_16, %c0_17] : memref<5x36x64xf32, #tpu.memory_space<vmem>>, vector<1x36x64xf32>
    %16 = vector.shape_cast %15 : vector<1x36x64xf32> to vector<36x64xf32>
    %cst_18 = arith.constant dense<0.000000e+00> : vector<44x64xf32>
    %17 = tpu.matmul %14, %16, %cst_18 {dimension_numbers = #tpu.dot_dimension_numbers<[1], [0], [0], [1], [0, 0, 1, 1], [], []>} : vector<44x36xf32>, vector<36x64xf32>, vector<44x64xf32> -> vector<44x64xf32>
    %18 = arith.addf %13, %17 : vector<44x64xf32>
    %c4 = arith.constant 4 : index
    %c0_19 = arith.constant 0 : index
    %19 = vector.load %arg0[%c4, %c0_19] : memref<48x36xf32, #tpu.memory_space<vmem>>, vector<44x36xf32>
    %c4_20 = arith.constant 4 : index
    %c0_21 = arith.constant 0 : index
    %c0_22 = arith.constant 0 : index
    %20 = vector.load %arg1[%c4_20, %c0_21, %c0_22] : memref<5x36x64xf32, #tpu.memory_space<vmem>>, vector<1x36x64xf32>
    %21 = vector.shape_cast %20 : vector<1x36x64xf32> to vector<36x64xf32>
    %cst_23 = arith.constant dense<0.000000e+00> : vector<44x64xf32>
    %22 = tpu.matmul %19, %21, %cst_23 {dimension_numbers = #tpu.dot_dimension_numbers<[1], [0], [0], [1], [0, 0, 1, 1], [], []>} : vector<44x36xf32>, vector<36x64xf32>, vector<44x64xf32> -> vector<44x64xf32>
    %23 = arith.addf %18, %22 : vector<44x64xf32>
    %c0_24 = arith.constant 0 : index
    %c0_25 = arith.constant 0 : index
    %24 = vector.load %arg2[%c0_24, %c0_25] : memref<1x64xf32, #tpu.memory_space<vmem>>, vector<1x64xf32>
    %25 = vector.broadcast %24 : vector<1x64xf32> to vector<44x64xf32>
    %26 = arith.addf %23, %25 : vector<44x64xf32>
    %cst_26 = arith.constant 0.000000e+00 : f32
    %27 = vector.broadcast %cst_26 : f32 to vector<44x64xf32>
    %28 = arith.maximumf %26, %27 : vector<44x64xf32>
    %c0_27 = arith.constant 0 : index
    %c0_28 = arith.constant 0 : index
    %29 = vector.load %arg22[%c0_27, %c0_28] : memref<48x64xf32, #tpu.memory_space<vmem>>, vector<44x64xf32>
    tpu.vector_store %arg22[%c0_27, %c0_28], %28 {strides = array<i32>} : memref<48x64xf32, #tpu.memory_space<vmem>>, vector<44x64xf32>,
    %c0_29 = arith.constant 0 : index
    %c0_30 = arith.constant 0 : index
    %30 = vector.load %arg22[%c0_29, %c0_30] : memref<48x64xf32, #tpu.memory_space<vmem>>, vector<40x64xf32>
    %c0_31 = arith.constant 0 : index
    %c0_32 = arith.constant 0 : index
    %c0_33 = arith.constant 0 : index
    %31 = vector.load %arg3[%c0_31, %c0_32, %c0_33] : memref<5x64x64xf32, #tpu.memory_space<vmem>>, vector<1x64x64xf32>
    %32 = vector.shape_cast %31 : vector<1x64x64xf32> to vector<64x64xf32>
    %cst_34 = arith.constant dense<0.000000e+00> : vector<40x64xf32>
    %33 = tpu.matmul %30, %32, %cst_34 {dimension_numbers = #tpu.dot_dimension_numbers<[1], [0], [0], [1], [0, 0, 1, 1], [], []>} : vector<40x64xf32>, vector<64x64xf32>, vector<40x64xf32> -> vector<40x64xf32>
    %c1_35 = arith.constant 1 : index
    %c0_36 = arith.constant 0 : index
    %34 = vector.load %arg22[%c1_35, %c0_36] : memref<48x64xf32, #tpu.memory_space<vmem>>, vector<40x64xf32>
    %c1_37 = arith.constant 1 : index
    %c0_38 = arith.constant 0 : index
    %c0_39 = arith.constant 0 : index
    %35 = vector.load %arg3[%c1_37, %c0_38, %c0_39] : memref<5x64x64xf32, #tpu.memory_space<vmem>>, vector<1x64x64xf32>
    %36 = vector.shape_cast %35 : vector<1x64x64xf32> to vector<64x64xf32>
    %cst_40 = arith.constant dense<0.000000e+00> : vector<40x64xf32>
    %37 = tpu.matmul %34, %36, %cst_40 {dimension_numbers = #tpu.dot_dimension_numbers<[1], [0], [0], [1], [0, 0, 1, 1], [], []>} : vector<40x64xf32>, vector<64x64xf32>, vector<40x64xf32> -> vector<40x64xf32>
    %38 = arith.addf %33, %37 : vector<40x64xf32>
    %c2_41 = arith.constant 2 : index
    %c0_42 = arith.constant 0 : index
    %39 = vector.load %arg22[%c2_41, %c0_42] : memref<48x64xf32, #tpu.memory_space<vmem>>, vector<40x64xf32>
    %c2_43 = arith.constant 2 : index
    %c0_44 = arith.constant 0 : index
    %c0_45 = arith.constant 0 : index
    %40 = vector.load %arg3[%c2_43, %c0_44, %c0_45] : memref<5x64x64xf32, #tpu.memory_space<vmem>>, vector<1x64x64xf32>
    %41 = vector.shape_cast %40 : vector<1x64x64xf32> to vector<64x64xf32>
    %cst_46 = arith.constant dense<0.000000e+00> : vector<40x64xf32>
    %42 = tpu.matmul %39, %41, %cst_46 {dimension_numbers = #tpu.dot_dimension_numbers<[1], [0], [0], [1], [0, 0, 1, 1], [], []>} : vector<40x64xf32>, vector<64x64xf32>, vector<40x64xf32> -> vector<40x64xf32>
    %43 = arith.addf %38, %42 : vector<40x64xf32>
    %c3_47 = arith.constant 3 : index
    %c0_48 = arith.constant 0 : index
    %44 = vector.load %arg22[%c3_47, %c0_48] : memref<48x64xf32, #tpu.memory_space<vmem>>, vector<40x64xf32>
    %c3_49 = arith.constant 3 : index
    %c0_50 = arith.constant 0 : index
    %c0_51 = arith.constant 0 : index
    %45 = vector.load %arg3[%c3_49, %c0_50, %c0_51] : memref<5x64x64xf32, #tpu.memory_space<vmem>>, vector<1x64x64xf32>
    %46 = vector.shape_cast %45 : vector<1x64x64xf32> to vector<64x64xf32>
    %cst_52 = arith.constant dense<0.000000e+00> : vector<40x64xf32>
    %47 = tpu.matmul %44, %46, %cst_52 {dimension_numbers = #tpu.dot_dimension_numbers<[1], [0], [0], [1], [0, 0, 1, 1], [], []>} : vector<40x64xf32>, vector<64x64xf32>, vector<40x64xf32> -> vector<40x64xf32>
    %48 = arith.addf %43, %47 : vector<40x64xf32>
    %c4_53 = arith.constant 4 : index
    %c0_54 = arith.constant 0 : index
    %49 = vector.load %arg22[%c4_53, %c0_54] : memref<48x64xf32, #tpu.memory_space<vmem>>, vector<40x64xf32>
    %c4_55 = arith.constant 4 : index
    %c0_56 = arith.constant 0 : index
    %c0_57 = arith.constant 0 : index
    %50 = vector.load %arg3[%c4_55, %c0_56, %c0_57] : memref<5x64x64xf32, #tpu.memory_space<vmem>>, vector<1x64x64xf32>
    %51 = vector.shape_cast %50 : vector<1x64x64xf32> to vector<64x64xf32>
    %cst_58 = arith.constant dense<0.000000e+00> : vector<40x64xf32>
    %52 = tpu.matmul %49, %51, %cst_58 {dimension_numbers = #tpu.dot_dimension_numbers<[1], [0], [0], [1], [0, 0, 1, 1], [], []>} : vector<40x64xf32>, vector<64x64xf32>, vector<40x64xf32> -> vector<40x64xf32>
    %53 = arith.addf %48, %52 : vector<40x64xf32>
    %c0_59 = arith.constant 0 : index
    %c0_60 = arith.constant 0 : index
    %54 = vector.load %arg4[%c0_59, %c0_60] : memref<1x64xf32, #tpu.memory_space<vmem>>, vector<1x64xf32>
    %55 = vector.broadcast %54 : vector<1x64xf32> to vector<40x64xf32>
    %56 = arith.addf %53, %55 : vector<40x64xf32>
    %cst_61 = arith.constant 0.000000e+00 : f32
    %57 = vector.broadcast %cst_61 : f32 to vector<40x64xf32>
    %58 = arith.maximumf %56, %57 : vector<40x64xf32>
    %c0_62 = arith.constant 0 : index
    %c0_63 = arith.constant 0 : index
    %59 = vector.load %arg23[%c0_62, %c0_63] : memref<48x64xf32, #tpu.memory_space<vmem>>, vector<40x64xf32>
    tpu.vector_store %arg23[%c0_62, %c0_63], %58 {strides = array<i32>} : memref<48x64xf32, #tpu.memory_space<vmem>>, vector<40x64xf32>,
    %c0_64 = arith.constant 0 : index
    %c0_65 = arith.constant 0 : index
    %60 = vector.load %arg23[%c0_64, %c0_65] : memref<48x64xf32, #tpu.memory_space<vmem>>, vector<36x64xf32>
    %c0_66 = arith.constant 0 : index
    %c0_67 = arith.constant 0 : index
    %c0_68 = arith.constant 0 : index
    %61 = vector.load %arg5[%c0_66, %c0_67, %c0_68] : memref<5x64x64xf32, #tpu.memory_space<vmem>>, vector<1x64x64xf32>
    %62 = vector.shape_cast %61 : vector<1x64x64xf32> to vector<64x64xf32>
    %cst_69 = arith.constant dense<0.000000e+00> : vector<36x64xf32>
    %63 = tpu.matmul %60, %62, %cst_69 {dimension_numbers = #tpu.dot_dimension_numbers<[1], [0], [0], [1], [0, 0, 1, 1], [], []>} : vector<36x64xf32>, vector<64x64xf32>, vector<36x64xf32> -> vector<36x64xf32>
    %c1_70 = arith.constant 1 : index
    %c0_71 = arith.constant 0 : index
    %64 = vector.load %arg23[%c1_70, %c0_71] : memref<48x64xf32, #tpu.memory_space<vmem>>, vector<36x64xf32>
    %c1_72 = arith.constant 1 : index
    %c0_73 = arith.constant 0 : index
    %c0_74 = arith.constant 0 : index
    %65 = vector.load %arg5[%c1_72, %c0_73, %c0_74] : memref<5x64x64xf32, #tpu.memory_space<vmem>>, vector<1x64x64xf32>
    %66 = vector.shape_cast %65 : vector<1x64x64xf32> to vector<64x64xf32>
    %cst_75 = arith.constant dense<0.000000e+00> : vector<36x64xf32>
    %67 = tpu.matmul %64, %66, %cst_75 {dimension_numbers = #tpu.dot_dimension_numbers<[1], [0], [0], [1], [0, 0, 1, 1], [], []>} : vector<36x64xf32>, vector<64x64xf32>, vector<36x64xf32> -> vector<36x64xf32>
    %68 = arith.addf %63, %67 : vector<36x64xf32>
    %c2_76 = arith.constant 2 : index
    %c0_77 = arith.constant 0 : index
    %69 = vector.load %arg23[%c2_76, %c0_77] : memref<48x64xf32, #tpu.memory_space<vmem>>, vector<36x64xf32>
    %c2_78 = arith.constant 2 : index
    %c0_79 = arith.constant 0 : index
    %c0_80 = arith.constant 0 : index
    %70 = vector.load %arg5[%c2_78, %c0_79, %c0_80] : memref<5x64x64xf32, #tpu.memory_space<vmem>>, vector<1x64x64xf32>
    %71 = vector.shape_cast %70 : vector<1x64x64xf32> to vector<64x64xf32>
    %cst_81 = arith.constant dense<0.000000e+00> : vector<36x64xf32>
    %72 = tpu.matmul %69, %71, %cst_81 {dimension_numbers = #tpu.dot_dimension_numbers<[1], [0], [0], [1], [0, 0, 1, 1], [], []>} : vector<36x64xf32>, vector<64x64xf32>, vector<36x64xf32> -> vector<36x64xf32>
    %73 = arith.addf %68, %72 : vector<36x64xf32>
    %c3_82 = arith.constant 3 : index
    %c0_83 = arith.constant 0 : index
    %74 = vector.load %arg23[%c3_82, %c0_83] : memref<48x64xf32, #tpu.memory_space<vmem>>, vector<36x64xf32>
    %c3_84 = arith.constant 3 : index
    %c0_85 = arith.constant 0 : index
    %c0_86 = arith.constant 0 : index
    %75 = vector.load %arg5[%c3_84, %c0_85, %c0_86] : memref<5x64x64xf32, #tpu.memory_space<vmem>>, vector<1x64x64xf32>
    %76 = vector.shape_cast %75 : vector<1x64x64xf32> to vector<64x64xf32>
    %cst_87 = arith.constant dense<0.000000e+00> : vector<36x64xf32>
    %77 = tpu.matmul %74, %76, %cst_87 {dimension_numbers = #tpu.dot_dimension_numbers<[1], [0], [0], [1], [0, 0, 1, 1], [], []>} : vector<36x64xf32>, vector<64x64xf32>, vector<36x64xf32> -> vector<36x64xf32>
    %78 = arith.addf %73, %77 : vector<36x64xf32>
    %c4_88 = arith.constant 4 : index
    %c0_89 = arith.constant 0 : index
    %79 = vector.load %arg23[%c4_88, %c0_89] : memref<48x64xf32, #tpu.memory_space<vmem>>, vector<36x64xf32>
    %c4_90 = arith.constant 4 : index
    %c0_91 = arith.constant 0 : index
    %c0_92 = arith.constant 0 : index
    %80 = vector.load %arg5[%c4_90, %c0_91, %c0_92] : memref<5x64x64xf32, #tpu.memory_space<vmem>>, vector<1x64x64xf32>
    %81 = vector.shape_cast %80 : vector<1x64x64xf32> to vector<64x64xf32>
    %cst_93 = arith.constant dense<0.000000e+00> : vector<36x64xf32>
    %82 = tpu.matmul %79, %81, %cst_93 {dimension_numbers = #tpu.dot_dimension_numbers<[1], [0], [0], [1], [0, 0, 1, 1], [], []>} : vector<36x64xf32>, vector<64x64xf32>, vector<36x64xf32> -> vector<36x64xf32>
    %83 = arith.addf %78, %82 : vector<36x64xf32>
    %c0_94 = arith.constant 0 : index
    %c0_95 = arith.constant 0 : index
    %84 = vector.load %arg6[%c0_94, %c0_95] : memref<1x64xf32, #tpu.memory_space<vmem>>, vector<1x64xf32>
    %85 = vector.broadcast %84 : vector<1x64xf32> to vector<36x64xf32>
    %86 = arith.addf %83, %85 : vector<36x64xf32>
    %cst_96 = arith.constant 0.000000e+00 : f32
    %87 = vector.broadcast %cst_96 : f32 to vector<36x64xf32>
    %88 = arith.maximumf %86, %87 : vector<36x64xf32>
    %c0_97 = arith.constant 0 : index
    %c0_98 = arith.constant 0 : index
    %89 = vector.load %arg24[%c0_97, %c0_98] : memref<48x64xf32, #tpu.memory_space<vmem>>, vector<36x64xf32>
    tpu.vector_store %arg24[%c0_97, %c0_98], %88 {strides = array<i32>} : memref<48x64xf32, #tpu.memory_space<vmem>>, vector<36x64xf32>,
    %c0_99 = arith.constant 0 : index
    %c0_100 = arith.constant 0 : index
    %c0_101 = arith.constant 0 : index
    %90 = vector.load %arg7[%c0_99, %c0_100, %c0_101] : memref<5x64x64xf32, #tpu.memory_space<vmem>>, vector<1x64x64xf32>
    %91 = vector.shape_cast %90 : vector<1x64x64xf32> to vector<64x64xf32>
    %c0_102 = arith.constant 0 : index
    %c0_103 = arith.constant 0 : index
    %92 = vector.load %arg24[%c0_102, %c0_103] : memref<48x64xf32, #tpu.memory_space<vmem>>, vector<8x64xf32>
    %cst_104 = arith.constant dense<0.000000e+00> : vector<64x8xf32>
    %93 = tpu.matmul %91, %92, %cst_104 {dimension_numbers = #tpu.dot_dimension_numbers<[1], [1], [0], [0], [0, 0, 1, 0], [], []>} : vector<64x64xf32>, vector<8x64xf32>, vector<64x8xf32> -> vector<64x8xf32>
    %c1_105 = arith.constant 1 : index
    %c0_106 = arith.constant 0 : index
    %c0_107 = arith.constant 0 : index
    %94 = vector.load %arg7[%c1_105, %c0_106, %c0_107] : memref<5x64x64xf32, #tpu.memory_space<vmem>>, vector<1x64x64xf32>
    %95 = vector.shape_cast %94 : vector<1x64x64xf32> to vector<64x64xf32>
    %c1_108 = arith.constant 1 : index
    %c0_109 = arith.constant 0 : index
    %96 = vector.load %arg24[%c1_108, %c0_109] : memref<48x64xf32, #tpu.memory_space<vmem>>, vector<8x64xf32>
    %cst_110 = arith.constant dense<0.000000e+00> : vector<64x8xf32>
    %97 = tpu.matmul %95, %96, %cst_110 {dimension_numbers = #tpu.dot_dimension_numbers<[1], [1], [0], [0], [0, 0, 1, 0], [], []>} : vector<64x64xf32>, vector<8x64xf32>, vector<64x8xf32> -> vector<64x8xf32>
    %98 = arith.addf %93, %97 : vector<64x8xf32>
    %c2_111 = arith.constant 2 : index
    %c0_112 = arith.constant 0 : index
    %c0_113 = arith.constant 0 : index
    %99 = vector.load %arg7[%c2_111, %c0_112, %c0_113] : memref<5x64x64xf32, #tpu.memory_space<vmem>>, vector<1x64x64xf32>
    %100 = vector.shape_cast %99 : vector<1x64x64xf32> to vector<64x64xf32>
    %c2_114 = arith.constant 2 : index
    %c0_115 = arith.constant 0 : index
    %101 = vector.load %arg24[%c2_114, %c0_115] : memref<48x64xf32, #tpu.memory_space<vmem>>, vector<8x64xf32>
    %cst_116 = arith.constant dense<0.000000e+00> : vector<64x8xf32>
    %102 = tpu.matmul %100, %101, %cst_116 {dimension_numbers = #tpu.dot_dimension_numbers<[1], [1], [0], [0], [0, 0, 1, 0], [], []>} : vector<64x64xf32>, vector<8x64xf32>, vector<64x8xf32> -> vector<64x8xf32>
    %103 = arith.addf %98, %102 : vector<64x8xf32>
    %c3_117 = arith.constant 3 : index
    %c0_118 = arith.constant 0 : index
    %c0_119 = arith.constant 0 : index
    %104 = vector.load %arg7[%c3_117, %c0_118, %c0_119] : memref<5x64x64xf32, #tpu.memory_space<vmem>>, vector<1x64x64xf32>
    %105 = vector.shape_cast %104 : vector<1x64x64xf32> to vector<64x64xf32>
    %c3_120 = arith.constant 3 : index
    %c0_121 = arith.constant 0 : index
    %106 = vector.load %arg24[%c3_120, %c0_121] : memref<48x64xf32, #tpu.memory_space<vmem>>, vector<8x64xf32>
    %cst_122 = arith.constant dense<0.000000e+00> : vector<64x8xf32>
    %107 = tpu.matmul %105, %106, %cst_122 {dimension_numbers = #tpu.dot_dimension_numbers<[1], [1], [0], [0], [0, 0, 1, 0], [], []>} : vector<64x64xf32>, vector<8x64xf32>, vector<64x8xf32> -> vector<64x8xf32>
    %108 = arith.addf %103, %107 : vector<64x8xf32>
    %c4_123 = arith.constant 4 : index
    %c0_124 = arith.constant 0 : index
    %c0_125 = arith.constant 0 : index
    %109 = vector.load %arg7[%c4_123, %c0_124, %c0_125] : memref<5x64x64xf32, #tpu.memory_space<vmem>>, vector<1x64x64xf32>
    %110 = vector.shape_cast %109 : vector<1x64x64xf32> to vector<64x64xf32>
    %c4_126 = arith.constant 4 : index
    %c0_127 = arith.constant 0 : index
    %111 = vector.load %arg24[%c4_126, %c0_127] : memref<48x64xf32, #tpu.memory_space<vmem>>, vector<8x64xf32>
    %cst_128 = arith.constant dense<0.000000e+00> : vector<64x8xf32>
    %112 = tpu.matmul %110, %111, %cst_128 {dimension_numbers = #tpu.dot_dimension_numbers<[1], [1], [0], [0], [0, 0, 1, 0], [], []>} : vector<64x64xf32>, vector<8x64xf32>, vector<64x8xf32> -> vector<64x8xf32>
    %113 = arith.addf %108, %112 : vector<64x8xf32>
    %c0_129 = arith.constant 0 : index
    %c0_130 = arith.constant 0 : index
    %114 = vector.load %arg8[%c0_129, %c0_130] : memref<64x1xf32, #tpu.memory_space<vmem>>, vector<64x1xf32>
    %115 = vector.broadcast %114 : vector<64x1xf32> to vector<64x8xf32>
    %116 = arith.addf %113, %115 : vector<64x8xf32>
    %cst_131 = arith.constant 0.000000e+00 : f32
    %117 = vector.broadcast %cst_131 : f32 to vector<64x8xf32>
    %118 = arith.maximumf %116, %117 : vector<64x8xf32>
    %c0_132 = arith.constant 0 : index
    %c0_133 = arith.constant 0 : index
    %119 = vector.load %arg25[%c0_132, %c0_133] : memref<128x8xf32, #tpu.memory_space<vmem>>, vector<64x8xf32>
    tpu.vector_store %arg25[%c0_132, %c0_133], %118 {strides = array<i32>} : memref<128x8xf32, #tpu.memory_space<vmem>>, vector<64x8xf32>,
    %c0_134 = arith.constant 0 : index
    %c0_135 = arith.constant 0 : index
    %c0_136 = arith.constant 0 : index
    %120 = vector.load %arg7[%c0_134, %c0_135, %c0_136] : memref<5x64x64xf32, #tpu.memory_space<vmem>>, vector<1x64x64xf32>
    %121 = vector.shape_cast %120 : vector<1x64x64xf32> to vector<64x64xf32>
    %c24 = arith.constant 24 : index
    %c0_137 = arith.constant 0 : index
    %122 = vector.load %arg24[%c24, %c0_137] : memref<48x64xf32, #tpu.memory_space<vmem>>, vector<8x64xf32>
    %cst_138 = arith.constant dense<0.000000e+00> : vector<64x8xf32>
    %123 = tpu.matmul %121, %122, %cst_138 {dimension_numbers = #tpu.dot_dimension_numbers<[1], [1], [0], [0], [0, 0, 1, 0], [], []>} : vector<64x64xf32>, vector<8x64xf32>, vector<64x8xf32> -> vector<64x8xf32>
    %c1_139 = arith.constant 1 : index
    %c0_140 = arith.constant 0 : index
    %c0_141 = arith.constant 0 : index
    %124 = vector.load %arg7[%c1_139, %c0_140, %c0_141] : memref<5x64x64xf32, #tpu.memory_space<vmem>>, vector<1x64x64xf32>
    %125 = vector.shape_cast %124 : vector<1x64x64xf32> to vector<64x64xf32>
    %c25 = arith.constant 25 : index
    %c0_142 = arith.constant 0 : index
    %126 = vector.load %arg24[%c25, %c0_142] : memref<48x64xf32, #tpu.memory_space<vmem>>, vector<8x64xf32>
    %cst_143 = arith.constant dense<0.000000e+00> : vector<64x8xf32>
    %127 = tpu.matmul %125, %126, %cst_143 {dimension_numbers = #tpu.dot_dimension_numbers<[1], [1], [0], [0], [0, 0, 1, 0], [], []>} : vector<64x64xf32>, vector<8x64xf32>, vector<64x8xf32> -> vector<64x8xf32>
    %128 = arith.addf %123, %127 : vector<64x8xf32>
    %c2_144 = arith.constant 2 : index
    %c0_145 = arith.constant 0 : index
    %c0_146 = arith.constant 0 : index
    %129 = vector.load %arg7[%c2_144, %c0_145, %c0_146] : memref<5x64x64xf32, #tpu.memory_space<vmem>>, vector<1x64x64xf32>
    %130 = vector.shape_cast %129 : vector<1x64x64xf32> to vector<64x64xf32>
    %c26 = arith.constant 26 : index
    %c0_147 = arith.constant 0 : index
    %131 = vector.load %arg24[%c26, %c0_147] : memref<48x64xf32, #tpu.memory_space<vmem>>, vector<8x64xf32>
    %cst_148 = arith.constant dense<0.000000e+00> : vector<64x8xf32>
    %132 = tpu.matmul %130, %131, %cst_148 {dimension_numbers = #tpu.dot_dimension_numbers<[1], [1], [0], [0], [0, 0, 1, 0], [], []>} : vector<64x64xf32>, vector<8x64xf32>, vector<64x8xf32> -> vector<64x8xf32>
    %133 = arith.addf %128, %132 : vector<64x8xf32>
    %c3_149 = arith.constant 3 : index
    %c0_150 = arith.constant 0 : index
    %c0_151 = arith.constant 0 : index
    %134 = vector.load %arg7[%c3_149, %c0_150, %c0_151] : memref<5x64x64xf32, #tpu.memory_space<vmem>>, vector<1x64x64xf32>
    %135 = vector.shape_cast %134 : vector<1x64x64xf32> to vector<64x64xf32>
    %c27 = arith.constant 27 : index
    %c0_152 = arith.constant 0 : index
    %136 = vector.load %arg24[%c27, %c0_152] : memref<48x64xf32, #tpu.memory_space<vmem>>, vector<8x64xf32>
    %cst_153 = arith.constant dense<0.000000e+00> : vector<64x8xf32>
    %137 = tpu.matmul %135, %136, %cst_153 {dimension_numbers = #tpu.dot_dimension_numbers<[1], [1], [0], [0], [0, 0, 1, 0], [], []>} : vector<64x64xf32>, vector<8x64xf32>, vector<64x8xf32> -> vector<64x8xf32>
    %138 = arith.addf %133, %137 : vector<64x8xf32>
    %c4_154 = arith.constant 4 : index
    %c0_155 = arith.constant 0 : index
    %c0_156 = arith.constant 0 : index
    %139 = vector.load %arg7[%c4_154, %c0_155, %c0_156] : memref<5x64x64xf32, #tpu.memory_space<vmem>>, vector<1x64x64xf32>
    %140 = vector.shape_cast %139 : vector<1x64x64xf32> to vector<64x64xf32>
    %c28 = arith.constant 28 : index
    %c0_157 = arith.constant 0 : index
    %141 = vector.load %arg24[%c28, %c0_157] : memref<48x64xf32, #tpu.memory_space<vmem>>, vector<8x64xf32>
    %cst_158 = arith.constant dense<0.000000e+00> : vector<64x8xf32>
    %142 = tpu.matmul %140, %141, %cst_158 {dimension_numbers = #tpu.dot_dimension_numbers<[1], [1], [0], [0], [0, 0, 1, 0], [], []>} : vector<64x64xf32>, vector<8x64xf32>, vector<64x8xf32> -> vector<64x8xf32>
    %143 = arith.addf %138, %142 : vector<64x8xf32>
    %c0_159 = arith.constant 0 : index
    %c0_160 = arith.constant 0 : index
    %144 = vector.load %arg8[%c0_159, %c0_160] : memref<64x1xf32, #tpu.memory_space<vmem>>, vector<64x1xf32>
    %145 = vector.broadcast %144 : vector<64x1xf32> to vector<64x8xf32>
    %146 = arith.addf %143, %145 : vector<64x8xf32>
    %cst_161 = arith.constant 0.000000e+00 : f32
    %147 = vector.broadcast %cst_161 : f32 to vector<64x8xf32>
    %148 = arith.maximumf %146, %147 : vector<64x8xf32>
    %c64 = arith.constant 64 : index
    %c0_162 = arith.constant 0 : index
    %149 = vector.load %arg25[%c64, %c0_162] : memref<128x8xf32, #tpu.memory_space<vmem>>, vector<64x8xf32>
    tpu.vector_store %arg25[%c64, %c0_162], %148 {strides = array<i32>} : memref<128x8xf32, #tpu.memory_space<vmem>>, vector<64x8xf32>,
    %c0_163 = arith.constant 0 : index
    %c0_164 = arith.constant 0 : index
    %150 = tpu.strided_load %arg25[%c0_163, %c0_164] {strides = array<i32: 8, 1>} : memref<128x8xf32, #tpu.memory_space<vmem>>, vector<16x8xf32>
    %c0_165 = arith.constant 0 : index
    %c0_166 = arith.constant 0 : index
    %151 = vector.load %arg26[%c0_165, %c0_166] : memref<16x64xf32, #tpu.memory_space<vmem>>, vector<16x8xf32>
    tpu.vector_store %arg26[%c0_165, %c0_166], %150 {strides = array<i32>} : memref<16x64xf32, #tpu.memory_space<vmem>>, vector<16x8xf32>,
    %c1_167 = arith.constant 1 : index
    %c0_168 = arith.constant 0 : index
    %152 = tpu.strided_load %arg25[%c1_167, %c0_168] {strides = array<i32: 8, 1>} : memref<128x8xf32, #tpu.memory_space<vmem>>, vector<16x8xf32>
    %c0_169 = arith.constant 0 : index
    %c8 = arith.constant 8 : index
    %153 = vector.load %arg26[%c0_169, %c8] : memref<16x64xf32, #tpu.memory_space<vmem>>, vector<16x8xf32>
    tpu.vector_store %arg26[%c0_169, %c8], %152 {strides = array<i32>} : memref<16x64xf32, #tpu.memory_space<vmem>>, vector<16x8xf32>,
    %c2_170 = arith.constant 2 : index
    %c0_171 = arith.constant 0 : index
    %154 = tpu.strided_load %arg25[%c2_170, %c0_171] {strides = array<i32: 8, 1>} : memref<128x8xf32, #tpu.memory_space<vmem>>, vector<16x8xf32>
    %c0_172 = arith.constant 0 : index
    %c16 = arith.constant 16 : index
    %155 = vector.load %arg26[%c0_172, %c16] : memref<16x64xf32, #tpu.memory_space<vmem>>, vector<16x8xf32>
    tpu.vector_store %arg26[%c0_172, %c16], %154 {strides = array<i32>} : memref<16x64xf32, #tpu.memory_space<vmem>>, vector<16x8xf32>,
    %c3_173 = arith.constant 3 : index
    %c0_174 = arith.constant 0 : index
    %156 = tpu.strided_load %arg25[%c3_173, %c0_174] {strides = array<i32: 8, 1>} : memref<128x8xf32, #tpu.memory_space<vmem>>, vector<16x8xf32>
    %c0_175 = arith.constant 0 : index
    %c24_176 = arith.constant 24 : index
    %157 = vector.load %arg26[%c0_175, %c24_176] : memref<16x64xf32, #tpu.memory_space<vmem>>, vector<16x8xf32>
    tpu.vector_store %arg26[%c0_175, %c24_176], %156 {strides = array<i32>} : memref<16x64xf32, #tpu.memory_space<vmem>>, vector<16x8xf32>,
    %c4_177 = arith.constant 4 : index
    %c0_178 = arith.constant 0 : index
    %158 = tpu.strided_load %arg25[%c4_177, %c0_178] {strides = array<i32: 8, 1>} : memref<128x8xf32, #tpu.memory_space<vmem>>, vector<16x8xf32>
    %c0_179 = arith.constant 0 : index
    %c32 = arith.constant 32 : index
    %159 = vector.load %arg26[%c0_179, %c32] : memref<16x64xf32, #tpu.memory_space<vmem>>, vector<16x8xf32>
    tpu.vector_store %arg26[%c0_179, %c32], %158 {strides = array<i32>} : memref<16x64xf32, #tpu.memory_space<vmem>>, vector<16x8xf32>,
    %c5 = arith.constant 5 : index
    %c0_180 = arith.constant 0 : index
    %160 = tpu.strided_load %arg25[%c5, %c0_180] {strides = array<i32: 8, 1>} : memref<128x8xf32, #tpu.memory_space<vmem>>, vector<16x8xf32>
    %c0_181 = arith.constant 0 : index
    %c40 = arith.constant 40 : index
    %161 = vector.load %arg26[%c0_181, %c40] : memref<16x64xf32, #tpu.memory_space<vmem>>, vector<16x8xf32>
    tpu.vector_store %arg26[%c0_181, %c40], %160 {strides = array<i32>} : memref<16x64xf32, #tpu.memory_space<vmem>>, vector<16x8xf32>,
    %c6 = arith.constant 6 : index
    %c0_182 = arith.constant 0 : index
    %162 = tpu.strided_load %arg25[%c6, %c0_182] {strides = array<i32: 8, 1>} : memref<128x8xf32, #tpu.memory_space<vmem>>, vector<16x8xf32>
    %c0_183 = arith.constant 0 : index
    %c48 = arith.constant 48 : index
    %163 = vector.load %arg26[%c0_183, %c48] : memref<16x64xf32, #tpu.memory_space<vmem>>, vector<16x8xf32>
    tpu.vector_store %arg26[%c0_183, %c48], %162 {strides = array<i32>} : memref<16x64xf32, #tpu.memory_space<vmem>>, vector<16x8xf32>,
    %c7 = arith.constant 7 : index
    %c0_184 = arith.constant 0 : index
    %164 = tpu.strided_load %arg25[%c7, %c0_184] {strides = array<i32: 8, 1>} : memref<128x8xf32, #tpu.memory_space<vmem>>, vector<16x8xf32>
    %c0_185 = arith.constant 0 : index
    %c56 = arith.constant 56 : index
    %165 = vector.load %arg26[%c0_185, %c56] : memref<16x64xf32, #tpu.memory_space<vmem>>, vector<16x8xf32>
    tpu.vector_store %arg26[%c0_185, %c56], %164 {strides = array<i32>} : memref<16x64xf32, #tpu.memory_space<vmem>>, vector<16x8xf32>,
    %c0_186 = arith.constant 0 : index
    %c0_187 = arith.constant 0 : index
    %166 = vector.load %arg26[%c0_186, %c0_187] : memref<16x64xf32, #tpu.memory_space<vmem>>, vector<16x64xf32>
    %c0_188 = arith.constant 0 : index
    %c0_189 = arith.constant 0 : index
    %167 = vector.load %arg9[%c0_188, %c0_189] : memref<64x512xf32, #tpu.memory_space<vmem>>, vector<64x512xf32>
    %cst_190 = arith.constant dense<0.000000e+00> : vector<16x512xf32>
    %168 = tpu.matmul %166, %167, %cst_190 {dimension_numbers = #tpu.dot_dimension_numbers<[1], [0], [0], [1], [0, 0, 1, 1], [], []>} : vector<16x64xf32>, vector<64x512xf32>, vector<16x512xf32> -> vector<16x512xf32>
    %c0_191 = arith.constant 0 : index
    %c0_192 = arith.constant 0 : index
    %169 = vector.load %arg11[%c0_191, %c0_192] : memref<1x512xf32, #tpu.memory_space<vmem>>, vector<1x512xf32>
    %170 = vector.broadcast %169 : vector<1x512xf32> to vector<16x512xf32>
    %171 = arith.addf %168, %170 : vector<16x512xf32>
    %c0_193 = arith.constant 0 : index
    %c0_194 = arith.constant 0 : index
    %172 = vector.load %arg27[%c0_193, %c0_194] : memref<16x512xf32, #tpu.memory_space<vmem>>, vector<16x512xf32>
    tpu.vector_store %arg27[%c0_193, %c0_194], %171 {strides = array<i32>} : memref<16x512xf32, #tpu.memory_space<vmem>>, vector<16x512xf32>,
    %c0_195 = arith.constant 0 : index
    %c0_196 = arith.constant 0 : index
    %173 = vector.load %arg17[%c0_195, %c0_196] : memref<2x128xf32, #tpu.memory_space<vmem>>, vector<2x128xf32>
    %c0_197 = arith.constant 0 : index
    %c0_198 = arith.constant 0 : index
    %174 = vector.load %arg18[%c0_197, %c0_198] : memref<2x128xf32, #tpu.memory_space<vmem>>, vector<2x128xf32>
    %c0_199 = arith.constant 0 : index
    %c0_200 = arith.constant 0 : index
    %175 = vector.load %arg27[%c0_199, %c0_200] : memref<16x512xf32, #tpu.memory_space<vmem>>, vector<2x512xf32>
    %c0_201 = arith.constant 0 : index
    %c0_202 = arith.constant 0 : index
    %176 = vector.load %arg10[%c0_201, %c0_202] : memref<128x512xf32, #tpu.memory_space<vmem>>, vector<128x512xf32>
    %cst_203 = arith.constant dense<0.000000e+00> : vector<2x512xf32>
    %177 = tpu.matmul %173, %176, %cst_203 {dimension_numbers = #tpu.dot_dimension_numbers<[1], [0], [0], [1], [0, 0, 1, 1], [], []>} : vector<2x128xf32>, vector<128x512xf32>, vector<2x512xf32> -> vector<2x512xf32>
    %178 = arith.addf %175, %177 : vector<2x512xf32>
    %179 = vector.extract_strided_slice %178 {offsets = [0, 0], sizes = [2, 128], strides = [1, 1]} : vector<2x512xf32> to vector<2x128xf32>
    %180 = arith.negf %179 : vector<2x128xf32>
    %181 = math.exp %180 : vector<2x128xf32>
    %cst_204 = arith.constant 1.000000e+00 : f32
    %182 = vector.broadcast %cst_204 : f32 to vector<2x128xf32>
    %183 = arith.addf %182, %181 : vector<2x128xf32>
    %184 = arith.divf %182, %183 : vector<2x128xf32>
    %185 = vector.extract_strided_slice %178 {offsets = [0, 128], sizes = [2, 128], strides = [1, 1]} : vector<2x512xf32> to vector<2x128xf32>
    %186 = arith.negf %185 : vector<2x128xf32>
    %187 = math.exp %186 : vector<2x128xf32>
    %cst_205 = arith.constant 1.000000e+00 : f32
    %188 = vector.broadcast %cst_205 : f32 to vector<2x128xf32>
    %189 = arith.addf %188, %187 : vector<2x128xf32>
    %190 = arith.divf %188, %189 : vector<2x128xf32>
    %191 = vector.extract_strided_slice %178 {offsets = [0, 256], sizes = [2, 128], strides = [1, 1]} : vector<2x512xf32> to vector<2x128xf32>
    %192 = math.tanh %191 : vector<2x128xf32>
    %193 = vector.extract_strided_slice %178 {offsets = [0, 384], sizes = [2, 128], strides = [1, 1]} : vector<2x512xf32> to vector<2x128xf32>
    %194 = arith.negf %193 : vector<2x128xf32>
    %195 = math.exp %194 : vector<2x128xf32>
    %cst_206 = arith.constant 1.000000e+00 : f32
    %196 = vector.broadcast %cst_206 : f32 to vector<2x128xf32>
    %197 = arith.addf %196, %195 : vector<2x128xf32>
    %198 = arith.divf %196, %197 : vector<2x128xf32>
    %199 = arith.mulf %190, %174 : vector<2x128xf32>
    %200 = arith.mulf %184, %192 : vector<2x128xf32>
    %201 = arith.addf %199, %200 : vector<2x128xf32>
    %202 = math.tanh %201 : vector<2x128xf32>
    %203 = arith.mulf %198, %202 : vector<2x128xf32>
    %c0_207 = arith.constant 0 : index
    %c0_208 = arith.constant 0 : index
    %204 = vector.load %arg28[%c0_207, %c0_208] : memref<16x128xf32, #tpu.memory_space<vmem>>, vector<2x128xf32>
    tpu.vector_store %arg28[%c0_207, %c0_208], %203 {strides = array<i32>} : memref<16x128xf32, #tpu.memory_space<vmem>>, vector<2x128xf32>,
    %c2_209 = arith.constant 2 : index
    %c0_210 = arith.constant 0 : index
    %205 = vector.load %arg27[%c2_209, %c0_210] : memref<16x512xf32, #tpu.memory_space<vmem>>, vector<2x512xf32>
    %c0_211 = arith.constant 0 : index
    %c0_212 = arith.constant 0 : index
    %206 = vector.load %arg10[%c0_211, %c0_212] : memref<128x512xf32, #tpu.memory_space<vmem>>, vector<128x512xf32>
    %cst_213 = arith.constant dense<0.000000e+00> : vector<2x512xf32>
    %207 = tpu.matmul %203, %206, %cst_213 {dimension_numbers = #tpu.dot_dimension_numbers<[1], [0], [0], [1], [0, 0, 1, 1], [], []>} : vector<2x128xf32>, vector<128x512xf32>, vector<2x512xf32> -> vector<2x512xf32>
    %208 = arith.addf %205, %207 : vector<2x512xf32>
    %209 = vector.extract_strided_slice %208 {offsets = [0, 0], sizes = [2, 128], strides = [1, 1]} : vector<2x512xf32> to vector<2x128xf32>
    %210 = arith.negf %209 : vector<2x128xf32>
    %211 = math.exp %210 : vector<2x128xf32>
    %cst_214 = arith.constant 1.000000e+00 : f32
    %212 = vector.broadcast %cst_214 : f32 to vector<2x128xf32>
    %213 = arith.addf %212, %211 : vector<2x128xf32>
    %214 = arith.divf %212, %213 : vector<2x128xf32>
    %215 = vector.extract_strided_slice %208 {offsets = [0, 128], sizes = [2, 128], strides = [1, 1]} : vector<2x512xf32> to vector<2x128xf32>
    %216 = arith.negf %215 : vector<2x128xf32>
    %217 = math.exp %216 : vector<2x128xf32>
    %cst_215 = arith.constant 1.000000e+00 : f32
    %218 = vector.broadcast %cst_215 : f32 to vector<2x128xf32>
    %219 = arith.addf %218, %217 : vector<2x128xf32>
    %220 = arith.divf %218, %219 : vector<2x128xf32>
    %221 = vector.extract_strided_slice %208 {offsets = [0, 256], sizes = [2, 128], strides = [1, 1]} : vector<2x512xf32> to vector<2x128xf32>
    %222 = math.tanh %221 : vector<2x128xf32>
    %223 = vector.extract_strided_slice %208 {offsets = [0, 384], sizes = [2, 128], strides = [1, 1]} : vector<2x512xf32> to vector<2x128xf32>
    %224 = arith.negf %223 : vector<2x128xf32>
    %225 = math.exp %224 : vector<2x128xf32>
    %cst_216 = arith.constant 1.000000e+00 : f32
    %226 = vector.broadcast %cst_216 : f32 to vector<2x128xf32>
    %227 = arith.addf %226, %225 : vector<2x128xf32>
    %228 = arith.divf %226, %227 : vector<2x128xf32>
    %229 = arith.mulf %220, %201 : vector<2x128xf32>
    %230 = arith.mulf %214, %222 : vector<2x128xf32>
    %231 = arith.addf %229, %230 : vector<2x128xf32>
    %232 = math.tanh %231 : vector<2x128xf32>
    %233 = arith.mulf %228, %232 : vector<2x128xf32>
    %c2_217 = arith.constant 2 : index
    %c0_218 = arith.constant 0 : index
    %234 = vector.load %arg28[%c2_217, %c0_218] : memref<16x128xf32, #tpu.memory_space<vmem>>, vector<2x128xf32>
    tpu.vector_store %arg28[%c2_217, %c0_218], %233 {strides = array<i32>} : memref<16x128xf32, #tpu.memory_space<vmem>>, vector<2x128xf32>,
    %c4_219 = arith.constant 4 : index
    %c0_220 = arith.constant 0 : index
    %235 = vector.load %arg27[%c4_219, %c0_220] : memref<16x512xf32, #tpu.memory_space<vmem>>, vector<2x512xf32>
    %c0_221 = arith.constant 0 : index
    %c0_222 = arith.constant 0 : index
    %236 = vector.load %arg10[%c0_221, %c0_222] : memref<128x512xf32, #tpu.memory_space<vmem>>, vector<128x512xf32>
    %cst_223 = arith.constant dense<0.000000e+00> : vector<2x512xf32>
    %237 = tpu.matmul %233, %236, %cst_223 {dimension_numbers = #tpu.dot_dimension_numbers<[1], [0], [0], [1], [0, 0, 1, 1], [], []>} : vector<2x128xf32>, vector<128x512xf32>, vector<2x512xf32> -> vector<2x512xf32>
    %238 = arith.addf %235, %237 : vector<2x512xf32>
    %239 = vector.extract_strided_slice %238 {offsets = [0, 0], sizes = [2, 128], strides = [1, 1]} : vector<2x512xf32> to vector<2x128xf32>
    %240 = arith.negf %239 : vector<2x128xf32>
    %241 = math.exp %240 : vector<2x128xf32>
    %cst_224 = arith.constant 1.000000e+00 : f32
    %242 = vector.broadcast %cst_224 : f32 to vector<2x128xf32>
    %243 = arith.addf %242, %241 : vector<2x128xf32>
    %244 = arith.divf %242, %243 : vector<2x128xf32>
    %245 = vector.extract_strided_slice %238 {offsets = [0, 128], sizes = [2, 128], strides = [1, 1]} : vector<2x512xf32> to vector<2x128xf32>
    %246 = arith.negf %245 : vector<2x128xf32>
    %247 = math.exp %246 : vector<2x128xf32>
    %cst_225 = arith.constant 1.000000e+00 : f32
    %248 = vector.broadcast %cst_225 : f32 to vector<2x128xf32>
    %249 = arith.addf %248, %247 : vector<2x128xf32>
    %250 = arith.divf %248, %249 : vector<2x128xf32>
    %251 = vector.extract_strided_slice %238 {offsets = [0, 256], sizes = [2, 128], strides = [1, 1]} : vector<2x512xf32> to vector<2x128xf32>
    %252 = math.tanh %251 : vector<2x128xf32>
    %253 = vector.extract_strided_slice %238 {offsets = [0, 384], sizes = [2, 128], strides = [1, 1]} : vector<2x512xf32> to vector<2x128xf32>
    %254 = arith.negf %253 : vector<2x128xf32>
    %255 = math.exp %254 : vector<2x128xf32>
    %cst_226 = arith.constant 1.000000e+00 : f32
    %256 = vector.broadcast %cst_226 : f32 to vector<2x128xf32>
    %257 = arith.addf %256, %255 : vector<2x128xf32>
    %258 = arith.divf %256, %257 : vector<2x128xf32>
    %259 = arith.mulf %250, %231 : vector<2x128xf32>
    %260 = arith.mulf %244, %252 : vector<2x128xf32>
    %261 = arith.addf %259, %260 : vector<2x128xf32>
    %262 = math.tanh %261 : vector<2x128xf32>
    %263 = arith.mulf %258, %262 : vector<2x128xf32>
    %c4_227 = arith.constant 4 : index
    %c0_228 = arith.constant 0 : index
    %264 = vector.load %arg28[%c4_227, %c0_228] : memref<16x128xf32, #tpu.memory_space<vmem>>, vector<2x128xf32>
    tpu.vector_store %arg28[%c4_227, %c0_228], %263 {strides = array<i32>} : memref<16x128xf32, #tpu.memory_space<vmem>>, vector<2x128xf32>,
    %c6_229 = arith.constant 6 : index
    %c0_230 = arith.constant 0 : index
    %265 = vector.load %arg27[%c6_229, %c0_230] : memref<16x512xf32, #tpu.memory_space<vmem>>, vector<2x512xf32>
    %c0_231 = arith.constant 0 : index
    %c0_232 = arith.constant 0 : index
    %266 = vector.load %arg10[%c0_231, %c0_232] : memref<128x512xf32, #tpu.memory_space<vmem>>, vector<128x512xf32>
    %cst_233 = arith.constant dense<0.000000e+00> : vector<2x512xf32>
    %267 = tpu.matmul %263, %266, %cst_233 {dimension_numbers = #tpu.dot_dimension_numbers<[1], [0], [0], [1], [0, 0, 1, 1], [], []>} : vector<2x128xf32>, vector<128x512xf32>, vector<2x512xf32> -> vector<2x512xf32>
    %268 = arith.addf %265, %267 : vector<2x512xf32>
    %269 = vector.extract_strided_slice %268 {offsets = [0, 0], sizes = [2, 128], strides = [1, 1]} : vector<2x512xf32> to vector<2x128xf32>
    %270 = arith.negf %269 : vector<2x128xf32>
    %271 = math.exp %270 : vector<2x128xf32>
    %cst_234 = arith.constant 1.000000e+00 : f32
    %272 = vector.broadcast %cst_234 : f32 to vector<2x128xf32>
    %273 = arith.addf %272, %271 : vector<2x128xf32>
    %274 = arith.divf %272, %273 : vector<2x128xf32>
    %275 = vector.extract_strided_slice %268 {offsets = [0, 128], sizes = [2, 128], strides = [1, 1]} : vector<2x512xf32> to vector<2x128xf32>
    %276 = arith.negf %275 : vector<2x128xf32>
    %277 = math.exp %276 : vector<2x128xf32>
    %cst_235 = arith.constant 1.000000e+00 : f32
    %278 = vector.broadcast %cst_235 : f32 to vector<2x128xf32>
    %279 = arith.addf %278, %277 : vector<2x128xf32>
    %280 = arith.divf %278, %279 : vector<2x128xf32>
    %281 = vector.extract_strided_slice %268 {offsets = [0, 256], sizes = [2, 128], strides = [1, 1]} : vector<2x512xf32> to vector<2x128xf32>
    %282 = math.tanh %281 : vector<2x128xf32>
    %283 = vector.extract_strided_slice %268 {offsets = [0, 384], sizes = [2, 128], strides = [1, 1]} : vector<2x512xf32> to vector<2x128xf32>
    %284 = arith.negf %283 : vector<2x128xf32>
    %285 = math.exp %284 : vector<2x128xf32>
    %cst_236 = arith.constant 1.000000e+00 : f32
    %286 = vector.broadcast %cst_236 : f32 to vector<2x128xf32>
    %287 = arith.addf %286, %285 : vector<2x128xf32>
    %288 = arith.divf %286, %287 : vector<2x128xf32>
    %289 = arith.mulf %280, %261 : vector<2x128xf32>
    %290 = arith.mulf %274, %282 : vector<2x128xf32>
    %291 = arith.addf %289, %290 : vector<2x128xf32>
    %292 = math.tanh %291 : vector<2x128xf32>
    %293 = arith.mulf %288, %292 : vector<2x128xf32>
    %c6_237 = arith.constant 6 : index
    %c0_238 = arith.constant 0 : index
    %294 = vector.load %arg28[%c6_237, %c0_238] : memref<16x128xf32, #tpu.memory_space<vmem>>, vector<2x128xf32>
    tpu.vector_store %arg28[%c6_237, %c0_238], %293 {strides = array<i32>} : memref<16x128xf32, #tpu.memory_space<vmem>>, vector<2x128xf32>,
    %c8_239 = arith.constant 8 : index
    %c0_240 = arith.constant 0 : index
    %295 = vector.load %arg27[%c8_239, %c0_240] : memref<16x512xf32, #tpu.memory_space<vmem>>, vector<2x512xf32>
    %c0_241 = arith.constant 0 : index
    %c0_242 = arith.constant 0 : index
    %296 = vector.load %arg10[%c0_241, %c0_242] : memref<128x512xf32, #tpu.memory_space<vmem>>, vector<128x512xf32>
    %cst_243 = arith.constant dense<0.000000e+00> : vector<2x512xf32>
    %297 = tpu.matmul %293, %296, %cst_243 {dimension_numbers = #tpu.dot_dimension_numbers<[1], [0], [0], [1], [0, 0, 1, 1], [], []>} : vector<2x128xf32>, vector<128x512xf32>, vector<2x512xf32> -> vector<2x512xf32>
    %298 = arith.addf %295, %297 : vector<2x512xf32>
    %299 = vector.extract_strided_slice %298 {offsets = [0, 0], sizes = [2, 128], strides = [1, 1]} : vector<2x512xf32> to vector<2x128xf32>
    %300 = arith.negf %299 : vector<2x128xf32>
    %301 = math.exp %300 : vector<2x128xf32>
    %cst_244 = arith.constant 1.000000e+00 : f32
    %302 = vector.broadcast %cst_244 : f32 to vector<2x128xf32>
    %303 = arith.addf %302, %301 : vector<2x128xf32>
    %304 = arith.divf %302, %303 : vector<2x128xf32>
    %305 = vector.extract_strided_slice %298 {offsets = [0, 128], sizes = [2, 128], strides = [1, 1]} : vector<2x512xf32> to vector<2x128xf32>
    %306 = arith.negf %305 : vector<2x128xf32>
    %307 = math.exp %306 : vector<2x128xf32>
    %cst_245 = arith.constant 1.000000e+00 : f32
    %308 = vector.broadcast %cst_245 : f32 to vector<2x128xf32>
    %309 = arith.addf %308, %307 : vector<2x128xf32>
    %310 = arith.divf %308, %309 : vector<2x128xf32>
    %311 = vector.extract_strided_slice %298 {offsets = [0, 256], sizes = [2, 128], strides = [1, 1]} : vector<2x512xf32> to vector<2x128xf32>
    %312 = math.tanh %311 : vector<2x128xf32>
    %313 = vector.extract_strided_slice %298 {offsets = [0, 384], sizes = [2, 128], strides = [1, 1]} : vector<2x512xf32> to vector<2x128xf32>
    %314 = arith.negf %313 : vector<2x128xf32>
    %315 = math.exp %314 : vector<2x128xf32>
    %cst_246 = arith.constant 1.000000e+00 : f32
    %316 = vector.broadcast %cst_246 : f32 to vector<2x128xf32>
    %317 = arith.addf %316, %315 : vector<2x128xf32>
    %318 = arith.divf %316, %317 : vector<2x128xf32>
    %319 = arith.mulf %310, %291 : vector<2x128xf32>
    %320 = arith.mulf %304, %312 : vector<2x128xf32>
    %321 = arith.addf %319, %320 : vector<2x128xf32>
    %322 = math.tanh %321 : vector<2x128xf32>
    %323 = arith.mulf %318, %322 : vector<2x128xf32>
    %c8_247 = arith.constant 8 : index
    %c0_248 = arith.constant 0 : index
    %324 = vector.load %arg28[%c8_247, %c0_248] : memref<16x128xf32, #tpu.memory_space<vmem>>, vector<2x128xf32>
    tpu.vector_store %arg28[%c8_247, %c0_248], %323 {strides = array<i32>} : memref<16x128xf32, #tpu.memory_space<vmem>>, vector<2x128xf32>,
    %c10 = arith.constant 10 : index
    %c0_249 = arith.constant 0 : index
    %325 = vector.load %arg27[%c10, %c0_249] : memref<16x512xf32, #tpu.memory_space<vmem>>, vector<2x512xf32>
    %c0_250 = arith.constant 0 : index
    %c0_251 = arith.constant 0 : index
    %326 = vector.load %arg10[%c0_250, %c0_251] : memref<128x512xf32, #tpu.memory_space<vmem>>, vector<128x512xf32>
    %cst_252 = arith.constant dense<0.000000e+00> : vector<2x512xf32>
    %327 = tpu.matmul %323, %326, %cst_252 {dimension_numbers = #tpu.dot_dimension_numbers<[1], [0], [0], [1], [0, 0, 1, 1], [], []>} : vector<2x128xf32>, vector<128x512xf32>, vector<2x512xf32> -> vector<2x512xf32>
    %328 = arith.addf %325, %327 : vector<2x512xf32>
    %329 = vector.extract_strided_slice %328 {offsets = [0, 0], sizes = [2, 128], strides = [1, 1]} : vector<2x512xf32> to vector<2x128xf32>
    %330 = arith.negf %329 : vector<2x128xf32>
    %331 = math.exp %330 : vector<2x128xf32>
    %cst_253 = arith.constant 1.000000e+00 : f32
    %332 = vector.broadcast %cst_253 : f32 to vector<2x128xf32>
    %333 = arith.addf %332, %331 : vector<2x128xf32>
    %334 = arith.divf %332, %333 : vector<2x128xf32>
    %335 = vector.extract_strided_slice %328 {offsets = [0, 128], sizes = [2, 128], strides = [1, 1]} : vector<2x512xf32> to vector<2x128xf32>
    %336 = arith.negf %335 : vector<2x128xf32>
    %337 = math.exp %336 : vector<2x128xf32>
    %cst_254 = arith.constant 1.000000e+00 : f32
    %338 = vector.broadcast %cst_254 : f32 to vector<2x128xf32>
    %339 = arith.addf %338, %337 : vector<2x128xf32>
    %340 = arith.divf %338, %339 : vector<2x128xf32>
    %341 = vector.extract_strided_slice %328 {offsets = [0, 256], sizes = [2, 128], strides = [1, 1]} : vector<2x512xf32> to vector<2x128xf32>
    %342 = math.tanh %341 : vector<2x128xf32>
    %343 = vector.extract_strided_slice %328 {offsets = [0, 384], sizes = [2, 128], strides = [1, 1]} : vector<2x512xf32> to vector<2x128xf32>
    %344 = arith.negf %343 : vector<2x128xf32>
    %345 = math.exp %344 : vector<2x128xf32>
    %cst_255 = arith.constant 1.000000e+00 : f32
    %346 = vector.broadcast %cst_255 : f32 to vector<2x128xf32>
    %347 = arith.addf %346, %345 : vector<2x128xf32>
    %348 = arith.divf %346, %347 : vector<2x128xf32>
    %349 = arith.mulf %340, %321 : vector<2x128xf32>
    %350 = arith.mulf %334, %342 : vector<2x128xf32>
    %351 = arith.addf %349, %350 : vector<2x128xf32>
    %352 = math.tanh %351 : vector<2x128xf32>
    %353 = arith.mulf %348, %352 : vector<2x128xf32>
    %c10_256 = arith.constant 10 : index
    %c0_257 = arith.constant 0 : index
    %354 = vector.load %arg28[%c10_256, %c0_257] : memref<16x128xf32, #tpu.memory_space<vmem>>, vector<2x128xf32>
    tpu.vector_store %arg28[%c10_256, %c0_257], %353 {strides = array<i32>} : memref<16x128xf32, #tpu.memory_space<vmem>>, vector<2x128xf32>,
    %c12 = arith.constant 12 : index
    %c0_258 = arith.constant 0 : index
    %355 = vector.load %arg27[%c12, %c0_258] : memref<16x512xf32, #tpu.memory_space<vmem>>, vector<2x512xf32>
    %c0_259 = arith.constant 0 : index
    %c0_260 = arith.constant 0 : index
    %356 = vector.load %arg10[%c0_259, %c0_260] : memref<128x512xf32, #tpu.memory_space<vmem>>, vector<128x512xf32>
    %cst_261 = arith.constant dense<0.000000e+00> : vector<2x512xf32>
    %357 = tpu.matmul %353, %356, %cst_261 {dimension_numbers = #tpu.dot_dimension_numbers<[1], [0], [0], [1], [0, 0, 1, 1], [], []>} : vector<2x128xf32>, vector<128x512xf32>, vector<2x512xf32> -> vector<2x512xf32>
    %358 = arith.addf %355, %357 : vector<2x512xf32>
    %359 = vector.extract_strided_slice %358 {offsets = [0, 0], sizes = [2, 128], strides = [1, 1]} : vector<2x512xf32> to vector<2x128xf32>
    %360 = arith.negf %359 : vector<2x128xf32>
    %361 = math.exp %360 : vector<2x128xf32>
    %cst_262 = arith.constant 1.000000e+00 : f32
    %362 = vector.broadcast %cst_262 : f32 to vector<2x128xf32>
    %363 = arith.addf %362, %361 : vector<2x128xf32>
    %364 = arith.divf %362, %363 : vector<2x128xf32>
    %365 = vector.extract_strided_slice %358 {offsets = [0, 128], sizes = [2, 128], strides = [1, 1]} : vector<2x512xf32> to vector<2x128xf32>
    %366 = arith.negf %365 : vector<2x128xf32>
    %367 = math.exp %366 : vector<2x128xf32>
    %cst_263 = arith.constant 1.000000e+00 : f32
    %368 = vector.broadcast %cst_263 : f32 to vector<2x128xf32>
    %369 = arith.addf %368, %367 : vector<2x128xf32>
    %370 = arith.divf %368, %369 : vector<2x128xf32>
    %371 = vector.extract_strided_slice %358 {offsets = [0, 256], sizes = [2, 128], strides = [1, 1]} : vector<2x512xf32> to vector<2x128xf32>
    %372 = math.tanh %371 : vector<2x128xf32>
    %373 = vector.extract_strided_slice %358 {offsets = [0, 384], sizes = [2, 128], strides = [1, 1]} : vector<2x512xf32> to vector<2x128xf32>
    %374 = arith.negf %373 : vector<2x128xf32>
    %375 = math.exp %374 : vector<2x128xf32>
    %cst_264 = arith.constant 1.000000e+00 : f32
    %376 = vector.broadcast %cst_264 : f32 to vector<2x128xf32>
    %377 = arith.addf %376, %375 : vector<2x128xf32>
    %378 = arith.divf %376, %377 : vector<2x128xf32>
    %379 = arith.mulf %370, %351 : vector<2x128xf32>
    %380 = arith.mulf %364, %372 : vector<2x128xf32>
    %381 = arith.addf %379, %380 : vector<2x128xf32>
    %382 = math.tanh %381 : vector<2x128xf32>
    %383 = arith.mulf %378, %382 : vector<2x128xf32>
    %c12_265 = arith.constant 12 : index
    %c0_266 = arith.constant 0 : index
    %384 = vector.load %arg28[%c12_265, %c0_266] : memref<16x128xf32, #tpu.memory_space<vmem>>, vector<2x128xf32>
    tpu.vector_store %arg28[%c12_265, %c0_266], %383 {strides = array<i32>} : memref<16x128xf32, #tpu.memory_space<vmem>>, vector<2x128xf32>,
    %c14 = arith.constant 14 : index
    %c0_267 = arith.constant 0 : index
    %385 = vector.load %arg27[%c14, %c0_267] : memref<16x512xf32, #tpu.memory_space<vmem>>, vector<2x512xf32>
    %c0_268 = arith.constant 0 : index
    %c0_269 = arith.constant 0 : index
    %386 = vector.load %arg10[%c0_268, %c0_269] : memref<128x512xf32, #tpu.memory_space<vmem>>, vector<128x512xf32>
    %cst_270 = arith.constant dense<0.000000e+00> : vector<2x512xf32>
    %387 = tpu.matmul %383, %386, %cst_270 {dimension_numbers = #tpu.dot_dimension_numbers<[1], [0], [0], [1], [0, 0, 1, 1], [], []>} : vector<2x128xf32>, vector<128x512xf32>, vector<2x512xf32> -> vector<2x512xf32>
    %388 = arith.addf %385, %387 : vector<2x512xf32>
    %389 = vector.extract_strided_slice %388 {offsets = [0, 0], sizes = [2, 128], strides = [1, 1]} : vector<2x512xf32> to vector<2x128xf32>
    %390 = arith.negf %389 : vector<2x128xf32>
    %391 = math.exp %390 : vector<2x128xf32>
    %cst_271 = arith.constant 1.000000e+00 : f32
    %392 = vector.broadcast %cst_271 : f32 to vector<2x128xf32>
    %393 = arith.addf %392, %391 : vector<2x128xf32>
    %394 = arith.divf %392, %393 : vector<2x128xf32>
    %395 = vector.extract_strided_slice %388 {offsets = [0, 128], sizes = [2, 128], strides = [1, 1]} : vector<2x512xf32> to vector<2x128xf32>
    %396 = arith.negf %395 : vector<2x128xf32>
    %397 = math.exp %396 : vector<2x128xf32>
    %cst_272 = arith.constant 1.000000e+00 : f32
    %398 = vector.broadcast %cst_272 : f32 to vector<2x128xf32>
    %399 = arith.addf %398, %397 : vector<2x128xf32>
    %400 = arith.divf %398, %399 : vector<2x128xf32>
    %401 = vector.extract_strided_slice %388 {offsets = [0, 256], sizes = [2, 128], strides = [1, 1]} : vector<2x512xf32> to vector<2x128xf32>
    %402 = math.tanh %401 : vector<2x128xf32>
    %403 = vector.extract_strided_slice %388 {offsets = [0, 384], sizes = [2, 128], strides = [1, 1]} : vector<2x512xf32> to vector<2x128xf32>
    %404 = arith.negf %403 : vector<2x128xf32>
    %405 = math.exp %404 : vector<2x128xf32>
    %cst_273 = arith.constant 1.000000e+00 : f32
    %406 = vector.broadcast %cst_273 : f32 to vector<2x128xf32>
    %407 = arith.addf %406, %405 : vector<2x128xf32>
    %408 = arith.divf %406, %407 : vector<2x128xf32>
    %409 = arith.mulf %400, %381 : vector<2x128xf32>
    %410 = arith.mulf %394, %402 : vector<2x128xf32>
    %411 = arith.addf %409, %410 : vector<2x128xf32>
    %412 = math.tanh %411 : vector<2x128xf32>
    %413 = arith.mulf %408, %412 : vector<2x128xf32>
    %c14_274 = arith.constant 14 : index
    %c0_275 = arith.constant 0 : index
    %414 = vector.load %arg28[%c14_274, %c0_275] : memref<16x128xf32, #tpu.memory_space<vmem>>, vector<2x128xf32>
    tpu.vector_store %arg28[%c14_274, %c0_275], %413 {strides = array<i32>} : memref<16x128xf32, #tpu.memory_space<vmem>>, vector<2x128xf32>,
    %c0_276 = arith.constant 0 : index
    %c0_277 = arith.constant 0 : index
    %415 = vector.load %arg28[%c0_276, %c0_277] : memref<16x128xf32, #tpu.memory_space<vmem>>, vector<16x128xf32>
    %c0_278 = arith.constant 0 : index
    %c0_279 = arith.constant 0 : index
    %416 = vector.load %arg12[%c0_278, %c0_279] : memref<128x512xf32, #tpu.memory_space<vmem>>, vector<128x512xf32>
    %cst_280 = arith.constant dense<0.000000e+00> : vector<16x512xf32>
    %417 = tpu.matmul %415, %416, %cst_280 {dimension_numbers = #tpu.dot_dimension_numbers<[1], [0], [0], [1], [0, 0, 1, 1], [], []>} : vector<16x128xf32>, vector<128x512xf32>, vector<16x512xf32> -> vector<16x512xf32>
    %c0_281 = arith.constant 0 : index
    %c0_282 = arith.constant 0 : index
    %418 = vector.load %arg14[%c0_281, %c0_282] : memref<1x512xf32, #tpu.memory_space<vmem>>, vector<1x512xf32>
    %419 = vector.broadcast %418 : vector<1x512xf32> to vector<16x512xf32>
    %420 = arith.addf %417, %419 : vector<16x512xf32>
    %c0_283 = arith.constant 0 : index
    %c0_284 = arith.constant 0 : index
    %421 = vector.load %arg27[%c0_283, %c0_284] : memref<16x512xf32, #tpu.memory_space<vmem>>, vector<16x512xf32>
    tpu.vector_store %arg27[%c0_283, %c0_284], %420 {strides = array<i32>} : memref<16x512xf32, #tpu.memory_space<vmem>>, vector<16x512xf32>,
    %c0_285 = arith.constant 0 : index
    %c0_286 = arith.constant 0 : index
    %422 = vector.load %arg27[%c0_285, %c0_286] : memref<16x512xf32, #tpu.memory_space<vmem>>, vector<2x512xf32>
    %c0_287 = arith.constant 0 : index
    %c0_288 = arith.constant 0 : index
    %423 = vector.load %arg13[%c0_287, %c0_288] : memref<128x512xf32, #tpu.memory_space<vmem>>, vector<128x512xf32>
    %cst_289 = arith.constant dense<0.000000e+00> : vector<2x512xf32>
    %424 = tpu.matmul %413, %423, %cst_289 {dimension_numbers = #tpu.dot_dimension_numbers<[1], [0], [0], [1], [0, 0, 1, 1], [], []>} : vector<2x128xf32>, vector<128x512xf32>, vector<2x512xf32> -> vector<2x512xf32>
    %425 = arith.addf %422, %424 : vector<2x512xf32>
    %426 = vector.extract_strided_slice %425 {offsets = [0, 0], sizes = [2, 128], strides = [1, 1]} : vector<2x512xf32> to vector<2x128xf32>
    %427 = arith.negf %426 : vector<2x128xf32>
    %428 = math.exp %427 : vector<2x128xf32>
    %cst_290 = arith.constant 1.000000e+00 : f32
    %429 = vector.broadcast %cst_290 : f32 to vector<2x128xf32>
    %430 = arith.addf %429, %428 : vector<2x128xf32>
    %431 = arith.divf %429, %430 : vector<2x128xf32>
    %432 = vector.extract_strided_slice %425 {offsets = [0, 128], sizes = [2, 128], strides = [1, 1]} : vector<2x512xf32> to vector<2x128xf32>
    %433 = arith.negf %432 : vector<2x128xf32>
    %434 = math.exp %433 : vector<2x128xf32>
    %cst_291 = arith.constant 1.000000e+00 : f32
    %435 = vector.broadcast %cst_291 : f32 to vector<2x128xf32>
    %436 = arith.addf %435, %434 : vector<2x128xf32>
    %437 = arith.divf %435, %436 : vector<2x128xf32>
    %438 = vector.extract_strided_slice %425 {offsets = [0, 256], sizes = [2, 128], strides = [1, 1]} : vector<2x512xf32> to vector<2x128xf32>
    %439 = math.tanh %438 : vector<2x128xf32>
    %440 = vector.extract_strided_slice %425 {offsets = [0, 384], sizes = [2, 128], strides = [1, 1]} : vector<2x512xf32> to vector<2x128xf32>
    %441 = arith.negf %440 : vector<2x128xf32>
    %442 = math.exp %441 : vector<2x128xf32>
    %cst_292 = arith.constant 1.000000e+00 : f32
    %443 = vector.broadcast %cst_292 : f32 to vector<2x128xf32>
    %444 = arith.addf %443, %442 : vector<2x128xf32>
    %445 = arith.divf %443, %444 : vector<2x128xf32>
    %446 = arith.mulf %437, %411 : vector<2x128xf32>
    %447 = arith.mulf %431, %439 : vector<2x128xf32>
    %448 = arith.addf %446, %447 : vector<2x128xf32>
    %449 = math.tanh %448 : vector<2x128xf32>
    %450 = arith.mulf %445, %449 : vector<2x128xf32>
    %c2_293 = arith.constant 2 : index
    %c0_294 = arith.constant 0 : index
    %451 = vector.load %arg27[%c2_293, %c0_294] : memref<16x512xf32, #tpu.memory_space<vmem>>, vector<2x512xf32>
    %c0_295 = arith.constant 0 : index
    %c0_296 = arith.constant 0 : index
    %452 = vector.load %arg13[%c0_295, %c0_296] : memref<128x512xf32, #tpu.memory_space<vmem>>, vector<128x512xf32>
    %cst_297 = arith.constant dense<0.000000e+00> : vector<2x512xf32>
    %453 = tpu.matmul %450, %452, %cst_297 {dimension_numbers = #tpu.dot_dimension_numbers<[1], [0], [0], [1], [0, 0, 1, 1], [], []>} : vector<2x128xf32>, vector<128x512xf32>, vector<2x512xf32> -> vector<2x512xf32>
    %454 = arith.addf %451, %453 : vector<2x512xf32>
    %455 = vector.extract_strided_slice %454 {offsets = [0, 0], sizes = [2, 128], strides = [1, 1]} : vector<2x512xf32> to vector<2x128xf32>
    %456 = arith.negf %455 : vector<2x128xf32>
    %457 = math.exp %456 : vector<2x128xf32>
    %cst_298 = arith.constant 1.000000e+00 : f32
    %458 = vector.broadcast %cst_298 : f32 to vector<2x128xf32>
    %459 = arith.addf %458, %457 : vector<2x128xf32>
    %460 = arith.divf %458, %459 : vector<2x128xf32>
    %461 = vector.extract_strided_slice %454 {offsets = [0, 128], sizes = [2, 128], strides = [1, 1]} : vector<2x512xf32> to vector<2x128xf32>
    %462 = arith.negf %461 : vector<2x128xf32>
    %463 = math.exp %462 : vector<2x128xf32>
    %cst_299 = arith.constant 1.000000e+00 : f32
    %464 = vector.broadcast %cst_299 : f32 to vector<2x128xf32>
    %465 = arith.addf %464, %463 : vector<2x128xf32>
    %466 = arith.divf %464, %465 : vector<2x128xf32>
    %467 = vector.extract_strided_slice %454 {offsets = [0, 256], sizes = [2, 128], strides = [1, 1]} : vector<2x512xf32> to vector<2x128xf32>
    %468 = math.tanh %467 : vector<2x128xf32>
    %469 = vector.extract_strided_slice %454 {offsets = [0, 384], sizes = [2, 128], strides = [1, 1]} : vector<2x512xf32> to vector<2x128xf32>
    %470 = arith.negf %469 : vector<2x128xf32>
    %471 = math.exp %470 : vector<2x128xf32>
    %cst_300 = arith.constant 1.000000e+00 : f32
    %472 = vector.broadcast %cst_300 : f32 to vector<2x128xf32>
    %473 = arith.addf %472, %471 : vector<2x128xf32>
    %474 = arith.divf %472, %473 : vector<2x128xf32>
    %475 = arith.mulf %466, %448 : vector<2x128xf32>
    %476 = arith.mulf %460, %468 : vector<2x128xf32>
    %477 = arith.addf %475, %476 : vector<2x128xf32>
    %478 = math.tanh %477 : vector<2x128xf32>
    %479 = arith.mulf %474, %478 : vector<2x128xf32>
    %c4_301 = arith.constant 4 : index
    %c0_302 = arith.constant 0 : index
    %480 = vector.load %arg27[%c4_301, %c0_302] : memref<16x512xf32, #tpu.memory_space<vmem>>, vector<2x512xf32>
    %c0_303 = arith.constant 0 : index
    %c0_304 = arith.constant 0 : index
    %481 = vector.load %arg13[%c0_303, %c0_304] : memref<128x512xf32, #tpu.memory_space<vmem>>, vector<128x512xf32>
    %cst_305 = arith.constant dense<0.000000e+00> : vector<2x512xf32>
    %482 = tpu.matmul %479, %481, %cst_305 {dimension_numbers = #tpu.dot_dimension_numbers<[1], [0], [0], [1], [0, 0, 1, 1], [], []>} : vector<2x128xf32>, vector<128x512xf32>, vector<2x512xf32> -> vector<2x512xf32>
    %483 = arith.addf %480, %482 : vector<2x512xf32>
    %484 = vector.extract_strided_slice %483 {offsets = [0, 0], sizes = [2, 128], strides = [1, 1]} : vector<2x512xf32> to vector<2x128xf32>
    %485 = arith.negf %484 : vector<2x128xf32>
    %486 = math.exp %485 : vector<2x128xf32>
    %cst_306 = arith.constant 1.000000e+00 : f32
    %487 = vector.broadcast %cst_306 : f32 to vector<2x128xf32>
    %488 = arith.addf %487, %486 : vector<2x128xf32>
    %489 = arith.divf %487, %488 : vector<2x128xf32>
    %490 = vector.extract_strided_slice %483 {offsets = [0, 128], sizes = [2, 128], strides = [1, 1]} : vector<2x512xf32> to vector<2x128xf32>
    %491 = arith.negf %490 : vector<2x128xf32>
    %492 = math.exp %491 : vector<2x128xf32>
    %cst_307 = arith.constant 1.000000e+00 : f32
    %493 = vector.broadcast %cst_307 : f32 to vector<2x128xf32>
    %494 = arith.addf %493, %492 : vector<2x128xf32>
    %495 = arith.divf %493, %494 : vector<2x128xf32>
    %496 = vector.extract_strided_slice %483 {offsets = [0, 256], sizes = [2, 128], strides = [1, 1]} : vector<2x512xf32> to vector<2x128xf32>
    %497 = math.tanh %496 : vector<2x128xf32>
    %498 = vector.extract_strided_slice %483 {offsets = [0, 384], sizes = [2, 128], strides = [1, 1]} : vector<2x512xf32> to vector<2x128xf32>
    %499 = arith.negf %498 : vector<2x128xf32>
    %500 = math.exp %499 : vector<2x128xf32>
    %cst_308 = arith.constant 1.000000e+00 : f32
    %501 = vector.broadcast %cst_308 : f32 to vector<2x128xf32>
    %502 = arith.addf %501, %500 : vector<2x128xf32>
    %503 = arith.divf %501, %502 : vector<2x128xf32>
    %504 = arith.mulf %495, %477 : vector<2x128xf32>
    %505 = arith.mulf %489, %497 : vector<2x128xf32>
    %506 = arith.addf %504, %505 : vector<2x128xf32>
    %507 = math.tanh %506 : vector<2x128xf32>
    %508 = arith.mulf %503, %507 : vector<2x128xf32>
    %c6_309 = arith.constant 6 : index
    %c0_310 = arith.constant 0 : index
    %509 = vector.load %arg27[%c6_309, %c0_310] : memref<16x512xf32, #tpu.memory_space<vmem>>, vector<2x512xf32>
    %c0_311 = arith.constant 0 : index
    %c0_312 = arith.constant 0 : index
    %510 = vector.load %arg13[%c0_311, %c0_312] : memref<128x512xf32, #tpu.memory_space<vmem>>, vector<128x512xf32>
    %cst_313 = arith.constant dense<0.000000e+00> : vector<2x512xf32>
    %511 = tpu.matmul %508, %510, %cst_313 {dimension_numbers = #tpu.dot_dimension_numbers<[1], [0], [0], [1], [0, 0, 1, 1], [], []>} : vector<2x128xf32>, vector<128x512xf32>, vector<2x512xf32> -> vector<2x512xf32>
    %512 = arith.addf %509, %511 : vector<2x512xf32>
    %513 = vector.extract_strided_slice %512 {offsets = [0, 0], sizes = [2, 128], strides = [1, 1]} : vector<2x512xf32> to vector<2x128xf32>
    %514 = arith.negf %513 : vector<2x128xf32>
    %515 = math.exp %514 : vector<2x128xf32>
    %cst_314 = arith.constant 1.000000e+00 : f32
    %516 = vector.broadcast %cst_314 : f32 to vector<2x128xf32>
    %517 = arith.addf %516, %515 : vector<2x128xf32>
    %518 = arith.divf %516, %517 : vector<2x128xf32>
    %519 = vector.extract_strided_slice %512 {offsets = [0, 128], sizes = [2, 128], strides = [1, 1]} : vector<2x512xf32> to vector<2x128xf32>
    %520 = arith.negf %519 : vector<2x128xf32>
    %521 = math.exp %520 : vector<2x128xf32>
    %cst_315 = arith.constant 1.000000e+00 : f32
    %522 = vector.broadcast %cst_315 : f32 to vector<2x128xf32>
    %523 = arith.addf %522, %521 : vector<2x128xf32>
    %524 = arith.divf %522, %523 : vector<2x128xf32>
    %525 = vector.extract_strided_slice %512 {offsets = [0, 256], sizes = [2, 128], strides = [1, 1]} : vector<2x512xf32> to vector<2x128xf32>
    %526 = math.tanh %525 : vector<2x128xf32>
    %527 = vector.extract_strided_slice %512 {offsets = [0, 384], sizes = [2, 128], strides = [1, 1]} : vector<2x512xf32> to vector<2x128xf32>
    %528 = arith.negf %527 : vector<2x128xf32>
    %529 = math.exp %528 : vector<2x128xf32>
    %cst_316 = arith.constant 1.000000e+00 : f32
    %530 = vector.broadcast %cst_316 : f32 to vector<2x128xf32>
    %531 = arith.addf %530, %529 : vector<2x128xf32>
    %532 = arith.divf %530, %531 : vector<2x128xf32>
    %533 = arith.mulf %524, %506 : vector<2x128xf32>
    %534 = arith.mulf %518, %526 : vector<2x128xf32>
    %535 = arith.addf %533, %534 : vector<2x128xf32>
    %536 = math.tanh %535 : vector<2x128xf32>
    %537 = arith.mulf %532, %536 : vector<2x128xf32>
    %538 = vector.extract_strided_slice %537 {offsets = [1, 0], sizes = [1, 128], strides = [1, 1]} : vector<2x128xf32> to vector<1x128xf32>
    %c0_317 = arith.constant 0 : index
    %c0_318 = arith.constant 0 : index
    %539 = vector.load %arg29[%c0_317, %c0_318] : memref<2x128xf32, #tpu.memory_space<vmem>>, vector<1x128xf32>
    tpu.vector_store %arg29[%c0_317, %c0_318], %538 {strides = array<i32>} : memref<2x128xf32, #tpu.memory_space<vmem>>, vector<1x128xf32>,
    %c8_319 = arith.constant 8 : index
    %c0_320 = arith.constant 0 : index
    %540 = vector.load %arg27[%c8_319, %c0_320] : memref<16x512xf32, #tpu.memory_space<vmem>>, vector<2x512xf32>
    %c0_321 = arith.constant 0 : index
    %c0_322 = arith.constant 0 : index
    %541 = vector.load %arg13[%c0_321, %c0_322] : memref<128x512xf32, #tpu.memory_space<vmem>>, vector<128x512xf32>
    %cst_323 = arith.constant dense<0.000000e+00> : vector<2x512xf32>
    %542 = tpu.matmul %537, %541, %cst_323 {dimension_numbers = #tpu.dot_dimension_numbers<[1], [0], [0], [1], [0, 0, 1, 1], [], []>} : vector<2x128xf32>, vector<128x512xf32>, vector<2x512xf32> -> vector<2x512xf32>
    %543 = arith.addf %540, %542 : vector<2x512xf32>
    %544 = vector.extract_strided_slice %543 {offsets = [0, 0], sizes = [2, 128], strides = [1, 1]} : vector<2x512xf32> to vector<2x128xf32>
    %545 = arith.negf %544 : vector<2x128xf32>
    %546 = math.exp %545 : vector<2x128xf32>
    %cst_324 = arith.constant 1.000000e+00 : f32
    %547 = vector.broadcast %cst_324 : f32 to vector<2x128xf32>
    %548 = arith.addf %547, %546 : vector<2x128xf32>
    %549 = arith.divf %547, %548 : vector<2x128xf32>
    %550 = vector.extract_strided_slice %543 {offsets = [0, 128], sizes = [2, 128], strides = [1, 1]} : vector<2x512xf32> to vector<2x128xf32>
    %551 = arith.negf %550 : vector<2x128xf32>
    %552 = math.exp %551 : vector<2x128xf32>
    %cst_325 = arith.constant 1.000000e+00 : f32
    %553 = vector.broadcast %cst_325 : f32 to vector<2x128xf32>
    %554 = arith.addf %553, %552 : vector<2x128xf32>
    %555 = arith.divf %553, %554 : vector<2x128xf32>
    %556 = vector.extract_strided_slice %543 {offsets = [0, 256], sizes = [2, 128], strides = [1, 1]} : vector<2x512xf32> to vector<2x128xf32>
    %557 = math.tanh %556 : vector<2x128xf32>
    %558 = vector.extract_strided_slice %543 {offsets = [0, 384], sizes = [2, 128], strides = [1, 1]} : vector<2x512xf32> to vector<2x128xf32>
    %559 = arith.negf %558 : vector<2x128xf32>
    %560 = math.exp %559 : vector<2x128xf32>
    %cst_326 = arith.constant 1.000000e+00 : f32
    %561 = vector.broadcast %cst_326 : f32 to vector<2x128xf32>
    %562 = arith.addf %561, %560 : vector<2x128xf32>
    %563 = arith.divf %561, %562 : vector<2x128xf32>
    %564 = arith.mulf %555, %535 : vector<2x128xf32>
    %565 = arith.mulf %549, %557 : vector<2x128xf32>
    %566 = arith.addf %564, %565 : vector<2x128xf32>
    %567 = math.tanh %566 : vector<2x128xf32>
    %568 = arith.mulf %563, %567 : vector<2x128xf32>
    %c10_327 = arith.constant 10 : index
    %c0_328 = arith.constant 0 : index
    %569 = vector.load %arg27[%c10_327, %c0_328] : memref<16x512xf32, #tpu.memory_space<vmem>>, vector<2x512xf32>
    %c0_329 = arith.constant 0 : index
    %c0_330 = arith.constant 0 : index
    %570 = vector.load %arg13[%c0_329, %c0_330] : memref<128x512xf32, #tpu.memory_space<vmem>>, vector<128x512xf32>
    %cst_331 = arith.constant dense<0.000000e+00> : vector<2x512xf32>
    %571 = tpu.matmul %568, %570, %cst_331 {dimension_numbers = #tpu.dot_dimension_numbers<[1], [0], [0], [1], [0, 0, 1, 1], [], []>} : vector<2x128xf32>, vector<128x512xf32>, vector<2x512xf32> -> vector<2x512xf32>
    %572 = arith.addf %569, %571 : vector<2x512xf32>
    %573 = vector.extract_strided_slice %572 {offsets = [0, 0], sizes = [2, 128], strides = [1, 1]} : vector<2x512xf32> to vector<2x128xf32>
    %574 = arith.negf %573 : vector<2x128xf32>
    %575 = math.exp %574 : vector<2x128xf32>
    %cst_332 = arith.constant 1.000000e+00 : f32
    %576 = vector.broadcast %cst_332 : f32 to vector<2x128xf32>
    %577 = arith.addf %576, %575 : vector<2x128xf32>
    %578 = arith.divf %576, %577 : vector<2x128xf32>
    %579 = vector.extract_strided_slice %572 {offsets = [0, 128], sizes = [2, 128], strides = [1, 1]} : vector<2x512xf32> to vector<2x128xf32>
    %580 = arith.negf %579 : vector<2x128xf32>
    %581 = math.exp %580 : vector<2x128xf32>
    %cst_333 = arith.constant 1.000000e+00 : f32
    %582 = vector.broadcast %cst_333 : f32 to vector<2x128xf32>
    %583 = arith.addf %582, %581 : vector<2x128xf32>
    %584 = arith.divf %582, %583 : vector<2x128xf32>
    %585 = vector.extract_strided_slice %572 {offsets = [0, 256], sizes = [2, 128], strides = [1, 1]} : vector<2x512xf32> to vector<2x128xf32>
    %586 = math.tanh %585 : vector<2x128xf32>
    %587 = vector.extract_strided_slice %572 {offsets = [0, 384], sizes = [2, 128], strides = [1, 1]} : vector<2x512xf32> to vector<2x128xf32>
    %588 = arith.negf %587 : vector<2x128xf32>
    %589 = math.exp %588 : vector<2x128xf32>
    %cst_334 = arith.constant 1.000000e+00 : f32
    %590 = vector.broadcast %cst_334 : f32 to vector<2x128xf32>
    %591 = arith.addf %590, %589 : vector<2x128xf32>
    %592 = arith.divf %590, %591 : vector<2x128xf32>
    %593 = arith.mulf %584, %566 : vector<2x128xf32>
    %594 = arith.mulf %578, %586 : vector<2x128xf32>
    %595 = arith.addf %593, %594 : vector<2x128xf32>
    %596 = math.tanh %595 : vector<2x128xf32>
    %597 = arith.mulf %592, %596 : vector<2x128xf32>
    %c12_335 = arith.constant 12 : index
    %c0_336 = arith.constant 0 : index
    %598 = vector.load %arg27[%c12_335, %c0_336] : memref<16x512xf32, #tpu.memory_space<vmem>>, vector<2x512xf32>
    %c0_337 = arith.constant 0 : index
    %c0_338 = arith.constant 0 : index
    %599 = vector.load %arg13[%c0_337, %c0_338] : memref<128x512xf32, #tpu.memory_space<vmem>>, vector<128x512xf32>
    %cst_339 = arith.constant dense<0.000000e+00> : vector<2x512xf32>
    %600 = tpu.matmul %597, %599, %cst_339 {dimension_numbers = #tpu.dot_dimension_numbers<[1], [0], [0], [1], [0, 0, 1, 1], [], []>} : vector<2x128xf32>, vector<128x512xf32>, vector<2x512xf32> -> vector<2x512xf32>
    %601 = arith.addf %598, %600 : vector<2x512xf32>
    %602 = vector.extract_strided_slice %601 {offsets = [0, 0], sizes = [2, 128], strides = [1, 1]} : vector<2x512xf32> to vector<2x128xf32>
    %603 = arith.negf %602 : vector<2x128xf32>
    %604 = math.exp %603 : vector<2x128xf32>
    %cst_340 = arith.constant 1.000000e+00 : f32
    %605 = vector.broadcast %cst_340 : f32 to vector<2x128xf32>
    %606 = arith.addf %605, %604 : vector<2x128xf32>
    %607 = arith.divf %605, %606 : vector<2x128xf32>
    %608 = vector.extract_strided_slice %601 {offsets = [0, 128], sizes = [2, 128], strides = [1, 1]} : vector<2x512xf32> to vector<2x128xf32>
    %609 = arith.negf %608 : vector<2x128xf32>
    %610 = math.exp %609 : vector<2x128xf32>
    %cst_341 = arith.constant 1.000000e+00 : f32
    %611 = vector.broadcast %cst_341 : f32 to vector<2x128xf32>
    %612 = arith.addf %611, %610 : vector<2x128xf32>
    %613 = arith.divf %611, %612 : vector<2x128xf32>
    %614 = vector.extract_strided_slice %601 {offsets = [0, 256], sizes = [2, 128], strides = [1, 1]} : vector<2x512xf32> to vector<2x128xf32>
    %615 = math.tanh %614 : vector<2x128xf32>
    %616 = vector.extract_strided_slice %601 {offsets = [0, 384], sizes = [2, 128], strides = [1, 1]} : vector<2x512xf32> to vector<2x128xf32>
    %617 = arith.negf %616 : vector<2x128xf32>
    %618 = math.exp %617 : vector<2x128xf32>
    %cst_342 = arith.constant 1.000000e+00 : f32
    %619 = vector.broadcast %cst_342 : f32 to vector<2x128xf32>
    %620 = arith.addf %619, %618 : vector<2x128xf32>
    %621 = arith.divf %619, %620 : vector<2x128xf32>
    %622 = arith.mulf %613, %595 : vector<2x128xf32>
    %623 = arith.mulf %607, %615 : vector<2x128xf32>
    %624 = arith.addf %622, %623 : vector<2x128xf32>
    %625 = math.tanh %624 : vector<2x128xf32>
    %626 = arith.mulf %621, %625 : vector<2x128xf32>
    %c14_343 = arith.constant 14 : index
    %c0_344 = arith.constant 0 : index
    %627 = vector.load %arg27[%c14_343, %c0_344] : memref<16x512xf32, #tpu.memory_space<vmem>>, vector<2x512xf32>
    %c0_345 = arith.constant 0 : index
    %c0_346 = arith.constant 0 : index
    %628 = vector.load %arg13[%c0_345, %c0_346] : memref<128x512xf32, #tpu.memory_space<vmem>>, vector<128x512xf32>
    %cst_347 = arith.constant dense<0.000000e+00> : vector<2x512xf32>
    %629 = tpu.matmul %626, %628, %cst_347 {dimension_numbers = #tpu.dot_dimension_numbers<[1], [0], [0], [1], [0, 0, 1, 1], [], []>} : vector<2x128xf32>, vector<128x512xf32>, vector<2x512xf32> -> vector<2x512xf32>
    %630 = arith.addf %627, %629 : vector<2x512xf32>
    %631 = vector.extract_strided_slice %630 {offsets = [0, 0], sizes = [2, 128], strides = [1, 1]} : vector<2x512xf32> to vector<2x128xf32>
    %632 = arith.negf %631 : vector<2x128xf32>
    %633 = math.exp %632 : vector<2x128xf32>
    %cst_348 = arith.constant 1.000000e+00 : f32
    %634 = vector.broadcast %cst_348 : f32 to vector<2x128xf32>
    %635 = arith.addf %634, %633 : vector<2x128xf32>
    %636 = arith.divf %634, %635 : vector<2x128xf32>
    %637 = vector.extract_strided_slice %630 {offsets = [0, 128], sizes = [2, 128], strides = [1, 1]} : vector<2x512xf32> to vector<2x128xf32>
    %638 = arith.negf %637 : vector<2x128xf32>
    %639 = math.exp %638 : vector<2x128xf32>
    %cst_349 = arith.constant 1.000000e+00 : f32
    %640 = vector.broadcast %cst_349 : f32 to vector<2x128xf32>
    %641 = arith.addf %640, %639 : vector<2x128xf32>
    %642 = arith.divf %640, %641 : vector<2x128xf32>
    %643 = vector.extract_strided_slice %630 {offsets = [0, 256], sizes = [2, 128], strides = [1, 1]} : vector<2x512xf32> to vector<2x128xf32>
    %644 = math.tanh %643 : vector<2x128xf32>
    %645 = vector.extract_strided_slice %630 {offsets = [0, 384], sizes = [2, 128], strides = [1, 1]} : vector<2x512xf32> to vector<2x128xf32>
    %646 = arith.negf %645 : vector<2x128xf32>
    %647 = math.exp %646 : vector<2x128xf32>
    %cst_350 = arith.constant 1.000000e+00 : f32
    %648 = vector.broadcast %cst_350 : f32 to vector<2x128xf32>
    %649 = arith.addf %648, %647 : vector<2x128xf32>
    %650 = arith.divf %648, %649 : vector<2x128xf32>
    %651 = arith.mulf %642, %624 : vector<2x128xf32>
    %652 = arith.mulf %636, %644 : vector<2x128xf32>
    %653 = arith.addf %651, %652 : vector<2x128xf32>
    %654 = math.tanh %653 : vector<2x128xf32>
    %655 = arith.mulf %650, %654 : vector<2x128xf32>
    %656 = vector.extract_strided_slice %655 {offsets = [1, 0], sizes = [1, 128], strides = [1, 1]} : vector<2x128xf32> to vector<1x128xf32>
    %c1_351 = arith.constant 1 : index
    %c0_352 = arith.constant 0 : index
    %657 = vector.load %arg29[%c1_351, %c0_352] : memref<2x128xf32, #tpu.memory_space<vmem>>, vector<1x128xf32>
    tpu.vector_store %arg29[%c1_351, %c0_352], %656 {strides = array<i32>} : memref<2x128xf32, #tpu.memory_space<vmem>>, vector<1x128xf32>,
    %c0_353 = arith.constant 0 : index
    %c0_354 = arith.constant 0 : index
    %658 = vector.load %arg29[%c0_353, %c0_354] : memref<2x128xf32, #tpu.memory_space<vmem>>, vector<2x128xf32>
    %c0_355 = arith.constant 0 : index
    %c0_356 = arith.constant 0 : index
    %659 = vector.load %arg15[%c0_355, %c0_356] : memref<128x9xf32, #tpu.memory_space<vmem>>, vector<128x9xf32>
    %cst_357 = arith.constant dense<0.000000e+00> : vector<2x9xf32>
    %660 = tpu.matmul %658, %659, %cst_357 {dimension_numbers = #tpu.dot_dimension_numbers<[1], [0], [0], [1], [0, 0, 1, 1], [], []>} : vector<2x128xf32>, vector<128x9xf32>, vector<2x9xf32> -> vector<2x9xf32>
    %c0_358 = arith.constant 0 : index
    %c0_359 = arith.constant 0 : index
    %661 = vector.load %arg16[%c0_358, %c0_359] : memref<1x9xf32, #tpu.memory_space<vmem>>, vector<1x9xf32>
    %662 = vector.broadcast %661 : vector<1x9xf32> to vector<2x9xf32>
    %663 = arith.addf %660, %662 : vector<2x9xf32>
    %c0_360 = arith.constant 0 : index
    %c0_361 = arith.constant 0 : index
    %664 = vector.load %arg19[%c0_360, %c0_361] : memref<2x9xf32, #tpu.memory_space<vmem>>, vector<2x9xf32>
    tpu.vector_store %arg19[%c0_360, %c0_361], %663 {strides = array<i32>} : memref<2x9xf32, #tpu.memory_space<vmem>>, vector<2x9xf32>,
    %c0_362 = arith.constant 0 : index
    %c0_363 = arith.constant 0 : index
    %665 = vector.load %arg20[%c0_362, %c0_363] : memref<2x128xf32, #tpu.memory_space<vmem>>, vector<2x128xf32>
    tpu.vector_store %arg20[%c0_362, %c0_363], %655 {strides = array<i32>} : memref<2x128xf32, #tpu.memory_space<vmem>>, vector<2x128xf32>,
    %c0_364 = arith.constant 0 : index
    %c0_365 = arith.constant 0 : index
    %666 = vector.load %arg21[%c0_364, %c0_365] : memref<2x128xf32, #tpu.memory_space<vmem>>, vector<2x128xf32>
    tpu.vector_store %arg21[%c0_364, %c0_365], %653 {strides = array<i32>} : memref<2x128xf32, #tpu.memory_space<vmem>>, vector<2x128xf32>,
    return
  }
}

</mosaic_0001>

<bundles_post_ra>
// kernel: har_forward.1
= control target key start
LH: loop header
LB: loop body
LE: loop exit
PB: predicated region body
PF: predicated region fallthrough
CT: control target
= control target key end

     0   :  { %s9666_s0 = inlined_call_operand.vmem [shape: f32[48,36], index: 0, kind: input, shape index: {}]   ;;  %s9667_s1 = inlined_call_operand.hbm [shape: f32[5,36,64], index: 1, kind: input, shape index: {}]   ;;  %s9668_s2 = inlined_call_operand.vmem [shape: f32[1,64], index: 2, kind: input, shape index: {}]   ;;  %s9669_s3 = inlined_call_operand.hbm [shape: f32[5,64,64], index: 3, kind: input, shape index: {}]   ;;  %s9670_s4 = inlined_call_operand.vmem [shape: f32[1,64], index: 4, kind: input, shape index: {}]   ;;  %s9671_s5 = inlined_call_operand.hbm [shape: f32[5,64,64], index: 5, kind: input, shape index: {}]   ;;  %s9672_s6 = inlined_call_operand.vmem [shape: f32[1,64], index: 6, kind: input, shape index: {}]   ;;  %s9673_s7 = inlined_call_operand.hbm [shape: f32[5,64,64], index: 7, kind: input, shape index: {}]   ;;  %s9674_s8 = inlined_call_operand.vmem [shape: f32[64,1], index: 8, kind: input, shape index: {}]   ;;  %s9675_s9 = inlined_call_operand.hbm [shape: f32[64,512], index: 9, kind: input, shape index: {}]   ;;  %s9676_s10 = inlined_call_operand.hbm [shape: f32[128,512], index: 10, kind: input, shape index: {}]   ;;  %s9677_s11 = inlined_call_operand.vmem [shape: f32[1,512], index: 11, kind: input, shape index: {}]   ;;  %s9678_s12 = inlined_call_operand.hbm [shape: f32[128,512], index: 12, kind: input, shape index: {}]   ;;  %s9679_s13 = inlined_call_operand.hbm [shape: f32[128,512], index: 13, kind: input, shape index: {}]   ;;  %s9680_s14 = inlined_call_operand.vmem [shape: f32[1,512], index: 14, kind: input, shape index: {}]   ;;  %s9681_s15 = inlined_call_operand.vmem [shape: f32[128,9], index: 15, kind: input, shape index: {}]   ;;  %s9682_s16 = inlined_call_operand.vmem [shape: f32[1,9], index: 16, kind: input, shape index: {}]   ;;  %s9683_s17 = inlined_call_operand.vmem [shape: f32[2,128], index: 17, kind: input, shape index: {}]   ;;  %s9684_s18 = inlined_call_operand.vmem [shape: f32[2,128], index: 18, kind: input, shape index: {}]   ;;  %s9685_s19 = inlined_call_operand.hbm [shape: f32[2,9], index: 19, kind: output, shape index: {0}]   ;;  %s9686_s20 = inlined_call_operand.hbm [shape: f32[2,128], index: 20, kind: output, shape index: {1}]   ;;  %s9687_s21 = inlined_call_operand.hbm [shape: f32[2,128], index: 21, kind: output, shape index: {2}]  }
   0x1   :  { %9807 = sst [smem:[#allocation64_spill]] %s9666_s0 }
   0x2   :  { %9808 = sst [smem:[#allocation65_spill]] %s9667_s1 }
   0x3   :  { %9809 = sst [smem:[#allocation66_spill]] %s9668_s2 }
   0x4   :  { %9810 = sst [smem:[#allocation67_spill]] %s9669_s3 }
   0x5   :  { %9811 = sst [smem:[#allocation68_spill]] %s9670_s4 }
   0x6   :  { %9812 = sst [smem:[#allocation69_spill]] %s9671_s5 }
   0x7   :  { %9813 = sst [smem:[#allocation70_spill]] %s9685_s19 }
   0x8   :  { %27 = vsyncpa [#allocation11], 0 }
   0x9   :  { %28 = vsyncpa [#allocation14], 0 }
   0xa   :  { %29 = vsyncpa [#allocation17], 0 }
   0xb   :  { %30 = vsyncpa [#allocation20], 0 }
   0xc   :  { %31 = vsyncpa [#allocation23], 0 }
   0xd   :  { %32 = vsyncpa [#allocation12], 0 }
   0xe   :  { %33 = vsyncpa [#allocation26], 0  ;;  %s9814_s26 = sld [smem:[#allocation67_spill]]  ;;  %s6868_s3 = smov [#allocation13]  }
   0xf   :  { %s57_s28 = sshll.u32 %s6868_s3, 4  ;;  %s85_s4 = sshll.u32 %s9673_s7, 4  ;;  %s58_s28 = int_to_ptr.vmem [resolvable:$true] %s57_s28  ;;  %s86_s4 = int_to_ptr.hbm [resolvable:$true] %s85_s4 }
  0x10   :  { %s6869_s30 = smov 128   ;;  %s6870_s5 = smov 8  }
  0x11   :  { %s6871_s22 = smov [#allocation16]   ;;  %s113_s2 = sshll.u32 %s9676_s10, 4  ;;  %s114_s2 = int_to_ptr.hbm [resolvable:$true] %s113_s2 }
  0x12   :  { %s87_s23 = sshll.u32 %s6871_s22, 4  ;;  %s6872_s7 = smov [#allocation19]   ;;  %s88_s23 = int_to_ptr.vmem [resolvable:$true] %s87_s23 }
  0x13   :  { %93 = dma.hbm_to_vmem [thread:$0]  %s86_s4, 5120, %s88_s23, [#allocation17], %s6869_s30, %s6869_s30, %s6870_s5  }
  0x14   :  { %s55_s27 = sshll.u32 %s9814_s26, 4  ;;  %s115_s25 = sshll.u32 %s6872_s7, 4  ;;  %s56_s27 = int_to_ptr.hbm [resolvable:$true] %s55_s27  ;;  %s116_s25 = int_to_ptr.vmem [resolvable:$true] %s115_s25 }
  0x15   :  { %63 = dma.hbm_to_vmem [thread:$0]  %s56_s27, 5120, %s58_s28, [#allocation14], %s6869_s30, %s6869_s30, %s6870_s5  }
  0x16   :  { %s9815_s29 = sld [smem:[#allocation65_spill]]  ;;  %s6873_s28 = smov 512  }
  0x17   :  { %s6874_s0 = smov 32   ;;  %s6875_s4 = smov [#allocation10]  }
  0x18   :  { %121 = dma.hbm_to_vmem [thread:$0]  %s114_s2, 8192, %s116_s25, [#allocation20], %s6873_s28, %s6873_s28, %s6874_s0  }
  0x19   :  { %s42_s22 = sshll.u32 %s6875_s4, 4  ;;  %s9816_s10 = sld [smem:[#allocation69_spill]]  ;;  %s43_s22 = int_to_ptr.vmem [resolvable:$true] %s42_s22 }
  0x1a   :  { %s100_s3 = sshll.u32 %s9675_s9, 4  ;;  %s6877_s2 = smov [#allocation18]   ;;  %s101_s3 = int_to_ptr.hbm [resolvable:$true] %s100_s3 }
  0x1b   :  { %s102_s25 = sshll.u32 %s6877_s2, 4  ;;  %s128_s1 = sshll.u32 %s9678_s12, 4  ;;  %s103_s25 = int_to_ptr.vmem [resolvable:$true] %s102_s25  ;;  %s129_s1 = int_to_ptr.hbm [resolvable:$true] %s128_s1 }
  0x1c   :  { %s40_s27 = sshll.u32 %s9815_s29, 4  ;;  %s6876_s29 = smov [#allocation15]   ;;  %s41_s27 = int_to_ptr.hbm [resolvable:$true] %s40_s27 }
  0x1d   :  { %48 = dma.hbm_to_vmem [thread:$0]  %s41_s27, 3200, %s43_s22, [#allocation11], %s6869_s30, %s6869_s30, %s6870_s5  }
  0x1e   :  { %s72_s19 = sshll.u32 %s6876_s29, 4  ;;  %s141_s22 = sshll.u32 %s9679_s13, 4  ;;  %s73_s19 = int_to_ptr.vmem [resolvable:$true] %s72_s19  ;;  %s142_s22 = int_to_ptr.hbm [resolvable:$true] %s141_s22 }
  0x1f   :  { %s70_s24 = sshll.u32 %s9816_s10, 4  ;;  %s6878_s10 = smov [#allocation21]   ;;  %s71_s24 = int_to_ptr.hbm [resolvable:$true] %s70_s24 }
  0x20   :  { %78 = dma.hbm_to_vmem [thread:$0]  %s71_s24, 5120, %s73_s19, [#allocation14], %s6869_s30, %s6869_s30, %s6870_s5  }
  0x21   :  { %108 = dma.hbm_to_vmem [thread:$0]  %s101_s3, 4096, %s103_s25, [#allocation17], %s6873_s28, %s6873_s28, %s6874_s0  }
  0x22   :  { %s130_s7 = sshll.u32 %s6878_s10, 4  ;;  %s6879_s19 = smov [#allocation22]   ;;  %s131_s7 = int_to_ptr.vmem [resolvable:$true] %s130_s7 }
  0x23   :  { %136 = dma.hbm_to_vmem [thread:$0]  %s129_s1, 8192, %s131_s7, [#allocation20], %s6873_s28, %s6873_s28, %s6874_s0  }
  0x24   :  { %s143_s12 = sshll.u32 %s6879_s19, 4  ;;  %s144_s12 = int_to_ptr.vmem [resolvable:$true] %s143_s12 }
  0x25   :  { %149 = dma.hbm_to_vmem [thread:$0]  %s142_s22, 8192, %s144_s12, [#allocation23], %s6873_s28, %s6873_s28, %s6874_s0  }
  0x26   :  { %6854 = dma.done.wait [#allocation11], 3200  }
  0x27   :  { %6855 = vsyncadd [#allocation11], 4294964096 }
  0x28   :  { %6856 = dma.done.wait [#allocation14], 10240  }
  0x29   :  { %6857 = vsyncadd [#allocation14], 4294957056 }
  0x2a   :  { %6858 = dma.done.wait [#allocation17], 9216  }
  0x2b   :  { %6859 = vsyncadd [#allocation17], 4294958080 }
  0x2c   :  { %6860 = dma.done.wait [#allocation20], 16384  }
  0x2d   :  { %6861 = vsyncadd [#allocation20], 4294950912 }
  0x2e   :  { %6862 = dma.done.wait [#allocation23], 8192  }
  0x2f   :  { %6863 = vsyncadd [#allocation23], 4294959104  ;;  %vm234_vm0 = vcmask 1043456   ;;  %v214_v0 = vld [vmem:[#allocation10 + $0x48] sm:$0xf]  ;;  %v213_v3 = vld [vmem:[#allocation10 + $0x40] sm:$0xff] }
  0x30   :  { %v202_v1 = vld [vmem:[#allocation10 + $0x20] sm:$0xf]  ;;  %v340_v2 = vld [vmem:[#allocation10 + $0x70] sm:$0xf]  ;;  %6073 = vmatpush.msk.msra.mxu0 %vm234_vm0, %v214_v0  ;;  %v201_v4 = vld [vmem:[#allocation10 + $0x18] sm:$0xff]  ;;  %s9817_s28 = sld [smem:[#allocation64_spill]] }
  0x31   :  { %6080 = vmatpush.msk.msra.mxu1 %vm234_vm0, %v202_v1  ;;  %v339_v5 = vld [vmem:[#allocation10 + $0x68] sm:$0xff]  ;;  %6087 = vmatpush.msk.msra.mxu2 %vm234_vm0, %v340_v2  ;;  %v414_v6 = vld [vmem:[#allocation10 + $0x98] sm:$0xf]  ;;  %v200_v8 = vld [vmem:[#allocation10 + $0x10] sm:$0xff]  ;;  %vm215_vm1 = vcmask 293888   ;;  %s9818_s25 = sld [smem:[#allocation66_spill]] }
  0x32   :  { %v212_v7 = vld [vmem:[#allocation10 + $0x38] sm:$0xff]  ;;  %250 = vmatpush.msra.mxu0 %v213_v3  ;;  %v338_v9 = vld [vmem:[#allocation10 + $0x60] sm:$0xff]  ;;  %v413_v10 = vld [vmem:[#allocation10 + $0x90] sm:$0xff]  ;;  %6094 = vmatpush.msk.msra.mxu3 %vm234_vm0, %v414_v6  ;;  %vm567_vm2 = vcmask 523264   ;;  %vm573_vm3 = vcmask 519168   ;;  %s9819_s1 = sld [smem:[#allocation68_spill]] }
  0x33   :  { %306 = vmatpush.msra.mxu1 %v201_v4  ;;  %374 = vmatpush.msra.mxu2 %v339_v5  ;;  %v211_v11 = vld [vmem:[#allocation10 + $0x30] sm:$0xff]  ;;  %v199_v12 = vld [vmem:[#allocation10 + $0x8] sm:$0xff]  ;;  %v337_v13 = vld [vmem:[#allocation10 + $0x58] sm:$0xff]  ;;  %vm1728_vm4 = vcmask 64512   ;;  %s6882_s23 = smov 16   ;;  %s6884_s9 = smov 40  }
  0x34   :  { %251 = vmatpush.msra.mxu0 %v212_v7  ;;  %v412_v14 = vld [vmem:[#allocation10 + $0x88] sm:$0xff]  ;;  %448 = vmatpush.msra.mxu3 %v413_v10  ;;  %v198_v16 = vld [vmem:[#allocation10] sm:$0xff]  ;;  %v336_v17 = vld [vmem:[#allocation10 + $0x50] sm:$0xff]  ;;  %s6885_s27 = smov 56   ;;  %vm2243_vm5 = vcmask 130112   ;;  %vm2262_vm6 = vcmask 195712  }
  0x35   :  { %307 = vmatpush.msra.mxu1 %v200_v8  ;;  %375 = vmatpush.msra.mxu2 %v338_v9  ;;  %v210_v15 = vld [vmem:[#allocation10 + $0x28] sm:$0xff]  ;;  %v411_v18 = vld [vmem:[#allocation10 + $0x80] sm:$0xff]  ;;  %v410_v22 = vld [vmem:[#allocation10 + $0x78] sm:$0xff]  ;;  %vm2281_vm7 = vcmask 261312   ;;  %vm2300_vm8 = vcmask 326912   ;;  %vm2319_vm9 = vcmask 392512  }
  0x36   :  { %252 = vmatpush.msra.mxu0 %v211_v11  ;;  %449 = vmatpush.msra.mxu3 %v412_v14  ;;  %v203_v19 = vld [vmem:[%s9817_s28 + $0x1] sm:$0xff]  ;;  %v488_v24 = vld [vmem:[#allocation10 + $0xc0] sm:$0xf]  ;;  %v204_v25 = vld [vmem:[%s9817_s28 + $0x9] sm:$0xff]  ;;  %vm2338_vm10 = vcmask 458112   ;;  %vm2357_vm11 = vcmask 523712  }
  0x37   :  { %308 = vmatpush.msra.mxu1 %v199_v12  ;;  %376 = vmatpush.msra.mxu2 %v337_v13  ;;  %v192_v20 = vld [vmem:[%s9817_s28] sm:$0xff]  ;;  %v193_v26 = vld [vmem:[%s9817_s28 + $0x8] sm:$0xff]  ;;  %v205_v32 = vld [vmem:[%s9817_s28 + $0x11] sm:$0xff]  ;;  %s6039_s26 = sshll.u32 %s9686_s20, 4  ;;  %s6886_s3 = smov [#allocation25]   ;;  %s6040_s26 = int_to_ptr.hbm [resolvable:$true] %s6039_s26 }
  0x38   :  { %253 = vmatpush.msra.mxu0 %v210_v15  ;;  %v329_v21 = vld [vmem:[%s9817_s28 + $0x2] sm:$0xff]  ;;  %450 = vmatpush.msra.mxu3 %v411_v18  ;;  %v330_v27 = vld [vmem:[%s9817_s28 + $0xa] sm:$0xff]  ;;  %v485_v31 = vld [vmem:[#allocation10 + $0xa8] sm:$0xff]  ;;  %s6037_s29 = sshll.u32 %s6886_s3, 4  ;;  %s6050_s2 = sshll.u32 %s9687_s21, 4  ;;  %s6038_s29 = int_to_ptr.vmem [resolvable:$true] %s6037_s29  ;;  %s6051_s2 = int_to_ptr.hbm [resolvable:$true] %s6050_s2 }
  0x39   :  { %309 = vmatpush.msra.mxu1 %v198_v16  ;;  %377 = vmatpush.msra.mxu2 %v336_v17  ;;  %v403_v23 = vld [vmem:[%s9817_s28 + $0x3] sm:$0xff]  ;;  %v404_v28 = vld [vmem:[%s9817_s28 + $0xb] sm:$0xff]  ;;  %v405_v36 = vld [vmem:[%s9817_s28 + $0x13] sm:$0xff]  ;;  %s6888_s20 = smov [#allocation24]  }
  0x3a   :  { %6074 = vmatmul.msk.f32.vlgmr.msra.gmra.mxu0 %vm215_vm1, %v203_v19  ;;  %6081 = vmatmul.msk.f32.vlgmr.msra.gmra.mxu1 %vm215_vm1, %v192_v20  ;;  %v487_v29 = vld [vmem:[#allocation10 + $0xb8] sm:$0xff]  ;;  %v486_v30 = vld [vmem:[#allocation10 + $0xb0] sm:$0xff]  ;;  %v331_v34 = vld [vmem:[%s9817_s28 + $0x12] sm:$0xff] }
  0x3b   :  { %6088 = vmatmul.msk.f32.vlgmr.msra.gmra.mxu2 %vm215_vm1, %v329_v21  ;;  %451 = vmatpush.msra.mxu3 %v410_v22  ;;  %v194_v33 = vld [vmem:[%s9817_s28 + $0x10] sm:$0xff]  ;;  %v206_v37 = vld [vmem:[%s9817_s28 + $0x19] sm:$0xff]  ;;  %v207_v41 = vld [vmem:[%s9817_s28 + $0x21] sm:$0xff] }
  0x3c   :  { %6095 = vmatmul.msk.f32.vlgmr.msra.gmra.mxu3 %vm215_vm1, %v403_v23  ;;  %6101 = vmatpush.msk.msrb.mxu0 %vm234_vm0, %v488_v24  ;;  %v484_v35 = vld [vmem:[#allocation10 + $0xa0] sm:$0xff]  ;;  %v332_v39 = vld [vmem:[%s9817_s28 + $0x1a] sm:$0xff]  ;;  %v333_v43 = vld [vmem:[%s9817_s28 + $0x22] sm:$0xff] }
  0x3d   :  { %v195_v38 = vld [vmem:[%s9817_s28 + $0x18] sm:$0xff]  ;;  %v196_v42 = vld [vmem:[%s9817_s28 + $0x20] sm:$0xff]  ;;  %v208_v45 = vld [vmem:[%s9817_s28 + $0x29] sm:$0xf] }
  0x3e   :  { %522 = vmatpush.msrb.mxu0 %v487_v29  ;;  %v406_v40 = vld [vmem:[%s9817_s28 + $0x1b] sm:$0xff]  ;;  %v407_v44 = vld [vmem:[%s9817_s28 + $0x23] sm:$0xff]  ;;  %v408_v48 = vld [vmem:[%s9817_s28 + $0x2b] sm:$0xf] }
  0x3f   :  { %v197_v46 = vld [vmem:[%s9817_s28 + $0x28] sm:$0xf]  ;;  %v478_v50 = vld [vmem:[%s9817_s28 + $0xc] sm:$0xff]  ;;  %v479_v51 = vld [vmem:[%s9817_s28 + $0x14] sm:$0xff] }
  0x40   :  { %523 = vmatpush.msrb.mxu0 %v486_v30  ;;  %v334_v47 = vld [vmem:[%s9817_s28 + $0x2a] sm:$0xf]  ;;  %v480_v52 = vld [vmem:[%s9817_s28 + $0x1c] sm:$0xff]  ;;  %v587_v58 = vld [vmem:[#allocation13 + $0x38] sm:$0xff] }
  0x41   :  { %v477_v49 = vld [vmem:[%s9817_s28 + $0x4] sm:$0xff]  ;;  %v482_v54 = vld [vmem:[%s9817_s28 + $0x2c] sm:$0xf]  ;;  %672 = vmatpush.msrb.mxu2 %v587_v58  ;;  %v584_v61 = vld [vmem:[#allocation13 + $0x20] sm:$0xff] }
  0x42   :  { %6075 = vmatmul.msk.f32.gmra.mxu0 %vm215_vm1, %v204_v25  ;;  %6082 = vmatmul.msk.f32.gmra.mxu1 %vm215_vm1, %v193_v26  ;;  %v481_v53 = vld [vmem:[%s9817_s28 + $0x24] sm:$0xff]  ;;  %v601_v63 = vld [vmem:[#allocation13 + $0x78] sm:$0xff]  ;;  %v598_v10 = vld [vmem:[#allocation13 + $0x60] sm:$0xff] }
  0x43   :  { %6089 = vmatmul.msk.f32.gmra.mxu2 %vm215_vm1, %v330_v27  ;;  %524 = vmatpush.msrb.mxu0 %v485_v31  ;;  %v586_v59 = vld [vmem:[#allocation13 + $0x30] sm:$0xff]  ;;  %v585_v60 = vld [vmem:[#allocation13 + $0x28] sm:$0xff]  ;;  %v583_v0 = vld [vmem:[#allocation13 + $0x18] sm:$0xff] }
  0x44   :  { %6096 = vmatmul.msk.f32.gmra.mxu3 %vm215_vm1, %v404_v28  ;;  %673 = vmatpush.msrb.mxu2 %v586_v59  ;;  %v709_v1 = vld [vmem:[#allocation13 + $0xb8] sm:$0xff]  ;;  %v600_v2 = vld [vmem:[#allocation13 + $0x70] sm:$0xff]  ;;  %v599_v6 = vld [vmem:[#allocation13 + $0x68] sm:$0xff] }
  0x45   :  { %525 = vmatpush.msrb.mxu0 %v484_v35  ;;  %625 = vmatpush.msrb.mxu1 %v601_v63  ;;  %v582_v3 = vld [vmem:[#allocation13 + $0x10] sm:$0xff]  ;;  %v581_v7 = vld [vmem:[#allocation13 + $0x8] sm:$0xff]  ;;  %v580_v11 = vld [vmem:[#allocation13] sm:$0xff] }
  0x46   :  { %674 = vmatpush.msrb.mxu2 %v585_v60  ;;  %733 = vmatpush.msrb.mxu3 %v709_v1  ;;  %v708_v4 = vld [vmem:[#allocation13 + $0xb0] sm:$0xff]  ;;  %v707_v8 = vld [vmem:[#allocation13 + $0xa8] sm:$0xff]  ;;  %v706_v12 = vld [vmem:[#allocation13 + $0xa0] sm:$0xff] }
  0x47   :  { %626 = vmatpush.msrb.mxu1 %v600_v2  ;;  %v597_v14 = vld [vmem:[#allocation13 + $0x58] sm:$0xff]  ;;  %v596_v17 = vld [vmem:[#allocation13 + $0x50] sm:$0xff]  ;;  %v595_v19 = vld [vmem:[#allocation13 + $0x48] sm:$0xff] }
  0x48   :  { %675 = vmatpush.msrb.mxu2 %v584_v61  ;;  %734 = vmatpush.msrb.mxu3 %v708_v4  ;;  %v705_v15 = vld [vmem:[#allocation13 + $0x98] sm:$0xff]  ;;  %v704_v18 = vld [vmem:[#allocation13 + $0x90] sm:$0xff]  ;;  %v703_v20 = vld [vmem:[#allocation13 + $0x88] sm:$0xff] }
  0x49   :  { %627 = vmatpush.msrb.mxu1 %v599_v6  ;;  %v594_v22 = vld [vmem:[#allocation13 + $0x40] sm:$0xff]  ;;  %v837_v58 = vld [vmem:[#allocation13 + $0x118] sm:$0xff]  ;;  %v774_v59 = vld [vmem:[#allocation13 + $0xf0] sm:$0xff] }
  0x4a   :  { %6076 = vmatmul.msk.f32.gmra.mxu0 %vm215_vm1, %v205_v32  ;;  %6083 = vmatmul.msk.f32.gmra.mxu1 %vm215_vm1, %v194_v33  ;;  %v702_v23 = vld [vmem:[#allocation13 + $0x80] sm:$0xff]  ;;  %v836_v63 = vld [vmem:[#allocation13 + $0x110] sm:$0xff] }
  0x4b   :  { %6090 = vmatmul.msk.f32.gmra.mxu2 %vm215_vm1, %v331_v34  ;;  %735 = vmatpush.msrb.mxu3 %v707_v8  ;;  %v7185_v30 = vld [vmem:[%s9818_s25] ss:$0 sm:$0xff]  ;;  %s6887_s25 = smov [#allocation27]  }
  0x4c   :  { %6097 = vmatmul.msk.f32.gmra.mxu3 %vm215_vm1, %v405_v36  ;;  %676 = vmatpush.msrb.mxu2 %v583_v0  ;;  %v773_v0 = vld [vmem:[#allocation13 + $0xe8] sm:$0xff]  ;;  %v772_v6 = vld [vmem:[#allocation13 + $0xe0] sm:$0xff]  ;;  %s6048_s4 = sshll.u32 %s6887_s25, 4  ;;  %s6049_s4 = int_to_ptr.vmem [resolvable:$true] %s6048_s4 }
  0x4d   :  { %628 = vmatpush.msrb.mxu1 %v598_v10  ;;  %736 = vmatpush.msrb.mxu3 %v706_v12 }
  0x4e   :  { %677 = vmatpush.msrb.mxu2 %v582_v3  ;;  %v835_v3 = vld [vmem:[#allocation13 + $0x108] sm:$0xff] }
  0x4f   :  { %629 = vmatpush.msrb.mxu1 %v597_v14  ;;  %737 = vmatpush.msrb.mxu3 %v705_v15  ;;  %v771_v14 = vld [vmem:[#allocation13 + $0xd8] sm:$0xff] }
  0x50   :  { %678 = vmatpush.msrb.mxu2 %v581_v7  ;;  %v834_v7 = vld [vmem:[#allocation13 + $0x100] sm:$0xff] }
  0x51   :  { %630 = vmatpush.msrb.mxu1 %v596_v17  ;;  %738 = vmatpush.msrb.mxu3 %v704_v18  ;;  %v770_v17 = vld [vmem:[#allocation13 + $0xd0] sm:$0xff] }
  0x52   :  { %6077 = vmatmul.msk.f32.gmra.mxu0 %vm215_vm1, %v206_v37  ;;  %6084 = vmatmul.msk.f32.gmra.mxu1 %vm215_vm1, %v195_v38 }
  0x53   :  { %6091 = vmatmul.msk.f32.gmra.mxu2 %vm215_vm1, %v332_v39  ;;  %631 = vmatpush.msrb.mxu1 %v595_v19 }
  0x54   :  { %6098 = vmatmul.msk.f32.gmra.mxu3 %vm215_vm1, %v406_v40  ;;  %679 = vmatpush.msrb.mxu2 %v580_v11 }
  0x55   :  { %739 = vmatpush.msrb.mxu3 %v703_v20  ;;  %632 = vmatpush.msrb.mxu1 %v594_v22 }
  0x57   :  { %740 = vmatpush.msrb.mxu3 %v702_v23  ;;  %v768_v23 = vld [vmem:[#allocation13 + $0xc0] sm:$0xff] }
  0x5a   :  { %6078 = vmatmul.msk.f32.gmra.mxu0 %vm215_vm1, %v207_v41  ;;  %6085 = vmatmul.msk.f32.gmra.mxu1 %vm215_vm1, %v196_v42  ;;  %v841_v42 = vld [vmem:[#allocation13 + $0x138] sm:$0xff] }
  0x5b   :  { %6092 = vmatmul.msk.f32.gmra.mxu2 %vm215_vm1, %v333_v43 }
  0x5c   :  { %6099 = vmatmul.msk.f32.gmra.mxu3 %vm215_vm1, %v407_v44  ;;  %865 = vmatpush.msra.mxu2 %v841_v42 }
  0x62   :  { %6079 = vmatmul.msk.f32.gmra.mxu0 %vm215_vm1, %v208_v45  ;;  %6086 = vmatmul.msk.f32.gmra.mxu1 %vm215_vm1, %v197_v46  ;;  %v840_v46 = vld [vmem:[#allocation13 + $0x130] sm:$0xff] }
  0x63   :  { %6093 = vmatmul.msk.f32.gmra.mxu2 %vm215_vm1, %v334_v47 }
  0x64   :  { %6100 = vmatmul.msk.f32.gmra.mxu3 %vm215_vm1, %v408_v48  ;;  %866 = vmatpush.msra.mxu2 %v840_v46 }
  0x6a   :  { %6102 = vmatmul.msk.f32.vlgmr.msrb.gmra.mxu0 %vm215_vm1, %v477_v49 }
  0x72   :  { %6103 = vmatmul.msk.f32.gmra.mxu0 %vm215_vm1, %v478_v50  ;;  %v839_v50 = vld [vmem:[#allocation13 + $0x128] sm:$0xff] }
  0x73   :  { %867 = vmatpush.msra.mxu2 %v839_v50 }
  0x7a   :  { %6104 = vmatmul.msk.f32.gmra.mxu0 %vm215_vm1, %v479_v51 }
  0x82   :  { %6105 = vmatmul.msk.f32.gmra.mxu0 %vm215_vm1, %v480_v52 }
  0x8a   :  { %6106 = vmatmul.msk.f32.gmra.mxu0 %vm215_vm1, %v481_v53  ;;  %v838_v53 = vld [vmem:[#allocation13 + $0x120] sm:$0xff] }
  0x8b   :  { %868 = vmatpush.msra.mxu2 %v838_v53 }
  0x8d   :  { %869 = vmatpush.msra.mxu2 %v837_v58 }
  0x8f   :  { %870 = vmatpush.msra.mxu2 %v836_v63 }
  0x91   :  { %871 = vmatpush.msra.mxu2 %v835_v3  ;;  %v923_v3 = vld [vmem:[#allocation15 + $0x28] sm:$0xff] }
  0x92   :  { %6107 = vmatmul.msk.f32.gmra.mxu0 %vm215_vm1, %v482_v54 }
  0x93   :  { %872 = vmatpush.msra.mxu2 %v834_v7  ;;  %v921_v7 = vld [vmem:[#allocation15 + $0x18] sm:$0xff] }
  0xb7   :  { %v255_v55 = vpop.f32.mrf.mxu0  ;;  %v311_v5 = vpop.f32.mrf.mxu1 }
  0xb8   :  { %v312_v26 = vadd.f32 %v311_v5, %v255_v55 }
  0xbe   :  { %v379_v9 = vpop.f32.mrf.mxu2 }
  0xbf   :  { %v7172_v56 = vpop.f32.mrf.mxu0  ;;  %v453_v16 = vpop.f32.mrf.mxu3  ;;  %v397_v27 = vadd.f32 %v379_v9, %v312_v26 }
  0xc0   :  { %v314_v21 = vpop.f32.mrf.mxu1 }
  0xc1   :  { %v471_v29 = vadd.f32 %v453_v16, %v397_v27  ;;  %v315_v33 = vadd.f32 %v314_v21, %v7172_v56  ;;  %v769_v21 = vld [vmem:[#allocation13 + $0xc8] sm:$0xff] }
  0xc6   :  { %v382_v24 = vpop.f32.mrf.mxu2 }
  0xc7   :  { %v7174_v57 = vpop.f32.mrf.mxu0  ;;  %v456_v28 = vpop.f32.mrf.mxu3  ;;  %v398_v36 = vadd.f32 %v382_v24, %v315_v33 }
  0xc8   :  { %v317_v31 = vpop.f32.mrf.mxu1 }
  0xc9   :  { %v472_v40 = vadd.f32 %v456_v28, %v398_v36  ;;  %v318_v43 = vadd.f32 %v317_v31, %v7174_v57  ;;  %v775_v57 = vld [vmem:[#allocation13 + $0xf8] sm:$0xff] }
  0xca   :  { %799 = vmatpush.msra.mxu1 %v775_v57 }
  0xcc   :  { %800 = vmatpush.msra.mxu1 %v774_v59 }
  0xce   :  { %v385_v35 = vpop.f32.mrf.mxu2  ;;  %801 = vmatpush.msra.mxu1 %v773_v0  ;;  %v925_v0 = vld [vmem:[#allocation15 + $0x38] sm:$0xff] }
  0xcf   :  { %v7176_v62 = vpop.f32.mrf.mxu0  ;;  %v459_v39 = vpop.f32.mrf.mxu3  ;;  %v399_v47 = vadd.f32 %v385_v35, %v318_v43  ;;  %1010 = vmatpush.msra.mxu0 %v925_v0 }
  0xd0   :  { %v320_v45 = vpop.f32.mrf.mxu1  ;;  %802 = vmatpush.msra.mxu1 %v772_v6  ;;  %v939_v6 = vld [vmem:[#allocation15 + $0x78] sm:$0xff] }
  0xd1   :  { %v473_v54 = vadd.f32 %v459_v39, %v399_v47  ;;  %v321_v60 = vadd.f32 %v320_v45, %v7176_v62  ;;  %963 = vmatpush.msra.mxu3 %v939_v6  ;;  %v1177_v6 = vld [vmem:[#allocation15 + $0x128] sm:$0xff] }
  0xd2   :  { %803 = vmatpush.msra.mxu1 %v771_v14 }
  0xd4   :  { %804 = vmatpush.msra.mxu1 %v770_v17  ;;  %v1045_v17 = vld [vmem:[#allocation15 + $0xa8] sm:$0xff] }
  0xd6   :  { %v388_v49 = vpop.f32.mrf.mxu2  ;;  %805 = vmatpush.msra.mxu1 %v769_v21  ;;  %v918_v21 = vld [vmem:[#allocation15] sm:$0xff] }
  0xd7   :  { %v7178_v13 = vpop.f32.mrf.mxu0  ;;  %v462_v55 = vpop.f32.mrf.mxu3  ;;  %v400_v1 = vadd.f32 %v388_v49, %v321_v60 }
  0xd8   :  { %v323_v4 = vpop.f32.mrf.mxu1  ;;  %806 = vmatpush.msra.mxu1 %v768_v23  ;;  %v1110_v23 = vld [vmem:[#allocation15 + $0xe0] sm:$0xff] }
  0xd9   :  { %v474_v11 = vadd.f32 %v462_v55, %v400_v1  ;;  %v324_v15 = vadd.f32 %v323_v4, %v7178_v13  ;;  %v924_v1 = vld [vmem:[#allocation15 + $0x30] sm:$0xff] }
  0xda   :  { %1011 = vmatpush.msra.mxu0 %v924_v1  ;;  %v1179_v1 = vld [vmem:[#allocation15 + $0x138] sm:$0xff] }
  0xdc   :  { %1012 = vmatpush.msra.mxu0 %v923_v3  ;;  %v1178_v3 = vld [vmem:[#allocation15 + $0x130] sm:$0xff] }
  0xde   :  { %v391_v8 = vpop.f32.mrf.mxu2 }
  0xdf   :  { %v7180_v25 = vpop.f32.mrf.mxu0  ;;  %v465_v18 = vpop.f32.mrf.mxu3  ;;  %v401_v19 = vadd.f32 %v391_v8, %v324_v15  ;;  %v1047_v8 = vld [vmem:[#allocation15 + $0xb8] sm:$0xff]  ;;  %v937_v15 = vld [vmem:[#allocation15 + $0x68] sm:$0xff] }
  0xe0   :  { %v326_v24 = vpop.f32.mrf.mxu1 }
  0xe6   :  { %v394_v13 = vpop.f32.mrf.mxu2 }
  0xe7   :  { %v527_v32 = vpop.f32.mrf.mxu0  ;;  %v468_v36 = vpop.f32.mrf.mxu3 }
  0xe8   :  { %v545_v34 = vadd.f32 %v527_v32, %v471_v29  ;;  %v475_v29 = vadd.f32 %v465_v18, %v401_v19  ;;  %v327_v32 = vadd.f32 %v326_v24, %v7180_v25  ;;  %v1111_v18 = vld [vmem:[#allocation15 + $0xe8] sm:$0xff]  ;;  %v935_v24 = vld [vmem:[#allocation15 + $0x58] sm:$0xff] }
  0xea   :  { %v555_v37 = vadd.f32 %v7185_v30, %v545_v34  ;;  %v402_v34 = vadd.f32 %v394_v13, %v327_v32  ;;  %v1042_v13 = vld [vmem:[#allocation15 + $0x90] sm:$0xff] }
  0xec   :  { %v561_v38 = vmax.f32 %v555_v37, 0.0 }
  0xee   :  { %568 = vst.msk [vmem:[#allocation2] sm:$0xff] %vm567_vm2, %v561_v38 }
  0xef   :  { %v530_v41 = vpop.f32.mrf.mxu0 }
  0xf0   :  { %v546_v44 = vadd.f32 %v530_v41, %v472_v40  ;;  %v476_v41 = vadd.f32 %v468_v36, %v402_v34  ;;  %v1041_v34 = vld [vmem:[#allocation15 + $0x88] sm:$0xff] }
  0xf2   :  { %v556_v48 = vadd.f32 %v7185_v30, %v546_v44 }
  0xf4   :  { %v562_v51 = vmax.f32 %v556_v48, 0.0 }
  0xf5   :  { %v575_v52 = vld [vmem:[#allocation2] sm:$0xff] }
  0xf6   :  { %569 = vst.msk [vmem:[#allocation2 + $0x8] sm:$0xff] %vm567_vm2, %v562_v51  ;;  %6113 = vmatmul.msk.f32.vlgmr.msrb.gmra.mxu2 %vm567_vm2, %v575_v52 }
  0xf7   :  { %v533_v56 = vpop.f32.mrf.mxu0 }
  0xf8   :  { %v547_v61 = vadd.f32 %v533_v56, %v473_v54 }
  0xfa   :  { %v557_v2 = vadd.f32 %v7185_v30, %v547_v61 }
  0xfc   :  { %v563_v5 = vmax.f32 %v557_v2, 0.0 }
  0xfd   :  { %v588_v9 = vld [vmem:[#allocation2 + $0x1] sm:$0xff] }
  0xfe   :  { %v576_v10 = vld [vmem:[#allocation2 + $0x8] sm:$0xff]  ;;  %570 = vst.msk [vmem:[#allocation2 + $0x10] sm:$0xff] %vm567_vm2, %v563_v5  ;;  %6108 = vmatmul.msk.f32.vlgmr.msrb.gmra.mxu1 %vm567_vm2, %v588_v9  ;;  %v922_v5 = vld [vmem:[#allocation15 + $0x20] sm:$0xff]  ;;  %v1113_v9 = vld [vmem:[#allocation15 + $0xf8] sm:$0xff] }
  0xff   :  { %v696_v62 = vld [vmem:[#allocation2 + $0x2] sm:$0xff]  ;;  %6114 = vmatmul.msk.f32.gmra.mxu2 %vm567_vm2, %v576_v10  ;;  %v536_v12 = vpop.f32.mrf.mxu0  ;;  %1013 = vmatpush.msra.mxu0 %v922_v5  ;;  %v938_v10 = vld [vmem:[#allocation15 + $0x70] sm:$0xff] }
 0x100   :  { %6118 = vmatmul.msk.f32.vlgmr.msrb.gmra.mxu3 %vm567_vm2, %v696_v62  ;;  %v548_v16 = vadd.f32 %v536_v12, %v474_v11  ;;  %v828_v50 = vld [vmem:[#allocation2 + $0x4] sm:$0xff]  ;;  %1071 = vmatpush.msrb.mxu1 %v1047_v8 }
 0x101   :  { %1014 = vmatpush.msra.mxu0 %v921_v7  ;;  %1137 = vmatpush.msrb.mxu2 %v1113_v9  ;;  %v920_v62 = vld [vmem:[#allocation15 + $0x10] sm:$0xff]  ;;  %v1176_v9 = vld [vmem:[#allocation15 + $0x120] sm:$0xff] }
 0x102   :  { %v558_v20 = vadd.f32 %v7185_v30, %v548_v16  ;;  %v1046_v11 = vld [vmem:[#allocation15 + $0xb0] sm:$0xff]  ;;  %964 = vmatpush.msra.mxu3 %v938_v10  ;;  %v919_v16 = vld [vmem:[#allocation15 + $0x8] sm:$0xff] }
 0x103   :  { %1015 = vmatpush.msra.mxu0 %v920_v62  ;;  %v1112_v12 = vld [vmem:[#allocation15 + $0xf0] sm:$0xff]  ;;  %1072 = vmatpush.msrb.mxu1 %v1046_v11 }
 0x104   :  { %v564_v22 = vmax.f32 %v558_v20, 0.0  ;;  %1138 = vmatpush.msrb.mxu2 %v1112_v12  ;;  %965 = vmatpush.msra.mxu3 %v937_v15  ;;  %v936_v20 = vld [vmem:[#allocation15 + $0x60] sm:$0xff] }
 0x105   :  { %v589_v26 = vld [vmem:[#allocation2 + $0x9] sm:$0xff]  ;;  %1016 = vmatpush.msra.mxu0 %v919_v16  ;;  %1073 = vmatpush.msrb.mxu1 %v1045_v17  ;;  %v1175_v17 = vld [vmem:[#allocation15 + $0x118] sm:$0xff] }
 0x106   :  { %v577_v27 = vld [vmem:[#allocation2 + $0x10] sm:$0xff]  ;;  %571 = vst.msk [vmem:[#allocation2 + $0x18] sm:$0xff] %vm567_vm2, %v564_v22  ;;  %6109 = vmatmul.msk.f32.gmra.mxu1 %vm567_vm2, %v589_v26  ;;  %1139 = vmatpush.msrb.mxu2 %v1111_v18  ;;  %v1044_v22 = vld [vmem:[#allocation15 + $0xa0] sm:$0xff] }
 0x107   :  { %v697_v28 = vld [vmem:[#allocation2 + $0xa] sm:$0xff]  ;;  %6115 = vmatmul.msk.f32.gmra.mxu2 %vm567_vm2, %v577_v27  ;;  %v539_v31 = vpop.f32.mrf.mxu0  ;;  %966 = vmatpush.msra.mxu3 %v936_v20  ;;  %v1043_v26 = vld [vmem:[#allocation15 + $0x98] sm:$0xff] }
 0x108   :  { %6119 = vmatmul.msk.f32.gmra.mxu3 %vm567_vm2, %v697_v28  ;;  %v549_v33 = vadd.f32 %v539_v31, %v475_v29  ;;  %v829_v51 = vld [vmem:[#allocation2 + $0xc] sm:$0xff]  ;;  %1017 = vmatpush.msra.mxu0 %v918_v21 }
 0x109   :  { %v763_v52 = vld [vmem:[#allocation2 + $0xb] sm:$0xff]  ;;  %1074 = vmatpush.msrb.mxu1 %v1044_v22  ;;  %1140 = vmatpush.msrb.mxu2 %v1110_v23 }
 0x10a   :  { %v559_v35 = vadd.f32 %v7185_v30, %v549_v33  ;;  %v1109_v27 = vld [vmem:[#allocation15 + $0xd8] sm:$0xff]  ;;  %967 = vmatpush.msra.mxu3 %v935_v24  ;;  %v934_v29 = vld [vmem:[#allocation15 + $0x50] sm:$0xff]  ;;  %v933_v33 = vld [vmem:[#allocation15 + $0x48] sm:$0xff] }
 0x10b   :  { %1075 = vmatpush.msrb.mxu1 %v1043_v26  ;;  %1141 = vmatpush.msrb.mxu2 %v1109_v27  ;;  %v1108_v31 = vld [vmem:[#allocation15 + $0xd0] sm:$0xff]  ;;  %v1173_v26 = vld [vmem:[#allocation15 + $0x108] sm:$0xff] }
 0x10c   :  { %v565_v37 = vmax.f32 %v559_v35, 0.0  ;;  %968 = vmatpush.msra.mxu3 %v934_v29  ;;  %v1107_v35 = vld [vmem:[#allocation15 + $0xc8] sm:$0xff]  ;;  %v1174_v20 = vld [vmem:[#allocation15 + $0x110] sm:$0xff] }
 0x10d   :  { %v590_v38 = vld [vmem:[#allocation2 + $0x11] sm:$0xff]  ;;  %1076 = vmatpush.msrb.mxu1 %v1042_v13  ;;  %1142 = vmatpush.msrb.mxu2 %v1108_v31 }
 0x10e   :  { %v578_v39 = vld [vmem:[#allocation2 + $0x18] sm:$0xff]  ;;  %572 = vst.msk [vmem:[#allocation2 + $0x20] sm:$0xff] %vm567_vm2, %v565_v37  ;;  %6110 = vmatmul.msk.f32.gmra.mxu1 %vm567_vm2, %v590_v38  ;;  %969 = vmatpush.msra.mxu3 %v933_v33 }
 0x10f   :  { %v698_v40 = vld [vmem:[#allocation2 + $0x12] sm:$0xff]  ;;  %6116 = vmatmul.msk.f32.gmra.mxu2 %vm567_vm2, %v578_v39  ;;  %v542_v42 = vpop.f32.mrf.mxu0  ;;  %1077 = vmatpush.msrb.mxu1 %v1041_v34  ;;  %v932_v37 = vld [vmem:[#allocation15 + $0x40] sm:$0xff] }
 0x110   :  { %6120 = vmatmul.msk.f32.gmra.mxu3 %vm567_vm2, %v698_v40  ;;  %v550_v25 = vadd.f32 %v542_v42, %v476_v41  ;;  %v830_v53 = vld [vmem:[#allocation2 + $0x14] sm:$0xff]  ;;  %1143 = vmatpush.msrb.mxu2 %v1107_v35 }
 0x111   :  { %v764_v54 = vld [vmem:[#allocation2 + $0x13] sm:$0xff]  ;;  %970 = vmatpush.msra.mxu3 %v932_v37 }
 0x112   :  { %v560_v43 = vadd.f32 %v7185_v30, %v550_v25  ;;  %v762_v30 = vld [vmem:[#allocation2 + $0x3] sm:$0xff]  ;;  %v1040_v38 = vld [vmem:[#allocation15 + $0x80] sm:$0xff] }
 0x113   :  { %v1106_v39 = vld [vmem:[#allocation15 + $0xc0] sm:$0xff]  ;;  %1078 = vmatpush.msrb.mxu1 %v1040_v38  ;;  %1203 = vmatpush.msrb.mxu3 %v1179_v1 }
 0x114   :  { %v566_v44 = vmax.f32 %v560_v43, 0.0  ;;  %1144 = vmatpush.msrb.mxu2 %v1106_v39  ;;  %v1172_v34 = vld [vmem:[#allocation15 + $0x100] sm:$0xff] }
 0x115   :  { %v591_v45 = vld [vmem:[#allocation2 + $0x19] sm:$0xff]  ;;  %1204 = vmatpush.msrb.mxu3 %v1178_v3 }
 0x116   :  { %v579_v46 = vld [vmem:[#allocation2 + $0x20] sm:$0xff]  ;;  %574 = vst.msk [vmem:[#allocation2 + $0x28] sm:$0xf] %vm573_vm3, %v566_v44  ;;  %6111 = vmatmul.msk.f32.gmra.mxu1 %vm567_vm2, %v591_v45 }
 0x117   :  { %v699_v47 = vld [vmem:[#allocation2 + $0x1a] sm:$0xff]  ;;  %6117 = vmatmul.msk.f32.gmra.mxu2 %vm567_vm2, %v579_v46  ;;  %1205 = vmatpush.msrb.mxu3 %v1177_v6 }
 0x118   :  { %6121 = vmatmul.msk.f32.gmra.mxu3 %vm567_vm2, %v699_v47  ;;  %v831_v55 = vld [vmem:[#allocation2 + $0x1c] sm:$0xff] }
 0x119   :  { %v765_v56 = vld [vmem:[#allocation2 + $0x1b] sm:$0xff]  ;;  %1206 = vmatpush.msrb.mxu3 %v1176_v9 }
 0x11a   :  { %v7254_v45 = vld [vmem:[%s9819_s1] ss:$0 sm:$0xff]  ;;  %s6883_s1 = smov 48  }
 0x11b   :  { %1207 = vmatpush.msrb.mxu3 %v1175_v17 }
 0x11d   :  { %v592_v48 = vld [vmem:[#allocation2 + $0x21] sm:$0xff]  ;;  %1208 = vmatpush.msrb.mxu3 %v1174_v20 }
 0x11e   :  { %v700_v49 = vld [vmem:[#allocation2 + $0x22] sm:$0xff]  ;;  %6112 = vmatmul.msk.f32.gmra.mxu1 %vm567_vm2, %v592_v48 }
 0x11f   :  { %6128 = vmatmul.msk.f32.vlgmr.msra.gmra.mxu2 %vm567_vm2, %v828_v50  ;;  %v832_v57 = vld [vmem:[#allocation2 + $0x24] sm:$0xff]  ;;  %1209 = vmatpush.msrb.mxu3 %v1173_v26 }
 0x120   :  { %6122 = vmatmul.msk.f32.gmra.mxu3 %vm567_vm2, %v700_v49  ;;  %v766_v58 = vld [vmem:[#allocation2 + $0x23] sm:$0xff] }
 0x121   :  { %1210 = vmatpush.msrb.mxu3 %v1172_v34 }
 0x126   :  { %6123 = vmatmul.msk.f32.vlgmr.msra.gmra.mxu1 %vm567_vm2, %v762_v30 }
 0x127   :  { %6129 = vmatmul.msk.f32.gmra.mxu2 %vm567_vm2, %v829_v51 }
 0x12e   :  { %6124 = vmatmul.msk.f32.gmra.mxu1 %vm567_vm2, %v763_v52 }
 0x12f   :  { %6130 = vmatmul.msk.f32.gmra.mxu2 %vm567_vm2, %v830_v53 }
 0x136   :  { %6125 = vmatmul.msk.f32.gmra.mxu1 %vm567_vm2, %v764_v54 }
 0x137   :  { %6131 = vmatmul.msk.f32.gmra.mxu2 %vm567_vm2, %v831_v55 }
 0x13e   :  { %6126 = vmatmul.msk.f32.gmra.mxu1 %vm567_vm2, %v765_v56 }
 0x13f   :  { %6132 = vmatmul.msk.f32.gmra.mxu2 %vm567_vm2, %v832_v57 }
 0x146   :  { %6127 = vmatmul.msk.f32.gmra.mxu1 %vm567_vm2, %v766_v58 }
 0x179   :  { %v7229_v59 = vpop.f32.mrf.mxu2 }
 0x17b   :  { %v7231_v60 = vpop.f32.mrf.mxu1 }
 0x17c   :  { %v682_v40 = vadd.f32 %v7229_v59, %v7231_v60 }
 0x182   :  { %v7233_v61 = vpop.f32.mrf.mxu2 }
 0x183   :  { %v7235_v63 = vpop.f32.mrf.mxu1  ;;  %v742_v28 = vpop.f32.mrf.mxu3 }
 0x184   :  { %v757_v25 = vadd.f32 %v742_v28, %v682_v40  ;;  %v685_v47 = vadd.f32 %v7233_v61, %v7235_v63 }
 0x18a   :  { %v7237_v2 = vpop.f32.mrf.mxu2 }
 0x18b   :  { %v7239_v4 = vpop.f32.mrf.mxu1  ;;  %v745_v41 = vpop.f32.mrf.mxu3 }
 0x18c   :  { %v758_v50 = vadd.f32 %v745_v41, %v685_v47  ;;  %v688_v55 = vadd.f32 %v7237_v2, %v7239_v4 }
 0x192   :  { %v7241_v14 = vpop.f32.mrf.mxu2 }
 0x193   :  { %v7243_v19 = vpop.f32.mrf.mxu1  ;;  %v748_v51 = vpop.f32.mrf.mxu3 }
 0x194   :  { %v759_v58 = vadd.f32 %v748_v51, %v688_v55  ;;  %v691_v2 = vadd.f32 %v7241_v14, %v7243_v19 }
 0x19a   :  { %v7245_v32 = vpop.f32.mrf.mxu2 }
 0x19b   :  { %v7247_v36 = vpop.f32.mrf.mxu1  ;;  %v751_v0 = vpop.f32.mrf.mxu3 }
 0x19c   :  { %v760_v7 = vadd.f32 %v751_v0, %v691_v2  ;;  %v694_v21 = vadd.f32 %v7245_v32, %v7247_v36 }
 0x1a2   :  { %v874_v42 = vpop.f32.mrf.mxu2 }
 0x1a3   :  { %v808_v43 = vpop.f32.mrf.mxu1  ;;  %v754_v19 = vpop.f32.mrf.mxu3 }
 0x1a4   :  { %v823_v44 = vadd.f32 %v808_v43, %v757_v25  ;;  %v761_v23 = vadd.f32 %v754_v19, %v694_v21  ;;  %v7310_v21 = vld [vmem:[#allocation16] sm:$0xff] }
 0x1a6   :  { %v889_v46 = vadd.f32 %v874_v42, %v823_v44 }
 0x1a8   :  { %v898_v48 = vadd.f32 %v7254_v45, %v889_v46 }
 0x1aa   :  { %v877_v49 = vpop.f32.mrf.mxu2  ;;  %v903_v30 = vmax.f32 %v898_v48, 0.0 }
 0x1ab   :  { %v811_v52 = vpop.f32.mrf.mxu1 }
 0x1ac   :  { %908 = vst.msk [vmem:[#allocation3] sm:$0xff] %vm567_vm2, %v903_v30  ;;  %v824_v53 = vadd.f32 %v811_v52, %v758_v50 }
 0x1ae   :  { %v890_v54 = vadd.f32 %v877_v49, %v824_v53 }
 0x1b0   :  { %v899_v56 = vadd.f32 %v7254_v45, %v890_v54 }
 0x1b2   :  { %v880_v57 = vpop.f32.mrf.mxu2  ;;  %v904_v59 = vmax.f32 %v899_v56, 0.0 }
 0x1b3   :  { %v814_v60 = vpop.f32.mrf.mxu1  ;;  %v913_v61 = vld [vmem:[#allocation3] sm:$0xff] }
 0x1b4   :  { %909 = vst.msk [vmem:[#allocation3 + $0x8] sm:$0xff] %vm567_vm2, %v904_v59  ;;  %v825_v63 = vadd.f32 %v814_v60, %v759_v58  ;;  %6138 = vmatmul.msk.f32.vlgmr.msra.gmra.mxu0 %vm567_vm2, %v913_v61 }
 0x1b6   :  { %v891_v5 = vadd.f32 %v880_v57, %v825_v63 }
 0x1b8   :  { %v900_v4 = vadd.f32 %v7254_v45, %v891_v5  ;;  %v7302_v5 = vld [vmem:[%s9672_s6] ss:$0 sm:$0xff] }
 0x1ba   :  { %v905_v8 = vmax.f32 %v900_v4, 0.0  ;;  %v883_v10 = vpop.f32.mrf.mxu2 }
 0x1bb   :  { %v817_v62 = vpop.f32.mrf.mxu1  ;;  %v926_v11 = vld [vmem:[#allocation3 + $0x1] sm:$0xff] }
 0x1bc   :  { %v914_v12 = vld [vmem:[#allocation3 + $0x8] sm:$0xff]  ;;  %910 = vst.msk [vmem:[#allocation3 + $0x10] sm:$0xff] %vm567_vm2, %v905_v8  ;;  %v826_v16 = vadd.f32 %v817_v62, %v760_v7  ;;  %6133 = vmatmul.msk.f32.vlgmr.msra.gmra.mxu3 %vm567_vm2, %v926_v11 }
 0x1bd   :  { %v1034_v15 = vld [vmem:[#allocation3 + $0x2] sm:$0xff]  ;;  %6139 = vmatmul.msk.f32.gmra.mxu0 %vm567_vm2, %v914_v12 }
 0x1be   :  { %v1100_v14 = vld [vmem:[#allocation3 + $0x3] sm:$0xff]  ;;  %6143 = vmatmul.msk.f32.vlgmr.msrb.gmra.mxu1 %vm567_vm2, %v1034_v15  ;;  %v892_v18 = vadd.f32 %v883_v10, %v826_v16 }
 0x1bf   :  { %6148 = vmatmul.msk.f32.vlgmr.msrb.gmra.mxu2 %vm567_vm2, %v1100_v14  ;;  %v1166_v48 = vld [vmem:[#allocation3 + $0x4] sm:$0xff] }
 0x1c0   :  { %v901_v22 = vadd.f32 %v7254_v45, %v892_v18 }
 0x1c2   :  { %v906_v24 = vmax.f32 %v901_v22, 0.0  ;;  %v886_v32 = vpop.f32.mrf.mxu2  ;;  %v7312_v22 = vld [vmem:[#allocation16 + $0x38] sm:$0xff] }
 0x1c3   :  { %v820_v27 = vpop.f32.mrf.mxu1  ;;  %v927_v28 = vld [vmem:[#allocation3 + $0x9] sm:$0xff] }
 0x1c4   :  { %v915_v29 = vld [vmem:[#allocation3 + $0x10] sm:$0xff]  ;;  %911 = vst.msk [vmem:[#allocation3 + $0x18] sm:$0xff] %vm567_vm2, %v906_v24  ;;  %v827_v31 = vadd.f32 %v820_v27, %v761_v23  ;;  %6134 = vmatmul.msk.f32.gmra.mxu3 %vm567_vm2, %v927_v28 }
 0x1c5   :  { %v1035_v13 = vld [vmem:[#allocation3 + $0xa] sm:$0xff]  ;;  %6140 = vmatmul.msk.f32.gmra.mxu0 %vm567_vm2, %v915_v29 }
 0x1c6   :  { %v1101_v33 = vld [vmem:[#allocation3 + $0xb] sm:$0xff]  ;;  %6144 = vmatmul.msk.f32.gmra.mxu1 %vm567_vm2, %v1035_v13  ;;  %v893_v35 = vadd.f32 %v886_v32, %v827_v31 }
 0x1c7   :  { %6149 = vmatmul.msk.f32.gmra.mxu2 %vm567_vm2, %v1101_v33  ;;  %v1167_v49 = vld [vmem:[#allocation3 + $0xc] sm:$0xff] }
 0x1c8   :  { %v902_v36 = vadd.f32 %v7254_v45, %v893_v35  ;;  %v7320_v35 = vld [vmem:[#allocation16 + $0x40] sm:$0xff] }
 0x1ca   :  { %v907_v37 = vmax.f32 %v902_v36, 0.0  ;;  %v7322_v36 = vld [vmem:[#allocation16 + $0x8] sm:$0xff] }
 0x1cb   :  { %v928_v38 = vld [vmem:[#allocation3 + $0x11] sm:$0xff] }
 0x1cc   :  { %v916_v39 = vld [vmem:[#allocation3 + $0x18] sm:$0xff]  ;;  %912 = vst.msk [vmem:[#allocation3 + $0x20] sm:$0xff] %vm567_vm2, %v907_v37  ;;  %6135 = vmatmul.msk.f32.gmra.mxu3 %vm567_vm2, %v928_v38  ;;  %v7326_v38 = vld [vmem:[#allocation16 + $0x78] sm:$0xff] }
 0x1cd   :  { %v1036_v40 = vld [vmem:[#allocation3 + $0x12] sm:$0xff]  ;;  %6141 = vmatmul.msk.f32.gmra.mxu0 %vm567_vm2, %v916_v39  ;;  %v7328_v39 = vld [vmem:[#allocation16 + $0xc0] sm:$0xff] }
 0x1ce   :  { %v1102_v41 = vld [vmem:[#allocation3 + $0x13] sm:$0xff]  ;;  %6145 = vmatmul.msk.f32.gmra.mxu1 %vm567_vm2, %v1036_v40 }
 0x1cf   :  { %6150 = vmatmul.msk.f32.gmra.mxu2 %vm567_vm2, %v1102_v41  ;;  %v1168_v50 = vld [vmem:[#allocation3 + $0x14] sm:$0xff] }
 0x1d3   :  { %v929_v42 = vld [vmem:[#allocation3 + $0x19] sm:$0xff]  ;;  %v930_v45 = vld [vmem:[#allocation3 + $0x21] sm:$0xf] }
 0x1d4   :  { %v917_v25 = vld [vmem:[#allocation3 + $0x20] sm:$0xf]  ;;  %6136 = vmatmul.msk.f32.gmra.mxu3 %vm567_vm2, %v929_v42  ;;  %v1170_v51 = vld [vmem:[#allocation3 + $0x24] sm:$0xf] }
 0x1d5   :  { %v1037_v43 = vld [vmem:[#allocation3 + $0x1a] sm:$0xff]  ;;  %6142 = vmatmul.msk.f32.gmra.mxu0 %vm567_vm2, %v917_v25  ;;  %v1038_v46 = vld [vmem:[#allocation3 + $0x22] sm:$0xf] }
 0x1d6   :  { %v1103_v44 = vld [vmem:[#allocation3 + $0x1b] sm:$0xff]  ;;  %6146 = vmatmul.msk.f32.gmra.mxu1 %vm567_vm2, %v1037_v43  ;;  %v1104_v47 = vld [vmem:[#allocation3 + $0x23] sm:$0xf] }
 0x1d7   :  { %6151 = vmatmul.msk.f32.gmra.mxu2 %vm567_vm2, %v1103_v44  ;;  %v1169_v30 = vld [vmem:[#allocation3 + $0x1c] sm:$0xff] }
 0x1dc   :  { %6137 = vmatmul.msk.f32.gmra.mxu3 %vm567_vm2, %v930_v45 }
 0x1de   :  { %6147 = vmatmul.msk.f32.gmra.mxu1 %vm567_vm2, %v1038_v46  ;;  %v7341_v46 = vld [vmem:[#allocation16 + $0x48] sm:$0xff] }
 0x1df   :  { %6152 = vmatmul.msk.f32.gmra.mxu2 %vm567_vm2, %v1104_v47  ;;  %v7343_v47 = vld [vmem:[#allocation16 + $0x10] sm:$0xff] }
 0x1e4   :  { %6153 = vmatmul.msk.f32.vlgmr.msrb.gmra.mxu3 %vm567_vm2, %v1166_v48 }
 0x1ec   :  { %6154 = vmatmul.msk.f32.gmra.mxu3 %vm567_vm2, %v1167_v49  ;;  %v7345_v49 = vld [vmem:[#allocation16 + $0x80] sm:$0xff] }
 0x1f4   :  { %6155 = vmatmul.msk.f32.gmra.mxu3 %vm567_vm2, %v1168_v50  ;;  %v7347_v50 = vld [vmem:[#allocation16 + $0xc8] sm:$0xff] }
 0x1fc   :  { %6156 = vmatmul.msk.f32.gmra.mxu3 %vm567_vm2, %v1169_v30 }
 0x204   :  { %6157 = vmatmul.msk.f32.gmra.mxu3 %vm567_vm2, %v1170_v51 }
 0x231   :  { %v1019_v55 = vpop.f32.mrf.mxu0 }
 0x23a   :  { %v1022_v60 = vpop.f32.mrf.mxu0 }
 0x23b   :  { %v1080_v57 = vpop.f32.mrf.mxu1 }
 0x23f   :  { %v972_v52 = vpop.f32.mrf.mxu3 }
 0x240   :  { %v1020_v59 = vadd.f32 %v1019_v55, %v972_v52  ;;  %v7362_v55 = vld [vmem:[#allocation16 + $0x18] sm:$0xff] }
 0x242   :  { %v1146_v58 = vpop.f32.mrf.mxu2  ;;  %v1095_v63 = vadd.f32 %v1080_v57, %v1020_v59  ;;  %v1025_v7 = vpop.f32.mrf.mxu0  ;;  %v7366_v57 = vld [vmem:[#allocation16 + $0xd0] sm:$0xff] }
 0x243   :  { %v1083_v0 = vpop.f32.mrf.mxu1  ;;  %v7405_v7 = vld [vmem:[%s9674_s8] sm:$0xff] }
 0x244   :  { %v1161_v1 = vadd.f32 %v1146_v58, %v1095_v63  ;;  %v1264_v63 = vld [vmem:[#allocation16 + $0x58] sm:$0xff] }
 0x247   :  { %v975_v53 = vpop.f32.mrf.mxu3 }
 0x248   :  { %v1023_v3 = vadd.f32 %v1022_v60, %v975_v53 }
 0x24a   :  { %v1149_v6 = vpop.f32.mrf.mxu2  ;;  %v1096_v8 = vadd.f32 %v1083_v0, %v1023_v3  ;;  %v1028_v17 = vpop.f32.mrf.mxu0  ;;  %v7378_v0 = vld [vmem:[#allocation16 + $0x20] sm:$0xff]  ;;  %v7384_v3 = vld [vmem:[#allocation16 + $0xd8] sm:$0xff] }
 0x24b   :  { %v1086_v62 = vpop.f32.mrf.mxu1 }
 0x24c   :  { %v1162_v11 = vadd.f32 %v1149_v6, %v1096_v8  ;;  %v7393_v6 = vld [vmem:[#allocation16 + $0x28] sm:$0xff]  ;;  %v6880_v8 = vmov 0   ;;  %v1411_v62 = vld [vmem:[#allocation16 + $0xa0] sm:$0xff] }
 0x24d   :  { %6327 = vset.pattern.permute.xlu0 %v6880_v8  ;;  %6328 = vset.pattern.permute.xlu1 %v6880_v8 }
 0x24e   :  { %1674 = vperm.xlu0 %6327, %v7405_v7   ;;  %6329 = vset.pattern.permute.xlu2 %v6880_v8 }
 0x24f   :  { %v978_v54 = vpop.f32.mrf.mxu3 }
 0x250   :  { %v7360_v54 = vld [vmem:[#allocation16 + $0x50] sm:$0xff] }
 0x252   :  { %v1152_v16 = vpop.f32.mrf.mxu2  ;;  %v1031_v28 = vpop.f32.mrf.mxu0 }
 0x253   :  { %v1089_v23 = vpop.f32.mrf.mxu1  ;;  %v1412_v16 = vld [vmem:[#allocation16 + $0xa8] sm:$0xff] }
 0x257   :  { %v981_v56 = vpop.f32.mrf.mxu3 }
 0x258   :  { %v1029_v20 = vadd.f32 %v1028_v17, %v981_v56  ;;  %v7364_v56 = vld [vmem:[#allocation16 + $0x88] sm:$0xff]  ;;  %v1666_v17 = vld [vmem:[%s9674_s8 + $0x10] sm:$0xff] }
 0x259   :  { %1684 = vperm.xlu1 %6328, %v1666_v17  }
 0x25a   :  { %v1098_v26 = vadd.f32 %v1089_v23, %v1029_v20  ;;  %v1155_v27 = vpop.f32.mrf.mxu2  ;;  %v7436_v20 = vld [vmem:[#allocation16 + $0xf8] sm:$0xff] }
 0x25b   :  { %v1092_v41 = vpop.f32.mrf.mxu1  ;;  %v1667_v23 = vld [vmem:[%s9674_s8 + $0x18] sm:$0xff] }
 0x25c   :  { %v1164_v33 = vadd.f32 %v1155_v27, %v1098_v26  ;;  %v1414_v26 = vld [vmem:[#allocation16 + $0xb8] sm:$0xff]  ;;  %v1581_v27 = vld [vmem:[#allocation16 + $0x110] sm:$0xff] }
 0x25f   :  { %v984_v61 = vpop.f32.mrf.mxu3 }
 0x260   :  { %v1032_v32 = vadd.f32 %v1031_v28, %v984_v61  ;;  %v1582_v28 = vld [vmem:[#allocation16 + $0x118] sm:$0xff] }
 0x261   :  { %1689 = vperm.xlu1 %6328, %v1667_v23  }
 0x262   :  { %v1099_v42 = vadd.f32 %v1092_v41, %v1032_v32  ;;  %v1158_v44 = vpop.f32.mrf.mxu2  ;;  %v1669_v32 = vld [vmem:[%s9674_s8 + $0x28] sm:$0xff] }
 0x264   :  { %v1165_v45 = vadd.f32 %v1158_v44, %v1099_v42 }
 0x267   :  { %v1212_v2 = vpop.f32.mrf.mxu3 }
 0x268   :  { %v1227_v4 = vadd.f32 %v1212_v2, %v1161_v1  ;;  %v7382_v1 = vld [vmem:[#allocation16 + $0x90] sm:$0xff]  ;;  %v7395_v2 = vld [vmem:[#allocation16 + $0x98] sm:$0xff] }
 0x26a   :  { %v1236_v9 = vadd.f32 %v7302_v5, %v1227_v4  ;;  %v7397_v4 = vld [vmem:[#allocation16 + $0xe0] sm:$0xff] }
 0x26c   :  { %v1241_v10 = vmax.f32 %v1236_v9, 0.0  ;;  %v1266_v9 = vld [vmem:[#allocation16 + $0x68] sm:$0xff] }
 0x26e   :  { %1246 = vst.msk [vmem:[#allocation4] sm:$0xff] %vm567_vm2, %v1241_v10  ;;  %v7412_v10 = vld [vmem:[#allocation16 + $0x30] sm:$0xff] }
 0x26f   :  { %v1215_v12 = vpop.f32.mrf.mxu3 }
 0x270   :  { %v1228_v15 = vadd.f32 %v1215_v12, %v1162_v11  ;;  %v7414_v11 = vld [vmem:[#allocation16 + $0xe8] sm:$0xff] }
 0x271   :  { %v1665_v12 = vld [vmem:[%s9674_s8 + $0x8] sm:$0xff] }
 0x272   :  { %v1237_v14 = vadd.f32 %v7302_v5, %v1228_v15  ;;  %1679 = vperm.xlu0 %6327, %v1665_v12   ;;  %v1267_v15 = vld [vmem:[#allocation16 + $0x70] sm:$0xff] }
 0x274   :  { %v1242_v18 = vmax.f32 %v1237_v14, 0.0  ;;  %v7425_v14 = vld [vmem:[#allocation16 + $0xf0] sm:$0xff] }
 0x275   :  { %v1259_v19 = vld [vmem:[#allocation4] sm:$0xff] }
 0x276   :  { %1247 = vst.msk [vmem:[#allocation4 + $0x8] sm:$0xff] %vm567_vm2, %v1242_v18  ;;  %6167 = vmatpush.xpose.msk.msra.mxu1 %vm567_vm2, %v1259_v19  ;;  %6305 = vmatpush.xpose.msk.msra.mxu3 %vm567_vm2, %v1259_v19  ;;  %v1579_v18 = vld [vmem:[#allocation16 + $0x100] sm:$0xff]  ;;  %v1413_v19 = vld [vmem:[#allocation16 + $0xb0] sm:$0xff] }
 0x277   :  { %v1218_v24 = vpop.f32.mrf.mxu3 }
 0x278   :  { %v1580_v24 = vld [vmem:[#allocation16 + $0x108] sm:$0xff] }
 0x279   :  { %6168 = vmatmul.msk.f32.vlgmr.msra.gmra.mxu1 %vm567_vm2, %v7310_v21  ;;  %6175 = vmatmul.msk.f32.vlgmr.msra.gmra.mxu3 %vm567_vm2, %v7312_v22 }
 0x27d   :  { %v1269_v29 = vld [vmem:[#allocation4 + $0x1] sm:$0xff] }
 0x27e   :  { %v1501_v13 = vld [vmem:[#allocation4 + $0x3] sm:$0xff]  ;;  %6158 = vmatpush.xpose.msk.msrb.mxu0 %vm567_vm2, %v1269_v29  ;;  %6304 = vmatpush.xpose.msk.msra.mxu2 %vm567_vm2, %v1269_v29  ;;  %v1670_v29 = vld [vmem:[%s9674_s8 + $0x30] sm:$0xff] }
 0x27f   :  { %v1415_v31 = vld [vmem:[#allocation4 + $0x2] sm:$0xff]  ;;  %6185 = vmatpush.xpose.msk.msrb.mxu3 %vm567_vm2, %v1501_v13  ;;  %v1221_v37 = vpop.f32.mrf.mxu3  ;;  %1704 = vperm.xlu0 %6327, %v1670_v29  }
 0x280   :  { %v1587_v34 = vld [vmem:[#allocation4 + $0x4] sm:$0xff]  ;;  %v1230_v40 = vadd.f32 %v1221_v37, %v1164_v33 }
 0x281   :  { %6159 = vmatmul.msk.f32.vlgmr.msrb.gmra.mxu0 %vm567_vm2, %v7320_v35  ;;  %6169 = vmatmul.msk.f32.gmra.mxu1 %vm567_vm2, %v7322_v36  ;;  %v1668_v13 = vld [vmem:[%s9674_s8 + $0x20] sm:$0xff] }
 0x282   :  { %6176 = vmatpush.xpose.msk.msrb.mxu2 %vm567_vm2, %v1415_v31  ;;  %6194 = vmatpush.xpose.msk.msra.mxu0 %vm567_vm2, %v1587_v34  ;;  %v1239_v25 = vadd.f32 %v7302_v5, %v1230_v40  ;;  %v1671_v31 = vld [vmem:[%s9674_s8 + $0x38] sm:$0xff]  ;;  %v1584_v33 = vld [vmem:[#allocation16 + $0x128] sm:$0xff]  ;;  %v1585_v34 = vld [vmem:[#allocation16 + $0x130] sm:$0xff]  ;;  %s6881_s8 = smov 24  }
 0x283   :  { %6166 = vmatmul.msk.f32.vlgmr.msra.gmra.mxu2 %vm567_vm2, %v7326_v38  ;;  %6186 = vmatmul.msk.f32.vlgmr.msrb.gmra.mxu3 %vm567_vm2, %v7328_v39 }
 0x284   :  { %v1244_v43 = vmax.f32 %v1239_v25, 0.0  ;;  %1694 = vperm.xlu2 %6329, %v1668_v13   ;;  %1709 = vperm.xlu1 %6328, %v1671_v31  }
 0x286   :  { %1249 = vst.msk [vmem:[#allocation4 + $0x18] sm:$0xff] %vm567_vm2, %v1244_v43 }
 0x287   :  { %v1224_v48 = vpop.f32.mrf.mxu3  ;;  %2161 = vperm.xlu0 %6327, %v1665_v12  }
 0x288   :  { %v1231_v30 = vadd.f32 %v1224_v48, %v1165_v45 }
 0x289   :  { %6160 = vmatmul.msk.f32.gmra.mxu0 %vm567_vm2, %v7341_v46  ;;  %6170 = vmatmul.msk.f32.gmra.mxu1 %vm567_vm2, %v7343_v47 }
 0x28a   :  { %v1240_v51 = vadd.f32 %v7302_v5, %v1231_v30  ;;  %v1265_v5 = vld [vmem:[#allocation16 + $0x60] sm:$0xff] }
 0x28b   :  { %6177 = vmatmul.msk.f32.vlgmr.msrb.gmra.mxu2 %vm567_vm2, %v7345_v49  ;;  %6187 = vmatmul.msk.f32.gmra.mxu3 %vm567_vm2, %v7347_v50 }
 0x28c   :  { %v1245_v52 = vmax.f32 %v1240_v51, 0.0  ;;  %1699 = vperm.xlu2 %6329, %v1669_v32   ;;  %2166 = vperm.xlu1 %6328, %v1666_v17  }
 0x28d   :  { %v1745_v53 = vld [vmem:[#allocation4 + $0x18] sm:$0xff] }
 0x28e   :  { %1250 = vst.msk [vmem:[#allocation4 + $0x20] sm:$0xf] %vm573_vm3, %v1245_v52  ;;  %6212 = vmatpush.xpose.msk.msra.mxu2 %vm567_vm2, %v1745_v53 }
 0x28f   :  { %2176 = vperm.xlu0 %6327, %v1668_v13  }
 0x291   :  { %6161 = vmatmul.msk.f32.gmra.mxu0 %vm567_vm2, %v7360_v54  ;;  %6171 = vmatmul.msk.f32.gmra.mxu1 %vm567_vm2, %v7362_v55 }
 0x293   :  { %6178 = vmatmul.msk.f32.gmra.mxu2 %vm567_vm2, %v7364_v56  ;;  %6188 = vmatmul.msk.f32.gmra.mxu3 %vm567_vm2, %v7366_v57 }
 0x294   :  { %2156 = vperm.xlu2 %6329, %v7405_v7   ;;  %2181 = vperm.xlu1 %6328, %v1669_v32  }
 0x295   :  { %v1754_v58 = vld [vmem:[#allocation4 + $0x19] sm:$0xff] }
 0x296   :  { %v1899_v59 = vld [vmem:[#allocation4 + $0x1a] sm:$0xff]  ;;  %6203 = vmatpush.xpose.msk.msrb.mxu1 %vm567_vm2, %v1754_v58 }
 0x297   :  { %v1984_v60 = vld [vmem:[#allocation4 + $0x1b] sm:$0xff]  ;;  %6221 = vmatpush.xpose.msk.msra.mxu3 %vm567_vm2, %v1899_v59  ;;  %2191 = vperm.xlu0 %6327, %v1671_v31  }
 0x298   :  { %v2069_v61 = vld [vmem:[#allocation4 + $0x1c] sm:$0xff]  ;;  %6230 = vmatpush.xpose.msk.msrb.mxu0 %vm567_vm2, %v1984_v60 }
 0x299   :  { %6162 = vmatmul.msk.f32.gmra.mxu0 %vm567_vm2, %v1264_v63  ;;  %6172 = vmatmul.msk.f32.gmra.mxu1 %vm567_vm2, %v7378_v0 }
 0x29a   :  { %6239 = vmatpush.xpose.msk.msra.mxu1 %vm567_vm2, %v2069_v61 }
 0x29b   :  { %6179 = vmatmul.msk.f32.gmra.mxu2 %vm567_vm2, %v7382_v1  ;;  %6189 = vmatmul.msk.f32.gmra.mxu3 %vm567_vm2, %v7384_v3 }
 0x29c   :  { %2171 = vperm.xlu2 %6329, %v1667_v23  }
 0x2a1   :  { %6163 = vmatmul.msk.f32.gmra.mxu0 %vm567_vm2, %v1265_v5  ;;  %6173 = vmatmul.msk.f32.gmra.mxu1 %vm567_vm2, %v7393_v6 }
 0x2a3   :  { %6180 = vmatmul.msk.f32.gmra.mxu2 %vm567_vm2, %v7395_v2  ;;  %6190 = vmatmul.msk.f32.gmra.mxu3 %vm567_vm2, %v7397_v4 }
 0x2a4   :  { %2186 = vperm.xlu2 %6329, %v1670_v29  }
 0x2a9   :  { %6164 = vmatmul.msk.f32.gmra.mxu0 %vm567_vm2, %v1266_v9  ;;  %6174 = vmatmul.msk.f32.gmra.mxu1 %vm567_vm2, %v7412_v10 }
 0x2ab   :  { %6181 = vmatmul.msk.f32.gmra.mxu2 %vm567_vm2, %v1411_v62  ;;  %6191 = vmatmul.msk.f32.gmra.mxu3 %vm567_vm2, %v7414_v11 }
 0x2b1   :  { %6165 = vmatmul.msk.f32.gmra.mxu0 %vm567_vm2, %v1267_v15  ;;  %6204 = vmatmul.msk.f32.vlgmr.msrb.gmra.mxu1 %vm567_vm2, %v7320_v35  ;;  %v1586_v35 = vld [vmem:[#allocation16 + $0x138] sm:$0xff] }
 0x2b3   :  { %6182 = vmatmul.msk.f32.gmra.mxu2 %vm567_vm2, %v1412_v16  ;;  %6192 = vmatmul.msk.f32.gmra.mxu3 %vm567_vm2, %v7425_v14 }
 0x2b9   :  { %6195 = vmatmul.msk.f32.vlgmr.msra.gmra.mxu0 %vm567_vm2, %v1579_v18  ;;  %6205 = vmatmul.msk.f32.gmra.mxu1 %vm567_vm2, %v7341_v46 }
 0x2bb   :  { %6183 = vmatmul.msk.f32.gmra.mxu2 %vm567_vm2, %v1413_v19  ;;  %6193 = vmatmul.msk.f32.gmra.mxu3 %vm567_vm2, %v7436_v20 }
 0x2c0   :  { %v1675_v60 = vpop.permute.xlu0 %1674 }
 0x2c1   :  { %6196 = vmatmul.msk.f32.gmra.mxu0 %vm567_vm2, %v1580_v24  ;;  %6206 = vmatmul.msk.f32.gmra.mxu1 %vm567_vm2, %v7360_v54 }
 0x2c3   :  { %6184 = vmatmul.msk.f32.gmra.mxu2 %vm567_vm2, %v1414_v26  ;;  %6222 = vmatmul.msk.f32.vlgmr.msra.gmra.mxu3 %vm567_vm2, %v7345_v49 }
 0x2c9   :  { %6197 = vmatmul.msk.f32.gmra.mxu0 %vm567_vm2, %v1581_v27  ;;  %6207 = vmatmul.msk.f32.gmra.mxu1 %vm567_vm2, %v1264_v63 }
 0x2cb   :  { %6213 = vmatmul.msk.f32.vlgmr.msra.gmra.mxu2 %vm567_vm2, %v7310_v21  ;;  %6223 = vmatmul.msk.f32.gmra.mxu3 %vm567_vm2, %v7364_v56  ;;  %v1583_v21 = vld [vmem:[#allocation16 + $0x120] sm:$0xff] }
 0x2d1   :  { %6198 = vmatmul.msk.f32.gmra.mxu0 %vm567_vm2, %v1582_v28  ;;  %6208 = vmatmul.msk.f32.gmra.mxu1 %vm567_vm2, %v1265_v5 }
 0x2d3   :  { %6214 = vmatmul.msk.f32.gmra.mxu2 %vm567_vm2, %v7322_v36  ;;  %6224 = vmatmul.msk.f32.gmra.mxu3 %vm567_vm2, %v7382_v1 }
 0x2d9   :  { %6199 = vmatmul.msk.f32.gmra.mxu0 %vm567_vm2, %v1583_v21  ;;  %6209 = vmatmul.msk.f32.gmra.mxu1 %vm567_vm2, %v1266_v9 }
 0x2db   :  { %6215 = vmatmul.msk.f32.gmra.mxu2 %vm567_vm2, %v7343_v47  ;;  %6225 = vmatmul.msk.f32.gmra.mxu3 %vm567_vm2, %v7395_v2 }
 0x2e1   :  { %6200 = vmatmul.msk.f32.gmra.mxu0 %vm567_vm2, %v1584_v33  ;;  %6210 = vmatmul.msk.f32.gmra.mxu1 %vm567_vm2, %v1267_v15 }
 0x2e3   :  { %6216 = vmatmul.msk.f32.gmra.mxu2 %vm567_vm2, %v7362_v55  ;;  %6226 = vmatmul.msk.f32.gmra.mxu3 %vm567_vm2, %v1411_v62 }
 0x2e4   :  { %v1680_v9 = vpop.permute.xlu0 %1679 }
 0x2e9   :  { %6201 = vmatmul.msk.f32.gmra.mxu0 %vm567_vm2, %v1585_v34  ;;  %6211 = vmatmul.msk.f32.gmra.mxu1 %vm567_vm2, %v7326_v38 }
 0x2eb   :  { %6217 = vmatmul.msk.f32.gmra.mxu2 %vm567_vm2, %v7378_v0  ;;  %6227 = vmatmul.msk.f32.gmra.mxu3 %vm567_vm2, %v1412_v16 }
 0x2f1   :  { %6202 = vmatmul.msk.f32.gmra.mxu0 %vm567_vm2, %v1586_v35  ;;  %6240 = vmatmul.msk.f32.vlgmr.msra.gmra.mxu1 %vm567_vm2, %v1579_v18  ;;  %v1685_v18 = vpop.permute.xlu1 %1684 }
 0x2f3   :  { %6218 = vmatmul.msk.f32.gmra.mxu2 %vm567_vm2, %v7393_v6  ;;  %6228 = vmatmul.msk.f32.gmra.mxu3 %vm567_vm2, %v1413_v19 }
 0x2f6   :  { %v1382_v36 = vpop.f32.mrf.mxu1 }
 0x2f9   :  { %6231 = vmatmul.msk.f32.vlgmr.msrb.gmra.mxu0 %vm567_vm2, %v7328_v39  ;;  %6241 = vmatmul.msk.f32.gmra.mxu1 %vm567_vm2, %v1580_v24 }
 0x2fb   :  { %6219 = vmatmul.msk.f32.gmra.mxu2 %vm567_vm2, %v7412_v10  ;;  %6229 = vmatmul.msk.f32.gmra.mxu3 %vm567_vm2, %v1414_v26 }
 0x2fc   :  { %v7515_v42 = vpop.f32.mrf.mxu3 }
 0x2fe   :  { %v1314_v37 = vpop.f32.mrf.mxu0  ;;  %v1385_v38 = vpop.f32.mrf.mxu1 }
 0x301   :  { %6232 = vmatmul.msk.f32.gmra.mxu0 %vm567_vm2, %v7347_v50  ;;  %6242 = vmatmul.msk.f32.gmra.mxu1 %vm567_vm2, %v1581_v27 }
 0x303   :  { %6220 = vmatmul.msk.f32.gmra.mxu2 %vm567_vm2, %v7312_v22 }
 0x306   :  { %v7511_v40 = vpop.f32.mrf.mxu2  ;;  %v1317_v39 = vpop.f32.mrf.mxu0 }
 0x307   :  { %v1388_v41 = vpop.f32.mrf.mxu1  ;;  %v1546_v22 = vpop.f32.mrf.mxu3  ;;  %v1386_v1 = vadd.f32 %v1385_v38, %v1317_v39 }
 0x309   :  { %6233 = vmatmul.msk.f32.gmra.mxu0 %vm567_vm2, %v7366_v57  ;;  %6243 = vmatmul.msk.f32.gmra.mxu1 %vm567_vm2, %v1582_v28  ;;  %v1383_v57 = vadd.f32 %v1382_v36, %v1314_v37 }
 0x30e   :  { %v1320_v25 = vpop.f32.mrf.mxu0  ;;  %v1460_v44 = vpop.f32.mrf.mxu2 }
 0x30f   :  { %v1391_v43 = vpop.f32.mrf.mxu1  ;;  %v1549_v48 = vpop.f32.mrf.mxu3  ;;  %v1484_v58 = vadd.f32 %v1460_v44, %v1383_v57 }
 0x311   :  { %6234 = vmatmul.msk.f32.gmra.mxu0 %vm567_vm2, %v7384_v3  ;;  %6244 = vmatmul.msk.f32.gmra.mxu1 %vm567_vm2, %v1583_v21  ;;  %v1570_v61 = vadd.f32 %v1546_v22, %v1484_v58 }
 0x316   :  { %v1323_v45 = vpop.f32.mrf.mxu0  ;;  %v1463_v47 = vpop.f32.mrf.mxu2 }
 0x317   :  { %v1394_v46 = vpop.f32.mrf.mxu1  ;;  %v1552_v53 = vpop.f32.mrf.mxu3  ;;  %v1485_v6 = vadd.f32 %v1463_v47, %v1386_v1  ;;  %v1392_v26 = vadd.f32 %v1391_v43, %v1323_v45 }
 0x319   :  { %6235 = vmatmul.msk.f32.gmra.mxu0 %vm567_vm2, %v7397_v4  ;;  %6245 = vmatmul.msk.f32.gmra.mxu1 %vm567_vm2, %v1584_v33  ;;  %v1571_v8 = vadd.f32 %v1549_v48, %v1485_v6  ;;  %v1690_v33 = vpop.permute.xlu1 %1689  ;;  %v1705_v6 = vpop.permute.xlu0 %1704 }
 0x31e   :  { %v1326_v49 = vpop.f32.mrf.mxu0  ;;  %v1466_v30 = vpop.f32.mrf.mxu2 }
 0x31f   :  { %v7524_v50 = vpop.f32.mrf.mxu1  ;;  %v1555_v59 = vpop.f32.mrf.mxu3 }
 0x321   :  { %6236 = vmatmul.msk.f32.gmra.mxu0 %vm567_vm2, %v7414_v11  ;;  %6246 = vmatmul.msk.f32.gmra.mxu1 %vm567_vm2, %v1585_v34  ;;  %v1389_v11 = vadd.f32 %v1388_v41, %v1320_v25  ;;  %v1695_v25 = vpop.permute.xlu2 %1694 }
 0x323   :  { %v1486_v15 = vadd.f32 %v1466_v30, %v1389_v11 }
 0x325   :  { %v1572_v19 = vadd.f32 %v1552_v53, %v1486_v15  ;;  %v1710_v15 = vpop.permute.xlu1 %1709 }
 0x326   :  { %v7529_v51 = vpop.f32.mrf.mxu0  ;;  %v1469_v54 = vpop.f32.mrf.mxu2 }
 0x327   :  { %v7531_v52 = vpop.f32.mrf.mxu1  ;;  %v1558_v7 = vpop.f32.mrf.mxu3  ;;  %v1487_v28 = vadd.f32 %v1469_v54, %v1392_v26  ;;  %v1398_v47 = vadd.f32 %v7524_v50, %v7529_v51 }
 0x329   :  { %6237 = vmatmul.msk.f32.gmra.mxu0 %vm567_vm2, %v7425_v14  ;;  %6247 = vmatmul.msk.f32.gmra.mxu1 %vm567_vm2, %v1586_v35  ;;  %v1573_v31 = vadd.f32 %v1555_v59, %v1487_v28  ;;  %v1395_v35 = vadd.f32 %v1394_v46, %v1326_v49  ;;  %v1700_v57 = vpop.permute.xlu2 %1699 }
 0x32e   :  { %v7536_v55 = vpop.f32.mrf.mxu0  ;;  %v1472_v5 = vpop.f32.mrf.mxu2 }
 0x32f   :  { %v7538_v56 = vpop.f32.mrf.mxu1  ;;  %v1488_v38 = vadd.f32 %v1472_v5, %v1395_v35 }
 0x331   :  { %6238 = vmatmul.msk.f32.gmra.mxu0 %vm567_vm2, %v7436_v20  ;;  %v1561_v20 = vpop.f32.mrf.mxu3  ;;  %v1574_v43 = vadd.f32 %v1558_v7, %v1488_v38  ;;  %v1404_v7 = vadd.f32 %v7515_v42, %v7511_v40 }
 0x336   :  { %v1632_v63 = vpop.f32.mrf.mxu0  ;;  %v1475_v14 = vpop.f32.mrf.mxu2 }
 0x337   :  { %v7542_v0 = vpop.f32.mrf.mxu1  ;;  %v1656_v3 = vadd.f32 %v1632_v63, %v1570_v61  ;;  %v1489_v30 = vadd.f32 %v1475_v14, %v1398_v47 }
 0x339   :  { %v1712_v2 = vadd.f32 %v1675_v60, %v1656_v3  ;;  %v1564_v36 = vpop.f32.mrf.mxu3  ;;  %v1575_v54 = vadd.f32 %v1561_v20, %v1489_v30  ;;  %v1401_v60 = vadd.f32 %v7531_v52, %v7536_v55 }
 0x33b   :  { %v1720_v4 = vmax.f32 %v1712_v2, 0.0 }
 0x33d   :  { %1729 = vst.msk [vmem:[#allocation5] sm:$0xff] %vm1728_vm4, %v1720_v4 }
 0x33e   :  { %v1635_v10 = vpop.f32.mrf.mxu0  ;;  %v1478_v13 = vpop.f32.mrf.mxu2 }
 0x33f   :  { %v7545_v62 = vpop.f32.mrf.mxu1  ;;  %v1657_v12 = vadd.f32 %v1635_v10, %v1571_v8  ;;  %v1490_v1 = vadd.f32 %v1478_v13, %v1401_v60 }
 0x341   :  { %v1713_v16 = vadd.f32 %v1680_v9, %v1657_v12  ;;  %v1567_v53 = vpop.f32.mrf.mxu3  ;;  %v1576_v5 = vadd.f32 %v1564_v36, %v1490_v1 }
 0x343   :  { %v1721_v17 = vmax.f32 %v1713_v16, 0.0 }
 0x345   :  { %1730 = vst.msk [vmem:[#allocation5 + $0x8] sm:$0xff] %vm1728_vm4, %v1721_v17 }
 0x346   :  { %v1638_v23 = vpop.f32.mrf.mxu0  ;;  %v1481_v44 = vpop.f32.mrf.mxu2 }
 0x347   :  { %v7548_v24 = vpop.f32.mrf.mxu1  ;;  %v1658_v27 = vadd.f32 %v1638_v23, %v1572_v19  ;;  %v1491_v9 = vadd.f32 %v1481_v44, %v1404_v7 }
 0x349   :  { %v1714_v29 = vadd.f32 %v1685_v18, %v1658_v27  ;;  %v1944_v50 = vpop.f32.mrf.mxu3  ;;  %v1577_v11 = vadd.f32 %v1567_v53, %v1491_v9 }
 0x34b   :  { %v1722_v21 = vmax.f32 %v1714_v29, 0.0  ;;  %v2157_v29 = vpop.permute.xlu2 %2156 }
 0x34d   :  { %1731 = vst.msk [vmem:[#allocation5 + $0x10] sm:$0xff] %vm1728_vm4, %v1722_v21 }
 0x34e   :  { %v1641_v32 = vpop.f32.mrf.mxu0  ;;  %v1867_v61 = vpop.f32.mrf.mxu2 }
 0x34f   :  { %v7551_v34 = vpop.f32.mrf.mxu1  ;;  %v1659_v37 = vadd.f32 %v1641_v32, %v1573_v31  ;;  %v1868_v18 = vadd.f32 %v1867_v61, %v7538_v56 }
 0x351   :  { %v1715_v39 = vadd.f32 %v1690_v33, %v1659_v37  ;;  %v1947_v12 = vpop.f32.mrf.mxu3  ;;  %v1968_v26 = vadd.f32 %v1944_v50, %v1868_v18 }
 0x353   :  { %v1723_v41 = vmax.f32 %v1715_v39, 0.0 }
 0x355   :  { %1732 = vst.msk [vmem:[#allocation5 + $0x18] sm:$0xff] %vm1728_vm4, %v1723_v41 }
 0x356   :  { %v1644_v22 = vpop.f32.mrf.mxu0  ;;  %v1870_v10 = vpop.f32.mrf.mxu2 }
 0x357   :  { %v7554_v45 = vpop.f32.mrf.mxu1  ;;  %v1660_v48 = vadd.f32 %v1644_v22, %v1574_v43  ;;  %v1871_v21 = vadd.f32 %v1870_v10, %v7542_v0 }
 0x359   :  { %v1716_v46 = vadd.f32 %v1695_v25, %v1660_v48  ;;  %v1950_v28 = vpop.f32.mrf.mxu3  ;;  %v1969_v37 = vadd.f32 %v1947_v12, %v1871_v21 }
 0x35b   :  { %v1724_v49 = vmax.f32 %v1716_v46, 0.0 }
 0x35c   :  { %v2266_v31 = vld [vmem:[#allocation5 + $0x3] ss:$8 sm:$0xf]  ;;  %v2247_v32 = vld [vmem:[#allocation5 + $0x2] ss:$8 sm:$0xf] }
 0x35d   :  { %1733 = vst.msk [vmem:[#allocation5 + $0x20] sm:$0xff] %vm1728_vm4, %v1724_v49  ;;  %v2228_v35 = vld [vmem:[#allocation5 + $0x1] ss:$8 sm:$0xf] }
 0x35e   :  { %v1647_v58 = vpop.f32.mrf.mxu0  ;;  %v1873_v20 = vpop.f32.mrf.mxu2  ;;  %v2218_v30 = vld [vmem:[#allocation5] ss:$8 sm:$0xf]  ;;  %v2323_v1 = vld [vmem:[#allocation5 + $0x6] ss:$8 sm:$0xf] }
 0x35f   :  { %v7559_v59 = vpop.f32.mrf.mxu1  ;;  %v1661_v63 = vadd.f32 %v1647_v58, %v1575_v54  ;;  %v1874_v53 = vadd.f32 %v1873_v20, %v7545_v62  ;;  %v2342_v18 = vld [vmem:[#allocation5 + $0x7] ss:$8 sm:$0xf] }
 0x361   :  { %v1717_v3 = vadd.f32 %v1700_v57, %v1661_v63  ;;  %v1953_v54 = vpop.f32.mrf.mxu3  ;;  %v2162_v57 = vpop.permute.xlu0 %2161  ;;  %v1970_v50 = vadd.f32 %v1950_v28, %v1874_v53 }
 0x363   :  { %v1725_v51 = vmax.f32 %v1717_v3, 0.0  ;;  %v2304_v3 = vld [vmem:[#allocation5 + $0x5] ss:$8 sm:$0xf] }
 0x365   :  { %1734 = vst.msk [vmem:[#allocation5 + $0x28] sm:$0xff] %vm1728_vm4, %v1725_v51 }
 0x366   :  { %v1650_v2 = vpop.f32.mrf.mxu0  ;;  %v1876_v38 = vpop.f32.mrf.mxu2 }
 0x367   :  { %v7564_v4 = vpop.f32.mrf.mxu1  ;;  %v1662_v8 = vadd.f32 %v1650_v2, %v1576_v5  ;;  %v2285_v2 = vld [vmem:[#allocation5 + $0x4] ss:$8 sm:$0xf] }
 0x369   :  { %v1718_v52 = vadd.f32 %v1705_v6, %v1662_v8 }
 0x36b   :  { %v1726_v55 = vmax.f32 %v1718_v52, 0.0  ;;  %v1877_v52 = vadd.f32 %v1876_v38, %v7548_v24 }
 0x36d   :  { %1735 = vst.msk [vmem:[#allocation5 + $0x30] sm:$0xff] %vm1728_vm4, %v1726_v55 }
 0x36e   :  { %v1653_v16 = vpop.f32.mrf.mxu0  ;;  %v1879_v10 = vpop.f32.mrf.mxu2 }
 0x36f   :  { %v2114_v14 = vpop.f32.mrf.mxu1  ;;  %v1663_v17 = vadd.f32 %v1653_v16, %v1577_v11  ;;  %v2167_v11 = vpop.permute.xlu1 %2166 }
 0x370   :  { %v1956_v16 = vpop.f32.mrf.mxu3 }
 0x371   :  { %v1719_v19 = vadd.f32 %v1710_v15, %v1663_v17 }
 0x373   :  { %v1727_v23 = vmax.f32 %v1719_v19, 0.0 }
 0x375   :  { %1736 = vst.msk [vmem:[#allocation5 + $0x38] sm:$0xff] %vm1728_vm4, %v1727_v23 }
 0x376   :  { %v2029_v40 = vpop.f32.mrf.mxu0 }
 0x377   :  { %v2117_v42 = vpop.f32.mrf.mxu1  ;;  %v2053_v27 = vadd.f32 %v2029_v40, %v1968_v26  ;;  %v1880_v40 = vadd.f32 %v1879_v10, %v7551_v34 }
 0x379   :  { %v2138_v13 = vadd.f32 %v2114_v14, %v2053_v27  ;;  %v1971_v14 = vadd.f32 %v1953_v54, %v1877_v52  ;;  %v2172_v27 = vpop.permute.xlu2 %2171 }
 0x37b   :  { %v2194_v33 = vadd.f32 %v2157_v29, %v2138_v13  ;;  %v1972_v29 = vadd.f32 %v1956_v16, %v1880_v40  ;;  %v1959_v13 = vpop.f32.mrf.mxu3 }
 0x37c   :  { %v2267_v36 = vld [vmem:[#allocation5 + $0x3] ss:$8 sm:$0xf0]  ;;  %v2248_v56 = vld [vmem:[#allocation5 + $0x2] ss:$8 sm:$0xf0] }
 0x37d   :  { %v2202_v39 = vmax.f32 %v2194_v33, 0.0  ;;  %v2268_v41 = vor.u32 %v2267_v36, %v2266_v31  ;;  %v2249_v25 = vor.u32 %v2248_v56, %v2247_v32  ;;  %v2229_v43 = vld [vmem:[#allocation5 + $0x1] ss:$8 sm:$0xf0]  ;;  %v2177_v36 = vpop.permute.xlu0 %2176 }
 0x37e   :  { %v2032_v44 = vpop.f32.mrf.mxu0  ;;  %v2230_v22 = vor.u32 %v2229_v43, %v2228_v35  ;;  %v2219_v0 = vld [vmem:[#allocation5] ss:$8 sm:$0xf0]  ;;  %v2324_v58 = vld [vmem:[#allocation5 + $0x6] ss:$8 sm:$0xf0] }
 0x37f   :  { %v2120_v47 = vpop.f32.mrf.mxu1  ;;  %2210 = vst.msk [vmem:[#allocation5 + $0x40] sm:$0xff] %vm1728_vm4, %v2202_v39  ;;  %v2054_v48 = vadd.f32 %v2032_v44, %v1969_v37  ;;  %2275 = vrot.lane.b32.xlu0 %v2268_v41, %s6881_s8  ;;  %2256 = vrot.lane.b32.xlu2 %v2249_v25, %s6882_s23  ;;  %v2220_v49 = vor.u32 %v2219_v0, %v2218_v30  ;;  %v2305_v60 = vld [vmem:[#allocation5 + $0x5] ss:$8 sm:$0xf0] }
 0x380   :  { %2237 = vrot.lane.b32.xlu1 %v2230_v22, %s6870_s5  ;;  %v2286_v63 = vld [vmem:[#allocation5 + $0x4] ss:$8 sm:$0xf0]  ;;  %v2325_v5 = vor.u32 %v2324_v58, %v2323_v1  ;;  %v2306_v6 = vor.u32 %v2305_v60, %v2304_v3  ;;  %v2343_v15 = vld [vmem:[#allocation5 + $0x7] ss:$8 sm:$0xf0] }
 0x381   :  { %v2139_v46 = vadd.f32 %v2117_v42, %v2054_v48  ;;  %2225 = vst.msk [vmem:[#allocation6] sm:$0xff] %vm1728_vm4, %v2220_v49  ;;  %v2287_v8 = vor.u32 %v2286_v63, %v2285_v2  ;;  %v2344_v20 = vor.u32 %v2343_v15, %v2342_v18  ;;  %v1882_v42 = vpop.f32.mrf.mxu2  ;;  %v2187_v60 = vpop.permute.xlu2 %2186 }
 0x382   :  { %v1883_v32 = vadd.f32 %v1882_v42, %v7554_v45 }
 0x383   :  { %v2195_v61 = vadd.f32 %v2162_v57, %v2139_v46  ;;  %v1962_v43 = vpop.f32.mrf.mxu3 }
 0x384   :  { %v1973_v39 = vadd.f32 %v1959_v13, %v1883_v32  ;;  %v2576_v13 = vld [vmem:[#allocation19 + $0x1e0] sm:$0xff] }
 0x385   :  { %v2203_v51 = vmax.f32 %v2195_v61, 0.0  ;;  %v2572_v32 = vld [vmem:[#allocation19 + $0x1c0] sm:$0xff]  ;;  %2580 = vmatpush.msra.mxu0 %v2576_v13  ;;  %2796 = vmatpush.msrb.mxu1 %v2576_v13  ;;  %v7643_v13 = vld [vmem:[#allocation19 + $0x1b8] sm:$0xff] }
 0x386   :  { %v2035_v7 = vpop.f32.mrf.mxu0 }
 0x387   :  { %v2123_v62 = vpop.f32.mrf.mxu1  ;;  %2211 = vst.msk [vmem:[#allocation5 + $0x48] sm:$0xff] %vm1728_vm4, %v2203_v51  ;;  %v2055_v9 = vadd.f32 %v2035_v7, %v1970_v50  ;;  %2332 = vrot.lane.b32.xlu0 %v2325_v5, %s6883_s1  ;;  %2313 = vrot.lane.b32.xlu2 %v2306_v6, %s6884_s9  ;;  %v2192_v5 = vpop.permute.xlu0 %2191 }
 0x388   :  { %2294 = vrot.lane.b32.xlu1 %v2287_v8, %s6874_s0  ;;  %2581 = vmatpush.msra.mxu0 %v2572_v32 }
 0x389   :  { %v2140_v55 = vadd.f32 %v2120_v47, %v2055_v9  ;;  %v1885_v38 = vpop.f32.mrf.mxu2  ;;  %v2182_v47 = vpop.permute.xlu1 %2181  ;;  %2797 = vmatpush.msrb.mxu1 %v2572_v32  ;;  %v7652_v32 = vld [vmem:[#allocation19 + $0x198] sm:$0xff] }
 0x38a   :  { %v1886_v44 = vadd.f32 %v1885_v38, %v7559_v59  ;;  %v2379_v38 = vld [vmem:[#allocation18 + $0x88] sm:$0xff] }
 0x38b   :  { %v2196_v12 = vadd.f32 %v2167_v11, %v2140_v55  ;;  %v1965_v58 = vpop.f32.mrf.mxu3 }
 0x38c   :  { %v1974_v30 = vadd.f32 %v1962_v43, %v1886_v44  ;;  %v2370_v43 = vld [vmem:[#allocation18 + $0x40] sm:$0xff]  ;;  %v2371_v44 = vld [vmem:[#allocation18 + $0x48] sm:$0xff] }
 0x38d   :  { %v2204_v17 = vmax.f32 %v2196_v12, 0.0 }
 0x38e   :  { %v2038_v19 = vpop.f32.mrf.mxu0 }
 0x38f   :  { %2212 = vst.msk [vmem:[#allocation5 + $0x50] sm:$0xff] %vm1728_vm4, %v2204_v17  ;;  %v2056_v23 = vadd.f32 %v2038_v19, %v1971_v14  ;;  %v2126_v26 = vpop.f32.mrf.mxu1 }
 0x390   :  { %2351 = vrot.lane.b32.xlu1 %v2344_v20, %s6885_s27 }
 0x391   :  { %v2141_v24 = vadd.f32 %v2123_v62, %v2056_v23  ;;  %v1888_v53 = vpop.f32.mrf.mxu2 }
 0x392   :  { %v1889_v54 = vadd.f32 %v1888_v53, %v7564_v4  ;;  %v2548_v53 = vld [vmem:[#allocation19 + $0x100] sm:$0xff] }
 0x393   :  { %v2197_v28 = vadd.f32 %v2172_v27, %v2141_v24 }
 0x394   :  { %v1975_v63 = vadd.f32 %v1965_v58, %v1889_v54  ;;  %v2536_v54 = vld [vmem:[#allocation19 + $0xa0] sm:$0xff] }
 0x395   :  { %v2205_v21 = vmax.f32 %v2197_v28, 0.0  ;;  %v2532_v58 = vld [vmem:[#allocation19 + $0x80] sm:$0xff] }
 0x396   :  { %v2041_v31 = vpop.f32.mrf.mxu0 }
 0x397   :  { %2213 = vst.msk [vmem:[#allocation5 + $0x58] sm:$0xff] %vm1728_vm4, %v2205_v21  ;;  %v2057_v33 = vadd.f32 %v2041_v31, %v1972_v29  ;;  %v2129_v56 = vpop.f32.mrf.mxu1  ;;  %v2390_v29 = vld [vmem:[#allocation18 + $0xe0] sm:$0xff]  ;;  %v2391_v21 = vld [vmem:[#allocation18 + $0xe8] sm:$0xff] }
 0x398   :  { %2418 = vmatpush.msrb.mxu2 %v2390_v29  ;;  %2441 = vmatpush.msrb.mxu3 %v2391_v21  ;;  %v2386_v31 = vld [vmem:[#allocation18 + $0xc0] sm:$0xff]  ;;  %v7637_v29 = vld [vmem:[#allocation19 + $0x1a8] sm:$0xff]  ;;  %v7639_v21 = vld [vmem:[#allocation19 + $0x1b0] sm:$0xff] }
 0x399   :  { %v2142_v35 = vadd.f32 %v2126_v26, %v2057_v33  ;;  %v2387_v33 = vld [vmem:[#allocation18 + $0xc8] sm:$0xff] }
 0x39a   :  { %2419 = vmatpush.msrb.mxu2 %v2386_v31  ;;  %2442 = vmatpush.msrb.mxu3 %v2387_v33  ;;  %v7646_v31 = vld [vmem:[#allocation19 + $0x188] sm:$0xff]  ;;  %v7648_v33 = vld [vmem:[#allocation19 + $0x190] sm:$0xff] }
 0x39b   :  { %v2198_v37 = vadd.f32 %v2177_v36, %v2142_v35  ;;  %v2382_v35 = vld [vmem:[#allocation18 + $0xa0] sm:$0xff]  ;;  %v2383_v36 = vld [vmem:[#allocation18 + $0xa8] sm:$0xff] }
 0x39c   :  { %2420 = vmatpush.msrb.mxu2 %v2382_v35  ;;  %2443 = vmatpush.msrb.mxu3 %v2383_v36  ;;  %v7655_v35 = vld [vmem:[#allocation19 + $0x168] sm:$0xff]  ;;  %v7657_v36 = vld [vmem:[#allocation19 + $0x170] sm:$0xff] }
 0x39d   :  { %v2206_v34 = vmax.f32 %v2198_v37, 0.0  ;;  %v2378_v37 = vld [vmem:[#allocation18 + $0x80] sm:$0xff] }
 0x39e   :  { %v2044_v41 = vpop.f32.mrf.mxu0  ;;  %v2251_v7 = vld [vmem:[#allocation5 + $0x42] ss:$8 sm:$0xf]  ;;  %v2232_v8 = vld [vmem:[#allocation5 + $0x41] ss:$8 sm:$0xf]  ;;  %2421 = vmatpush.msrb.mxu2 %v2378_v37  ;;  %2444 = vmatpush.msrb.mxu3 %v2379_v38 }
 0x39f   :  { %2214 = vst.msk [vmem:[#allocation5 + $0x60] sm:$0xff] %vm1728_vm4, %v2206_v34  ;;  %v2058_v25 = vadd.f32 %v2044_v41, %v1973_v39  ;;  %v2132_v0 = vpop.f32.mrf.mxu1  ;;  %v2270_v52 = vld [vmem:[#allocation5 + $0x43] ss:$8 sm:$0xf] }
 0x3a0   :  { %v2222_v12 = vld [vmem:[#allocation5 + $0x40] ss:$8 sm:$0xf]  ;;  %v2308_v19 = vld [vmem:[#allocation5 + $0x45] ss:$8 sm:$0xf] }
 0x3a1   :  { %v2143_v22 = vadd.f32 %v2129_v56, %v2058_v25  ;;  %v2289_v20 = vld [vmem:[#allocation5 + $0x44] ss:$8 sm:$0xf]  ;;  %v2327_v40 = vld [vmem:[#allocation5 + $0x46] ss:$8 sm:$0xf] }
 0x3a2   :  { %v2346_v27 = vld [vmem:[#allocation5 + $0x47] ss:$8 sm:$0xf] }
 0x3a3   :  { %v2199_v48 = vadd.f32 %v2182_v47, %v2143_v22  ;;  %v2568_v56 = vld [vmem:[#allocation19 + $0x1a0] sm:$0xff]  ;;  %v2375_v41 = vld [vmem:[#allocation18 + $0x68] sm:$0xff]  ;;  %v7666_v38 = vld [vmem:[#allocation19 + $0x150] sm:$0xff] }
 0x3a4   :  { %v2564_v39 = vld [vmem:[#allocation19 + $0x180] sm:$0xff]  ;;  %2582 = vmatpush.msra.mxu0 %v2568_v56  ;;  %2798 = vmatpush.msrb.mxu1 %v2568_v56  ;;  %v7661_v56 = vld [vmem:[#allocation19 + $0x178] sm:$0xff]  ;;  %v7664_v37 = vld [vmem:[#allocation19 + $0x148] sm:$0xff] }
 0x3a5   :  { %v2207_v45 = vmax.f32 %v2199_v48, 0.0  ;;  %v2374_v34 = vld [vmem:[#allocation18 + $0x60] sm:$0xff]  ;;  %2445 = vmatpush.msrb.mxu3 %v2375_v41  ;;  %v2367_v48 = vld [vmem:[#allocation18 + $0x28] sm:$0xff]  ;;  %v7675_v41 = vld [vmem:[#allocation19 + $0x130] sm:$0xff] }
 0x3a6   :  { %v2047_v46 = vpop.f32.mrf.mxu0  ;;  %v2560_v25 = vld [vmem:[#allocation19 + $0x160] sm:$0xff]  ;;  %2583 = vmatpush.msra.mxu0 %v2564_v39  ;;  %2799 = vmatpush.msrb.mxu1 %v2564_v39  ;;  %v7670_v39 = vld [vmem:[#allocation19 + $0x158] sm:$0xff] }
 0x3a7   :  { %2215 = vst.msk [vmem:[#allocation5 + $0x68] sm:$0xff] %vm1728_vm4, %v2207_v45  ;;  %v2059_v49 = vadd.f32 %v2047_v46, %v1974_v30  ;;  %v2135_v3 = vpop.f32.mrf.mxu1  ;;  %2422 = vmatpush.msrb.mxu2 %v2374_v34  ;;  %v2556_v22 = vld [vmem:[#allocation19 + $0x140] sm:$0xff]  ;;  %2446 = vmatpush.msrb.mxu3 %v2371_v44  ;;  %v2363_v45 = vld [vmem:[#allocation18 + $0x8] sm:$0xff]  ;;  %v7684_v44 = vld [vmem:[#allocation19 + $0x110] sm:$0xff] }
 0x3a8   :  { %2584 = vmatpush.msra.mxu0 %v2560_v25  ;;  %v2366_v47 = vld [vmem:[#allocation18 + $0x20] sm:$0xff]  ;;  %2800 = vmatpush.msrb.mxu1 %v2560_v25  ;;  %v7673_v34 = vld [vmem:[#allocation19 + $0x128] sm:$0xff]  ;;  %v7679_v25 = vld [vmem:[#allocation19 + $0x138] sm:$0xff] }
 0x3a9   :  { %v2144_v57 = vadd.f32 %v2132_v0, %v2059_v49  ;;  %2423 = vmatpush.msrb.mxu2 %v2370_v43  ;;  %v2552_v0 = vld [vmem:[#allocation19 + $0x120] sm:$0xff]  ;;  %2447 = vmatpush.msrb.mxu3 %v2367_v48  ;;  %v7682_v43 = vld [vmem:[#allocation19 + $0x108] sm:$0xff]  ;;  %v7693_v48 = vld [vmem:[#allocation19 + $0xf0] sm:$0xff] }
 0x3aa   :  { %2585 = vmatpush.msra.mxu0 %v2556_v22  ;;  %v2362_v30 = vld [vmem:[#allocation18] sm:$0xff]  ;;  %2801 = vmatpush.msrb.mxu1 %v2556_v22  ;;  %v7688_v22 = vld [vmem:[#allocation19 + $0x118] sm:$0xff] }
 0x3ab   :  { %v2200_v61 = vadd.f32 %v2187_v60, %v2144_v57  ;;  %2424 = vmatpush.msrb.mxu2 %v2366_v47  ;;  %2448 = vmatpush.msrb.mxu3 %v2363_v45  ;;  %v2544_v46 = vld [vmem:[#allocation19 + $0xe0] sm:$0xff]  ;;  %v7691_v47 = vld [vmem:[#allocation19 + $0xe8] sm:$0xff]  ;;  %v7702_v45 = vld [vmem:[#allocation19 + $0xd0] sm:$0xff] }
 0x3ac   :  { %2586 = vmatpush.msra.mxu0 %v2552_v0  ;;  %2802 = vmatpush.msrb.mxu1 %v2552_v0  ;;  %v2540_v49 = vld [vmem:[#allocation19 + $0xc0] sm:$0xff]  ;;  %v7697_v0 = vld [vmem:[#allocation19 + $0xf8] sm:$0xff] }
 0x3ad   :  { %v2208_v1 = vmax.f32 %v2200_v61, 0.0  ;;  %2425 = vmatpush.msrb.mxu2 %v2362_v30  ;;  %v7700_v30 = vld [vmem:[#allocation19 + $0xc8] sm:$0xff] }
 0x3ae   :  { %v2050_v59 = vpop.f32.mrf.mxu0  ;;  %2587 = vmatpush.msra.mxu0 %v2548_v53  ;;  %2803 = vmatpush.msrb.mxu1 %v2548_v53  ;;  %v7706_v53 = vld [vmem:[#allocation19 + $0xd8] sm:$0xff] }
 0x3af   :  { %2216 = vst.msk [vmem:[#allocation5 + $0x70] sm:$0xff] %vm1728_vm4, %v2208_v1  ;;  %v2060_v50 = vadd.f32 %v2050_v59, %v1975_v63  ;;  %v2528_v63 = vld [vmem:[#allocation19 + $0x60] sm:$0xff] }
 0x3b0   :  { %2588 = vmatpush.msra.mxu0 %v2544_v46  ;;  %2804 = vmatpush.msrb.mxu1 %v2544_v46  ;;  %v2524_v1 = vld [vmem:[#allocation19 + $0x40] sm:$0xff] }
 0x3b1   :  { %v2145_v51 = vadd.f32 %v2135_v3, %v2060_v50  ;;  %v2520_v59 = vld [vmem:[#allocation19 + $0x20] sm:$0xff] }
 0x3b2   :  { %2589 = vmatpush.msra.mxu0 %v2540_v49  ;;  %2805 = vmatpush.msrb.mxu1 %v2540_v49  ;;  %v2516_v3 = vld [vmem:[#allocation19] sm:$0xff] }
 0x3b3   :  { %v2201_v6 = vadd.f32 %v2192_v5, %v2145_v51  ;;  %v7608_v51 = vld [vmem:[%s9683_s17] sm:$0x3] }
 0x3b4   :  { %2590 = vmatpush.msra.mxu0 %v2536_v54  ;;  %2806 = vmatpush.msrb.mxu1 %v2536_v54  ;;  %v7709_v54 = vld [vmem:[#allocation19 + $0xa8] sm:$0xff] }
 0x3b5   :  { %v2209_v2 = vmax.f32 %v2201_v6, 0.0 }
 0x3b6   :  { %2591 = vmatpush.msra.mxu0 %v2532_v58  ;;  %2807 = vmatpush.msrb.mxu1 %v2532_v58 }
 0x3b7   :  { %2217 = vst.msk [vmem:[#allocation5 + $0x78] sm:$0xff] %vm1728_vm4, %v2209_v2 }
 0x3b8   :  { %2592 = vmatpush.msra.mxu0 %v2528_v63  ;;  %2808 = vmatpush.msrb.mxu1 %v2528_v63  ;;  %v7722_v63 = vld [vmem:[#allocation19 + $0x90] sm:$0xff] }
 0x3ba   :  { %2593 = vmatpush.msra.mxu0 %v2524_v1  ;;  %2809 = vmatpush.msrb.mxu1 %v2524_v1  ;;  %v7727_v1 = vld [vmem:[#allocation19 + $0x98] sm:$0xff] }
 0x3bc   :  { %2594 = vmatpush.msra.mxu0 %v2520_v59  ;;  %2810 = vmatpush.msrb.mxu1 %v2520_v59  ;;  %v7730_v59 = vld [vmem:[#allocation19 + $0x68] sm:$0xff] }
 0x3be   :  { %v2252_v4 = vld [vmem:[#allocation5 + $0x42] ss:$8 sm:$0xf0]  ;;  %v2233_v62 = vld [vmem:[#allocation5 + $0x41] ss:$8 sm:$0xf0]  ;;  %2595 = vmatpush.msra.mxu0 %v2516_v3  ;;  %2811 = vmatpush.msrb.mxu1 %v2516_v3 }
 0x3bf   :  { %v2253_v9 = vor.u32 %v2252_v4, %v2251_v7  ;;  %v2234_v10 = vor.u32 %v2233_v62, %v2232_v8  ;;  %v2271_v55 = vld [vmem:[#allocation5 + $0x43] ss:$8 sm:$0xf0]  ;;  %v2223_v15 = vld [vmem:[#allocation5 + $0x40] ss:$8 sm:$0xf0]  ;;  %2596 = vmatmul.f32.vlgmr.msra.gmra.mxu0 %v7608_v51 }
 0x3c0   :  { %v2272_v11 = vor.u32 %v2271_v55, %v2270_v52  ;;  %v2224_v16 = vor.u32 %v2223_v15, %v2222_v12  ;;  %v2309_v14 = vld [vmem:[#allocation5 + $0x45] ss:$8 sm:$0xf0]  ;;  %v2290_v17 = vld [vmem:[#allocation5 + $0x44] ss:$8 sm:$0xf0] }
 0x3c1   :  { %2258 = vrot.lane.b32.xlu0 %v2253_v9, %s6882_s23  ;;  %2239 = vrot.lane.b32.xlu2 %v2234_v10, %s6870_s5  ;;  %v2328_v18 = vld [vmem:[#allocation5 + $0x46] ss:$8 sm:$0xf0]  ;;  %v2310_v23 = vor.u32 %v2309_v14, %v2308_v19  ;;  %v2291_v26 = vor.u32 %v2290_v17, %v2289_v20  ;;  %v2347_v42 = vld [vmem:[#allocation5 + $0x47] ss:$8 sm:$0xf0] }
 0x3c2   :  { %2277 = vrot.lane.b32.xlu1 %v2272_v11, %s6881_s8  ;;  %2226 = vst.msk [vmem:[#allocation6 + $0x8] sm:$0xff] %vm1728_vm4, %v2224_v16  ;;  %v2329_v24 = vor.u32 %v2328_v18, %v2327_v40  ;;  %v2348_v28 = vor.u32 %v2347_v42, %v2346_v27  ;;  %v2392_v8 = vld [vmem:[#allocation18 + $0xf0] sm:$0xff]  ;;  %v2393_v4 = vld [vmem:[#allocation18 + $0xf8] sm:$0xff]  ;;  %v7628_v42 = vld [vmem:[#allocation19 + $0x1c8] sm:$0xff]  ;;  %s9992_s5 = sld [smem:[#allocation70_spill]] }
 0x3c3   :  { %v2388_v62 = vld [vmem:[#allocation18 + $0xd0] sm:$0xff]  ;;  %2464 = vmatpush.msra.mxu2 %v2392_v8  ;;  %2487 = vmatpush.msra.mxu3 %v2393_v4  ;;  %v2389_v9 = vld [vmem:[#allocation18 + $0xd8] sm:$0xff]  ;;  %v7748_v4 = vld [vmem:[#allocation19 + $0x28] sm:$0xff] }
 0x3c4   :  { %v2384_v10 = vld [vmem:[#allocation18 + $0xb0] sm:$0xff]  ;;  %v2385_v52 = vld [vmem:[#allocation18 + $0xb8] sm:$0xff] }
 0x3c5   :  { %2465 = vmatpush.msra.mxu2 %v2388_v62  ;;  %2488 = vmatpush.msra.mxu3 %v2389_v9  ;;  %v2380_v55 = vld [vmem:[#allocation18 + $0x90] sm:$0xff]  ;;  %v2381_v11 = vld [vmem:[#allocation18 + $0x98] sm:$0xff] }
 0x3c6   :  { %v2376_v12 = vld [vmem:[#allocation18 + $0x70] sm:$0xff]  ;;  %v2377_v15 = vld [vmem:[#allocation18 + $0x78] sm:$0xff] }
 0x3c7   :  { %2466 = vmatpush.msra.mxu2 %v2384_v10  ;;  %2489 = vmatpush.msra.mxu3 %v2385_v52  ;;  %v2372_v16 = vld [vmem:[#allocation18 + $0x50] sm:$0xff]  ;;  %v2373_v14 = vld [vmem:[#allocation18 + $0x58] sm:$0xff] }
 0x3c8   :  { %v2368_v18 = vld [vmem:[#allocation18 + $0x30] sm:$0xff]  ;;  %v2369_v19 = vld [vmem:[#allocation18 + $0x38] sm:$0xff] }
 0x3c9   :  { %2315 = vrot.lane.b32.xlu0 %v2310_v23, %s6884_s9  ;;  %2296 = vrot.lane.b32.xlu2 %v2291_v26, %s6874_s0  ;;  %v2364_v20 = vld [vmem:[#allocation18 + $0x10] sm:$0xff]  ;;  %v2365_v23 = vld [vmem:[#allocation18 + $0x18] sm:$0xff]  ;;  %v7622_v26 = vld [vmem:[#allocation19 + $0x1e8] sm:$0xff]  ;;  %s6028_s0 = sshll.u32 %s9992_s5, 4  ;;  %s6029_s0 = int_to_ptr.hbm [resolvable:$true] %s6028_s0 }
 0x3ca   :  { %2334 = vrot.lane.b32.xlu1 %v2329_v24, %s6883_s1  ;;  %2467 = vmatpush.msra.mxu2 %v2380_v55  ;;  %v7624_v40 = vld [vmem:[#allocation19 + $0x1f0] sm:$0xff]  ;;  %v7626_v24 = vld [vmem:[#allocation19 + $0x1f8] sm:$0xff]  ;;  %v7759_v55 = vld [vmem:[#allocation19 + $0x8] sm:$0xff]  ;;  %s6026_s1 = sshll.u32 %s6888_s20, 4  ;;  %s6027_s1 = int_to_ptr.vmem [resolvable:$true] %s6026_s1 }
 0x3cb   :  { %2490 = vmatpush.msra.mxu3 %v2381_v11  ;;  %v7630_v27 = vld [vmem:[#allocation19 + $0x1d0] sm:$0xff]  ;;  %2640 = vmatpush.msrb.mxu0 %v7626_v24  ;;  %v7755_v10 = vld [vmem:[#allocation19 + $0x38] sm:$0xff] }
 0x3cc   :  { %2468 = vmatpush.msra.mxu2 %v2376_v12  ;;  %v7732_v3 = vld [vmem:[#allocation19 + $0x70] sm:$0xff]  ;;  %v7766_v12 = vld [vmem:[#allocation19 + $0x18] sm:$0xff] }
 0x3cd   :  { %2491 = vmatpush.msra.mxu3 %v2377_v15  ;;  %v7750_v62 = vld [vmem:[#allocation19 + $0x30] sm:$0xff] }
 0x3ce   :  { %2469 = vmatpush.msra.mxu2 %v2372_v16  ;;  %v7761_v11 = vld [vmem:[#allocation19 + $0x10] sm:$0xff] }
 0x3cf   :  { %2492 = vmatpush.msra.mxu3 %v2373_v14 }
 0x3d0   :  { %2470 = vmatpush.msra.mxu2 %v2368_v18 }
 0x3d1   :  { %2353 = vrot.lane.b32.xlu2 %v2348_v28, %s6885_s27  ;;  %2493 = vmatpush.msra.mxu3 %v2369_v19  ;;  %v7634_v28 = vld [vmem:[#allocation19 + $0x1d8] sm:$0xff] }
 0x3d2   :  { %2471 = vmatpush.msra.mxu2 %v2364_v20  ;;  %2641 = vmatpush.msrb.mxu0 %v7634_v28 }
 0x3d3   :  { %2494 = vmatpush.msra.mxu3 %v2365_v23 }
 0x3d4   :  { %2642 = vmatpush.msrb.mxu0 %v7643_v13 }
 0x3d6   :  { %2643 = vmatpush.msrb.mxu0 %v7652_v32 }
 0x3d8   :  { %2644 = vmatpush.msrb.mxu0 %v7661_v56 }
 0x3d9   :  { %v2257_v57 = vpop.permute.xlu2 %2256 }
 0x3da   :  { %2645 = vmatpush.msrb.mxu0 %v7670_v39 }
 0x3dc   :  { %2646 = vmatpush.msrb.mxu0 %v7679_v25 }
 0x3de   :  { %2647 = vmatpush.msrb.mxu0 %v7688_v22 }
 0x3e0   :  { %2648 = vmatpush.msrb.mxu0 %v7697_v0 }
 0x3e1   :  { %v2314_v5 = vpop.permute.xlu2 %2313 }
 0x3e2   :  { %2649 = vmatpush.msrb.mxu0 %v7706_v53 }
 0x3f1   :  { %v2276_v60 = vpop.permute.xlu0 %2275 }
 0x3f2   :  { %v2238_v61 = vpop.permute.xlu1 %2237 }
 0x3f3   :  { %2244 = vst.msk [vmem:[#allocation6] sm:$0xff] %vm2243_vm5, %v2238_v61  ;;  %v7720_v61 = vld [vmem:[#allocation19 + $0x88] sm:$0xff] }
 0x3f4   :  { %2263 = vst.msk [vmem:[#allocation6] sm:$0xff] %vm2262_vm6, %v2257_v57  ;;  %v7711_v57 = vld [vmem:[#allocation19 + $0xb0] sm:$0xff] }
 0x3f5   :  { %2282 = vst.msk [vmem:[#allocation6] sm:$0xff] %vm2281_vm7, %v2276_v60  ;;  %v7716_v60 = vld [vmem:[#allocation19 + $0xb8] sm:$0xff] }
 0x3f6   :  { %2650 = vmatpush.msrb.mxu0 %v7716_v60 }
 0x3f8   :  { %2651 = vmatpush.msrb.mxu0 %v7727_v1 }
 0x3f9   :  { %v2333_v6 = vpop.permute.xlu0 %2332 }
 0x3fa   :  { %v2295_v50 = vpop.permute.xlu1 %2294 }
 0x3fb   :  { %2301 = vst.msk [vmem:[#allocation6] sm:$0xff] %vm2300_vm8, %v2295_v50  ;;  %v7736_v50 = vld [vmem:[#allocation19 + $0x78] sm:$0xff] }
 0x3fc   :  { %2320 = vst.msk [vmem:[#allocation6] sm:$0xff] %vm2319_vm9, %v2314_v5  ;;  %v7739_v5 = vld [vmem:[#allocation19 + $0x48] sm:$0xff]  ;;  %2652 = vmatpush.msrb.mxu0 %v7736_v50 }
 0x3fd   :  { %2339 = vst.msk [vmem:[#allocation6] sm:$0xff] %vm2338_vm10, %v2333_v6  ;;  %v7741_v6 = vld [vmem:[#allocation19 + $0x50] sm:$0xff] }
 0x402   :  { %v2352_v2 = vpop.permute.xlu1 %2351 }
 0x403   :  { %2358 = vst.msk [vmem:[#allocation6] sm:$0xff] %vm2357_vm11, %v2352_v2  ;;  %v7745_v2 = vld [vmem:[#allocation19 + $0x58] sm:$0xff] }
 0x404   :  { %2653 = vmatpush.msrb.mxu0 %v7745_v2 }
 0x406   :  { %2654 = vmatpush.msrb.mxu0 %v7755_v10 }
 0x408   :  { %2655 = vmatpush.msrb.mxu0 %v7766_v12 }
 0x409   :  { %2656 = vmatmul.f32.vlgmr.msrb.gmra.mxu0 %v7608_v51 }
 0x40a   :  { %v7615_v7 = vld [vmem:[#allocation6] sm:$0xff]  ;;  %2856 = vmatpush.msra.mxu0 %v7626_v24 }
 0x40b   :  { %6248 = vmatmul.msk.f32.vlgmr.msrb.gmra.mxu2 %vm567_vm2, %v7615_v7  ;;  %6250 = vmatmul.msk.f32.vlgmr.msrb.gmra.mxu3 %vm567_vm2, %v7615_v7 }
 0x40c   :  { %2600 = vmatpush.msrb.mxu2 %v7622_v26  ;;  %2620 = vmatpush.msrb.mxu3 %v7624_v40 }
 0x40d   :  { %2857 = vmatpush.msra.mxu0 %v7634_v28 }
 0x40e   :  { %2601 = vmatpush.msrb.mxu2 %v7628_v42  ;;  %2621 = vmatpush.msrb.mxu3 %v7630_v27 }
 0x40f   :  { %2858 = vmatpush.msra.mxu0 %v7643_v13 }
 0x410   :  { %2602 = vmatpush.msrb.mxu2 %v7637_v29  ;;  %2622 = vmatpush.msrb.mxu3 %v7639_v21 }
 0x411   :  { %2859 = vmatpush.msra.mxu0 %v7652_v32 }
 0x412   :  { %2603 = vmatpush.msrb.mxu2 %v7646_v31  ;;  %2623 = vmatpush.msrb.mxu3 %v7648_v33 }
 0x413   :  { %2860 = vmatpush.msra.mxu0 %v7661_v56 }
 0x414   :  { %2604 = vmatpush.msrb.mxu2 %v7655_v35  ;;  %2624 = vmatpush.msrb.mxu3 %v7657_v36 }
 0x415   :  { %2861 = vmatpush.msra.mxu0 %v7670_v39 }
 0x416   :  { %2605 = vmatpush.msrb.mxu2 %v7664_v37  ;;  %2625 = vmatpush.msrb.mxu3 %v7666_v38 }
 0x417   :  { %2862 = vmatpush.msra.mxu0 %v7679_v25 }
 0x418   :  { %2606 = vmatpush.msrb.mxu2 %v7673_v34  ;;  %2626 = vmatpush.msrb.mxu3 %v7675_v41 }
 0x419   :  { %2863 = vmatpush.msra.mxu0 %v7688_v22 }
 0x41a   :  { %2607 = vmatpush.msrb.mxu2 %v7682_v43  ;;  %2627 = vmatpush.msrb.mxu3 %v7684_v44 }
 0x41b   :  { %v2240_v17 = vpop.permute.xlu2 %2239  ;;  %2864 = vmatpush.msra.mxu0 %v7697_v0 }
 0x41c   :  { %2245 = vst.msk [vmem:[#allocation6 + $0x8] sm:$0xff] %vm2243_vm5, %v2240_v17  ;;  %2608 = vmatpush.msrb.mxu2 %v7691_v47  ;;  %2628 = vmatpush.msrb.mxu3 %v7693_v48 }
 0x41d   :  { %2865 = vmatpush.msra.mxu0 %v7706_v53 }
 0x41e   :  { %2609 = vmatpush.msrb.mxu2 %v7700_v30  ;;  %2629 = vmatpush.msrb.mxu3 %v7702_v45 }
 0x41f   :  { %2866 = vmatpush.msra.mxu0 %v7716_v60 }
 0x420   :  { %2610 = vmatpush.msrb.mxu2 %v7709_v54  ;;  %2630 = vmatpush.msrb.mxu3 %v7711_v57 }
 0x421   :  { %2867 = vmatpush.msra.mxu0 %v7727_v1 }
 0x422   :  { %2611 = vmatpush.msrb.mxu2 %v7720_v61  ;;  %2631 = vmatpush.msrb.mxu3 %v7722_v63 }
 0x423   :  { %v2297_v46 = vpop.permute.xlu2 %2296  ;;  %2868 = vmatpush.msra.mxu0 %v7736_v50 }
 0x424   :  { %2612 = vmatpush.msrb.mxu2 %v7730_v59  ;;  %2632 = vmatpush.msrb.mxu3 %v7732_v3 }
 0x425   :  { %2869 = vmatpush.msra.mxu0 %v7745_v2 }
 0x426   :  { %2613 = vmatpush.msrb.mxu2 %v7739_v5  ;;  %2633 = vmatpush.msrb.mxu3 %v7741_v6 }
 0x427   :  { %2870 = vmatpush.msra.mxu0 %v7755_v10 }
 0x428   :  { %2614 = vmatpush.msrb.mxu2 %v7748_v4  ;;  %2634 = vmatpush.msrb.mxu3 %v7750_v62 }
 0x429   :  { %2871 = vmatpush.msra.mxu0 %v7766_v12 }
 0x42a   :  { %2615 = vmatpush.msrb.mxu2 %v7759_v55  ;;  %2635 = vmatpush.msrb.mxu3 %v7761_v11 }
 0x42b   :  { %v2354_v52 = vpop.permute.xlu2 %2353  ;;  %3090 = vmatpush.msrb.mxu0 %v7626_v24 }
 0x42d   :  { %3091 = vmatpush.msrb.mxu0 %v7634_v28 }
 0x42f   :  { %3092 = vmatpush.msrb.mxu0 %v7643_v13 }
 0x431   :  { %3093 = vmatpush.msrb.mxu0 %v7652_v32 }
 0x433   :  { %v2259_v49 = vpop.permute.xlu0 %2258  ;;  %3094 = vmatpush.msrb.mxu0 %v7661_v56 }
 0x434   :  { %2264 = vst.msk [vmem:[#allocation6 + $0x8] sm:$0xff] %vm2262_vm6, %v2259_v49  ;;  %v2278_v58 = vpop.permute.xlu1 %2277 }
 0x435   :  { %2283 = vst.msk [vmem:[#allocation6 + $0x8] sm:$0xff] %vm2281_vm7, %v2278_v58  ;;  %3095 = vmatpush.msrb.mxu0 %v7670_v39 }
 0x436   :  { %2302 = vst.msk [vmem:[#allocation6 + $0x8] sm:$0xff] %vm2300_vm8, %v2297_v46 }
 0x437   :  { %3096 = vmatpush.msrb.mxu0 %v7679_v25 }
 0x439   :  { %3097 = vmatpush.msrb.mxu0 %v7688_v22 }
 0x43b   :  { %v2316_v8 = vpop.permute.xlu0 %2315  ;;  %3098 = vmatpush.msrb.mxu0 %v7697_v0 }
 0x43c   :  { %2321 = vst.msk [vmem:[#allocation6 + $0x8] sm:$0xff] %vm2319_vm9, %v2316_v8  ;;  %v2335_v9 = vpop.permute.xlu1 %2334 }
 0x43d   :  { %2340 = vst.msk [vmem:[#allocation6 + $0x8] sm:$0xff] %vm2338_vm10, %v2335_v9  ;;  %3099 = vmatpush.msrb.mxu0 %v7706_v53 }
 0x43e   :  { %2359 = vst.msk [vmem:[#allocation6 + $0x8] sm:$0xff] %vm2357_vm11, %v2354_v52 }
 0x43f   :  { %3100 = vmatpush.msrb.mxu0 %v7716_v60 }
 0x441   :  { %3101 = vmatpush.msrb.mxu0 %v7727_v1 }
 0x443   :  { %3102 = vmatpush.msrb.mxu0 %v7736_v50 }
 0x445   :  { %v2361_v15 = vld [vmem:[#allocation6 + $0x8] sm:$0xff]  ;;  %3103 = vmatpush.msrb.mxu0 %v7745_v2 }
 0x446   :  { %6249 = vmatmul.msk.f32.gmra.mxu2 %vm567_vm2, %v2361_v15  ;;  %6251 = vmatmul.msk.f32.gmra.mxu3 %vm567_vm2, %v2361_v15 }
 0x447   :  { %3104 = vmatpush.msrb.mxu0 %v7755_v10 }
 0x449   :  { %3105 = vmatpush.msrb.mxu0 %v7766_v12  ;;  %v2511_v12 = vld [vmem:[%s9684_s18] sm:$0x3] }
 0x44e   :  { %6252 = vmatmul.msk.f32.vlgmr.msra.gmra.mxu2 %vm567_vm2, %v7615_v7  ;;  %6254 = vmatmul.msk.f32.vlgmr.msra.gmra.mxu3 %vm567_vm2, %v7615_v7 }
 0x44f   :  { %2816 = vmatpush.msra.mxu2 %v7622_v26  ;;  %2836 = vmatpush.msra.mxu3 %v7624_v40 }
 0x451   :  { %2817 = vmatpush.msra.mxu2 %v7628_v42  ;;  %2837 = vmatpush.msra.mxu3 %v7630_v27 }
 0x453   :  { %2818 = vmatpush.msra.mxu2 %v7637_v29  ;;  %2838 = vmatpush.msra.mxu3 %v7639_v21 }
 0x455   :  { %2819 = vmatpush.msra.mxu2 %v7646_v31  ;;  %2839 = vmatpush.msra.mxu3 %v7648_v33 }
 0x456   :  { %6253 = vmatmul.msk.f32.gmra.mxu2 %vm567_vm2, %v2361_v15  ;;  %6255 = vmatmul.msk.f32.gmra.mxu3 %vm567_vm2, %v2361_v15 }
 0x457   :  { %2820 = vmatpush.msra.mxu2 %v7655_v35  ;;  %2840 = vmatpush.msra.mxu3 %v7657_v36 }
 0x459   :  { %2821 = vmatpush.msra.mxu2 %v7664_v37  ;;  %2841 = vmatpush.msra.mxu3 %v7666_v38 }
 0x45b   :  { %2822 = vmatpush.msra.mxu2 %v7673_v34  ;;  %2842 = vmatpush.msra.mxu3 %v7675_v41 }
 0x45d   :  { %2823 = vmatpush.msra.mxu2 %v7682_v43  ;;  %2843 = vmatpush.msra.mxu3 %v7684_v44 }
 0x45e   :  { %2616 = vmatmul.f32.vlgmr.msrb.gmra.mxu2 %v7608_v51  ;;  %2636 = vmatmul.f32.vlgmr.msrb.gmra.mxu3 %v7608_v51  ;;  %v2394_v51 = vld [vmem:[%s9677_s11] sm:$0xf] }
 0x45f   :  { %2824 = vmatpush.msra.mxu2 %v7691_v47  ;;  %2844 = vmatpush.msra.mxu3 %v7693_v48  ;;  %v2396_v7 = vperm.slane %v2394_v51, 0  ;;  %v2397_v16 = vperm.slane %v2394_v51, 1  ;;  %v2398_v28 = vperm.slane %v2394_v51, 2 }
 0x461   :  { %2825 = vmatpush.msra.mxu2 %v7700_v30  ;;  %2845 = vmatpush.msra.mxu3 %v7702_v45 }
 0x463   :  { %2826 = vmatpush.msra.mxu2 %v7709_v54  ;;  %2846 = vmatpush.msra.mxu3 %v7711_v57 }
 0x465   :  { %2827 = vmatpush.msra.mxu2 %v7720_v61  ;;  %2847 = vmatpush.msra.mxu3 %v7722_v63 }
 0x467   :  { %2828 = vmatpush.msra.mxu2 %v7730_v59  ;;  %2848 = vmatpush.msra.mxu3 %v7732_v3 }
 0x469   :  { %2829 = vmatpush.msra.mxu2 %v7739_v5  ;;  %2849 = vmatpush.msra.mxu3 %v7741_v6 }
 0x46b   :  { %2830 = vmatpush.msra.mxu2 %v7748_v4  ;;  %2850 = vmatpush.msra.mxu3 %v7750_v62 }
 0x46d   :  { %2831 = vmatpush.msra.mxu2 %v7759_v55  ;;  %2851 = vmatpush.msra.mxu3 %v7761_v11 }
 0x46f   :  { %3050 = vmatpush.msrb.mxu2 %v7622_v26  ;;  %3070 = vmatpush.msrb.mxu3 %v7624_v40 }
 0x471   :  { %3051 = vmatpush.msrb.mxu2 %v7628_v42  ;;  %3071 = vmatpush.msrb.mxu3 %v7630_v27  ;;  %v2597_v42 = vpop.f32.mrf.mxu0 }
 0x473   :  { %3052 = vmatpush.msrb.mxu2 %v7637_v29  ;;  %3072 = vmatpush.msrb.mxu3 %v7639_v21  ;;  %v2399_v29 = vperm.slane %v2394_v51, 3 }
 0x475   :  { %3053 = vmatpush.msrb.mxu2 %v7646_v31  ;;  %3073 = vmatpush.msrb.mxu3 %v7648_v33 }
 0x477   :  { %3054 = vmatpush.msrb.mxu2 %v7655_v35  ;;  %3074 = vmatpush.msrb.mxu3 %v7657_v36 }
 0x479   :  { %3055 = vmatpush.msrb.mxu2 %v7664_v37  ;;  %3075 = vmatpush.msrb.mxu3 %v7666_v38 }
 0x47b   :  { %3056 = vmatpush.msrb.mxu2 %v7673_v34  ;;  %3076 = vmatpush.msrb.mxu3 %v7675_v41 }
 0x47d   :  { %3057 = vmatpush.msrb.mxu2 %v7682_v43  ;;  %3077 = vmatpush.msrb.mxu3 %v7684_v44 }
 0x47f   :  { %3058 = vmatpush.msrb.mxu2 %v7691_v47  ;;  %3078 = vmatpush.msrb.mxu3 %v7693_v48 }
 0x481   :  { %3059 = vmatpush.msrb.mxu2 %v7700_v30  ;;  %3079 = vmatpush.msrb.mxu3 %v7702_v45 }
 0x483   :  { %3060 = vmatpush.msrb.mxu2 %v7709_v54  ;;  %3080 = vmatpush.msrb.mxu3 %v7711_v57 }
 0x485   :  { %3061 = vmatpush.msrb.mxu2 %v7720_v61  ;;  %3081 = vmatpush.msrb.mxu3 %v7722_v63 }
 0x486   :  { %v2657_v38 = vpop.f32.mrf.mxu0 }
 0x487   :  { %3062 = vmatpush.msrb.mxu2 %v7730_v59  ;;  %3082 = vmatpush.msrb.mxu3 %v7732_v3 }
 0x489   :  { %3063 = vmatpush.msrb.mxu2 %v7739_v5  ;;  %3083 = vmatpush.msrb.mxu3 %v7741_v6 }
 0x48b   :  { %3064 = vmatpush.msrb.mxu2 %v7748_v4  ;;  %3084 = vmatpush.msrb.mxu3 %v7750_v62 }
 0x48d   :  { %3065 = vmatpush.msrb.mxu2 %v7759_v55  ;;  %3085 = vmatpush.msrb.mxu3 %v7761_v11 }
 0x48e   :  { %v2427_v14 = vpop.f32.mrf.mxu2  ;;  %v2450_v17 = vpop.f32.mrf.mxu3 }
 0x48f   :  { %v2428_v18 = vadd.f32 %v2427_v14, %v2396_v7  ;;  %v2451_v19 = vadd.f32 %v2450_v17, %v2397_v16 }
 0x491   :  { %2502 = vst [vmem:[#allocation7 + $0x30] sm:$0xff] %v2428_v18 }
 0x492   :  { %2503 = vst [vmem:[#allocation7] sm:$0xff] %v2451_v19 }
 0x498   :  { %v2512_v24 = vld [vmem:[#allocation7 + $0x30] sm:$0x3] }
 0x499   :  { %v2660_v27 = vadd.f32 %v2597_v42, %v2512_v24  ;;  %v2513_v44 = vld [vmem:[#allocation7] sm:$0x3] }
 0x49b   :  { %v6256_v31 = vmul.f32 -1.442695, %v2660_v27 }
 0x49d   :  { %6334 = vpow2.f32 %v6256_v31 }
 0x4a3   :  { %v6335_v39 = vpop.eup %6334 }
 0x4a4   :  { %v2667_v25 = vadd.f32 1.0, %v6335_v39 }
 0x4a6   :  { %vm2673_vm13 = vweird.f32 %v2667_v25  ;;  %v2679_v2 = vand.u32 2147483648, %v2667_v25  ;;  %v2677_v4 = vand.u32 2147483647, %v2667_v25 }
 0x4a8   :  { %v2680_v15 = vor.u32 1.1754944e-38, %v2679_v2  ;;  %vm2678_vm2 = vcmp.eq.f32.partialorder %v2677_v4, 8.507059e+37  ;;  %v7935_v2 = vld [vmem:[#allocation19] sm:$0xff] }
 0x4c9   :  { %v2430_v20 = vpop.f32.mrf.mxu2  ;;  %v2453_v23 = vpop.f32.mrf.mxu3 }
 0x4ca   :  { %v2431_v26 = vadd.f32 %v2430_v20, %v2396_v7  ;;  %v2454_v40 = vadd.f32 %v2453_v23, %v2397_v16 }
 0x4cc   :  { %2506 = vst [vmem:[#allocation7 + $0x8] sm:$0xff] %v2431_v26 }
 0x4cd   :  { %2507 = vst [vmem:[#allocation7 + $0x20] sm:$0xff] %v2454_v40 }
 0x4d1   :  { %v2473_v21 = vpop.f32.mrf.mxu2  ;;  %v2496_v13 = vpop.f32.mrf.mxu3 }
 0x4d2   :  { %v2474_v33 = vadd.f32 %v2473_v21, %v2398_v28  ;;  %v2497_v32 = vadd.f32 %v2496_v13, %v2399_v29  ;;  %v7891_v21 = vld [vmem:[#allocation19 + $0x1c0] sm:$0xff] }
 0x4d3   :  { %v7894_v13 = vld [vmem:[#allocation19 + $0x1a0] sm:$0xff] }
 0x4d4   :  { %2504 = vst [vmem:[#allocation7 + $0x18] sm:$0xff] %v2474_v33  ;;  %v7897_v33 = vld [vmem:[#allocation19 + $0x180] sm:$0xff] }
 0x4d5   :  { %2505 = vst [vmem:[#allocation7 + $0x10] sm:$0xff] %v2497_v32 }
 0x4d9   :  { %v2476_v35 = vpop.f32.mrf.mxu2  ;;  %v2499_v36 = vpop.f32.mrf.mxu3 }
 0x4da   :  { %v2477_v56 = vadd.f32 %v2476_v35, %v2398_v28  ;;  %v2500_v37 = vadd.f32 %v2499_v36, %v2399_v29  ;;  %v7888_v29 = vld [vmem:[#allocation19 + $0x1e0] sm:$0xff]  ;;  %v2728_v36 = vld [vmem:[#allocation7 + $0x30] sm:$0xc] }
 0x4db   :  { %v2514_v58 = vld [vmem:[#allocation7 + $0x18] sm:$0x3]  ;;  %3030 = vmatpush.msra.mxu1 %v7888_v29 }
 0x4dc   :  { %2508 = vst [vmem:[#allocation7 + $0x28] sm:$0xff] %v2477_v56  ;;  %v2515_v34 = vld [vmem:[#allocation7 + $0x10] sm:$0x3]  ;;  %v2731_v39 = vld [vmem:[#allocation7 + $0x10] sm:$0xc] }
 0x4dd   :  { %2509 = vst [vmem:[#allocation7 + $0x38] sm:$0xff] %v2500_v37  ;;  %v2663_v41 = vadd.f32 %v2657_v38, %v2515_v34  ;;  %3031 = vmatpush.msra.mxu1 %v7891_v21  ;;  %v7900_v37 = vld [vmem:[#allocation19 + $0x160] sm:$0xff] }
 0x4df   :  { %v6258_v43 = vmul.f32 -1.442695, %v2663_v41  ;;  %3032 = vmatpush.msra.mxu1 %v7894_v13  ;;  %v7903_v41 = vld [vmem:[#allocation19 + $0x140] sm:$0xff] }
 0x4e1   :  { %6336 = vpow2.f32 %v6258_v43  ;;  %v2617_v22 = vpop.f32.mrf.mxu2  ;;  %v2637_v57 = vpop.f32.mrf.mxu3  ;;  %3033 = vmatpush.msra.mxu1 %v7897_v33 }
 0x4e2   :  { %v2661_v47 = vadd.f32 %v2617_v22, %v2513_v44  ;;  %6338 = vrcp.f32 %v2667_v25  ;;  %v2662_v60 = vadd.f32 %v2637_v57, %v2514_v58  ;;  %v7906_v22 = vld [vmem:[#allocation19 + $0x120] sm:$0xff] }
 0x4e3   :  { %3034 = vmatpush.msra.mxu1 %v7900_v37 }
 0x4e4   :  { %v6257_v48 = vmul.f32 -1.442695, %v2661_v47 }
 0x4e5   :  { %3035 = vmatpush.msra.mxu1 %v7903_v41 }
 0x4e6   :  { %6340 = vpow2.f32 %v6257_v48  ;;  %v2729_v48 = vld [vmem:[#allocation7] sm:$0xc] }
 0x4e7   :  { %v6337_v0 = vpop.eup %6336  ;;  %3036 = vmatpush.msra.mxu1 %v7906_v22 }
 0x4e8   :  { %v6339_v30 = vpop.eup %6338  ;;  %v2706_v45 = vadd.f32 1.0, %v6337_v0  ;;  %v7909_v0 = vld [vmem:[#allocation19 + $0x100] sm:$0xff] }
 0x4e9   :  { %v2669_v46 = vmul.f32 %v6339_v30, %v2667_v25  ;;  %vm2674_vm12 = vweird.f32 %v6339_v30  ;;  %3037 = vmatpush.msra.mxu1 %v7909_v0 }
 0x4ea   :  { %6342 = vrcp.f32 %v2706_v45  ;;  %vm2675_vm15 = vmor %vm2673_vm13, %vm2674_vm12  ;;  %v2718_v23 = vand.u32 2147483648, %v2706_v45  ;;  %vm2712_vm5 = vweird.f32 %v2706_v45  ;;  %v2716_v26 = vand.u32 2147483647, %v2706_v45 }
 0x4eb   :  { %v2670_v54 = vsub.f32 1.0, %v2669_v46  ;;  %v7915_v46 = vld [vmem:[#allocation19 + $0xc0] sm:$0xff] }
 0x4ec   :  { %v6341_v53 = vpop.eup %6340  ;;  %v2719_v24 = vor.u32 1.1754944e-38, %v2718_v23  ;;  %vm2717_vm7 = vcmp.eq.f32.partialorder %v2716_v26, 8.507059e+37 }
 0x4ed   :  { %v2686_v49 = vadd.f32 1.0, %v6341_v53  ;;  %v2671_v63 = vmul.f32 %v6339_v30, %v2670_v54 }
 0x4ef   :  { %6344 = vrcp.f32 %v2686_v49  ;;  %v2672_v5 = vadd.f32 %v6339_v30, %v2671_v63  ;;  %v2698_v6 = vand.u32 2147483648, %v2686_v49  ;;  %v2696_v62 = vand.u32 2147483647, %v2686_v49 }
 0x4f0   :  { %v6343_v61 = vpop.eup %6342  ;;  %6346 = vtanh.f32 %v2662_v60  ;;  %vm2692_vm0 = vweird.f32 %v2686_v49  ;;  %v7920_v60 = vld [vmem:[#allocation19 + $0x80] sm:$0xff] }
 0x4f1   :  { %v2708_v3 = vmul.f32 %v6343_v61, %v2706_v45  ;;  %v2676_v10 = vsel %vm2675_vm15, %v6339_v30, %v2672_v5  ;;  %v2699_v11 = vor.u32 1.1754944e-38, %v2698_v6  ;;  %vm2697_vm3 = vcmp.eq.f32.partialorder %v2696_v62, 8.507059e+37  ;;  %v7912_v45 = vld [vmem:[#allocation19 + $0xe0] sm:$0xff] }
 0x4f2   :  { %v2681_v16 = vsel %vm2678_vm2, %v2680_v15, %v2676_v10  ;;  %vm2713_vm4 = vweird.f32 %v6343_v61  ;;  %3038 = vmatpush.msra.mxu1 %v7912_v45  ;;  %v2730_v10 = vld [vmem:[#allocation7 + $0x18] sm:$0xc] }
 0x4f3   :  { %v2709_v9 = vsub.f32 1.0, %v2708_v3  ;;  %vm2714_vm6 = vmor %vm2712_vm5, %vm2713_vm4 }
 0x4f4   :  { %3039 = vmatpush.msra.mxu1 %v7915_v46 }
 0x4f5   :  { %v6345_v1 = vpop.eup %6344  ;;  %v2710_v7 = vmul.f32 %v6343_v61, %v2709_v9 }
 0x4f6   :  { %v2688_v59 = vmul.f32 %v6345_v1, %v2686_v49  ;;  %vm2693_vm14 = vweird.f32 %v6345_v1  ;;  %v6347_v55 = vpop.eup %6346  ;;  %v7917_v49 = vld [vmem:[#allocation19 + $0xa0] sm:$0xff] }
 0x4f7   :  { %vm2694_vm1 = vmor %vm2692_vm0, %vm2693_vm14  ;;  %v2723_v18 = vmul.f32 %v6347_v55, %v2681_v16  ;;  %v2711_v20 = vadd.f32 %v6343_v61, %v2710_v7  ;;  %3040 = vmatpush.msra.mxu1 %v7917_v49 }
 0x4f8   :  { %v2689_v50 = vsub.f32 1.0, %v2688_v59 }
 0x4f9   :  { %v2715_v40 = vsel %vm2714_vm6, %v6343_v61, %v2711_v20  ;;  %v7923_v61 = vld [vmem:[#allocation19 + $0x60] sm:$0xff]  ;;  %3041 = vmatpush.msra.mxu1 %v7920_v60 }
 0x4fa   :  { %v2690_v8 = vmul.f32 %v6345_v1, %v2689_v50  ;;  %v2720_v27 = vsel %vm2717_vm7, %v2719_v24, %v2715_v40  ;;  %v7931_v50 = vld [vmem:[#allocation19 + $0x20] sm:$0xff] }
 0x4fb   :  { %3042 = vmatpush.msra.mxu1 %v7923_v61 }
 0x4fc   :  { %v2691_v52 = vadd.f32 %v6345_v1, %v2690_v8 }
 0x4fe   :  { %v2695_v51 = vsel %vm2694_vm1, %v6345_v1, %v2691_v52  ;;  %v7928_v1 = vld [vmem:[#allocation19 + $0x40] sm:$0xff] }
 0x4ff   :  { %v2700_v14 = vsel %vm2697_vm3, %v2699_v11, %v2695_v51  ;;  %3043 = vmatpush.msra.mxu1 %v7928_v1 }
 0x500   :  { %v2722_v17 = vmul.f32 %v2700_v14, %v2511_v12 }
 0x501   :  { %3044 = vmatpush.msra.mxu1 %v7931_v50 }
 0x502   :  { %v7885_v19 = vadd.f32 %v2723_v18, %v2722_v17  ;;  %v8057_v18 = vld [vmem:[#allocation19 + $0xe8] sm:$0xff] }
 0x503   :  { %3045 = vmatpush.msra.mxu1 %v7935_v2 }
 0x504   :  { %6348 = vtanh.f32 %v7885_v19 }
 0x50a   :  { %v6349_v42 = vpop.eup %6348 }
 0x50b   :  { %v2726_v28 = vmul.f32 %v6349_v42, %v2720_v27 }
 0x50d   :  { %2727 = vst [vmem:[#allocation8] sm:$0x3] %v2726_v28  ;;  %2812 = vmatmul.f32.vlgmr.msrb.gmra.mxu1 %v2726_v28  ;;  %2832 = vmatmul.f32.vlgmr.msra.gmra.mxu2 %v2726_v28 }
 0x50e   :  { %2852 = vmatmul.f32.vlgmr.msra.gmra.mxu3 %v2726_v28  ;;  %2872 = vmatmul.f32.vlgmr.msra.gmra.mxu0 %v2726_v28 }
 0x50f   :  { %3264 = vmatpush.msrb.mxu1 %v7888_v29 }
 0x511   :  { %3265 = vmatpush.msrb.mxu1 %v7891_v21 }
 0x513   :  { %3266 = vmatpush.msrb.mxu1 %v7894_v13 }
 0x515   :  { %3267 = vmatpush.msrb.mxu1 %v7897_v33 }
 0x517   :  { %3268 = vmatpush.msrb.mxu1 %v7900_v37 }
 0x519   :  { %3269 = vmatpush.msrb.mxu1 %v7903_v41 }
 0x51b   :  { %3270 = vmatpush.msrb.mxu1 %v7906_v22 }
 0x51d   :  { %3271 = vmatpush.msrb.mxu1 %v7909_v0 }
 0x51f   :  { %3272 = vmatpush.msrb.mxu1 %v7912_v45 }
 0x521   :  { %3273 = vmatpush.msrb.mxu1 %v7915_v46 }
 0x523   :  { %3274 = vmatpush.msrb.mxu1 %v7917_v49 }
 0x525   :  { %3275 = vmatpush.msrb.mxu1 %v7920_v60 }
 0x527   :  { %3276 = vmatpush.msrb.mxu1 %v7923_v61 }
 0x529   :  { %3277 = vmatpush.msrb.mxu1 %v7928_v1 }
 0x52b   :  { %3278 = vmatpush.msrb.mxu1 %v7931_v50 }
 0x52d   :  { %3279 = vmatpush.msrb.mxu1 %v7935_v2 }
 0x58a   :  { %v2813_v31 = vpop.f32.mrf.mxu1 }
 0x58b   :  { %v2880_v32 = vrot.slane %v2813_v31, 6  ;;  %v2873_v35 = vpop.f32.mrf.mxu0  ;;  %v2951_v31 = vrot.slane %v7885_v19, 6 }
 0x58c   :  { %v2883_v56 = vrot.slane %v2873_v35, 6 }
 0x58d   :  { %v2888_v38 = vadd.f32 %v2880_v32, %v2728_v36 }
 0x58e   :  { %v2891_v34 = vadd.f32 %v2883_v56, %v2731_v39 }
 0x58f   :  { %v6259_v25 = vmul.f32 -1.442695, %v2888_v38 }
 0x590   :  { %v6261_v43 = vmul.f32 -1.442695, %v2891_v34  ;;  %v2833_v44 = vpop.f32.mrf.mxu2 }
 0x591   :  { %6350 = vpow2.f32 %v6259_v25  ;;  %v2881_v47 = vrot.slane %v2833_v44, 6  ;;  %v2853_v5 = vpop.f32.mrf.mxu3 }
 0x592   :  { %6352 = vpow2.f32 %v6261_v43  ;;  %v2882_v4 = vrot.slane %v2853_v5, 6 }
 0x593   :  { %v2889_v30 = vadd.f32 %v2881_v47, %v2729_v48 }
 0x594   :  { %v2890_v11 = vadd.f32 %v2882_v4, %v2730_v10  ;;  %v8032_v4 = vld [vmem:[#allocation19 + $0x150] sm:$0xff] }
 0x595   :  { %v6260_v53 = vmul.f32 -1.442695, %v2889_v30 }
 0x597   :  { %v6351_v54 = vpop.eup %6350  ;;  %6354 = vpow2.f32 %v6260_v53 }
 0x598   :  { %v6353_v57 = vpop.eup %6352  ;;  %v2895_v58 = vadd.f32 1.0, %v6351_v54 }
 0x599   :  { %v7925_v63 = vadd.f32 1.0, %v6353_v57  ;;  %v8014_v57 = vld [vmem:[#allocation19 + $0x190] sm:$0xff] }
 0x59a   :  { %6356 = vrcp.f32 %v2895_v58  ;;  %v2907_v7 = vand.u32 2147483648, %v2895_v58  ;;  %vm2901_vm9 = vweird.f32 %v2895_v58  ;;  %v2905_v14 = vand.u32 2147483647, %v2895_v58 }
 0x59b   :  { %6358 = vrcp.f32 %v7925_v63  ;;  %v2946_v43 = vand.u32 2147483648, %v7925_v63  ;;  %vm2940_vm1 = vweird.f32 %v7925_v63  ;;  %v2944_v19 = vand.u32 2147483647, %v7925_v63 }
 0x59c   :  { %v2908_v24 = vor.u32 1.1754944e-38, %v2907_v7  ;;  %vm2906_vm13 = vcmp.eq.f32.partialorder %v2905_v14, 8.507059e+37  ;;  %v8048_v7 = vld [vmem:[#allocation19 + $0x108] sm:$0xff]  ;;  %v8052_v14 = vld [vmem:[#allocation19 + $0x118] sm:$0xff] }
 0x59d   :  { %v6355_v59 = vpop.eup %6354  ;;  %v2947_v47 = vor.u32 1.1754944e-38, %v2946_v43  ;;  %vm2945_vm3 = vcmp.eq.f32.partialorder %v2944_v19, 8.507059e+37  ;;  %v8095_v43 = vld [vmem:[#allocation19 + $0x70] sm:$0xff] }
 0x59e   :  { %v2914_v3 = vadd.f32 1.0, %v6355_v59  ;;  %v8021_v59 = vld [vmem:[#allocation19 + $0x168] sm:$0xff] }
 0x5a0   :  { %v6357_v6 = vpop.eup %6356  ;;  %6360 = vrcp.f32 %v2914_v3  ;;  %v2926_v17 = vand.u32 2147483648, %v2914_v3  ;;  %v2924_v26 = vand.u32 2147483647, %v2914_v3  ;;  %vm2920_vm12 = vweird.f32 %v2914_v3 }
 0x5a1   :  { %v2897_v8 = vmul.f32 %v6357_v6, %v2895_v58  ;;  %v6359_v9 = vpop.eup %6358  ;;  %vm2902_vm8 = vweird.f32 %v6357_v6  ;;  %6362 = vtanh.f32 %v2890_v11  ;;  %v8016_v58 = vld [vmem:[#allocation19 + $0x198] sm:$0xff]  ;;  %v8041_v11 = vld [vmem:[#allocation19 + $0x130] sm:$0xff] }
 0x5a2   :  { %v2936_v51 = vmul.f32 %v6359_v9, %v7925_v63  ;;  %vm7943_vm10 = vmor %vm2901_vm9, %vm2902_vm8  ;;  %v2927_v27 = vor.u32 1.1754944e-38, %v2926_v17  ;;  %vm2925_vm15 = vcmp.eq.f32.partialorder %v2924_v26, 8.507059e+37  ;;  %vm2941_vm0 = vweird.f32 %v6359_v9 }
 0x5a3   :  { %v2898_v62 = vsub.f32 1.0, %v2897_v8  ;;  %vm2942_vm2 = vmor %vm2940_vm1, %vm2941_vm0  ;;  %v8030_v8 = vld [vmem:[#allocation19 + $0x148] sm:$0xff] }
 0x5a4   :  { %v2937_v40 = vsub.f32 1.0, %v2936_v51 }
 0x5a5   :  { %v2899_v52 = vmul.f32 %v6357_v6, %v2898_v62  ;;  %v8034_v62 = vld [vmem:[#allocation19 + $0x158] sm:$0xff] }
 0x5a6   :  { %v6361_v55 = vpop.eup %6360  ;;  %v2938_v36 = vmul.f32 %v6359_v9, %v2937_v40  ;;  %v8065_v40 = vld [vmem:[#allocation19 + $0xc8] sm:$0xff] }
 0x5a7   :  { %v2916_v12 = vmul.f32 %v6361_v55, %v2914_v3  ;;  %v2900_v15 = vadd.f32 %v6357_v6, %v2899_v52  ;;  %vm2921_vm11 = vweird.f32 %v6361_v55  ;;  %v6363_v35 = vpop.eup %6362  ;;  %v8023_v3 = vld [vmem:[#allocation19 + $0x170] sm:$0xff] }
 0x5a8   :  { %vm2922_vm14 = vmor %vm2920_vm12, %vm2921_vm11  ;;  %v2939_v25 = vadd.f32 %v6359_v9, %v2938_v36 }
 0x5a9   :  { %v2917_v16 = vsub.f32 1.0, %v2916_v12  ;;  %v2904_v23 = vsel %vm7943_vm10, %v6357_v6, %v2900_v15  ;;  %v2962_v6 = vld [vmem:[#allocation7 + $0x10] sm:$0x30]  ;;  %v2960_v15 = vld [vmem:[#allocation7] sm:$0x30] }
 0x5aa   :  { %v2909_v28 = vsel %vm2906_vm13, %v2908_v24, %v2904_v23  ;;  %v2943_v44 = vsel %vm2942_vm2, %v6359_v9, %v2939_v25  ;;  %v8043_v12 = vld [vmem:[#allocation19 + $0x138] sm:$0xff]  ;;  %v8067_v24 = vld [vmem:[#allocation19 + $0xd0] sm:$0xff]  ;;  %v8093_v25 = vld [vmem:[#allocation19 + $0x68] sm:$0xff] }
 0x5ab   :  { %v2918_v20 = vmul.f32 %v6361_v55, %v2917_v16  ;;  %v2954_v39 = vmul.f32 %v6363_v35, %v2909_v28  ;;  %v2948_v30 = vsel %vm2945_vm3, %v2947_v47, %v2943_v44  ;;  %v8050_v16 = vld [vmem:[#allocation19 + $0x110] sm:$0xff]  ;;  %v8061_v23 = vld [vmem:[#allocation19 + $0xf8] sm:$0xff]  ;;  %v8104_v47 = vld [vmem:[#allocation19 + $0x48] sm:$0xff] }
 0x5ac   :  { %v8074_v28 = vld [vmem:[#allocation19 + $0xb0] sm:$0xff]  ;;  %v8101_v44 = vld [vmem:[#allocation19 + $0x78] sm:$0xff] }
 0x5ad   :  { %v2919_v42 = vadd.f32 %v6361_v55, %v2918_v20  ;;  %v8059_v20 = vld [vmem:[#allocation19 + $0xf0] sm:$0xff] }
 0x5af   :  { %v2923_v32 = vsel %vm2922_vm14, %v6361_v55, %v2919_v42  ;;  %v8039_v55 = vld [vmem:[#allocation19 + $0x128] sm:$0xff]  ;;  %v8069_v42 = vld [vmem:[#allocation19 + $0xd8] sm:$0xff] }
 0x5b0   :  { %v2928_v56 = vsel %vm2925_vm15, %v2927_v27, %v2923_v32  ;;  %v8072_v27 = vld [vmem:[#allocation19 + $0xa8] sm:$0xff]  ;;  %v8078_v32 = vld [vmem:[#allocation19 + $0xb8] sm:$0xff] }
 0x5b1   :  { %v2953_v38 = vmul.f32 %v2951_v31, %v2928_v56  ;;  %v8083_v56 = vld [vmem:[#allocation19 + $0x88] sm:$0xff] }
 0x5b3   :  { %v7955_v34 = vadd.f32 %v2954_v39, %v2953_v38  ;;  %v8085_v38 = vld [vmem:[#allocation19 + $0x90] sm:$0xff]  ;;  %v8089_v39 = vld [vmem:[#allocation19 + $0x98] sm:$0xff] }
 0x5b5   :  { %6364 = vtanh.f32 %v7955_v34 }
 0x5bb   :  { %v6365_v48 = vpop.eup %6364 }
 0x5bc   :  { %v2957_v53 = vmul.f32 %v6365_v48, %v2948_v30  ;;  %v8106_v48 = vld [vmem:[#allocation19 + $0x50] sm:$0xff] }
 0x5be   :  { %2958 = vst [vmem:[#allocation8] sm:$0xc] %v2957_v53  ;;  %v3028_v54 = vrot.slane %v2957_v53, 2  ;;  %v8110_v53 = vld [vmem:[#allocation19 + $0x58] sm:$0xff] }
 0x5c0   :  { %3046 = vmatmul.f32.vlgmr.msra.gmra.mxu1 %v3028_v54  ;;  %3066 = vmatmul.f32.vlgmr.msrb.gmra.mxu2 %v3028_v54 }
 0x5c1   :  { %3086 = vmatmul.f32.vlgmr.msrb.gmra.mxu3 %v3028_v54  ;;  %3106 = vmatmul.f32.vlgmr.msrb.gmra.mxu0 %v3028_v54 }
 0x5c2   :  { %3498 = vmatpush.msra.mxu1 %v7888_v29  ;;  %v7985_v29 = vld [vmem:[#allocation19 + $0x1e8] sm:$0xff] }
 0x5c3   :  { %3284 = vmatpush.msra.mxu2 %v7985_v29 }
 0x5c4   :  { %3499 = vmatpush.msra.mxu1 %v7891_v21  ;;  %v7987_v21 = vld [vmem:[#allocation19 + $0x1f0] sm:$0xff] }
 0x5c5   :  { %3304 = vmatpush.msra.mxu3 %v7987_v21 }
 0x5c6   :  { %3500 = vmatpush.msra.mxu1 %v7894_v13  ;;  %v7989_v13 = vld [vmem:[#allocation19 + $0x1f8] sm:$0xff] }
 0x5c7   :  { %3324 = vmatpush.msra.mxu0 %v7989_v13 }
 0x5c8   :  { %3501 = vmatpush.msra.mxu1 %v7897_v33  ;;  %v7994_v33 = vld [vmem:[#allocation19 + $0x1c8] sm:$0xff] }
 0x5c9   :  { %3285 = vmatpush.msra.mxu2 %v7994_v33 }
 0x5ca   :  { %3502 = vmatpush.msra.mxu1 %v7900_v37  ;;  %v7996_v37 = vld [vmem:[#allocation19 + $0x1d0] sm:$0xff] }
 0x5cb   :  { %3305 = vmatpush.msra.mxu3 %v7996_v37 }
 0x5cc   :  { %3503 = vmatpush.msra.mxu1 %v7903_v41  ;;  %v7998_v41 = vld [vmem:[#allocation19 + $0x1d8] sm:$0xff] }
 0x5cd   :  { %9822 = vst [vmem:[#allocation35_spill] sm:$0xff] %v7998_v41  ;;  %3325 = vmatpush.msra.mxu0 %v7998_v41 }
 0x5ce   :  { %3504 = vmatpush.msra.mxu1 %v7906_v22  ;;  %v8003_v22 = vld [vmem:[#allocation19 + $0x1a8] sm:$0xff] }
 0x5cf   :  { %3286 = vmatpush.msra.mxu2 %v8003_v22 }
 0x5d0   :  { %3505 = vmatpush.msra.mxu1 %v7909_v0  ;;  %v8005_v0 = vld [vmem:[#allocation19 + $0x1b0] sm:$0xff] }
 0x5d1   :  { %9823 = vst [vmem:[#allocation36_spill] sm:$0xff] %v8005_v0  ;;  %3306 = vmatpush.msra.mxu3 %v8005_v0 }
 0x5d2   :  { %3506 = vmatpush.msra.mxu1 %v7912_v45  ;;  %v8007_v45 = vld [vmem:[#allocation19 + $0x1b8] sm:$0xff] }
 0x5d3   :  { %9824 = vst [vmem:[#allocation37_spill] sm:$0xff] %v8007_v45  ;;  %3326 = vmatpush.msra.mxu0 %v8007_v45  ;;  %3307 = vmatpush.msra.mxu3 %v8014_v57 }
 0x5d4   :  { %3507 = vmatpush.msra.mxu1 %v7915_v46 }
 0x5d5   :  { %3327 = vmatpush.msra.mxu0 %v8016_v58  ;;  %3308 = vmatpush.msra.mxu3 %v8023_v3 }
 0x5d6   :  { %3508 = vmatpush.msra.mxu1 %v7917_v49  ;;  %v8012_v49 = vld [vmem:[#allocation19 + $0x188] sm:$0xff] }
 0x5d7   :  { %3287 = vmatpush.msra.mxu2 %v8012_v49  ;;  %3309 = vmatpush.msra.mxu3 %v8032_v4 }
 0x5d8   :  { %3509 = vmatpush.msra.mxu1 %v7920_v60  ;;  %v2959_v60 = vld [vmem:[#allocation7 + $0x30] sm:$0x30] }
 0x5d9   :  { %3288 = vmatpush.msra.mxu2 %v8021_v59  ;;  %3310 = vmatpush.msra.mxu3 %v8041_v11 }
 0x5da   :  { %3510 = vmatpush.msra.mxu1 %v7923_v61 }
 0x5db   :  { %3289 = vmatpush.msra.mxu2 %v8030_v8  ;;  %3311 = vmatpush.msra.mxu3 %v8050_v16 }
 0x5dc   :  { %3511 = vmatpush.msra.mxu1 %v7928_v1 }
 0x5dd   :  { %3290 = vmatpush.msra.mxu2 %v8039_v55  ;;  %3312 = vmatpush.msra.mxu3 %v8059_v20 }
 0x5de   :  { %3512 = vmatpush.msra.mxu1 %v7931_v50  ;;  %v8025_v50 = vld [vmem:[#allocation19 + $0x178] sm:$0xff] }
 0x5df   :  { %3328 = vmatpush.msra.mxu0 %v8025_v50  ;;  %3291 = vmatpush.msra.mxu2 %v8048_v7 }
 0x5e0   :  { %3513 = vmatpush.msra.mxu1 %v7935_v2  ;;  %3313 = vmatpush.msra.mxu3 %v8067_v24 }
 0x5e1   :  { %3329 = vmatpush.msra.mxu0 %v8034_v62  ;;  %3292 = vmatpush.msra.mxu2 %v8057_v18 }
 0x5e2   :  { %3314 = vmatpush.msra.mxu3 %v8074_v28 }
 0x5e3   :  { %3330 = vmatpush.msra.mxu0 %v8043_v12  ;;  %3293 = vmatpush.msra.mxu2 %v8065_v40 }
 0x5e4   :  { %3315 = vmatpush.msra.mxu3 %v8085_v38 }
 0x5e5   :  { %3331 = vmatpush.msra.mxu0 %v8052_v14  ;;  %3294 = vmatpush.msra.mxu2 %v8072_v27 }
 0x5e6   :  { %3316 = vmatpush.msra.mxu3 %v8095_v43 }
 0x5e7   :  { %3332 = vmatpush.msra.mxu0 %v8061_v23  ;;  %3295 = vmatpush.msra.mxu2 %v8083_v56 }
 0x5e8   :  { %3317 = vmatpush.msra.mxu3 %v8106_v48 }
 0x5e9   :  { %3333 = vmatpush.msra.mxu0 %v8069_v42  ;;  %3296 = vmatpush.msra.mxu2 %v8093_v25 }
 0x5eb   :  { %3334 = vmatpush.msra.mxu0 %v8078_v32  ;;  %3297 = vmatpush.msra.mxu2 %v8104_v47 }
 0x5ed   :  { %3335 = vmatpush.msra.mxu0 %v8089_v39 }
 0x5ef   :  { %3336 = vmatpush.msra.mxu0 %v8101_v44 }
 0x5f1   :  { %3337 = vmatpush.msra.mxu0 %v8110_v53 }
 0x63d   :  { %v3047_v46 = vpop.f32.mrf.mxu1 }
 0x63e   :  { %v3114_v61 = vrot.slane %v3047_v46, 4  ;;  %v3107_v63 = vpop.f32.mrf.mxu0  ;;  %v8115_v46 = vld [vmem:[#allocation19 + $0x28] sm:$0xff] }
 0x63f   :  { %v3117_v1 = vrot.slane %v3107_v63, 4  ;;  %v8122_v63 = vld [vmem:[#allocation19 + $0x38] sm:$0xff]  ;;  %3298 = vmatpush.msra.mxu2 %v8115_v46 }
 0x640   :  { %v3122_v5 = vadd.f32 %v3114_v61, %v2959_v60  ;;  %v8117_v60 = vld [vmem:[#allocation19 + $0x30] sm:$0xff]  ;;  %3338 = vmatpush.msra.mxu0 %v8122_v63 }
 0x641   :  { %v3125_v2 = vadd.f32 %v3117_v1, %v2962_v6  ;;  %v8128_v6 = vld [vmem:[#allocation19 + $0x10] sm:$0xff]  ;;  %3318 = vmatpush.msra.mxu3 %v8117_v60 }
 0x642   :  { %v6262_v9 = vmul.f32 -1.442695, %v3122_v5  ;;  %v8126_v5 = vld [vmem:[#allocation19 + $0x8] sm:$0xff] }
 0x643   :  { %v6264_v10 = vmul.f32 -1.442695, %v3125_v2  ;;  %v3067_v52 = vpop.f32.mrf.mxu2  ;;  %3299 = vmatpush.msra.mxu2 %v8126_v5  ;;  %3319 = vmatpush.msra.mxu3 %v8128_v6 }
 0x644   :  { %6366 = vpow2.f32 %v6262_v9  ;;  %v3115_v51 = vrot.slane %v3067_v52, 4  ;;  %v3087_v61 = vpop.f32.mrf.mxu3  ;;  %v8133_v9 = vld [vmem:[#allocation19 + $0x18] sm:$0xff] }
 0x645   :  { %6368 = vpow2.f32 %v6264_v10  ;;  %v3116_v10 = vrot.slane %v3087_v61, 4  ;;  %3339 = vmatpush.msra.mxu0 %v8133_v9  ;;  %3518 = vmatpush.msrb.mxu2 %v7985_v29 }
 0x646   :  { %v3123_v17 = vadd.f32 %v3115_v51, %v2960_v15  ;;  %v2961_v51 = vld [vmem:[#allocation7 + $0x18] sm:$0x30]  ;;  %3538 = vmatpush.msrb.mxu3 %v7987_v21 }
 0x647   :  { %3558 = vmatpush.msrb.mxu0 %v7989_v13  ;;  %3519 = vmatpush.msrb.mxu2 %v7994_v33 }
 0x648   :  { %v6263_v26 = vmul.f32 -1.442695, %v3123_v17  ;;  %3539 = vmatpush.msrb.mxu3 %v7996_v37 }
 0x649   :  { %3559 = vmatpush.msrb.mxu0 %v7998_v41  ;;  %3520 = vmatpush.msrb.mxu2 %v8003_v22 }
 0x64a   :  { %v6367_v31 = vpop.eup %6366  ;;  %6370 = vpow2.f32 %v6263_v26  ;;  %3540 = vmatpush.msrb.mxu3 %v8005_v0 }
 0x64b   :  { %v6369_v35 = vpop.eup %6368  ;;  %v8080_v36 = vadd.f32 1.0, %v6367_v31  ;;  %v3124_v31 = vadd.f32 %v3116_v10, %v2961_v51  ;;  %3560 = vmatpush.msrb.mxu0 %v8007_v45  ;;  %3521 = vmatpush.msrb.mxu2 %v8012_v49 }
 0x64c   :  { %v8097_v19 = vadd.f32 1.0, %v6369_v35  ;;  %3541 = vmatpush.msrb.mxu3 %v8014_v57 }
 0x64d   :  { %6372 = vrcp.f32 %v8080_v36  ;;  %vm3135_vm5 = vweird.f32 %v8080_v36  ;;  %v3139_v10 = vand.u32 2147483647, %v8080_v36  ;;  %3561 = vmatpush.msrb.mxu0 %v8016_v58  ;;  %3522 = vmatpush.msrb.mxu2 %v8021_v59 }
 0x64e   :  { %6374 = vrcp.f32 %v8097_v19  ;;  %3542 = vmatpush.msrb.mxu3 %v8023_v3  ;;  %vm3174_vm13 = vweird.f32 %v8097_v19 }
 0x64f   :  { %vm3140_vm9 = vcmp.eq.f32.partialorder %v3139_v10, 8.507059e+37  ;;  %3562 = vmatpush.msrb.mxu0 %v8025_v50  ;;  %3523 = vmatpush.msrb.mxu2 %v8030_v8 }
 0x650   :  { %v6371_v30 = vpop.eup %6370  ;;  %3543 = vmatpush.msrb.mxu3 %v8032_v4 }
 0x651   :  { %v8112_v54 = vadd.f32 1.0, %v6371_v30  ;;  %3563 = vmatpush.msrb.mxu0 %v8034_v62  ;;  %3524 = vmatpush.msrb.mxu2 %v8039_v55 }
 0x652   :  { %3544 = vmatpush.msrb.mxu3 %v8041_v11 }
 0x653   :  { %v6373_v1 = vpop.eup %6372  ;;  %6376 = vrcp.f32 %v8112_v54  ;;  %v3160_v51 = vand.u32 2147483648, %v8112_v54  ;;  %vm3154_vm8 = vweird.f32 %v8112_v54  ;;  %3564 = vmatpush.msrb.mxu0 %v8043_v12  ;;  %3525 = vmatpush.msrb.mxu2 %v8048_v7 }
 0x654   :  { %v3131_v2 = vmul.f32 %v6373_v1, %v8080_v36  ;;  %v8140_v15 = vpop.eup %6374  ;;  %vm3136_vm4 = vweird.f32 %v6373_v1  ;;  %6378 = vtanh.f32 %v3124_v31  ;;  %3545 = vmatpush.msrb.mxu3 %v8050_v16 }
 0x655   :  { %v3170_v61 = vmul.f32 %v8140_v15, %v8097_v19  ;;  %vm8157_vm6 = vmor %vm3135_vm5, %vm3136_vm4  ;;  %3565 = vmatpush.msrb.mxu0 %v8052_v14  ;;  %vm3175_vm12 = vweird.f32 %v8140_v15  ;;  %3526 = vmatpush.msrb.mxu2 %v8057_v18 }
 0x656   :  { %v3132_v52 = vsub.f32 1.0, %v3131_v2  ;;  %v3141_v2 = vand.u32 2147483648, %v8080_v36  ;;  %v3158_v36 = vand.u32 2147483647, %v8112_v54  ;;  %3546 = vmatpush.msrb.mxu3 %v8059_v20  ;;  %vm3176_vm14 = vmor %vm3174_vm13, %vm3175_vm12 }
 0x657   :  { %v3171_v45 = vsub.f32 1.0, %v3170_v61  ;;  %3566 = vmatpush.msrb.mxu0 %v8061_v23  ;;  %3527 = vmatpush.msrb.mxu2 %v8065_v40 }
 0x658   :  { %v3133_v17 = vmul.f32 %v6373_v1, %v3132_v52  ;;  %v3142_v0 = vor.u32 1.1754944e-38, %v3141_v2  ;;  %vm3159_vm11 = vcmp.eq.f32.partialorder %v3158_v36, 8.507059e+37  ;;  %3547 = vmatpush.msrb.mxu3 %v8067_v24 }
 0x659   :  { %v6377_v26 = vpop.eup %6376  ;;  %3567 = vmatpush.msrb.mxu0 %v8069_v42  ;;  %3528 = vmatpush.msrb.mxu2 %v8072_v27 }
 0x65a   :  { %v3150_v35 = vmul.f32 %v6377_v26, %v8112_v54  ;;  %v3134_v30 = vadd.f32 %v6373_v1, %v3133_v17  ;;  %vm3155_vm7 = vweird.f32 %v6377_v26  ;;  %v6379_v54 = vpop.eup %6378  ;;  %3548 = vmatpush.msrb.mxu3 %v8074_v28 }
 0x65b   :  { %vm3156_vm10 = vmor %vm3154_vm8, %vm3155_vm7  ;;  %3568 = vmatpush.msrb.mxu0 %v8078_v32  ;;  %3529 = vmatpush.msrb.mxu2 %v8083_v56 }
 0x65c   :  { %v3151_v52 = vsub.f32 1.0, %v3150_v35  ;;  %v3138_v35 = vsel %vm8157_vm6, %v6373_v1, %v3134_v30  ;;  %v3161_v1 = vor.u32 1.1754944e-38, %v3160_v51  ;;  %3549 = vmatpush.msrb.mxu3 %v8085_v38 }
 0x65d   :  { %v3143_v30 = vsel %vm3140_vm9, %v3142_v0, %v3138_v35  ;;  %3569 = vmatpush.msrb.mxu0 %v8089_v39  ;;  %3530 = vmatpush.msrb.mxu2 %v8093_v25 }
 0x65e   :  { %v3152_v41 = vmul.f32 %v6377_v26, %v3151_v52  ;;  %v3185_v52 = vrot.slane %v7955_v34, 6  ;;  %v3188_v10 = vmul.f32 %v6379_v54, %v3143_v30  ;;  %3550 = vmatpush.msrb.mxu3 %v8095_v43  ;;  %v9828_v30 = vld [vmem:[#allocation36_spill] sm:$0xff] }
 0x65f   :  { %3570 = vmatpush.msrb.mxu0 %v8101_v44  ;;  %3531 = vmatpush.msrb.mxu2 %v8104_v47 }
 0x660   :  { %v3153_v31 = vadd.f32 %v6377_v26, %v3152_v41  ;;  %v3172_v41 = vmul.f32 %v8140_v15, %v3171_v45  ;;  %v3180_v45 = vand.u32 2147483648, %v8097_v19  ;;  %3551 = vmatpush.msrb.mxu3 %v8106_v48 }
 0x661   :  { %3571 = vmatpush.msrb.mxu0 %v8110_v53  ;;  %3532 = vmatpush.msrb.mxu2 %v8115_v46 }
 0x662   :  { %v3157_v17 = vsel %vm3156_vm10, %v6377_v26, %v3153_v31  ;;  %v3173_v0 = vadd.f32 %v8140_v15, %v3172_v41  ;;  %v3178_v26 = vand.u32 2147483647, %v8097_v19  ;;  %v3181_v35 = vor.u32 1.1754944e-38, %v3180_v45  ;;  %3552 = vmatpush.msrb.mxu3 %v8117_v60 }
 0x663   :  { %v3162_v61 = vsel %vm3159_vm11, %v3161_v1, %v3157_v17  ;;  %3572 = vmatpush.msrb.mxu0 %v8122_v63  ;;  %3533 = vmatpush.msrb.mxu2 %v8126_v5  ;;  %v9827_v1 = vld [vmem:[#allocation35_spill] sm:$0xff] }
 0x664   :  { %v3187_v2 = vmul.f32 %v3185_v52, %v3162_v61  ;;  %v3177_v51 = vsel %vm3176_vm14, %v8140_v15, %v3173_v0  ;;  %vm3179_vm15 = vcmp.eq.f32.partialorder %v3178_v26, 8.507059e+37  ;;  %3553 = vmatpush.msrb.mxu3 %v8128_v6  ;;  %v9829_v52 = vld [vmem:[#allocation37_spill] sm:$0xff] }
 0x665   :  { %v3182_v36 = vsel %vm3179_vm15, %v3181_v35, %v3177_v51  ;;  %3573 = vmatpush.msrb.mxu0 %v8133_v9 }
 0x666   :  { %v8180_v34 = vadd.f32 %v3188_v10, %v3187_v2 }
 0x668   :  { %6380 = vtanh.f32 %v8180_v34  ;;  %v3419_v54 = vrot.slane %v8180_v34, 6 }
 0x66e   :  { %v6381_v19 = vpop.eup %6380 }
 0x66f   :  { %v3191_v31 = vmul.f32 %v6381_v19, %v3182_v36 }
 0x671   :  { %3192 = vst [vmem:[#allocation8] sm:$0x30] %v3191_v31  ;;  %v3262_v15 = vrot.slane %v3191_v31, 4 }
 0x673   :  { %3280 = vmatmul.f32.vlgmr.msrb.gmra.mxu1 %v3262_v15  ;;  %3300 = vmatmul.f32.vlgmr.msra.gmra.mxu2 %v3262_v15 }
 0x674   :  { %3320 = vmatmul.f32.vlgmr.msra.gmra.mxu3 %v3262_v15  ;;  %3340 = vmatmul.f32.vlgmr.msra.gmra.mxu0 %v3262_v15 }
 0x675   :  { %3737 = vmatpush.msra.mxu2 %v7985_v29  ;;  %3757 = vmatpush.msra.mxu3 %v7987_v21 }
 0x676   :  { %3777 = vmatpush.msra.mxu0 %v7989_v13 }
 0x677   :  { %3738 = vmatpush.msra.mxu2 %v7994_v33  ;;  %3758 = vmatpush.msra.mxu3 %v7996_v37  ;;  %v3193_v33 = vld [vmem:[#allocation7 + $0x30] sm:$0xc0] }
 0x678   :  { %3778 = vmatpush.msra.mxu0 %v9827_v1 }
 0x679   :  { %3739 = vmatpush.msra.mxu2 %v8003_v22  ;;  %3759 = vmatpush.msra.mxu3 %v9828_v30 }
 0x67a   :  { %3779 = vmatpush.msra.mxu0 %v9829_v52  ;;  %v8267_v52 = vld [vmem:[#allocation19 + $0x1e0] sm:$0xff] }
 0x67b   :  { %3740 = vmatpush.msra.mxu2 %v8012_v49  ;;  %3760 = vmatpush.msra.mxu3 %v8014_v57  ;;  %v3196_v49 = vld [vmem:[#allocation7 + $0x10] sm:$0xc0] }
 0x67c   :  { %3780 = vmatpush.msra.mxu0 %v8016_v58  ;;  %3717 = vmatpush.msrb.mxu1 %v8267_v52 }
 0x67d   :  { %3741 = vmatpush.msra.mxu2 %v8021_v59  ;;  %3761 = vmatpush.msra.mxu3 %v8023_v3 }
 0x67e   :  { %3781 = vmatpush.msra.mxu0 %v8025_v50 }
 0x67f   :  { %3742 = vmatpush.msra.mxu2 %v8030_v8  ;;  %3762 = vmatpush.msra.mxu3 %v8032_v4  ;;  %v3194_v8 = vld [vmem:[#allocation7] sm:$0xc0] }
 0x680   :  { %3782 = vmatpush.msra.mxu0 %v8034_v62 }
 0x681   :  { %3743 = vmatpush.msra.mxu2 %v8039_v55  ;;  %3763 = vmatpush.msra.mxu3 %v8041_v11 }
 0x682   :  { %3783 = vmatpush.msra.mxu0 %v8043_v12 }
 0x683   :  { %3744 = vmatpush.msra.mxu2 %v8048_v7  ;;  %3764 = vmatpush.msra.mxu3 %v8050_v16 }
 0x684   :  { %3784 = vmatpush.msra.mxu0 %v8052_v14 }
 0x685   :  { %3745 = vmatpush.msra.mxu2 %v8057_v18  ;;  %3765 = vmatpush.msra.mxu3 %v8059_v20 }
 0x686   :  { %3785 = vmatpush.msra.mxu0 %v8061_v23 }
 0x687   :  { %3746 = vmatpush.msra.mxu2 %v8065_v40  ;;  %3766 = vmatpush.msra.mxu3 %v8067_v24 }
 0x688   :  { %3786 = vmatpush.msra.mxu0 %v8069_v42 }
 0x689   :  { %3747 = vmatpush.msra.mxu2 %v8072_v27  ;;  %3767 = vmatpush.msra.mxu3 %v8074_v28  ;;  %v3195_v27 = vld [vmem:[#allocation7 + $0x18] sm:$0xc0] }
 0x68a   :  { %3787 = vmatpush.msra.mxu0 %v8078_v32 }
 0x68b   :  { %3748 = vmatpush.msra.mxu2 %v8083_v56  ;;  %3768 = vmatpush.msra.mxu3 %v8085_v38 }
 0x68c   :  { %3788 = vmatpush.msra.mxu0 %v8089_v39 }
 0x68d   :  { %3749 = vmatpush.msra.mxu2 %v8093_v25  ;;  %3769 = vmatpush.msra.mxu3 %v8095_v43 }
 0x68e   :  { %3789 = vmatpush.msra.mxu0 %v8101_v44 }
 0x68f   :  { %3750 = vmatpush.msra.mxu2 %v8104_v47  ;;  %3770 = vmatpush.msra.mxu3 %v8106_v48 }
 0x690   :  { %3790 = vmatpush.msra.mxu0 %v8110_v53 }
 0x691   :  { %3751 = vmatpush.msra.mxu2 %v8115_v46  ;;  %3771 = vmatpush.msra.mxu3 %v8117_v60 }
 0x692   :  { %3791 = vmatpush.msra.mxu0 %v8122_v63 }
 0x693   :  { %3752 = vmatpush.msra.mxu2 %v8126_v5  ;;  %3772 = vmatpush.msra.mxu3 %v8128_v6 }
 0x694   :  { %3792 = vmatpush.msra.mxu0 %v8133_v9 }
 0x6f0   :  { %v3281_v29 = vpop.f32.mrf.mxu1 }
 0x6f1   :  { %v3348_v21 = vrot.slane %v3281_v29, 2  ;;  %v3341_v13 = vpop.f32.mrf.mxu0  ;;  %v8270_v29 = vld [vmem:[#allocation19 + $0x1c0] sm:$0xff] }
 0x6f2   :  { %v3351_v37 = vrot.slane %v3341_v13, 2  ;;  %3718 = vmatpush.msrb.mxu1 %v8270_v29  ;;  %v8276_v13 = vld [vmem:[#allocation19 + $0x180] sm:$0xff] }
 0x6f3   :  { %v3356_v22 = vadd.f32 %v3348_v21, %v3193_v33  ;;  %v8273_v21 = vld [vmem:[#allocation19 + $0x1a0] sm:$0xff] }
 0x6f4   :  { %v3359_v57 = vadd.f32 %v3351_v37, %v3196_v49  ;;  %3719 = vmatpush.msrb.mxu1 %v8273_v21  ;;  %v8279_v33 = vld [vmem:[#allocation19 + $0x160] sm:$0xff]  ;;  %v3427_v37 = vld [vmem:[#allocation7 + $0x8] sm:$0x3] }
 0x6f5   :  { %v6265_v58 = vmul.f32 -1.442695, %v3356_v22  ;;  %v8282_v49 = vld [vmem:[#allocation19 + $0x140] sm:$0xff] }
 0x6f6   :  { %v6267_v59 = vmul.f32 -1.442695, %v3359_v57  ;;  %v3301_v3 = vpop.f32.mrf.mxu2  ;;  %3720 = vmatpush.msrb.mxu1 %v8276_v13 }
 0x6f7   :  { %6382 = vpow2.f32 %v6265_v58  ;;  %v3349_v50 = vrot.slane %v3301_v3, 2  ;;  %v3321_v18 = vpop.f32.mrf.mxu3  ;;  %v3430_v58 = vld [vmem:[#allocation7 + $0x38] sm:$0x3] }
 0x6f8   :  { %6384 = vpow2.f32 %v6267_v59  ;;  %v3350_v40 = vrot.slane %v3321_v18, 2  ;;  %3721 = vmatpush.msrb.mxu1 %v8279_v33  ;;  %v8297_v18 = vld [vmem:[#allocation19 + $0xa0] sm:$0xff] }
 0x6f9   :  { %v3357_v4 = vadd.f32 %v3349_v50, %v3194_v8  ;;  %v8285_v50 = vld [vmem:[#allocation19 + $0x120] sm:$0xff] }
 0x6fa   :  { %v3358_v56 = vadd.f32 %v3350_v40, %v3195_v27  ;;  %3722 = vmatpush.msrb.mxu1 %v8282_v49  ;;  %v8305_v27 = vld [vmem:[#allocation19 + $0x40] sm:$0xff] }
 0x6fb   :  { %v6266_v62 = vmul.f32 -1.442695, %v3357_v4 }
 0x6fc   :  { %3723 = vmatpush.msrb.mxu1 %v8285_v50 }
 0x6fd   :  { %v6383_v55 = vpop.eup %6382  ;;  %6386 = vpow2.f32 %v6266_v62  ;;  %v8288_v62 = vld [vmem:[#allocation19 + $0x100] sm:$0xff] }
 0x6fe   :  { %v6385_v11 = vpop.eup %6384  ;;  %v3363_v12 = vadd.f32 1.0, %v6383_v55  ;;  %3724 = vmatpush.msrb.mxu1 %v8288_v62  ;;  %v3428_v55 = vld [vmem:[#allocation7 + $0x20] sm:$0x3] }
 0x6ff   :  { %v3402_v7 = vadd.f32 1.0, %v6385_v11 }
 0x700   :  { %6388 = vrcp.f32 %v3363_v12  ;;  %v3375_v43 = vand.u32 2147483648, %v3363_v12  ;;  %vm3369_vm1 = vweird.f32 %v3363_v12  ;;  %v3373_v47 = vand.u32 2147483647, %v3363_v12 }
 0x701   :  { %6390 = vrcp.f32 %v3402_v7  ;;  %v3414_v35 = vand.u32 2147483648, %v3402_v7  ;;  %vm3408_vm9 = vweird.f32 %v3402_v7  ;;  %v3412_v19 = vand.u32 2147483647, %v3402_v7 }
 0x702   :  { %v3376_v5 = vor.u32 1.1754944e-38, %v3375_v43  ;;  %vm3374_vm5 = vcmp.eq.f32.partialorder %v3373_v47, 8.507059e+37 }
 0x703   :  { %v6387_v16 = vpop.eup %6386  ;;  %v3415_v31 = vor.u32 1.1754944e-38, %v3414_v35  ;;  %vm3413_vm11 = vcmp.eq.f32.partialorder %v3412_v19, 8.507059e+37 }
 0x704   :  { %v3382_v14 = vadd.f32 1.0, %v6387_v16  ;;  %v8294_v16 = vld [vmem:[#allocation19 + $0xc0] sm:$0xff] }
 0x706   :  { %v6389_v20 = vpop.eup %6388  ;;  %6392 = vrcp.f32 %v3382_v14  ;;  %v3394_v48 = vand.u32 2147483648, %v3382_v14  ;;  %v3392_v60 = vand.u32 2147483647, %v3382_v14  ;;  %vm3388_vm4 = vweird.f32 %v3382_v14 }
 0x707   :  { %v3365_v23 = vmul.f32 %v6389_v20, %v3363_v12  ;;  %v6391_v42 = vpop.eup %6390  ;;  %vm3370_vm0 = vweird.f32 %v6389_v20  ;;  %6394 = vtanh.f32 %v3358_v56  ;;  %v8291_v12 = vld [vmem:[#allocation19 + $0xe0] sm:$0xff] }
 0x708   :  { %v3404_v25 = vmul.f32 %v6391_v42, %v3402_v7  ;;  %vm3371_vm2 = vmor %vm3369_vm1, %vm3370_vm0  ;;  %v3395_v9 = vor.u32 1.1754944e-38, %v3394_v48  ;;  %vm3393_vm7 = vcmp.eq.f32.partialorder %v3392_v60, 8.507059e+37  ;;  %vm3409_vm8 = vweird.f32 %v6391_v42  ;;  %3725 = vmatpush.msrb.mxu1 %v8291_v12 }
 0x709   :  { %v3366_v24 = vsub.f32 1.0, %v3365_v23  ;;  %vm3410_vm10 = vmor %vm3408_vm9, %vm3409_vm8 }
 0x70a   :  { %v3405_v63 = vsub.f32 1.0, %v3404_v25  ;;  %3726 = vmatpush.msrb.mxu1 %v8294_v16 }
 0x70b   :  { %v3367_v28 = vmul.f32 %v6389_v20, %v3366_v24 }
 0x70c   :  { %v6393_v32 = vpop.eup %6392  ;;  %v3406_v2 = vmul.f32 %v6391_v42, %v3405_v63  ;;  %3727 = vmatpush.msrb.mxu1 %v8297_v18 }
 0x70d   :  { %v3384_v38 = vmul.f32 %v6393_v32, %v3382_v14  ;;  %v3368_v39 = vadd.f32 %v6389_v20, %v3367_v28  ;;  %vm3389_vm3 = vweird.f32 %v6393_v32  ;;  %v6395_v61 = vpop.eup %6394 }
 0x70e   :  { %vm3390_vm6 = vmor %vm3388_vm4, %vm3389_vm3  ;;  %v3407_v51 = vadd.f32 %v6391_v42, %v3406_v2  ;;  %v8438_v2 = vld [vmem:[#allocation19 + $0xf0] sm:$0xff] }
 0x70f   :  { %v3385_v44 = vsub.f32 1.0, %v3384_v38  ;;  %v3372_v46 = vsel %vm3371_vm2, %v6389_v20, %v3368_v39  ;;  %v8299_v20 = vld [vmem:[#allocation19 + $0x80] sm:$0xff] }
 0x710   :  { %v3377_v17 = vsel %vm3374_vm5, %v3376_v5, %v3372_v46  ;;  %v3411_v36 = vsel %vm3410_vm10, %v6391_v42, %v3407_v51  ;;  %v8302_v42 = vld [vmem:[#allocation19 + $0x60] sm:$0xff]  ;;  %3728 = vmatpush.msrb.mxu1 %v8299_v20 }
 0x711   :  { %v3386_v53 = vmul.f32 %v6393_v32, %v3385_v44  ;;  %v3422_v45 = vmul.f32 %v6395_v61, %v3377_v17  ;;  %v3416_v15 = vsel %vm3413_vm11, %v3415_v31, %v3411_v36  ;;  %v8313_v39 = vld [vmem:[#allocation19] sm:$0xff] }
 0x712   :  { %3729 = vmatpush.msrb.mxu1 %v8302_v42 }
 0x713   :  { %v3387_v6 = vadd.f32 %v6393_v32, %v3386_v53  ;;  %v3429_v53 = vld [vmem:[#allocation7 + $0x28] sm:$0x3] }
 0x714   :  { %3730 = vmatpush.msrb.mxu1 %v8305_v27 }
 0x715   :  { %v3391_v41 = vsel %vm3390_vm6, %v6393_v32, %v3387_v6  ;;  %v8310_v32 = vld [vmem:[#allocation19 + $0x20] sm:$0xff] }
 0x716   :  { %v3396_v10 = vsel %vm3393_vm7, %v3395_v9, %v3391_v41  ;;  %3731 = vmatpush.msrb.mxu1 %v8310_v32 }
 0x717   :  { %v3421_v0 = vmul.f32 %v3419_v54, %v3396_v10 }
 0x718   :  { %3732 = vmatpush.msrb.mxu1 %v8313_v39 }
 0x719   :  { %v8264_v26 = vadd.f32 %v3422_v45, %v3421_v0 }
 0x71b   :  { %6396 = vtanh.f32 %v8264_v26 }
 0x721   :  { %v6397_v34 = vpop.eup %6396 }
 0x722   :  { %v3425_v1 = vmul.f32 %v6397_v34, %v3416_v15  ;;  %v3641_v15 = vrot.slane %v8264_v26, 6 }
 0x724   :  { %3426 = vst [vmem:[#allocation8] sm:$0xc0] %v3425_v1  ;;  %v3496_v30 = vrot.slane %v3425_v1, 6 }
 0x726   :  { %3514 = vmatmul.f32.vlgmr.msra.gmra.mxu1 %v3496_v30  ;;  %3534 = vmatmul.f32.vlgmr.msrb.gmra.mxu2 %v3496_v30 }
 0x727   :  { %3554 = vmatmul.f32.vlgmr.msrb.gmra.mxu3 %v3496_v30  ;;  %3574 = vmatmul.f32.vlgmr.msrb.gmra.mxu0 %v3496_v30 }
 0x728   :  { %3951 = vmatpush.msra.mxu1 %v8267_v52 }
 0x72a   :  { %3952 = vmatpush.msra.mxu1 %v8270_v29 }
 0x72c   :  { %3953 = vmatpush.msra.mxu1 %v8273_v21 }
 0x72e   :  { %3954 = vmatpush.msra.mxu1 %v8276_v13 }
 0x730   :  { %3955 = vmatpush.msra.mxu1 %v8279_v33 }
 0x732   :  { %3956 = vmatpush.msra.mxu1 %v8282_v49 }
 0x734   :  { %3957 = vmatpush.msra.mxu1 %v8285_v50 }
 0x736   :  { %3958 = vmatpush.msra.mxu1 %v8288_v62 }
 0x738   :  { %3959 = vmatpush.msra.mxu1 %v8291_v12 }
 0x73a   :  { %3960 = vmatpush.msra.mxu1 %v8294_v16 }
 0x73c   :  { %3961 = vmatpush.msra.mxu1 %v8297_v18 }
 0x73e   :  { %3962 = vmatpush.msra.mxu1 %v8299_v20 }
 0x740   :  { %3963 = vmatpush.msra.mxu1 %v8302_v42 }
 0x742   :  { %3964 = vmatpush.msra.mxu1 %v8305_v27 }
 0x744   :  { %3965 = vmatpush.msra.mxu1 %v8310_v32 }
 0x746   :  { %3966 = vmatpush.msra.mxu1 %v8313_v39 }
 0x7a3   :  { %v3515_v22 = vpop.f32.mrf.mxu1 }
 0x7a4   :  { %v3578_v57 = vadd.f32 %v3515_v22, %v3427_v37  ;;  %v3575_v59 = vpop.f32.mrf.mxu0 }
 0x7a5   :  { %v3581_v3 = vadd.f32 %v3575_v59, %v3430_v58 }
 0x7a6   :  { %v6268_v8 = vmul.f32 -1.442695, %v3578_v57 }
 0x7a7   :  { %v6270_v4 = vmul.f32 -1.442695, %v3581_v3 }
 0x7a8   :  { %6398 = vpow2.f32 %v6268_v8 }
 0x7a9   :  { %6400 = vpow2.f32 %v6270_v4  ;;  %v3535_v11 = vpop.f32.mrf.mxu2 }
 0x7aa   :  { %v3579_v7 = vadd.f32 %v3535_v11, %v3428_v55  ;;  %v3555_v47 = vpop.f32.mrf.mxu3 }
 0x7ab   :  { %v3580_v63 = vadd.f32 %v3555_v47, %v3429_v53 }
 0x7ac   :  { %v6269_v14 = vmul.f32 -1.442695, %v3579_v7 }
 0x7ae   :  { %v6399_v23 = vpop.eup %6398  ;;  %6402 = vpow2.f32 %v6269_v14  ;;  %v8391_v14 = vld [vmem:[#allocation19 + $0x188] sm:$0xff] }
 0x7af   :  { %v6401_v40 = vpop.eup %6400  ;;  %v3585_v24 = vadd.f32 1.0, %v6399_v23  ;;  %v3649_v23 = vld [vmem:[#allocation7 + $0x8] sm:$0xc] }
 0x7b0   :  { %v8307_v28 = vadd.f32 1.0, %v6401_v40 }
 0x7b1   :  { %6404 = vrcp.f32 %v3585_v24  ;;  %v3597_v17 = vand.u32 2147483648, %v3585_v24  ;;  %vm3591_vm13 = vweird.f32 %v3585_v24  ;;  %v3595_v41 = vand.u32 2147483647, %v3585_v24 }
 0x7b2   :  { %6406 = vrcp.f32 %v8307_v28  ;;  %v3636_v3 = vand.u32 2147483648, %v8307_v28  ;;  %vm3630_vm5 = vweird.f32 %v8307_v28  ;;  %v3634_v26 = vand.u32 2147483647, %v8307_v28 }
 0x7b3   :  { %v3598_v35 = vor.u32 1.1754944e-38, %v3597_v17  ;;  %vm3596_vm1 = vcmp.eq.f32.partialorder %v3595_v41, 8.507059e+37  ;;  %v8429_v17 = vld [vmem:[#allocation19 + $0x110] sm:$0xff] }
 0x7b4   :  { %v6403_v56 = vpop.eup %6402  ;;  %v3637_v4 = vor.u32 1.1754944e-38, %v3636_v3  ;;  %vm3635_vm7 = vcmp.eq.f32.partialorder %v3634_v26, 8.507059e+37  ;;  %v8480_v26 = vld [vmem:[#allocation19 + $0x78] sm:$0xff] }
 0x7b5   :  { %v3604_v38 = vadd.f32 1.0, %v6403_v56 }
 0x7b7   :  { %v6405_v25 = vpop.eup %6404  ;;  %6408 = vrcp.f32 %v3604_v38  ;;  %v3616_v61 = vand.u32 2147483648, %v3604_v38  ;;  %v3614_v45 = vand.u32 2147483647, %v3604_v38  ;;  %vm3610_vm0 = vweird.f32 %v3604_v38 }
 0x7b8   :  { %v3587_v43 = vmul.f32 %v6405_v25, %v3585_v24  ;;  %v6407_v48 = vpop.eup %6406  ;;  %vm3592_vm12 = vweird.f32 %v6405_v25  ;;  %6410 = vtanh.f32 %v3580_v63  ;;  %v8422_v63 = vld [vmem:[#allocation19 + $0x138] sm:$0xff] }
 0x7b9   :  { %v3626_v9 = vmul.f32 %v6407_v48, %v8307_v28  ;;  %vm8323_vm14 = vmor %vm3591_vm13, %vm3592_vm12  ;;  %v3617_v36 = vor.u32 1.1754944e-38, %v3616_v61  ;;  %vm3615_vm3 = vcmp.eq.f32.partialorder %v3614_v45, 8.507059e+37  ;;  %vm3631_vm4 = vweird.f32 %v6407_v48  ;;  %v8402_v28 = vld [vmem:[#allocation19 + $0x170] sm:$0xff]  ;;  %v8436_v61 = vld [vmem:[#allocation19 + $0xe8] sm:$0xff] }
 0x7ba   :  { %v3588_v44 = vsub.f32 1.0, %v3587_v43  ;;  %vm3632_vm6 = vmor %vm3630_vm5, %vm3631_vm4  ;;  %v8411_v43 = vld [vmem:[#allocation19 + $0x150] sm:$0xff]  ;;  %v8444_v45 = vld [vmem:[#allocation19 + $0xc8] sm:$0xff] }
 0x7bb   :  { %v3627_v51 = vsub.f32 1.0, %v3626_v9  ;;  %v8427_v9 = vld [vmem:[#allocation19 + $0x108] sm:$0xff] }
 0x7bc   :  { %v3589_v46 = vmul.f32 %v6405_v25, %v3588_v44  ;;  %v8413_v44 = vld [vmem:[#allocation19 + $0x158] sm:$0xff] }
 0x7bd   :  { %v6409_v60 = vpop.eup %6408  ;;  %v3628_v30 = vmul.f32 %v6407_v48, %v3627_v51  ;;  %v8446_v51 = vld [vmem:[#allocation19 + $0xd0] sm:$0xff] }
 0x7be   :  { %v3606_v5 = vmul.f32 %v6409_v60, %v3604_v38  ;;  %v3590_v6 = vadd.f32 %v6405_v25, %v3589_v46  ;;  %vm3611_vm15 = vweird.f32 %v6409_v60  ;;  %v6411_v1 = vpop.eup %6410  ;;  %v3652_v38 = vld [vmem:[#allocation7 + $0x38] sm:$0xc]  ;;  %v8418_v46 = vld [vmem:[#allocation19 + $0x128] sm:$0xff] }
 0x7bf   :  { %vm3612_vm2 = vmor %vm3610_vm0, %vm3611_vm15  ;;  %v3629_v59 = vadd.f32 %v6407_v48, %v3628_v30  ;;  %v8462_v30 = vld [vmem:[#allocation19 + $0x88] sm:$0xff] }
 0x7c0   :  { %v3607_v54 = vsub.f32 1.0, %v3606_v5  ;;  %v3594_v0 = vsel %vm8323_vm14, %v6405_v25, %v3590_v6  ;;  %v8409_v25 = vld [vmem:[#allocation19 + $0x148] sm:$0xff] }
 0x7c1   :  { %v3599_v31 = vsel %vm3596_vm1, %v3598_v35, %v3594_v0  ;;  %v3633_v8 = vsel %vm3632_vm6, %v6407_v48, %v3629_v59  ;;  %v3650_v5 = vld [vmem:[#allocation7 + $0x20] sm:$0xc]  ;;  %v8448_v35 = vld [vmem:[#allocation19 + $0xd8] sm:$0xff]  ;;  %v8474_v59 = vld [vmem:[#allocation19 + $0x70] sm:$0xff] }
 0x7c2   :  { %v3608_v10 = vmul.f32 %v6409_v60, %v3607_v54  ;;  %v3644_v57 = vmul.f32 %v6411_v1, %v3599_v31  ;;  %v3638_v11 = vsel %vm3635_vm7, %v3637_v4, %v3633_v8  ;;  %v8431_v54 = vld [vmem:[#allocation19 + $0x118] sm:$0xff]  ;;  %v8483_v8 = vld [vmem:[#allocation19 + $0x48] sm:$0xff]  ;;  %v8485_v4 = vld [vmem:[#allocation19 + $0x50] sm:$0xff] }
 0x7c4   :  { %v3609_v19 = vadd.f32 %v6409_v60, %v3608_v10  ;;  %v8440_v10 = vld [vmem:[#allocation19 + $0xf8] sm:$0xff] }
 0x7c6   :  { %v3613_v34 = vsel %vm3612_vm2, %v6409_v60, %v3609_v19  ;;  %v8420_v60 = vld [vmem:[#allocation19 + $0x130] sm:$0xff]  ;;  %v8451_v19 = vld [vmem:[#allocation19 + $0xa8] sm:$0xff] }
 0x7c7   :  { %v3618_v37 = vsel %vm3615_vm3, %v3617_v36, %v3613_v34  ;;  %v8453_v36 = vld [vmem:[#allocation19 + $0xb0] sm:$0xff]  ;;  %v8457_v34 = vld [vmem:[#allocation19 + $0xb8] sm:$0xff] }
 0x7c8   :  { %v3643_v22 = vmul.f32 %v3641_v15, %v3618_v37  ;;  %v8464_v37 = vld [vmem:[#allocation19 + $0x90] sm:$0xff] }
 0x7ca   :  { %v8335_v58 = vadd.f32 %v3644_v57, %v3643_v22  ;;  %v8468_v22 = vld [vmem:[#allocation19 + $0x98] sm:$0xff]  ;;  %v8472_v57 = vld [vmem:[#allocation19 + $0x68] sm:$0xff] }
 0x7cc   :  { %6412 = vtanh.f32 %v8335_v58 }
 0x7d2   :  { %v6413_v55 = vpop.eup %6412 }
 0x7d3   :  { %v3647_v7 = vmul.f32 %v6413_v55, %v3638_v11  ;;  %v8489_v11 = vld [vmem:[#allocation19 + $0x58] sm:$0xff] }
 0x7d5   :  { %3648 = vst [vmem:[#allocation8 + $0x8] sm:$0x3] %v3647_v7  ;;  %3733 = vmatmul.f32.vlgmr.msrb.gmra.mxu1 %v3647_v7  ;;  %3753 = vmatmul.f32.vlgmr.msra.gmra.mxu2 %v3647_v7 }
 0x7d6   :  { %3773 = vmatmul.f32.vlgmr.msra.gmra.mxu3 %v3647_v7  ;;  %3793 = vmatmul.f32.vlgmr.msra.gmra.mxu0 %v3647_v7 }
 0x7d7   :  { %4185 = vmatpush.msrb.mxu1 %v8267_v52  ;;  %v8364_v52 = vld [vmem:[#allocation19 + $0x1e8] sm:$0xff] }
 0x7d8   :  { %3971 = vmatpush.msrb.mxu2 %v8364_v52 }
 0x7d9   :  { %4186 = vmatpush.msrb.mxu1 %v8270_v29  ;;  %v8366_v29 = vld [vmem:[#allocation19 + $0x1f0] sm:$0xff] }
 0x7da   :  { %3991 = vmatpush.msrb.mxu3 %v8366_v29 }
 0x7db   :  { %4187 = vmatpush.msrb.mxu1 %v8273_v21  ;;  %v8368_v21 = vld [vmem:[#allocation19 + $0x1f8] sm:$0xff] }
 0x7dc   :  { %4011 = vmatpush.msrb.mxu0 %v8368_v21 }
 0x7dd   :  { %4188 = vmatpush.msrb.mxu1 %v8276_v13  ;;  %v8373_v13 = vld [vmem:[#allocation19 + $0x1c8] sm:$0xff] }
 0x7de   :  { %3972 = vmatpush.msrb.mxu2 %v8373_v13 }
 0x7df   :  { %4189 = vmatpush.msrb.mxu1 %v8279_v33  ;;  %v8375_v33 = vld [vmem:[#allocation19 + $0x1d0] sm:$0xff] }
 0x7e0   :  { %3992 = vmatpush.msrb.mxu3 %v8375_v33 }
 0x7e1   :  { %4190 = vmatpush.msrb.mxu1 %v8282_v49  ;;  %v8377_v49 = vld [vmem:[#allocation19 + $0x1d8] sm:$0xff] }
 0x7e2   :  { %4012 = vmatpush.msrb.mxu0 %v8377_v49 }
 0x7e3   :  { %4191 = vmatpush.msrb.mxu1 %v8285_v50  ;;  %v8382_v50 = vld [vmem:[#allocation19 + $0x1a8] sm:$0xff] }
 0x7e4   :  { %3973 = vmatpush.msrb.mxu2 %v8382_v50 }
 0x7e5   :  { %4192 = vmatpush.msrb.mxu1 %v8288_v62  ;;  %v8384_v62 = vld [vmem:[#allocation19 + $0x1b0] sm:$0xff] }
 0x7e6   :  { %3993 = vmatpush.msrb.mxu3 %v8384_v62  ;;  %3974 = vmatpush.msrb.mxu2 %v8391_v14 }
 0x7e7   :  { %4193 = vmatpush.msrb.mxu1 %v8291_v12  ;;  %v8386_v12 = vld [vmem:[#allocation19 + $0x1b8] sm:$0xff] }
 0x7e8   :  { %4013 = vmatpush.msrb.mxu0 %v8386_v12 }
 0x7e9   :  { %4194 = vmatpush.msrb.mxu1 %v8294_v16 }
 0x7eb   :  { %4195 = vmatpush.msrb.mxu1 %v8297_v18  ;;  %v8393_v18 = vld [vmem:[#allocation19 + $0x190] sm:$0xff] }
 0x7ec   :  { %3994 = vmatpush.msrb.mxu3 %v8393_v18 }
 0x7ed   :  { %4196 = vmatpush.msrb.mxu1 %v8299_v20  ;;  %v8395_v20 = vld [vmem:[#allocation19 + $0x198] sm:$0xff] }
 0x7ee   :  { %4014 = vmatpush.msrb.mxu0 %v8395_v20  ;;  %3995 = vmatpush.msrb.mxu3 %v8402_v28 }
 0x7ef   :  { %4197 = vmatpush.msrb.mxu1 %v8302_v42 }
 0x7f0   :  { %3996 = vmatpush.msrb.mxu3 %v8411_v43 }
 0x7f1   :  { %4198 = vmatpush.msrb.mxu1 %v8305_v27  ;;  %v8400_v27 = vld [vmem:[#allocation19 + $0x168] sm:$0xff] }
 0x7f2   :  { %3975 = vmatpush.msrb.mxu2 %v8400_v27  ;;  %3997 = vmatpush.msrb.mxu3 %v8420_v60 }
 0x7f3   :  { %4199 = vmatpush.msrb.mxu1 %v8310_v32  ;;  %v8404_v32 = vld [vmem:[#allocation19 + $0x178] sm:$0xff] }
 0x7f4   :  { %4015 = vmatpush.msrb.mxu0 %v8404_v32  ;;  %3976 = vmatpush.msrb.mxu2 %v8409_v25 }
 0x7f5   :  { %4200 = vmatpush.msrb.mxu1 %v8313_v39  ;;  %3998 = vmatpush.msrb.mxu3 %v8429_v17 }
 0x7f6   :  { %4016 = vmatpush.msrb.mxu0 %v8413_v44  ;;  %3977 = vmatpush.msrb.mxu2 %v8418_v46 }
 0x7f7   :  { %3999 = vmatpush.msrb.mxu3 %v8438_v2 }
 0x7f8   :  { %4017 = vmatpush.msrb.mxu0 %v8422_v63  ;;  %3978 = vmatpush.msrb.mxu2 %v8427_v9 }
 0x7f9   :  { %4000 = vmatpush.msrb.mxu3 %v8446_v51 }
 0x7fa   :  { %4018 = vmatpush.msrb.mxu0 %v8431_v54  ;;  %3979 = vmatpush.msrb.mxu2 %v8436_v61 }
 0x7fb   :  { %4001 = vmatpush.msrb.mxu3 %v8453_v36 }
 0x7fc   :  { %4019 = vmatpush.msrb.mxu0 %v8440_v10  ;;  %3980 = vmatpush.msrb.mxu2 %v8444_v45 }
 0x7fd   :  { %4002 = vmatpush.msrb.mxu3 %v8464_v37 }
 0x7fe   :  { %4020 = vmatpush.msrb.mxu0 %v8448_v35  ;;  %3981 = vmatpush.msrb.mxu2 %v8451_v19 }
 0x7ff   :  { %4003 = vmatpush.msrb.mxu3 %v8474_v59 }
 0x800   :  { %4021 = vmatpush.msrb.mxu0 %v8457_v34  ;;  %3982 = vmatpush.msrb.mxu2 %v8462_v30 }
 0x801   :  { %4004 = vmatpush.msrb.mxu3 %v8485_v4 }
 0x802   :  { %4022 = vmatpush.msrb.mxu0 %v8468_v22  ;;  %3983 = vmatpush.msrb.mxu2 %v8472_v57 }
 0x804   :  { %4023 = vmatpush.msrb.mxu0 %v8480_v26  ;;  %3984 = vmatpush.msrb.mxu2 %v8483_v8 }
 0x806   :  { %4024 = vmatpush.msrb.mxu0 %v8489_v11 }
 0x852   :  { %v3734_v16 = vpop.f32.mrf.mxu1 }
 0x853   :  { %v3801_v40 = vrot.slane %v3734_v16, 6  ;;  %v3794_v24 = vpop.f32.mrf.mxu0  ;;  %v8494_v16 = vld [vmem:[#allocation19 + $0x28] sm:$0xff] }
 0x854   :  { %v3804_v42 = vrot.slane %v3794_v24, 6  ;;  %v8501_v24 = vld [vmem:[#allocation19 + $0x38] sm:$0xff]  ;;  %3985 = vmatpush.msrb.mxu2 %v8494_v16 }
 0x855   :  { %v3809_v56 = vadd.f32 %v3801_v40, %v3649_v23  ;;  %v8496_v23 = vld [vmem:[#allocation19 + $0x30] sm:$0xff]  ;;  %4025 = vmatpush.msrb.mxu0 %v8501_v24 }
 0x856   :  { %v3812_v39 = vadd.f32 %v3804_v42, %v3652_v38  ;;  %v8507_v38 = vld [vmem:[#allocation19 + $0x10] sm:$0xff]  ;;  %4005 = vmatpush.msrb.mxu3 %v8496_v23 }
 0x857   :  { %v6271_v47 = vmul.f32 -1.442695, %v3809_v56  ;;  %v8505_v56 = vld [vmem:[#allocation19 + $0x8] sm:$0xff] }
 0x858   :  { %v6273_v48 = vmul.f32 -1.442695, %v3812_v39  ;;  %v3754_v53 = vpop.f32.mrf.mxu2  ;;  %3986 = vmatpush.msrb.mxu2 %v8505_v56  ;;  %4006 = vmatpush.msrb.mxu3 %v8507_v38 }
 0x859   :  { %6414 = vpow2.f32 %v6271_v47  ;;  %v3802_v6 = vrot.slane %v3754_v53, 6  ;;  %v3774_v40 = vpop.f32.mrf.mxu3  ;;  %v8512_v47 = vld [vmem:[#allocation19 + $0x18] sm:$0xff] }
 0x85a   :  { %6416 = vpow2.f32 %v6273_v48  ;;  %v3803_v48 = vrot.slane %v3774_v40, 6  ;;  %4026 = vmatpush.msrb.mxu0 %v8512_v47  ;;  %4205 = vmatpush.msra.mxu2 %v8364_v52 }
 0x85b   :  { %v3810_v41 = vadd.f32 %v3802_v6, %v3650_v5  ;;  %v3651_v6 = vld [vmem:[#allocation7 + $0x28] sm:$0xc]  ;;  %4225 = vmatpush.msra.mxu3 %v8366_v29 }
 0x85c   :  { %4245 = vmatpush.msra.mxu0 %v8368_v21  ;;  %4206 = vmatpush.msra.mxu2 %v8373_v13 }
 0x85d   :  { %v6272_v0 = vmul.f32 -1.442695, %v3810_v41  ;;  %4226 = vmatpush.msra.mxu3 %v8375_v33  ;;  %v4393_v33 = vld [vmem:[#allocation21 + $0x158] sm:$0xff] }
 0x85e   :  { %4246 = vmatpush.msra.mxu0 %v8377_v49  ;;  %4207 = vmatpush.msra.mxu2 %v8382_v50 }
 0x85f   :  { %v6415_v31 = vpop.eup %6414  ;;  %6418 = vpow2.f32 %v6272_v0  ;;  %4227 = vmatpush.msra.mxu3 %v8384_v62 }
 0x860   :  { %v6417_v15 = vpop.eup %6416  ;;  %v8459_v1 = vadd.f32 1.0, %v6415_v31  ;;  %v3811_v31 = vadd.f32 %v3803_v48, %v3651_v6  ;;  %4247 = vmatpush.msra.mxu0 %v8386_v12  ;;  %4208 = vmatpush.msra.mxu2 %v8391_v14  ;;  %v4400_v6 = vld [vmem:[#allocation21 + $0x190] sm:$0xff] }
 0x861   :  { %v8476_v3 = vadd.f32 1.0, %v6417_v15  ;;  %4228 = vmatpush.msra.mxu3 %v8393_v18  ;;  %v3872_v18 = vrot.slane %v8335_v58, 6 }
 0x862   :  { %6420 = vrcp.f32 %v8459_v1  ;;  %v3828_v40 = vand.u32 2147483648, %v8459_v1  ;;  %vm3822_vm9 = vweird.f32 %v8459_v1  ;;  %v3826_v21 = vand.u32 2147483647, %v8459_v1  ;;  %4248 = vmatpush.msra.mxu0 %v8395_v20  ;;  %4209 = vmatpush.msra.mxu2 %v8400_v27 }
 0x863   :  { %6422 = vrcp.f32 %v8476_v3  ;;  %4229 = vmatpush.msra.mxu3 %v8402_v28  ;;  %vm3861_vm1 = vweird.f32 %v8476_v3 }
 0x864   :  { %v3829_v12 = vor.u32 1.1754944e-38, %v3828_v40  ;;  %vm3827_vm13 = vcmp.eq.f32.partialorder %v3826_v21, 8.507059e+37  ;;  %4249 = vmatpush.msra.mxu0 %v8404_v32  ;;  %4210 = vmatpush.msra.mxu2 %v8409_v25  ;;  %v4397_v40 = vld [vmem:[#allocation21 + $0x178] sm:$0xff]  ;;  %v4391_v21 = vld [vmem:[#allocation21 + $0x148] sm:$0xff] }
 0x865   :  { %v6419_v55 = vpop.eup %6418  ;;  %4230 = vmatpush.msra.mxu3 %v8411_v43  ;;  %v3867_v43 = vand.u32 2147483648, %v8476_v3 }
 0x866   :  { %v8491_v7 = vadd.f32 1.0, %v6419_v55  ;;  %4250 = vmatpush.msra.mxu0 %v8413_v44  ;;  %4211 = vmatpush.msra.mxu2 %v8418_v46  ;;  %v3865_v44 = vand.u32 2147483647, %v8476_v3 }
 0x867   :  { %4231 = vmatpush.msra.mxu3 %v8420_v60  ;;  %v3868_v60 = vor.u32 1.1754944e-38, %v3867_v43  ;;  %v4374_v43 = vld [vmem:[#allocation21 + $0xc0] sm:$0xff] }
 0x868   :  { %v6421_v42 = vpop.eup %6420  ;;  %6424 = vrcp.f32 %v8491_v7  ;;  %v3847_v13 = vand.u32 2147483648, %v8491_v7  ;;  %vm3841_vm12 = vweird.f32 %v8491_v7  ;;  %4251 = vmatpush.msra.mxu0 %v8422_v63  ;;  %4212 = vmatpush.msra.mxu2 %v8427_v9  ;;  %vm3866_vm3 = vcmp.eq.f32.partialorder %v3865_v44, 8.507059e+37  ;;  %v4375_v44 = vld [vmem:[#allocation21 + $0xc8] sm:$0xff] }
 0x869   :  { %v3818_v39 = vmul.f32 %v6421_v42, %v8459_v1  ;;  %v8519_v5 = vpop.eup %6422  ;;  %vm3823_vm8 = vweird.f32 %v6421_v42  ;;  %6426 = vtanh.f32 %v3811_v31  ;;  %v3845_v1 = vand.u32 2147483647, %v8491_v7  ;;  %4232 = vmatpush.msra.mxu3 %v8429_v17  ;;  %v4394_v31 = vld [vmem:[#allocation21 + $0x160] sm:$0xff] }
 0x86a   :  { %v3857_v52 = vmul.f32 %v8519_v5, %v8476_v3  ;;  %vm8536_vm10 = vmor %vm3822_vm9, %vm3823_vm8  ;;  %v3848_v14 = vor.u32 1.1754944e-38, %v3847_v13  ;;  %4252 = vmatpush.msra.mxu0 %v8431_v54  ;;  %vm3862_vm0 = vweird.f32 %v8519_v5  ;;  %4213 = vmatpush.msra.mxu2 %v8436_v61  ;;  %v4408_v3 = vld [vmem:[#allocation21 + $0x1d0] sm:$0xff] }
 0x86b   :  { %v3819_v53 = vsub.f32 1.0, %v3818_v39  ;;  %vm3846_vm15 = vcmp.eq.f32.partialorder %v3845_v1, 8.507059e+37  ;;  %4233 = vmatpush.msra.mxu3 %v8438_v2  ;;  %vm3863_vm2 = vmor %vm3861_vm1, %vm3862_vm0  ;;  %v3880_v2 = vld [vmem:[#allocation7 + $0x8] sm:$0x30]  ;;  %v4387_v1 = vld [vmem:[#allocation21 + $0x128] sm:$0xff] }
 0x86c   :  { %v3858_v62 = vsub.f32 1.0, %v3857_v52  ;;  %4253 = vmatpush.msra.mxu0 %v8440_v10  ;;  %4214 = vmatpush.msra.mxu2 %v8444_v45  ;;  %v4392_v13 = vld [vmem:[#allocation21 + $0x150] sm:$0xff] }
 0x86d   :  { %v3820_v41 = vmul.f32 %v6421_v42, %v3819_v53  ;;  %4234 = vmatpush.msra.mxu3 %v8446_v51  ;;  %v4398_v53 = vld [vmem:[#allocation21 + $0x180] sm:$0xff] }
 0x86e   :  { %v6425_v0 = vpop.eup %6424  ;;  %4254 = vmatpush.msra.mxu0 %v8448_v35  ;;  %4215 = vmatpush.msra.mxu2 %v8451_v19  ;;  %v4410_v35 = vld [vmem:[#allocation21 + $0x1e0] sm:$0xff]  ;;  %v4411_v19 = vld [vmem:[#allocation21 + $0x1e8] sm:$0xff] }
 0x86f   :  { %v3837_v15 = vmul.f32 %v6425_v0, %v8491_v7  ;;  %v3821_v55 = vadd.f32 %v6421_v42, %v3820_v41  ;;  %vm3842_vm11 = vweird.f32 %v6425_v0  ;;  %v6427_v27 = vpop.eup %6426  ;;  %v3859_v7 = vmul.f32 %v8519_v5, %v3858_v62  ;;  %4235 = vmatpush.msra.mxu3 %v8453_v36  ;;  %v4412_v36 = vld [vmem:[#allocation21 + $0x1f0] sm:$0xff] }
 0x870   :  { %vm3843_vm14 = vmor %vm3841_vm12, %vm3842_vm11  ;;  %4255 = vmatpush.msra.mxu0 %v8457_v34  ;;  %4216 = vmatpush.msra.mxu2 %v8462_v30  ;;  %v3883_v30 = vld [vmem:[#allocation7 + $0x38] sm:$0x30]  ;;  %v4388_v62 = vld [vmem:[#allocation21 + $0x130] sm:$0xff] }
 0x871   :  { %v3838_v29 = vsub.f32 1.0, %v3837_v15  ;;  %v3825_v50 = vsel %vm8536_vm10, %v6421_v42, %v3821_v55  ;;  %v3860_v25 = vadd.f32 %v8519_v5, %v3859_v7  ;;  %4236 = vmatpush.msra.mxu3 %v8464_v37  ;;  %v4413_v37 = vld [vmem:[#allocation21 + $0x1f8] sm:$0xff]  ;;  %v4395_v15 = vld [vmem:[#allocation21 + $0x168] sm:$0xff]  ;;  %v4396_v55 = vld [vmem:[#allocation21 + $0x170] sm:$0xff] }
 0x872   :  { %v3830_v42 = vsel %vm3827_vm13, %v3829_v12, %v3825_v50  ;;  %4256 = vmatpush.msra.mxu0 %v8468_v22  ;;  %4217 = vmatpush.msra.mxu2 %v8472_v57  ;;  %v4406_v57 = vld [vmem:[#allocation21 + $0x1c0] sm:$0xff]  ;;  %v4389_v12 = vld [vmem:[#allocation21 + $0x138] sm:$0xff] }
 0x873   :  { %v3839_v49 = vmul.f32 %v6425_v0, %v3838_v29  ;;  %v3875_v32 = vmul.f32 %v6427_v27, %v3830_v42  ;;  %v3864_v46 = vsel %vm3863_vm2, %v8519_v5, %v3860_v25  ;;  %4237 = vmatpush.msra.mxu3 %v8474_v59  ;;  %v4407_v59 = vld [vmem:[#allocation21 + $0x1c8] sm:$0xff]  ;;  %v4390_v29 = vld [vmem:[#allocation21 + $0x140] sm:$0xff]  ;;  %v4385_v27 = vld [vmem:[#allocation21 + $0x118] sm:$0xff] }
 0x874   :  { %v3869_v9 = vsel %vm3866_vm3, %v3868_v60, %v3864_v46  ;;  %4257 = vmatpush.msra.mxu0 %v8480_v26  ;;  %4218 = vmatpush.msra.mxu2 %v8483_v8  ;;  %v4409_v8 = vld [vmem:[#allocation21 + $0x1d8] sm:$0xff]  ;;  %v4399_v5 = vld [vmem:[#allocation21 + $0x188] sm:$0xff]  ;;  %v4382_v42 = vld [vmem:[#allocation21 + $0x100] sm:$0xff] }
 0x875   :  { %v3840_v39 = vadd.f32 %v6425_v0, %v3839_v49  ;;  %4238 = vmatpush.msra.mxu3 %v8485_v4  ;;  %v4386_v49 = vld [vmem:[#allocation21 + $0x120] sm:$0xff]  ;;  %v4381_v25 = vld [vmem:[#allocation21 + $0xf8] sm:$0xff]  ;;  %v4376_v60 = vld [vmem:[#allocation21 + $0xd0] sm:$0xff] }
 0x876   :  { %4258 = vmatpush.msra.mxu0 %v8489_v11  ;;  %4219 = vmatpush.msra.mxu2 %v8494_v16  ;;  %v4402_v16 = vld [vmem:[#allocation21 + $0x1a0] sm:$0xff] }
 0x877   :  { %v3844_v20 = vsel %vm3843_vm14, %v6425_v0, %v3840_v39  ;;  %4239 = vmatpush.msra.mxu3 %v8496_v23  ;;  %v4403_v23 = vld [vmem:[#allocation21 + $0x1a8] sm:$0xff]  ;;  %v4401_v0 = vld [vmem:[#allocation21 + $0x198] sm:$0xff]  ;;  %v4378_v7 = vld [vmem:[#allocation21 + $0xe0] sm:$0xff] }
 0x878   :  { %v3849_v48 = vsel %vm3846_vm15, %v3848_v14, %v3844_v20  ;;  %4259 = vmatpush.msra.mxu0 %v8501_v24  ;;  %4220 = vmatpush.msra.mxu2 %v8505_v56  ;;  %v4404_v24 = vld [vmem:[#allocation21 + $0x1b0] sm:$0xff]  ;;  %v3881_v56 = vld [vmem:[#allocation7 + $0x20] sm:$0x30] }
 0x879   :  { %v3874_v28 = vmul.f32 %v3872_v18, %v3849_v48  ;;  %4240 = vmatpush.msra.mxu3 %v8507_v38  ;;  %v4383_v18 = vld [vmem:[#allocation21 + $0x108] sm:$0xff]  ;;  %v4384_v20 = vld [vmem:[#allocation21 + $0x110] sm:$0xff] }
 0x87a   :  { %4260 = vmatpush.msra.mxu0 %v8512_v47  ;;  %v4405_v47 = vld [vmem:[#allocation21 + $0x1b8] sm:$0xff]  ;;  %v4379_v48 = vld [vmem:[#allocation21 + $0xe8] sm:$0xff] }
 0x87b   :  { %v8559_v58 = vadd.f32 %v3875_v32, %v3874_v28  ;;  %v4380_v32 = vld [vmem:[#allocation21 + $0xf0] sm:$0xff] }
 0x87d   :  { %6428 = vtanh.f32 %v8559_v58 }
 0x883   :  { %v6429_v63 = vpop.eup %6428 }
 0x884   :  { %v3878_v17 = vmul.f32 %v6429_v63, %v3869_v9  ;;  %v4377_v63 = vld [vmem:[#allocation21 + $0xd8] sm:$0xff] }
 0x886   :  { %3879 = vst [vmem:[#allocation8 + $0x8] sm:$0xc] %v3878_v17  ;;  %v3949_v54 = vrot.slane %v3878_v17, 2  ;;  %v4370_v17 = vld [vmem:[#allocation21 + $0xa0] sm:$0xff] }
 0x888   :  { %3967 = vmatmul.f32.vlgmr.msra.gmra.mxu1 %v3949_v54  ;;  %3987 = vmatmul.f32.vlgmr.msrb.gmra.mxu2 %v3949_v54 }
 0x889   :  { %4007 = vmatmul.f32.vlgmr.msrb.gmra.mxu3 %v3949_v54  ;;  %4027 = vmatmul.f32.vlgmr.msrb.gmra.mxu0 %v3949_v54  ;;  %v4371_v54 = vld [vmem:[#allocation21 + $0xa8] sm:$0xff] }
 0x88a   :  { %4424 = vmatpush.msra.mxu1 %v4410_v35  ;;  %4447 = vmatpush.msrb.mxu2 %v4411_v19  ;;  %v4367_v35 = vld [vmem:[#allocation21 + $0x88] sm:$0xff] }
 0x88b   :  { %4470 = vmatpush.msrb.mxu3 %v4412_v36  ;;  %4493 = vmatpush.msrb.mxu0 %v4413_v37  ;;  %v4368_v36 = vld [vmem:[#allocation21 + $0x90] sm:$0xff]  ;;  %v4362_v37 = vld [vmem:[#allocation21 + $0x60] sm:$0xff] }
 0x88c   :  { %4425 = vmatpush.msra.mxu1 %v4406_v57  ;;  %4448 = vmatpush.msrb.mxu2 %v4407_v59  ;;  %v4364_v59 = vld [vmem:[#allocation21 + $0x70] sm:$0xff] }
 0x88d   :  { %4471 = vmatpush.msrb.mxu3 %v4408_v3  ;;  %4494 = vmatpush.msrb.mxu0 %v4409_v8  ;;  %v4365_v3 = vld [vmem:[#allocation21 + $0x78] sm:$0xff]  ;;  %v4359_v8 = vld [vmem:[#allocation21 + $0x48] sm:$0xff] }
 0x88e   :  { %4426 = vmatpush.msra.mxu1 %v4402_v16  ;;  %4449 = vmatpush.msrb.mxu2 %v4403_v23  ;;  %v4360_v23 = vld [vmem:[#allocation21 + $0x50] sm:$0xff] }
 0x88f   :  { %4472 = vmatpush.msrb.mxu3 %v4404_v24  ;;  %4495 = vmatpush.msrb.mxu0 %v4405_v47  ;;  %v4361_v24 = vld [vmem:[#allocation21 + $0x58] sm:$0xff]  ;;  %v4354_v47 = vld [vmem:[#allocation21 + $0x20] sm:$0xff] }
 0x890   :  { %4427 = vmatpush.msra.mxu1 %v4398_v53  ;;  %4450 = vmatpush.msrb.mxu2 %v4399_v5  ;;  %v4355_v53 = vld [vmem:[#allocation21 + $0x28] sm:$0xff] }
 0x891   :  { %4473 = vmatpush.msrb.mxu3 %v4400_v6  ;;  %4496 = vmatpush.msrb.mxu0 %v4401_v0  ;;  %v4357_v0 = vld [vmem:[#allocation21 + $0x38] sm:$0xff] }
 0x892   :  { %4428 = vmatpush.msra.mxu1 %v4394_v31  ;;  %4451 = vmatpush.msrb.mxu2 %v4395_v15 }
 0x893   :  { %4474 = vmatpush.msrb.mxu3 %v4396_v55  ;;  %4497 = vmatpush.msrb.mxu0 %v4397_v40  ;;  %v4350_v55 = vld [vmem:[#allocation21] sm:$0xff] }
 0x894   :  { %4429 = vmatpush.msra.mxu1 %v4390_v29  ;;  %4452 = vmatpush.msrb.mxu2 %v4391_v21  ;;  %v4352_v21 = vld [vmem:[#allocation21 + $0x10] sm:$0xff] }
 0x895   :  { %4475 = vmatpush.msrb.mxu3 %v4392_v13  ;;  %4498 = vmatpush.msrb.mxu0 %v4393_v33  ;;  %v4353_v13 = vld [vmem:[#allocation21 + $0x18] sm:$0xff] }
 0x896   :  { %4430 = vmatpush.msra.mxu1 %v4386_v49  ;;  %4453 = vmatpush.msrb.mxu2 %v4387_v1 }
 0x897   :  { %4476 = vmatpush.msrb.mxu3 %v4388_v62  ;;  %4499 = vmatpush.msrb.mxu0 %v4389_v12 }
 0x898   :  { %4431 = vmatpush.msra.mxu1 %v4382_v42  ;;  %4454 = vmatpush.msrb.mxu2 %v4383_v18 }
 0x899   :  { %4477 = vmatpush.msrb.mxu3 %v4384_v20  ;;  %4500 = vmatpush.msrb.mxu0 %v4385_v27  ;;  %v4106_v20 = vrot.slane %v8559_v58, 6 }
 0x89a   :  { %4432 = vmatpush.msra.mxu1 %v4378_v7  ;;  %4455 = vmatpush.msrb.mxu2 %v4379_v48 }
 0x89b   :  { %4478 = vmatpush.msrb.mxu3 %v4380_v32  ;;  %4501 = vmatpush.msrb.mxu0 %v4381_v25 }
 0x89c   :  { %4433 = vmatpush.msra.mxu1 %v4374_v43  ;;  %4456 = vmatpush.msrb.mxu2 %v4375_v44 }
 0x89d   :  { %4479 = vmatpush.msrb.mxu3 %v4376_v60  ;;  %4502 = vmatpush.msrb.mxu0 %v4377_v63 }
 0x89e   :  { %4434 = vmatpush.msra.mxu1 %v4370_v17  ;;  %4457 = vmatpush.msrb.mxu2 %v4371_v54 }
 0x8a0   :  { %4458 = vmatpush.msrb.mxu2 %v4367_v35  ;;  %v4114_v35 = vld [vmem:[#allocation7 + $0x8] sm:$0xc0] }
 0x905   :  { %v3968_v61 = vpop.f32.mrf.mxu1 }
 0x906   :  { %v4035_v10 = vrot.slane %v3968_v61, 4  ;;  %v4028_v45 = vpop.f32.mrf.mxu0 }
 0x907   :  { %v4038_v51 = vrot.slane %v4028_v45, 4 }
 0x908   :  { %v4043_v34 = vadd.f32 %v4035_v10, %v3880_v2  ;;  %v4372_v2 = vld [vmem:[#allocation21 + $0xb0] sm:$0xff]  ;;  %v4373_v10 = vld [vmem:[#allocation21 + $0xb8] sm:$0xff] }
 0x909   :  { %v4046_v22 = vadd.f32 %v4038_v51, %v3883_v30  ;;  %v4366_v51 = vld [vmem:[#allocation21 + $0x80] sm:$0xff]  ;;  %4480 = vmatpush.msrb.mxu3 %v4372_v2  ;;  %4503 = vmatpush.msrb.mxu0 %v4373_v10 }
 0x90a   :  { %v6274_v26 = vmul.f32 -1.442695, %v4043_v34  ;;  %v4369_v34 = vld [vmem:[#allocation21 + $0x98] sm:$0xff]  ;;  %4435 = vmatpush.msra.mxu1 %v4366_v51  ;;  %v4348_v10 = vld [vmem:[#allocation8] sm:$0xff] }
 0x90b   :  { %v6276_v4 = vmul.f32 -1.442695, %v4046_v22  ;;  %v3988_v11 = vpop.f32.mrf.mxu2  ;;  %v4363_v22 = vld [vmem:[#allocation21 + $0x68] sm:$0xff]  ;;  %4481 = vmatpush.msrb.mxu3 %v4368_v36  ;;  %4504 = vmatpush.msrb.mxu0 %v4369_v34 }
 0x90c   :  { %6430 = vpow2.f32 %v6274_v26  ;;  %v4036_v38 = vrot.slane %v3988_v11, 4  ;;  %v4008_v61 = vpop.f32.mrf.mxu3  ;;  %v4358_v26 = vld [vmem:[#allocation21 + $0x40] sm:$0xff]  ;;  %v3882_v11 = vld [vmem:[#allocation7 + $0x28] sm:$0x30]  ;;  %4436 = vmatpush.msra.mxu1 %v4362_v37  ;;  %4459 = vmatpush.msrb.mxu2 %v4363_v22 }
 0x90d   :  { %6432 = vpow2.f32 %v6276_v4  ;;  %v4037_v30 = vrot.slane %v4008_v61, 4  ;;  %4482 = vmatpush.msrb.mxu3 %v4364_v59  ;;  %4505 = vmatpush.msrb.mxu0 %v4365_v3  ;;  %v8644_v36 = vld [vmem:[%s9680_s14] sm:$0xf] }
 0x90e   :  { %v4044_v41 = vadd.f32 %v4036_v38, %v3881_v56  ;;  %4437 = vmatpush.msra.mxu1 %v4358_v26  ;;  %4460 = vmatpush.msrb.mxu2 %v4359_v8  ;;  %9836 = vst [vmem:[#allocation35_spill] sm:$0xff] %v8644_v36  ;;  %v9694_v26 = vperm.slane %v8644_v36, 3  ;;  %v4115_v8 = vld [vmem:[#allocation7 + $0x20] sm:$0xc0] }
 0x90f   :  { %v4045_v38 = vadd.f32 %v4037_v30, %v3882_v11  ;;  %4483 = vmatpush.msrb.mxu3 %v4360_v23  ;;  %4506 = vmatpush.msrb.mxu0 %v4361_v24  ;;  %v4117_v30 = vld [vmem:[#allocation7 + $0x38] sm:$0xc0]  ;;  %v8652_v24 = vld [vmem:[#allocation22 + $0x1e8] sm:$0xff] }
 0x910   :  { %v6275_v52 = vmul.f32 -1.442695, %v4044_v41  ;;  %v4356_v41 = vld [vmem:[#allocation21 + $0x30] sm:$0xff]  ;;  %4438 = vmatpush.msra.mxu1 %v4354_v47  ;;  %4461 = vmatpush.msrb.mxu2 %v4355_v53  ;;  %v8650_v23 = vld [vmem:[#allocation22 + $0x1e0] sm:$0xff] }
 0x911   :  { %4484 = vmatpush.msrb.mxu3 %v4356_v41  ;;  %4507 = vmatpush.msrb.mxu0 %v4357_v0  ;;  %v8666_v41 = vld [vmem:[#allocation22 + $0x1c0] sm:$0xff]  ;;  %v8668_v0 = vld [vmem:[#allocation22 + $0x1c8] sm:$0xff] }
 0x912   :  { %v6431_v50 = vpop.eup %6430  ;;  %6434 = vpow2.f32 %v6275_v52  ;;  %v4351_v52 = vld [vmem:[#allocation21 + $0x8] sm:$0xff]  ;;  %4439 = vmatpush.msra.mxu1 %v4350_v55  ;;  %v9693_v55 = vperm.slane %v8644_v36, 1 }
 0x913   :  { %v6433_v39 = vpop.eup %6432  ;;  %v8594_v14 = vadd.f32 1.0, %v6431_v50  ;;  %4462 = vmatpush.msrb.mxu2 %v4351_v52  ;;  %4485 = vmatpush.msrb.mxu3 %v4352_v21  ;;  %v8675_v52 = vld [vmem:[#allocation22 + $0x1d8] sm:$0xff]  ;;  %v8683_v21 = vld [vmem:[#allocation22 + $0x1b0] sm:$0xff] }
 0x914   :  { %v8597_v28 = vadd.f32 1.0, %v6433_v39  ;;  %4508 = vmatpush.msrb.mxu0 %v4353_v13 }
 0x915   :  { %6436 = vrcp.f32 %v8594_v14  ;;  %v4062_v15 = vand.u32 2147483648, %v8594_v14  ;;  %vm4056_vm5 = vweird.f32 %v8594_v14  ;;  %v4060_v29 = vand.u32 2147483647, %v8594_v14 }
 0x916   :  { %6438 = vrcp.f32 %v8597_v28  ;;  %v4101_v60 = vand.u32 2147483648, %v8597_v28  ;;  %vm4095_vm13 = vweird.f32 %v8597_v28  ;;  %v4099_v58 = vand.u32 2147483647, %v8597_v28 }
 0x917   :  { %v4063_v39 = vor.u32 1.1754944e-38, %v4062_v15  ;;  %vm4061_vm9 = vcmp.eq.f32.partialorder %v4060_v29, 8.507059e+37  ;;  %v8681_v29 = vld [vmem:[#allocation22 + $0x1a8] sm:$0xff] }
 0x918   :  { %v6435_v46 = vpop.eup %6434  ;;  %vm4100_vm15 = vcmp.eq.f32.partialorder %v4099_v58, 8.507059e+37  ;;  %v8729_v58 = vld [vmem:[#allocation22 + $0x150] sm:$0xff] }
 0x919   :  { %v8599_v9 = vadd.f32 1.0, %v6435_v46 }
 0x91b   :  { %v8602_v45 = vpop.eup %6436  ;;  %6440 = vrcp.f32 %v8599_v9  ;;  %v4081_v33 = vand.u32 2147483648, %v8599_v9  ;;  %v4079_v62 = vand.u32 2147483647, %v8599_v9  ;;  %vm4075_vm8 = vweird.f32 %v8599_v9 }
 0x91c   :  { %v4052_v19 = vmul.f32 %v8602_v45, %v8594_v14  ;;  %v8607_v4 = vpop.eup %6438  ;;  %vm4057_vm4 = vweird.f32 %v8602_v45  ;;  %6442 = vtanh.f32 %v4045_v38 }
 0x91d   :  { %v4091_v31 = vmul.f32 %v8607_v4, %v8597_v28  ;;  %vm8621_vm6 = vmor %vm4056_vm5, %vm4057_vm4  ;;  %v4082_v42 = vor.u32 1.1754944e-38, %v4081_v33  ;;  %vm4080_vm11 = vcmp.eq.f32.partialorder %v4079_v62, 8.507059e+37  ;;  %vm4096_vm12 = vweird.f32 %v8607_v4  ;;  %v8687_v33 = vld [vmem:[#allocation22 + $0x1b8] sm:$0xff] }
 0x91e   :  { %v4053_v57 = vsub.f32 1.0, %v4052_v19  ;;  %vm4097_vm14 = vmor %vm4095_vm13, %vm4096_vm12  ;;  %v9692_v62 = vperm.slane %v8644_v36, 2 }
 0x91f   :  { %v4092_v12 = vsub.f32 1.0, %v4091_v31  ;;  %v8670_v31 = vld [vmem:[#allocation22 + $0x1d0] sm:$0xff] }
 0x920   :  { %v4054_v16 = vmul.f32 %v8602_v45, %v4053_v57  ;;  %v9695_v57 = vperm.slane %v8644_v36, 0 }
 0x921   :  { %v6441_v56 = vpop.eup %6440  ;;  %v4093_v48 = vmul.f32 %v8607_v4, %v4092_v12  ;;  %v8694_v12 = vld [vmem:[#allocation22 + $0x180] sm:$0xff] }
 0x922   :  { %v4071_v5 = vmul.f32 %v6441_v56, %v8599_v9  ;;  %v4055_v6 = vadd.f32 %v8602_v45, %v4054_v16  ;;  %vm4076_vm7 = vweird.f32 %v6441_v56  ;;  %v6443_v7 = vpop.eup %6442  ;;  %v4102_v9 = vor.u32 1.1754944e-38, %v4101_v60  ;;  %v8727_v60 = vld [vmem:[#allocation22 + $0x148] sm:$0xff] }
 0x923   :  { %vm4077_vm10 = vmor %vm4075_vm8, %vm4076_vm7  ;;  %v4094_v46 = vadd.f32 %v8607_v4, %v4093_v48  ;;  %v8713_v48 = vld [vmem:[#allocation22 + $0x170] sm:$0xff] }
 0x924   :  { %v4072_v40 = vsub.f32 1.0, %v4071_v5  ;;  %v4059_v1 = vsel %vm8621_vm6, %v8602_v45, %v4055_v6  ;;  %v8660_v5 = vld [vmem:[#allocation22 + $0x1f8] sm:$0xff] }
 0x925   :  { %v4064_v18 = vsel %vm4061_vm9, %v4063_v39, %v4059_v1  ;;  %v4098_v63 = vsel %vm4097_vm14, %v8607_v4, %v4094_v46  ;;  %v8696_v39 = vld [vmem:[#allocation22 + $0x188] sm:$0xff]  ;;  %v8725_v46 = vld [vmem:[#allocation22 + $0x140] sm:$0xff] }
 0x926   :  { %v4073_v50 = vmul.f32 %v6441_v56, %v4072_v40  ;;  %v4109_v43 = vmul.f32 %v6443_v7, %v4064_v18  ;;  %v4103_v54 = vsel %vm4100_vm15, %v4102_v9, %v4098_v63  ;;  %v8679_v40 = vld [vmem:[#allocation22 + $0x1a0] sm:$0xff]  ;;  %v8711_v7 = vld [vmem:[#allocation22 + $0x168] sm:$0xff]  ;;  %v8733_v9 = vld [vmem:[#allocation22 + $0x158] sm:$0xff] }
 0x928   :  { %v4074_v14 = vadd.f32 %v6441_v56, %v4073_v50 }
 0x92a   :  { %v4078_v27 = vsel %vm4077_vm10, %v6441_v56, %v4074_v14  ;;  %v8654_v56 = vld [vmem:[#allocation22 + $0x1f0] sm:$0xff] }
 0x92b   :  { %v4083_v32 = vsel %vm4080_vm11, %v4082_v42, %v4078_v27  ;;  %v8698_v14 = vld [vmem:[#allocation22 + $0x190] sm:$0xff]  ;;  %v8709_v27 = vld [vmem:[#allocation22 + $0x160] sm:$0xff] }
 0x92c   :  { %v4108_v25 = vmul.f32 %v4106_v20, %v4083_v32  ;;  %v8704_v20 = vld [vmem:[#allocation22 + $0x198] sm:$0xff] }
 0x92e   :  { %v8632_v44 = vadd.f32 %v4109_v43, %v4108_v25  ;;  %v8719_v25 = vld [vmem:[#allocation22 + $0x178] sm:$0xff] }
 0x930   :  { %6444 = vtanh.f32 %v8632_v44 }
 0x936   :  { %v6445_v17 = vpop.eup %6444 }
 0x937   :  { %v4112_v61 = vmul.f32 %v6445_v17, %v4103_v54  ;;  %v8739_v54 = vld [vmem:[#allocation22 + $0x120] sm:$0xff] }
 0x939   :  { %4113 = vst [vmem:[#allocation8 + $0x8] sm:$0x30] %v4112_v61  ;;  %v4183_v2 = vrot.slane %v4112_v61, 4  ;;  %v8741_v61 = vld [vmem:[#allocation22 + $0x128] sm:$0xff] }
 0x93b   :  { %4201 = vmatmul.f32.vlgmr.msrb.gmra.mxu1 %v4183_v2  ;;  %4221 = vmatmul.f32.vlgmr.msra.gmra.mxu2 %v4183_v2 }
 0x93c   :  { %4241 = vmatmul.f32.vlgmr.msra.gmra.mxu3 %v4183_v2  ;;  %4261 = vmatmul.f32.vlgmr.msra.gmra.mxu0 %v4183_v2  ;;  %v8743_v2 = vld [vmem:[#allocation22 + $0x130] sm:$0xff] }
 0x93d   :  { %4595 = vmatpush.msrb.mxu1 %v8650_v23  ;;  %4615 = vmatpush.msra.mxu2 %v8652_v24 }
 0x93e   :  { %4635 = vmatpush.msra.mxu3 %v8654_v56  ;;  %4655 = vmatpush.msra.mxu0 %v8660_v5 }
 0x93f   :  { %4596 = vmatpush.msrb.mxu1 %v8666_v41  ;;  %4616 = vmatpush.msra.mxu2 %v8668_v0 }
 0x940   :  { %4636 = vmatpush.msra.mxu3 %v8670_v31  ;;  %4656 = vmatpush.msra.mxu0 %v8675_v52 }
 0x941   :  { %4597 = vmatpush.msrb.mxu1 %v8679_v40  ;;  %4617 = vmatpush.msra.mxu2 %v8681_v29 }
 0x942   :  { %4637 = vmatpush.msra.mxu3 %v8683_v21  ;;  %4657 = vmatpush.msra.mxu0 %v8687_v33 }
 0x943   :  { %4440 = vmatmul.f32.vlgmr.msra.gmra.mxu1 %v4348_v10  ;;  %4463 = vmatmul.f32.vlgmr.msrb.gmra.mxu2 %v4348_v10 }
 0x944   :  { %4486 = vmatmul.f32.vlgmr.msrb.gmra.mxu3 %v4348_v10  ;;  %4509 = vmatmul.f32.vlgmr.msrb.gmra.mxu0 %v4348_v10  ;;  %v8748_v10 = vld [vmem:[#allocation22 + $0x138] sm:$0xff] }
 0x945   :  { %4598 = vmatpush.msrb.mxu1 %v8694_v12  ;;  %4618 = vmatpush.msra.mxu2 %v8696_v39 }
 0x946   :  { %4638 = vmatpush.msra.mxu3 %v8698_v14  ;;  %4658 = vmatpush.msra.mxu0 %v8704_v20 }
 0x947   :  { %4599 = vmatpush.msrb.mxu1 %v8709_v27  ;;  %4619 = vmatpush.msra.mxu2 %v8711_v7 }
 0x948   :  { %4639 = vmatpush.msra.mxu3 %v8713_v48  ;;  %4659 = vmatpush.msra.mxu0 %v8719_v25 }
 0x949   :  { %4600 = vmatpush.msrb.mxu1 %v8725_v46  ;;  %4620 = vmatpush.msra.mxu2 %v8727_v60 }
 0x94a   :  { %4640 = vmatpush.msra.mxu3 %v8729_v58  ;;  %4660 = vmatpush.msra.mxu0 %v8733_v9 }
 0x94b   :  { %4601 = vmatpush.msrb.mxu1 %v8739_v54  ;;  %4621 = vmatpush.msra.mxu2 %v8741_v61 }
 0x94c   :  { %4641 = vmatpush.msra.mxu3 %v8743_v2  ;;  %4661 = vmatpush.msra.mxu0 %v8748_v10 }
 0x9b8   :  { %v4202_v28 = vpop.f32.mrf.mxu1 }
 0x9b9   :  { %v4269_v45 = vrot.slane %v4202_v28, 2  ;;  %v4262_v51 = vpop.f32.mrf.mxu0  ;;  %v8750_v28 = vld [vmem:[#allocation22 + $0x100] sm:$0xff] }
 0x9ba   :  { %v4272_v19 = vrot.slane %v4262_v51, 2  ;;  %4602 = vmatpush.msrb.mxu1 %v8750_v28 }
 0x9bb   :  { %v4277_v34 = vadd.f32 %v4269_v45, %v4114_v35  ;;  %v8752_v45 = vld [vmem:[#allocation22 + $0x108] sm:$0xff]  ;;  %v8759_v35 = vld [vmem:[#allocation22 + $0x110] sm:$0xff] }
 0x9bc   :  { %v4280_v37 = vadd.f32 %v4272_v19, %v4117_v30  ;;  %v8761_v19 = vld [vmem:[#allocation22 + $0x118] sm:$0xff]  ;;  %4622 = vmatpush.msra.mxu2 %v8752_v45  ;;  %4642 = vmatpush.msra.mxu3 %v8759_v35 }
 0x9bd   :  { %v6277_v22 = vmul.f32 -1.442695, %v4277_v34  ;;  %v8763_v34 = vld [vmem:[#allocation22 + $0xe0] sm:$0xff]  ;;  %4662 = vmatpush.msra.mxu0 %v8761_v19 }
 0x9be   :  { %v6279_v59 = vmul.f32 -1.442695, %v4280_v37  ;;  %v4222_v3 = vpop.f32.mrf.mxu2  ;;  %v8769_v37 = vld [vmem:[#allocation22 + $0xe8] sm:$0xff]  ;;  %4603 = vmatpush.msrb.mxu1 %v8763_v34 }
 0x9bf   :  { %6446 = vpow2.f32 %v6277_v22  ;;  %v4270_v4 = vrot.slane %v4222_v3, 2  ;;  %v8648_v11 = vpop.f32.mrf.mxu3  ;;  %v8771_v22 = vld [vmem:[#allocation22 + $0xf0] sm:$0xff]  ;;  %4623 = vmatpush.msra.mxu2 %v8769_v37 }
 0x9c0   :  { %6448 = vpow2.f32 %v6279_v59  ;;  %v4441_v16 = vpop.f32.mrf.mxu1  ;;  %v8773_v59 = vld [vmem:[#allocation22 + $0xf8] sm:$0xff]  ;;  %v4271_v3 = vrot.slane %v8648_v11, 2  ;;  %4643 = vmatpush.msra.mxu3 %v8771_v22  ;;  %v8790_v11 = vld [vmem:[#allocation22 + $0xa0] sm:$0xff] }
 0x9c1   :  { %v4278_v38 = vadd.f32 %v4270_v4, %v4115_v8  ;;  %v4442_v47 = vadd.f32 %v4441_v16, %v9695_v57  ;;  %v4510_v53 = vpop.f32.mrf.mxu0  ;;  %v8778_v8 = vld [vmem:[#allocation22 + $0xc0] sm:$0xff]  ;;  %v8780_v4 = vld [vmem:[#allocation22 + $0xc8] sm:$0xff]  ;;  %4663 = vmatpush.msra.mxu0 %v8773_v59  ;;  %9840 = vst [vmem:[#allocation39_spill] sm:$0xff] %v8790_v11 }
 0x9c2   :  { %v4511_v6 = vadd.f32 %v4510_v53, %v9694_v26  ;;  %9837 = vst [vmem:[#allocation36_spill] sm:$0xff] %v8780_v4  ;;  %v8792_v53 = vld [vmem:[#allocation22 + $0xa8] sm:$0xff]  ;;  %4604 = vmatpush.msrb.mxu1 %v8778_v8  ;;  %4624 = vmatpush.msra.mxu2 %v8780_v4 }
 0x9c3   :  { %v6278_v15 = vmul.f32 -1.442695, %v4278_v38  ;;  %4516 = vst [vmem:[#allocation7 + $0x30] sm:$0xff] %v4442_v47  ;;  %v8784_v38 = vld [vmem:[#allocation22 + $0xd0] sm:$0xff]  ;;  %v8786_v47 = vld [vmem:[#allocation22 + $0xd8] sm:$0xff]  ;;  %v8828_v26 = vld [vmem:[#allocation22 + $0x68] sm:$0xff] }
 0x9c4   :  { %4519 = vst [vmem:[#allocation7 + $0x10] sm:$0xff] %v4511_v6  ;;  %4644 = vmatpush.msra.mxu3 %v8784_v38  ;;  %4664 = vmatpush.msra.mxu0 %v8786_v47 }
 0x9c5   :  { %v6447_v13 = vpop.eup %6446  ;;  %6450 = vpow2.f32 %v6278_v15  ;;  %9838 = vst [vmem:[#allocation37_spill] sm:$0xff] %v8784_v38  ;;  %v4116_v15 = vld [vmem:[#allocation7 + $0x28] sm:$0xc0]  ;;  %4605 = vmatpush.msrb.mxu1 %v8790_v11  ;;  %4625 = vmatpush.msra.mxu2 %v8792_v53  ;;  %v8836_v11 = vld [vmem:[#allocation22 + $0x78] sm:$0xff] }
 0x9c6   :  { %v6449_v49 = vpop.eup %6448  ;;  %v8689_v50 = vadd.f32 1.0, %v6447_v13  ;;  %v4464_v1 = vpop.f32.mrf.mxu2  ;;  %9839 = vst [vmem:[#allocation38_spill] sm:$0xff] %v8786_v47 }
 0x9c7   :  { %v4465_v42 = vadd.f32 %v4464_v1, %v9693_v55  ;;  %v4487_v18 = vpop.f32.mrf.mxu3  ;;  %v8715_v32 = vadd.f32 1.0, %v6449_v49  ;;  %9841 = vst [vmem:[#allocation40_spill] sm:$0xff] %v8792_v53  ;;  %v8799_v49 = vld [vmem:[#allocation22 + $0xb0] sm:$0xff]  ;;  %v8801_v1 = vld [vmem:[#allocation22 + $0xb8] sm:$0xff] }
 0x9c8   :  { %6452 = vrcp.f32 %v8689_v50  ;;  %v4488_v43 = vadd.f32 %v4487_v18, %v9692_v62  ;;  %9842 = vst [vmem:[#allocation41_spill] sm:$0xff] %v8799_v49  ;;  %v4279_v18 = vadd.f32 %v4271_v3, %v4116_v15  ;;  %v8817_v3 = vld [vmem:[#allocation22 + $0x90] sm:$0xff]  ;;  %v8819_v15 = vld [vmem:[#allocation22 + $0x98] sm:$0xff]  ;;  %v4296_v55 = vand.u32 2147483648, %v8689_v50  ;;  %4645 = vmatpush.msra.mxu3 %v8799_v49  ;;  %4665 = vmatpush.msra.mxu0 %v8801_v1 }
 0x9c9   :  { %4517 = vst [vmem:[#allocation7] sm:$0xff] %v4465_v42  ;;  %6454 = vrcp.f32 %v8715_v32  ;;  %vm4290_vm1 = vweird.f32 %v8689_v50  ;;  %v4294_v36 = vand.u32 2147483647, %v8689_v50  ;;  %v8834_v53 = vld [vmem:[#allocation22 + $0x70] sm:$0xff]  ;;  %vm4329_vm9 = vweird.f32 %v8715_v32 }
 0x9ca   :  { %4518 = vst [vmem:[#allocation7 + $0x18] sm:$0xff] %v4488_v43  ;;  %v8807_v43 = vld [vmem:[#allocation22 + $0x80] sm:$0xff]  ;;  %4646 = vmatpush.msra.mxu3 %v8817_v3  ;;  %4666 = vmatpush.msra.mxu0 %v8819_v15  ;;  %v4297_v38 = vor.u32 1.1754944e-38, %v4296_v55  ;;  %v8875_v55 = vld [vmem:[#allocation22 + $0x38] sm:$0xff] }
 0x9cb   :  { %v6451_v63 = vpop.eup %6450  ;;  %9843 = vst [vmem:[#allocation42_spill] sm:$0xff] %v8801_v1  ;;  %4606 = vmatpush.msrb.mxu1 %v8807_v43  ;;  %v8867_v1 = vld [vmem:[#allocation22 + $0x28] sm:$0xff]  ;;  %vm4295_vm5 = vcmp.eq.f32.partialorder %v4294_v36, 8.507059e+37  ;;  %v8885_v36 = vld [vmem:[#allocation22] sm:$0xff] }
 0x9cc   :  { %v8735_v17 = vadd.f32 1.0, %v6451_v63  ;;  %9844 = vst [vmem:[#allocation43_spill] sm:$0xff] %v8807_v43  ;;  %v8809_v63 = vld [vmem:[#allocation22 + $0x88] sm:$0xff]  ;;  %4647 = vmatpush.msra.mxu3 %v8834_v53  ;;  %4667 = vmatpush.msra.mxu0 %v8836_v11 }
 0x9cd   :  { %9845 = vst [vmem:[#allocation44_spill] sm:$0xff] %v8809_v63  ;;  %4626 = vmatpush.msra.mxu2 %v8809_v63 }
 0x9ce   :  { %v8754_v51 = vpop.eup %6452  ;;  %6456 = vrcp.f32 %v8735_v17  ;;  %9846 = vst [vmem:[#allocation45_spill] sm:$0xff] %v8817_v3  ;;  %v4315_v49 = vand.u32 2147483648, %v8735_v17  ;;  %v4313_v47 = vand.u32 2147483647, %v8735_v17  ;;  %vm4309_vm4 = vweird.f32 %v8735_v17 }
 0x9cf   :  { %v4286_v30 = vmul.f32 %v8754_v51, %v8689_v50  ;;  %v8794_v6 = vpop.eup %6454  ;;  %vm4291_vm0 = vweird.f32 %v8754_v51  ;;  %9847 = vst [vmem:[#allocation46_spill] sm:$0xff] %v8819_v15  ;;  %6458 = vtanh.f32 %v4279_v18  ;;  %v8847_v50 = vld [vmem:[#allocation22 + $0x40] sm:$0xff]  ;;  %4627 = vmatpush.msra.mxu2 %v8828_v26  ;;  %v8859_v18 = vld [vmem:[#allocation22 + $0x50] sm:$0xff]  ;;  %v8861_v15 = vld [vmem:[#allocation22 + $0x58] sm:$0xff] }
 0x9d0   :  { %v4325_v62 = vmul.f32 %v8794_v6, %v8715_v32  ;;  %9849 = vst [vmem:[#allocation48_spill] sm:$0xff] %v8828_v26  ;;  %vm8841_vm2 = vmor %vm4290_vm1, %vm4291_vm0  ;;  %4648 = vmatpush.msra.mxu3 %v8859_v18  ;;  %4668 = vmatpush.msra.mxu0 %v8861_v15  ;;  %vm4314_vm7 = vcmp.eq.f32.partialorder %v4313_v47, 8.507059e+37  ;;  %vm4330_vm8 = vweird.f32 %v8794_v6 }
 0x9d1   :  { %v4287_v16 = vsub.f32 1.0, %v4286_v30  ;;  %9850 = vst [vmem:[#allocation49_spill] sm:$0xff] %v8834_v53  ;;  %vm4331_vm10 = vmor %vm4329_vm9, %vm4330_vm8 }
 0x9d2   :  { %9851 = vst [vmem:[#allocation50_spill] sm:$0xff] %v8836_v11  ;;  %v4326_v3 = vsub.f32 1.0, %v4325_v62  ;;  %v4316_v11 = vor.u32 1.1754944e-38, %v4315_v49  ;;  %v8897_v49 = vld [vmem:[#allocation22 + $0x18] sm:$0xff]  ;;  %4669 = vmatpush.msra.mxu0 %v8875_v55 }
 0x9d3   :  { %v4288_v13 = vmul.f32 %v8754_v51, %v4287_v16  ;;  %9854 = vst [vmem:[#allocation51_spill] sm:$0xff] %v8847_v50 }
 0x9d4   :  { %v8803_v42 = vpop.eup %6456  ;;  %9856 = vst [vmem:[#allocation53_spill] sm:$0xff] %v8859_v18  ;;  %4670 = vmatpush.msra.mxu0 %v8897_v49 }
 0x9d5   :  { %v4305_v30 = vmul.f32 %v8803_v42, %v8735_v17  ;;  %v4289_v16 = vadd.f32 %v8754_v51, %v4288_v13  ;;  %v8826_v13 = vld [vmem:[#allocation22 + $0x60] sm:$0xff]  ;;  %vm4310_vm3 = vweird.f32 %v8803_v42  ;;  %9857 = vst [vmem:[#allocation54_spill] sm:$0xff] %v8861_v15  ;;  %v8887_v17 = vld [vmem:[#allocation22 + $0x8] sm:$0xff]  ;;  %v4327_v15 = vmul.f32 %v8794_v6, %v4326_v3 }
 0x9d6   :  { %9848 = vst [vmem:[#allocation47_spill] sm:$0xff] %v8826_v13  ;;  %4607 = vmatpush.msrb.mxu1 %v8826_v13  ;;  %vm8879_vm6 = vmor %vm4309_vm4, %vm4310_vm3  ;;  %4809 = vmatpush.msrb.mxu0 %v8660_v5 }
 0x9d7   :  { %v4306_v57 = vsub.f32 1.0, %v4305_v30  ;;  %v8849_v30 = vld [vmem:[#allocation22 + $0x48] sm:$0xff]  ;;  %v4293_v43 = vsel %vm8841_vm2, %v8754_v51, %v4289_v16  ;;  %9859 = vst [vmem:[#allocation56_spill] sm:$0xff] %v8867_v1  ;;  %v8873_v16 = vld [vmem:[#allocation22 + $0x30] sm:$0xff] }
 0x9d8   :  { %9855 = vst [vmem:[#allocation52_spill] sm:$0xff] %v8849_v30  ;;  %4608 = vmatpush.msrb.mxu1 %v8847_v50  ;;  %4628 = vmatpush.msra.mxu2 %v8849_v30  ;;  %v4298_v53 = vsel %vm4295_vm5, %v4297_v38, %v4293_v43  ;;  %v8895_v38 = vld [vmem:[#allocation22 + $0x10] sm:$0xff]  ;;  %v6459_v43 = vpop.eup %6458 }
 0x9d9   :  { %v4307_v63 = vmul.f32 %v8803_v42, %v4306_v57  ;;  %v8865_v57 = vld [vmem:[#allocation22 + $0x20] sm:$0xff]  ;;  %9860 = vst [vmem:[#allocation57_spill] sm:$0xff] %v8873_v16  ;;  %4649 = vmatpush.msra.mxu3 %v8873_v16  ;;  %v4343_v62 = vmul.f32 %v6459_v43, %v4298_v53  ;;  %v4335_v53 = vand.u32 2147483648, %v8715_v32  ;;  %4810 = vmatpush.msrb.mxu0 %v8675_v52 }
 0x9da   :  { %9858 = vst [vmem:[#allocation55_spill] sm:$0xff] %v8865_v57  ;;  %4609 = vmatpush.msrb.mxu1 %v8865_v57  ;;  %4629 = vmatpush.msra.mxu2 %v8867_v1  ;;  %v9871_v43 = vld [vmem:[#allocation39_spill] sm:$0xff] }
 0x9db   :  { %v4308_v51 = vadd.f32 %v8803_v42, %v4307_v63  ;;  %9861 = vst [vmem:[#allocation58_spill] sm:$0xff] %v8875_v55  ;;  %v4340_v63 = vrot.slane %v8632_v44, 6  ;;  %4650 = vmatpush.msra.mxu3 %v8895_v38  ;;  %4811 = vmatpush.msrb.mxu0 %v8687_v33 }
 0x9dc   :  { %9864 = vst [vmem:[#allocation59_spill] sm:$0xff] %v8885_v36  ;;  %4610 = vmatpush.msrb.mxu1 %v8885_v36  ;;  %4630 = vmatpush.msra.mxu2 %v8887_v17 }
 0x9dd   :  { %9865 = vst [vmem:[#allocation60_spill] sm:$0xff] %v8887_v17  ;;  %v4312_v30 = vsel %vm8879_vm6, %v8803_v42, %v4308_v51  ;;  %4789 = vmatpush.msrb.mxu3 %v8654_v56  ;;  %v4333_v42 = vand.u32 2147483647, %v8715_v32  ;;  %4812 = vmatpush.msrb.mxu0 %v8704_v20  ;;  %v9869_v51 = vld [vmem:[#allocation37_spill] sm:$0xff] }
 0x9de   :  { %9866 = vst [vmem:[#allocation61_spill] sm:$0xff] %v8895_v38  ;;  %v4317_v18 = vsel %vm4314_vm7, %v4316_v11, %v4312_v30  ;;  %4749 = vmatpush.msra.mxu1 %v8650_v23  ;;  %4769 = vmatpush.msrb.mxu2 %v8652_v24  ;;  %v4328_v11 = vadd.f32 %v8794_v6, %v4327_v15  ;;  %v4336_v15 = vor.u32 1.1754944e-38, %v4335_v53  ;;  %v9875_v53 = vld [vmem:[#allocation43_spill] sm:$0xff] }
 0x9df   :  { %9867 = vst [vmem:[#allocation62_spill] sm:$0xff] %v8897_v49  ;;  %v4342_v44 = vmul.f32 %v4340_v63, %v4317_v18  ;;  %4790 = vmatpush.msrb.mxu3 %v8670_v31  ;;  %vm4334_vm11 = vcmp.eq.f32.partialorder %v4333_v42, 8.507059e+37  ;;  %4813 = vmatpush.msrb.mxu0 %v8719_v25  ;;  %v9870_v63 = vld [vmem:[#allocation38_spill] sm:$0xff]  ;;  %v9876_v42 = vld [vmem:[#allocation44_spill] sm:$0xff] }
 0x9e0   :  { %4750 = vmatpush.msra.mxu1 %v8666_v41  ;;  %4770 = vmatpush.msrb.mxu2 %v8668_v0  ;;  %v4332_v3 = vsel %vm4331_vm10, %v8794_v6, %v4328_v11  ;;  %v9874_v11 = vld [vmem:[#allocation42_spill] sm:$0xff] }
 0x9e1   :  { %v8906_v47 = vadd.f32 %v4343_v62, %v4342_v44  ;;  %4791 = vmatpush.msrb.mxu3 %v8683_v21  ;;  %v4337_v30 = vsel %vm4334_vm11, %v4336_v15, %v4332_v3  ;;  %4814 = vmatpush.msrb.mxu0 %v8733_v9  ;;  %v9872_v44 = vld [vmem:[#allocation40_spill] sm:$0xff]  ;;  %v9873_v62 = vld [vmem:[#allocation41_spill] sm:$0xff] }
 0x9e2   :  { %4751 = vmatpush.msra.mxu1 %v8679_v40  ;;  %4771 = vmatpush.msrb.mxu2 %v8681_v29  ;;  %v9877_v15 = vld [vmem:[#allocation45_spill] sm:$0xff] }
 0x9e3   :  { %9868 = vst [vmem:[#allocation63_spill] sm:$0xff] %v8906_v47  ;;  %6460 = vtanh.f32 %v8906_v47  ;;  %4792 = vmatpush.msrb.mxu3 %v8698_v14  ;;  %4815 = vmatpush.msrb.mxu0 %v8748_v10  ;;  %v9881_v47 = vld [vmem:[#allocation52_spill] sm:$0xff] }
 0x9e4   :  { %4752 = vmatpush.msra.mxu1 %v8694_v12  ;;  %4772 = vmatpush.msrb.mxu2 %v8696_v39 }
 0x9e5   :  { %4793 = vmatpush.msrb.mxu3 %v8713_v48  ;;  %4816 = vmatpush.msrb.mxu0 %v8761_v19 }
 0x9e6   :  { %4753 = vmatpush.msra.mxu1 %v8709_v27  ;;  %4773 = vmatpush.msrb.mxu2 %v8711_v7 }
 0x9e7   :  { %4794 = vmatpush.msrb.mxu3 %v8729_v58  ;;  %4817 = vmatpush.msrb.mxu0 %v8773_v59 }
 0x9e8   :  { %4754 = vmatpush.msra.mxu1 %v8725_v46  ;;  %4774 = vmatpush.msrb.mxu2 %v8727_v60 }
 0x9e9   :  { %v6461_v32 = vpop.eup %6460  ;;  %4795 = vmatpush.msrb.mxu3 %v8743_v2  ;;  %4818 = vmatpush.msrb.mxu0 %v9870_v63 }
 0x9ea   :  { %v4346_v6 = vmul.f32 %v6461_v32, %v4337_v30  ;;  %4755 = vmatpush.msra.mxu1 %v8739_v54  ;;  %4775 = vmatpush.msrb.mxu2 %v8741_v61  ;;  %v9878_v32 = vld [vmem:[#allocation46_spill] sm:$0xff]  ;;  %v9879_v30 = vld [vmem:[#allocation49_spill] sm:$0xff] }
 0x9eb   :  { %4796 = vmatpush.msrb.mxu3 %v8759_v35  ;;  %4819 = vmatpush.msrb.mxu0 %v9874_v11 }
 0x9ec   :  { %4347 = vst [vmem:[#allocation8 + $0x8] sm:$0xc0] %v4346_v6  ;;  %4756 = vmatpush.msra.mxu1 %v8750_v28  ;;  %4776 = vmatpush.msrb.mxu2 %v8752_v45  ;;  %v4593_v3 = vrot.slane %v4346_v6, 6  ;;  %v9882_v6 = vld [vmem:[#allocation53_spill] sm:$0xff] }
 0x9ed   :  { %4797 = vmatpush.msrb.mxu3 %v8771_v22  ;;  %4820 = vmatpush.msrb.mxu0 %v9878_v32 }
 0x9ee   :  { %4757 = vmatpush.msra.mxu1 %v8763_v34  ;;  %4777 = vmatpush.msrb.mxu2 %v8769_v37 }
 0x9ef   :  { %4798 = vmatpush.msrb.mxu3 %v9869_v51 }
 0x9f0   :  { %4758 = vmatpush.msra.mxu1 %v8778_v8  ;;  %4778 = vmatpush.msrb.mxu2 %v8780_v4 }
 0x9f1   :  { %4799 = vmatpush.msrb.mxu3 %v9873_v62 }
 0x9f2   :  { %4759 = vmatpush.msra.mxu1 %v9871_v43  ;;  %4779 = vmatpush.msrb.mxu2 %v9872_v44 }
 0x9f3   :  { %v4349_v18 = vld [vmem:[#allocation8 + $0x8] sm:$0xff]  ;;  %4800 = vmatpush.msrb.mxu3 %v9877_v15  ;;  %v9883_v15 = vld [vmem:[#allocation54_spill] sm:$0xff] }
 0x9f4   :  { %4443 = vmatmul.f32.gmra.mxu1 %v4349_v18  ;;  %4466 = vmatmul.f32.gmra.mxu2 %v4349_v18 }
 0x9f5   :  { %4489 = vmatmul.f32.gmra.mxu3 %v4349_v18  ;;  %4512 = vmatmul.f32.gmra.mxu0 %v4349_v18  ;;  %v9880_v18 = vld [vmem:[#allocation50_spill] sm:$0xff] }
 0x9f6   :  { %4760 = vmatpush.msra.mxu1 %v9875_v53  ;;  %4780 = vmatpush.msrb.mxu2 %v9876_v42 }
 0x9f7   :  { %4801 = vmatpush.msrb.mxu3 %v9879_v30  ;;  %4821 = vmatpush.msrb.mxu0 %v9880_v18 }
 0x9f8   :  { %4761 = vmatpush.msra.mxu1 %v8826_v13  ;;  %4781 = vmatpush.msrb.mxu2 %v8828_v26 }
 0x9f9   :  { %4802 = vmatpush.msrb.mxu3 %v9882_v6  ;;  %4822 = vmatpush.msrb.mxu0 %v9883_v15 }
 0x9fa   :  { %4762 = vmatpush.msra.mxu1 %v8847_v50  ;;  %4782 = vmatpush.msrb.mxu2 %v9881_v47 }
 0x9fb   :  { %4803 = vmatpush.msrb.mxu3 %v8873_v16  ;;  %4823 = vmatpush.msrb.mxu0 %v8875_v55 }
 0x9fc   :  { %4611 = vmatmul.f32.vlgmr.msrb.gmra.mxu1 %v4593_v3  ;;  %4631 = vmatmul.f32.vlgmr.msra.gmra.mxu2 %v4593_v3 }
 0x9fd   :  { %4651 = vmatmul.f32.vlgmr.msra.gmra.mxu3 %v4593_v3  ;;  %4671 = vmatmul.f32.vlgmr.msra.gmra.mxu0 %v4593_v3  ;;  %v9884_v3 = vld [vmem:[#allocation45_spill] sm:$0xff] }
 0x9fe   :  { %4763 = vmatpush.msra.mxu1 %v8865_v57  ;;  %4783 = vmatpush.msrb.mxu2 %v8867_v1 }
 0x9ff   :  { %4804 = vmatpush.msrb.mxu3 %v8895_v38  ;;  %4824 = vmatpush.msrb.mxu0 %v8897_v49 }
 0xa00   :  { %4764 = vmatpush.msra.mxu1 %v8885_v36  ;;  %4784 = vmatpush.msrb.mxu2 %v8887_v17 }
 0xa01   :  { %4958 = vmatpush.msra.mxu3 %v8654_v56  ;;  %4978 = vmatpush.msra.mxu0 %v8660_v5 }
 0xa02   :  { %4918 = vmatpush.msrb.mxu1 %v8650_v23  ;;  %4938 = vmatpush.msra.mxu2 %v8652_v24 }
 0xa03   :  { %4959 = vmatpush.msra.mxu3 %v8670_v31  ;;  %4979 = vmatpush.msra.mxu0 %v8675_v52 }
 0xa04   :  { %4919 = vmatpush.msrb.mxu1 %v8666_v41  ;;  %4939 = vmatpush.msra.mxu2 %v8668_v0 }
 0xa05   :  { %4960 = vmatpush.msra.mxu3 %v8683_v21  ;;  %4980 = vmatpush.msra.mxu0 %v8687_v33 }
 0xa06   :  { %4920 = vmatpush.msrb.mxu1 %v8679_v40  ;;  %4940 = vmatpush.msra.mxu2 %v8681_v29 }
 0xa07   :  { %4961 = vmatpush.msra.mxu3 %v8698_v14  ;;  %4981 = vmatpush.msra.mxu0 %v8704_v20 }
 0xa08   :  { %4921 = vmatpush.msrb.mxu1 %v8694_v12  ;;  %4941 = vmatpush.msra.mxu2 %v8696_v39 }
 0xa09   :  { %4962 = vmatpush.msra.mxu3 %v8713_v48  ;;  %4982 = vmatpush.msra.mxu0 %v8719_v25 }
 0xa0a   :  { %4922 = vmatpush.msrb.mxu1 %v8709_v27  ;;  %4942 = vmatpush.msra.mxu2 %v8711_v7 }
 0xa0b   :  { %4963 = vmatpush.msra.mxu3 %v8729_v58  ;;  %4983 = vmatpush.msra.mxu0 %v8733_v9 }
 0xa0c   :  { %4923 = vmatpush.msrb.mxu1 %v8725_v46  ;;  %4943 = vmatpush.msra.mxu2 %v8727_v60 }
 0xa0d   :  { %4964 = vmatpush.msra.mxu3 %v8743_v2  ;;  %4984 = vmatpush.msra.mxu0 %v8748_v10 }
 0xa0e   :  { %4924 = vmatpush.msrb.mxu1 %v8739_v54  ;;  %4944 = vmatpush.msra.mxu2 %v8741_v61 }
 0xa0f   :  { %4965 = vmatpush.msra.mxu3 %v8759_v35  ;;  %4985 = vmatpush.msra.mxu0 %v8761_v19 }
 0xa10   :  { %4925 = vmatpush.msrb.mxu1 %v8750_v28  ;;  %4945 = vmatpush.msra.mxu2 %v8752_v45 }
 0xa11   :  { %4966 = vmatpush.msra.mxu3 %v8771_v22  ;;  %4986 = vmatpush.msra.mxu0 %v8773_v59 }
 0xa12   :  { %4926 = vmatpush.msrb.mxu1 %v8763_v34  ;;  %4946 = vmatpush.msra.mxu2 %v8769_v37 }
 0xa13   :  { %4967 = vmatpush.msra.mxu3 %v9869_v51  ;;  %4987 = vmatpush.msra.mxu0 %v9870_v63 }
 0xa14   :  { %4927 = vmatpush.msrb.mxu1 %v8778_v8  ;;  %4947 = vmatpush.msra.mxu2 %v8780_v4 }
 0xa15   :  { %4968 = vmatpush.msra.mxu3 %v9873_v62  ;;  %4988 = vmatpush.msra.mxu0 %v9874_v11 }
 0xa16   :  { %4928 = vmatpush.msrb.mxu1 %v9871_v43  ;;  %4948 = vmatpush.msra.mxu2 %v9872_v44 }
 0xa17   :  { %4969 = vmatpush.msra.mxu3 %v9884_v3  ;;  %4989 = vmatpush.msra.mxu0 %v9878_v32  ;;  %v4527_v32 = vld [vmem:[#allocation7 + $0x10] sm:$0x3] }
 0xa18   :  { %4929 = vmatpush.msrb.mxu1 %v9875_v53  ;;  %4949 = vmatpush.msra.mxu2 %v9876_v42 }
 0xa19   :  { %4970 = vmatpush.msra.mxu3 %v9879_v30  ;;  %4990 = vmatpush.msra.mxu0 %v9880_v18 }
 0xa1a   :  { %4930 = vmatpush.msrb.mxu1 %v8826_v13  ;;  %4950 = vmatpush.msra.mxu2 %v8828_v26  ;;  %v4524_v26 = vld [vmem:[#allocation7 + $0x30] sm:$0x3] }
 0xa1b   :  { %4971 = vmatpush.msra.mxu3 %v9882_v6  ;;  %4991 = vmatpush.msra.mxu0 %v9883_v15  ;;  %v9885_v6 = vld [vmem:[#allocation35_spill] sm:$0xff] }
 0xa1c   :  { %4931 = vmatpush.msrb.mxu1 %v8847_v50  ;;  %4951 = vmatpush.msra.mxu2 %v9881_v47  ;;  %v9886_v50 = vperm.slane %v9885_v6, 0 }
 0xa1d   :  { %4972 = vmatpush.msra.mxu3 %v8873_v16  ;;  %4992 = vmatpush.msra.mxu0 %v8875_v55  ;;  %v9888_v55 = vperm.slane %v9885_v6, 1 }
 0xa1e   :  { %4932 = vmatpush.msrb.mxu1 %v8865_v57  ;;  %4952 = vmatpush.msra.mxu2 %v8867_v1  ;;  %v9887_v57 = vperm.slane %v9885_v6, 3 }
 0xa1f   :  { %4973 = vmatpush.msra.mxu3 %v8895_v38  ;;  %4993 = vmatpush.msra.mxu0 %v8897_v49 }
 0xa20   :  { %4933 = vmatpush.msrb.mxu1 %v8885_v36  ;;  %4953 = vmatpush.msra.mxu2 %v8887_v17  ;;  %v9889_v17 = vperm.slane %v9885_v6, 2 }
 0xa71   :  { %v4444_v47 = vpop.f32.mrf.mxu1 }
 0xa72   :  { %v4445_v15 = vadd.f32 %v4444_v47, %v9886_v50  ;;  %v4513_v18 = vpop.f32.mrf.mxu0 }
 0xa73   :  { %v4514_v1 = vadd.f32 %v4513_v18, %v9887_v57 }
 0xa74   :  { %4520 = vst [vmem:[#allocation7 + $0x8] sm:$0xff] %v4445_v15 }
 0xa75   :  { %4523 = vst [vmem:[#allocation7 + $0x38] sm:$0xff] %v4514_v1  ;;  %v4525_v1 = vld [vmem:[#allocation7] sm:$0x3] }
 0xa77   :  { %v4467_v16 = vpop.f32.mrf.mxu2 }
 0xa78   :  { %v4468_v36 = vadd.f32 %v4467_v16, %v9888_v55  ;;  %v4490_v30 = vpop.f32.mrf.mxu3 }
 0xa79   :  { %v4491_v38 = vadd.f32 %v4490_v30, %v9889_v17  ;;  %v4612_v49 = vpop.f32.mrf.mxu1 }
 0xa7a   :  { %4521 = vst [vmem:[#allocation7 + $0x20] sm:$0xff] %v4468_v36  ;;  %v4675_v13 = vadd.f32 %v4612_v49, %v4524_v26  ;;  %v4672_v50 = vpop.f32.mrf.mxu0 }
 0xa7b   :  { %4522 = vst [vmem:[#allocation7 + $0x28] sm:$0xff] %v4491_v38  ;;  %v4678_v47 = vadd.f32 %v4672_v50, %v4527_v32  ;;  %v4526_v50 = vld [vmem:[#allocation7 + $0x18] sm:$0x3] }
 0xa7c   :  { %v6280_v3 = vmul.f32 -1.442695, %v4675_v13 }
 0xa7d   :  { %v6282_v57 = vmul.f32 -1.442695, %v4678_v47 }
 0xa7e   :  { %6462 = vpow2.f32 %v6280_v3 }
 0xa7f   :  { %6464 = vpow2.f32 %v6282_v57  ;;  %v4632_v15 = vpop.f32.mrf.mxu2 }
 0xa80   :  { %v4676_v18 = vadd.f32 %v4632_v15, %v4525_v1  ;;  %v4652_v32 = vpop.f32.mrf.mxu3 }
 0xa81   :  { %v4677_v1 = vadd.f32 %v4652_v32, %v4526_v50 }
 0xa82   :  { %v6281_v16 = vmul.f32 -1.442695, %v4676_v18 }
 0xa84   :  { %v6463_v55 = vpop.eup %6462  ;;  %6466 = vpow2.f32 %v6281_v16 }
 0xa85   :  { %v6465_v6 = vpop.eup %6464  ;;  %v4682_v17 = vadd.f32 1.0, %v6463_v55 }
 0xa86   :  { %v4721_v30 = vadd.f32 1.0, %v6465_v6 }
 0xa87   :  { %6468 = vrcp.f32 %v4682_v17  ;;  %v4694_v55 = vand.u32 2147483648, %v4682_v17  ;;  %vm4688_vm13 = vweird.f32 %v4682_v17  ;;  %v4692_v6 = vand.u32 2147483647, %v4682_v17 }
 0xa88   :  { %6470 = vrcp.f32 %v4721_v30  ;;  %vm4727_vm5 = vweird.f32 %v4721_v30 }
 0xa89   :  { %v4695_v44 = vor.u32 1.1754944e-38, %v4694_v55  ;;  %vm4693_vm1 = vcmp.eq.f32.partialorder %v4692_v6, 8.507059e+37 }
 0xa8a   :  { %v6467_v36 = vpop.eup %6466 }
 0xa8b   :  { %v4701_v26 = vadd.f32 1.0, %v6467_v36 }
 0xa8d   :  { %v6469_v49 = vpop.eup %6468  ;;  %6472 = vrcp.f32 %v4701_v26  ;;  %v4713_v36 = vand.u32 2147483648, %v4701_v26  ;;  %v4711_v11 = vand.u32 2147483647, %v4701_v26  ;;  %vm4707_vm0 = vweird.f32 %v4701_v26 }
 0xa8e   :  { %v4684_v38 = vmul.f32 %v6469_v49, %v4682_v17  ;;  %v6471_v3 = vpop.eup %6470  ;;  %vm4689_vm12 = vweird.f32 %v6469_v49  ;;  %6474 = vtanh.f32 %v4677_v1 }
 0xa8f   :  { %v4723_v16 = vmul.f32 %v6471_v3, %v4721_v30  ;;  %vm4690_vm14 = vmor %vm4688_vm13, %vm4689_vm12  ;;  %v4714_v32 = vor.u32 1.1754944e-38, %v4713_v36  ;;  %vm4712_vm3 = vcmp.eq.f32.partialorder %v4711_v11, 8.507059e+37  ;;  %vm4728_vm4 = vweird.f32 %v6471_v3 }
 0xa90   :  { %v4685_v13 = vsub.f32 1.0, %v4684_v38  ;;  %vm4729_vm6 = vmor %vm4727_vm5, %vm4728_vm4 }
 0xa91   :  { %v4724_v62 = vsub.f32 1.0, %v4723_v16 }
 0xa92   :  { %v4686_v47 = vmul.f32 %v6469_v49, %v4685_v13 }
 0xa93   :  { %v6473_v57 = vpop.eup %6472  ;;  %v4725_v63 = vmul.f32 %v6471_v3, %v4724_v62 }
 0xa94   :  { %v4703_v15 = vmul.f32 %v6473_v57, %v4701_v26  ;;  %v4687_v18 = vadd.f32 %v6469_v49, %v4686_v47  ;;  %vm4708_vm15 = vweird.f32 %v6473_v57  ;;  %v6475_v17 = vpop.eup %6474 }
 0xa95   :  { %vm4709_vm2 = vmor %vm4707_vm0, %vm4708_vm15 }
 0xa96   :  { %v4704_v42 = vsub.f32 1.0, %v4703_v15  ;;  %v4691_v38 = vsel %vm4690_vm14, %v6469_v49, %v4687_v18  ;;  %v9890_v15 = vld [vmem:[#allocation63_spill] sm:$0xff]  ;;  %v4726_v49 = vadd.f32 %v6471_v3, %v4725_v63  ;;  %v4733_v18 = vand.u32 2147483648, %v4721_v30 }
 0xa97   :  { %v4696_v50 = vsel %vm4693_vm1, %v4695_v44, %v4691_v38  ;;  %v4738_v43 = vrot.slane %v9890_v15, 6 }
 0xa98   :  { %v4705_v53 = vmul.f32 %v6473_v57, %v4704_v42  ;;  %v4741_v42 = vmul.f32 %v6475_v17, %v4696_v50  ;;  %v4730_v44 = vsel %vm4729_vm6, %v6471_v3, %v4726_v49  ;;  %v4734_v26 = vor.u32 1.1754944e-38, %v4733_v18 }
 0xa9a   :  { %v4706_v13 = vadd.f32 %v6473_v57, %v4705_v53  ;;  %v4731_v53 = vand.u32 2147483647, %v4721_v30 }
 0xa9c   :  { %v4710_v47 = vsel %vm4709_vm2, %v6473_v57, %v4706_v13  ;;  %vm4732_vm7 = vcmp.eq.f32.partialorder %v4731_v53, 8.507059e+37 }
 0xa9d   :  { %v4715_v51 = vsel %vm4712_vm3, %v4714_v32, %v4710_v47  ;;  %v4735_v57 = vsel %vm4732_vm7, %v4734_v26, %v4730_v44 }
 0xa9e   :  { %v4740_v1 = vmul.f32 %v4738_v43, %v4715_v51  ;;  %v4746_v43 = vld [vmem:[#allocation7] sm:$0xc] }
 0xaa0   :  { %v9052_v4 = vadd.f32 %v4741_v42, %v4740_v1  ;;  %v4747_v42 = vld [vmem:[#allocation7 + $0x18] sm:$0xc] }
 0xaa2   :  { %6476 = vtanh.f32 %v9052_v4 }
 0xaa8   :  { %v6477_v11 = vpop.eup %6476 }
 0xaa9   :  { %v4744_v16 = vmul.f32 %v6477_v11, %v4735_v57 }
 0xaab   :  { %4765 = vmatmul.f32.vlgmr.msra.gmra.mxu1 %v4744_v16  ;;  %4785 = vmatmul.f32.vlgmr.msrb.gmra.mxu2 %v4744_v16 }
 0xaac   :  { %4805 = vmatmul.f32.vlgmr.msrb.gmra.mxu3 %v4744_v16  ;;  %4825 = vmatmul.f32.vlgmr.msrb.gmra.mxu0 %v4744_v16 }
 0xaad   :  { %5087 = vmatpush.msra.mxu1 %v8650_v23  ;;  %5107 = vmatpush.msrb.mxu2 %v8652_v24  ;;  %v9891_v23 = vld [vmem:[#allocation36_spill] sm:$0xff]  ;;  %v9892_v24 = vld [vmem:[#allocation37_spill] sm:$0xff] }
 0xaae   :  { %5127 = vmatpush.msrb.mxu3 %v8654_v56  ;;  %5147 = vmatpush.msrb.mxu0 %v8660_v5  ;;  %v9893_v56 = vld [vmem:[#allocation38_spill] sm:$0xff]  ;;  %v9894_v5 = vld [vmem:[#allocation39_spill] sm:$0xff] }
 0xaaf   :  { %5088 = vmatpush.msra.mxu1 %v8666_v41  ;;  %5108 = vmatpush.msrb.mxu2 %v8668_v0  ;;  %v9895_v41 = vld [vmem:[#allocation40_spill] sm:$0xff]  ;;  %v9896_v0 = vld [vmem:[#allocation41_spill] sm:$0xff] }
 0xab0   :  { %5128 = vmatpush.msrb.mxu3 %v8670_v31  ;;  %5148 = vmatpush.msrb.mxu0 %v8675_v52  ;;  %v9897_v31 = vld [vmem:[#allocation42_spill] sm:$0xff]  ;;  %v9898_v52 = vld [vmem:[#allocation43_spill] sm:$0xff] }
 0xab1   :  { %5089 = vmatpush.msra.mxu1 %v8679_v40  ;;  %5109 = vmatpush.msrb.mxu2 %v8681_v29  ;;  %v9899_v40 = vld [vmem:[#allocation44_spill] sm:$0xff]  ;;  %v9900_v29 = vld [vmem:[#allocation45_spill] sm:$0xff] }
 0xab2   :  { %5129 = vmatpush.msrb.mxu3 %v8683_v21  ;;  %5149 = vmatpush.msrb.mxu0 %v8687_v33  ;;  %v9901_v21 = vld [vmem:[#allocation46_spill] sm:$0xff]  ;;  %v9902_v33 = vld [vmem:[#allocation47_spill] sm:$0xff] }
 0xab3   :  { %5090 = vmatpush.msra.mxu1 %v8694_v12  ;;  %5110 = vmatpush.msrb.mxu2 %v8696_v39  ;;  %v9903_v12 = vld [vmem:[#allocation48_spill] sm:$0xff]  ;;  %v9904_v39 = vld [vmem:[#allocation49_spill] sm:$0xff] }
 0xab4   :  { %5130 = vmatpush.msrb.mxu3 %v8698_v14  ;;  %5150 = vmatpush.msrb.mxu0 %v8704_v20  ;;  %v9905_v14 = vld [vmem:[#allocation50_spill] sm:$0xff]  ;;  %v9906_v20 = vld [vmem:[#allocation51_spill] sm:$0xff] }
 0xab5   :  { %5091 = vmatpush.msra.mxu1 %v8709_v27  ;;  %5111 = vmatpush.msrb.mxu2 %v8711_v7  ;;  %v9907_v27 = vld [vmem:[#allocation52_spill] sm:$0xff]  ;;  %v9908_v7 = vld [vmem:[#allocation53_spill] sm:$0xff] }
 0xab6   :  { %5131 = vmatpush.msrb.mxu3 %v8713_v48  ;;  %5151 = vmatpush.msrb.mxu0 %v8719_v25  ;;  %v9909_v48 = vld [vmem:[#allocation54_spill] sm:$0xff]  ;;  %v9910_v25 = vld [vmem:[#allocation55_spill] sm:$0xff] }
 0xab7   :  { %5092 = vmatpush.msra.mxu1 %v8725_v46  ;;  %5112 = vmatpush.msrb.mxu2 %v8727_v60  ;;  %v9911_v46 = vld [vmem:[#allocation56_spill] sm:$0xff]  ;;  %v9912_v60 = vld [vmem:[#allocation57_spill] sm:$0xff] }
 0xab8   :  { %5132 = vmatpush.msrb.mxu3 %v8729_v58  ;;  %5152 = vmatpush.msrb.mxu0 %v8733_v9  ;;  %v9913_v58 = vld [vmem:[#allocation58_spill] sm:$0xff]  ;;  %v9914_v9 = vld [vmem:[#allocation59_spill] sm:$0xff] }
 0xab9   :  { %5093 = vmatpush.msra.mxu1 %v8739_v54  ;;  %5113 = vmatpush.msrb.mxu2 %v8741_v61  ;;  %v9915_v54 = vld [vmem:[#allocation60_spill] sm:$0xff]  ;;  %v9916_v61 = vld [vmem:[#allocation61_spill] sm:$0xff] }
 0xaba   :  { %5133 = vmatpush.msrb.mxu3 %v8743_v2  ;;  %5153 = vmatpush.msrb.mxu0 %v8748_v10  ;;  %v9917_v2 = vld [vmem:[#allocation62_spill] sm:$0xff] }
 0xabb   :  { %5094 = vmatpush.msra.mxu1 %v8750_v28  ;;  %5114 = vmatpush.msrb.mxu2 %v8752_v45 }
 0xabc   :  { %5134 = vmatpush.msrb.mxu3 %v8759_v35  ;;  %5154 = vmatpush.msrb.mxu0 %v8761_v19  ;;  %v4745_v35 = vld [vmem:[#allocation7 + $0x30] sm:$0xc] }
 0xabd   :  { %5095 = vmatpush.msra.mxu1 %v8763_v34  ;;  %5115 = vmatpush.msrb.mxu2 %v8769_v37  ;;  %v4748_v37 = vld [vmem:[#allocation7 + $0x10] sm:$0xc] }
 0xabe   :  { %5135 = vmatpush.msrb.mxu3 %v8771_v22  ;;  %5155 = vmatpush.msrb.mxu0 %v8773_v59 }
 0xabf   :  { %5096 = vmatpush.msra.mxu1 %v8778_v8  ;;  %5116 = vmatpush.msrb.mxu2 %v9891_v23 }
 0xac0   :  { %5136 = vmatpush.msrb.mxu3 %v9892_v24  ;;  %5156 = vmatpush.msrb.mxu0 %v9893_v56 }
 0xac1   :  { %5097 = vmatpush.msra.mxu1 %v9894_v5  ;;  %5117 = vmatpush.msrb.mxu2 %v9895_v41 }
 0xac2   :  { %5137 = vmatpush.msrb.mxu3 %v9896_v0  ;;  %5157 = vmatpush.msrb.mxu0 %v9897_v31 }
 0xac3   :  { %5098 = vmatpush.msra.mxu1 %v9898_v52  ;;  %5118 = vmatpush.msrb.mxu2 %v9899_v40 }
 0xac4   :  { %5138 = vmatpush.msrb.mxu3 %v9900_v29  ;;  %5158 = vmatpush.msrb.mxu0 %v9901_v21  ;;  %v4904_v21 = vrot.slane %v9052_v4, 6 }
 0xac5   :  { %5099 = vmatpush.msra.mxu1 %v9902_v33  ;;  %5119 = vmatpush.msrb.mxu2 %v9903_v12 }
 0xac6   :  { %5139 = vmatpush.msrb.mxu3 %v9904_v39  ;;  %5159 = vmatpush.msrb.mxu0 %v9905_v14 }
 0xac7   :  { %5100 = vmatpush.msra.mxu1 %v9906_v20  ;;  %5120 = vmatpush.msrb.mxu2 %v9907_v27 }
 0xac8   :  { %5140 = vmatpush.msrb.mxu3 %v9908_v7  ;;  %5160 = vmatpush.msrb.mxu0 %v9909_v48 }
 0xac9   :  { %5101 = vmatpush.msra.mxu1 %v9910_v25  ;;  %5121 = vmatpush.msrb.mxu2 %v9911_v46 }
 0xaca   :  { %5141 = vmatpush.msrb.mxu3 %v9912_v60  ;;  %5161 = vmatpush.msrb.mxu0 %v9913_v58 }
 0xacb   :  { %5102 = vmatpush.msra.mxu1 %v9914_v9  ;;  %5122 = vmatpush.msrb.mxu2 %v9915_v54 }
 0xacc   :  { %5142 = vmatpush.msrb.mxu3 %v9916_v61  ;;  %5162 = vmatpush.msrb.mxu0 %v9917_v2 }
 0xb28   :  { %v4766_v10 = vpop.f32.mrf.mxu1 }
 0xb29   :  { %v4833_v28 = vrot.slane %v4766_v10, 6  ;;  %v4826_v45 = vpop.f32.mrf.mxu0 }
 0xb2a   :  { %v4836_v19 = vrot.slane %v4826_v45, 6  ;;  %v4911_v45 = vld [vmem:[#allocation7 + $0x30] sm:$0x30] }
 0xb2b   :  { %v4841_v34 = vadd.f32 %v4833_v28, %v4745_v35 }
 0xb2c   :  { %v4844_v22 = vadd.f32 %v4836_v19, %v4748_v37 }
 0xb2d   :  { %v6283_v59 = vmul.f32 -1.442695, %v4841_v34  ;;  %v4914_v34 = vld [vmem:[#allocation7 + $0x10] sm:$0x30] }
 0xb2e   :  { %v6285_v8 = vmul.f32 -1.442695, %v4844_v22  ;;  %v4786_v51 = vpop.f32.mrf.mxu2 }
 0xb2f   :  { %6478 = vpow2.f32 %v6283_v59  ;;  %v4834_v63 = vrot.slane %v4786_v51, 6  ;;  %v4806_v32 = vpop.f32.mrf.mxu3 }
 0xb30   :  { %6480 = vpow2.f32 %v6285_v8  ;;  %v4835_v15 = vrot.slane %v4806_v32, 6 }
 0xb31   :  { %v4842_v62 = vadd.f32 %v4834_v63, %v4746_v43  ;;  %v4912_v63 = vld [vmem:[#allocation7] sm:$0x30] }
 0xb32   :  { %v4843_v53 = vadd.f32 %v4835_v15, %v4747_v42 }
 0xb33   :  { %v6284_v30 = vmul.f32 -1.442695, %v4842_v62 }
 0xb35   :  { %v6479_v3 = vpop.eup %6478  ;;  %6482 = vpow2.f32 %v6284_v30 }
 0xb36   :  { %v6481_v55 = vpop.eup %6480  ;;  %v4848_v6 = vadd.f32 1.0, %v6479_v3 }
 0xb37   :  { %v4887_v36 = vadd.f32 1.0, %v6481_v55 }
 0xb38   :  { %6484 = vrcp.f32 %v4848_v6  ;;  %v4860_v57 = vand.u32 2147483648, %v4848_v6  ;;  %vm4854_vm9 = vweird.f32 %v4848_v6  ;;  %v4858_v23 = vand.u32 2147483647, %v4848_v6 }
 0xb39   :  { %6486 = vrcp.f32 %v4887_v36  ;;  %v4899_v25 = vand.u32 2147483648, %v4887_v36  ;;  %vm4893_vm1 = vweird.f32 %v4887_v36  ;;  %v4897_v46 = vand.u32 2147483647, %v4887_v36 }
 0xb3a   :  { %v4861_v31 = vor.u32 1.1754944e-38, %v4860_v57  ;;  %vm4859_vm13 = vcmp.eq.f32.partialorder %v4858_v23, 8.507059e+37 }
 0xb3b   :  { %v6483_v38 = vpop.eup %6482  ;;  %v4900_v58 = vor.u32 1.1754944e-38, %v4899_v25  ;;  %vm4898_vm3 = vcmp.eq.f32.partialorder %v4897_v46, 8.507059e+37 }
 0xb3c   :  { %v4867_v13 = vadd.f32 1.0, %v6483_v38 }
 0xb3e   :  { %v6485_v50 = vpop.eup %6484  ;;  %6488 = vrcp.f32 %v4867_v13  ;;  %v4879_v24 = vand.u32 2147483648, %v4867_v13  ;;  %v4877_v41 = vand.u32 2147483647, %v4867_v13  ;;  %vm4873_vm12 = vweird.f32 %v4867_v13 }
 0xb3f   :  { %v4850_v47 = vmul.f32 %v6485_v50, %v4848_v6  ;;  %v6487_v1 = vpop.eup %6486  ;;  %vm4855_vm8 = vweird.f32 %v6485_v50  ;;  %6490 = vtanh.f32 %v4843_v53 }
 0xb40   :  { %v4889_v11 = vmul.f32 %v6487_v1, %v4887_v36  ;;  %vm4856_vm10 = vmor %vm4854_vm9, %vm4855_vm8  ;;  %v4880_v40 = vor.u32 1.1754944e-38, %v4879_v24  ;;  %vm4878_vm15 = vcmp.eq.f32.partialorder %v4877_v41, 8.507059e+37  ;;  %vm4894_vm0 = vweird.f32 %v6487_v1 }
 0xb41   :  { %v4851_v17 = vsub.f32 1.0, %v4850_v47  ;;  %vm4895_vm2 = vmor %vm4893_vm1, %vm4894_vm0 }
 0xb42   :  { %v4890_v0 = vsub.f32 1.0, %v4889_v11 }
 0xb43   :  { %v4852_v49 = vmul.f32 %v6485_v50, %v4851_v17 }
 0xb44   :  { %v6489_v18 = vpop.eup %6488  ;;  %v4891_v39 = vmul.f32 %v6487_v1, %v4890_v0 }
 0xb45   :  { %v4869_v44 = vmul.f32 %v6489_v18, %v4867_v13  ;;  %v4853_v26 = vadd.f32 %v6485_v50, %v4852_v49  ;;  %vm4874_vm11 = vweird.f32 %v6489_v18  ;;  %v6491_v12 = vpop.eup %6490 }
 0xb46   :  { %vm4875_vm14 = vmor %vm4873_vm12, %vm4874_vm11  ;;  %v4892_v48 = vadd.f32 %v6487_v1, %v4891_v39 }
 0xb47   :  { %v4870_v16 = vsub.f32 1.0, %v4869_v44  ;;  %v4857_v5 = vsel %vm4856_vm10, %v6485_v50, %v4853_v26 }
 0xb48   :  { %v4862_v29 = vsel %vm4859_vm13, %v4861_v31, %v4857_v5  ;;  %v4896_v60 = vsel %vm4895_vm2, %v6487_v1, %v4892_v48  ;;  %v4913_v1 = vld [vmem:[#allocation7 + $0x18] sm:$0x30] }
 0xb49   :  { %v4871_v56 = vmul.f32 %v6489_v18, %v4870_v16  ;;  %v4907_v27 = vmul.f32 %v6491_v12, %v4862_v29  ;;  %v4901_v9 = vsel %vm4898_vm3, %v4900_v58, %v4896_v60 }
 0xb4b   :  { %v4872_v52 = vadd.f32 %v6489_v18, %v4871_v56 }
 0xb4d   :  { %v4876_v33 = vsel %vm4875_vm14, %v6489_v18, %v4872_v52 }
 0xb4e   :  { %v4881_v14 = vsel %vm4878_vm15, %v4880_v40, %v4876_v33 }
 0xb4f   :  { %v4906_v20 = vmul.f32 %v4904_v21, %v4881_v14 }
 0xb51   :  { %v9120_v7 = vadd.f32 %v4907_v27, %v4906_v20 }
 0xb53   :  { %6492 = vtanh.f32 %v9120_v7  ;;  %v5073_v29 = vrot.slane %v9120_v7, 6 }
 0xb59   :  { %v6493_v4 = vpop.eup %6492 }
 0xb5a   :  { %v4910_v54 = vmul.f32 %v6493_v4, %v4901_v9 }
 0xb5c   :  { %v4916_v61 = vrot.slane %v4910_v54, 2 }
 0xb5e   :  { %4934 = vmatmul.f32.vlgmr.msrb.gmra.mxu1 %v4916_v61  ;;  %4954 = vmatmul.f32.vlgmr.msra.gmra.mxu2 %v4916_v61 }
 0xb5f   :  { %4974 = vmatmul.f32.vlgmr.msra.gmra.mxu3 %v4916_v61  ;;  %4994 = vmatmul.f32.vlgmr.msra.gmra.mxu0 %v4916_v61 }
 0xbdb   :  { %v4935_v2 = vpop.f32.mrf.mxu1 }
 0xbdc   :  { %v5002_v10 = vrot.slane %v4935_v2, 4  ;;  %v4995_v28 = vpop.f32.mrf.mxu0 }
 0xbdd   :  { %v5005_v35 = vrot.slane %v4995_v28, 4  ;;  %v5080_v28 = vld [vmem:[#allocation7 + $0x30] sm:$0xc0] }
 0xbde   :  { %v5010_v19 = vadd.f32 %v5002_v10, %v4911_v45 }
 0xbdf   :  { %v5013_v37 = vadd.f32 %v5005_v35, %v4914_v34 }
 0xbe0   :  { %v6286_v22 = vmul.f32 -1.442695, %v5010_v19  ;;  %v5083_v19 = vld [vmem:[#allocation7 + $0x10] sm:$0xc0] }
 0xbe1   :  { %v6288_v59 = vmul.f32 -1.442695, %v5013_v37  ;;  %v4955_v8 = vpop.f32.mrf.mxu2 }
 0xbe2   :  { %6494 = vpow2.f32 %v6286_v22  ;;  %v5003_v51 = vrot.slane %v4955_v8, 4  ;;  %v4975_v13 = vpop.f32.mrf.mxu3 }
 0xbe3   :  { %6496 = vpow2.f32 %v6288_v59  ;;  %v5004_v47 = vrot.slane %v4975_v13, 4  ;;  %v9145_v13 = vld [vmem:[#allocation22 + $0x1d8] sm:$0xff] }
 0xbe4   :  { %v5011_v43 = vadd.f32 %v5003_v51, %v4912_v63  ;;  %v5081_v51 = vld [vmem:[#allocation7] sm:$0xc0] }
 0xbe5   :  { %v5012_v18 = vadd.f32 %v5004_v47, %v4913_v1  ;;  %v9151_v47 = vld [vmem:[#allocation22 + $0x1a8] sm:$0xff] }
 0xbe6   :  { %v6287_v62 = vmul.f32 -1.442695, %v5011_v43  ;;  %v9127_v43 = vld [vmem:[#allocation22 + $0x1e0] sm:$0xff] }
 0xbe7   :  { %5321 = vmatpush.msrb.mxu1 %v9127_v43 }
 0xbe8   :  { %v6495_v30 = vpop.eup %6494  ;;  %6498 = vpow2.f32 %v6287_v62  ;;  %v9129_v62 = vld [vmem:[#allocation22 + $0x1e8] sm:$0xff] }
 0xbe9   :  { %v6497_v3 = vpop.eup %6496  ;;  %v5017_v55 = vadd.f32 1.0, %v6495_v30  ;;  %v9131_v30 = vld [vmem:[#allocation22 + $0x1f0] sm:$0xff]  ;;  %5341 = vmatpush.msra.mxu2 %v9129_v62 }
 0xbea   :  { %v5056_v6 = vadd.f32 1.0, %v6497_v3  ;;  %5361 = vmatpush.msra.mxu3 %v9131_v30 }
 0xbeb   :  { %6500 = vrcp.f32 %v5017_v55  ;;  %v5029_v11 = vand.u32 2147483648, %v5017_v55  ;;  %vm5023_vm5 = vweird.f32 %v5017_v55  ;;  %v5027_v16 = vand.u32 2147483647, %v5017_v55 }
 0xbec   :  { %6502 = vrcp.f32 %v5056_v6  ;;  %v5068_v25 = vand.u32 2147483648, %v5056_v6  ;;  %vm5062_vm13 = vweird.f32 %v5056_v6  ;;  %v5066_v46 = vand.u32 2147483647, %v5056_v6 }
 0xbed   :  { %v5030_v0 = vor.u32 1.1754944e-38, %v5029_v11  ;;  %vm5028_vm9 = vcmp.eq.f32.partialorder %v5027_v16, 8.507059e+37  ;;  %v9176_v11 = vld [vmem:[#allocation22 + $0x168] sm:$0xff]  ;;  %v9182_v16 = vld [vmem:[#allocation22 + $0x170] sm:$0xff] }
 0xbee   :  { %v6499_v36 = vpop.eup %6498  ;;  %v5069_v58 = vor.u32 1.1754944e-38, %v5068_v25  ;;  %vm5067_vm15 = vcmp.eq.f32.partialorder %v5066_v46, 8.507059e+37  ;;  %v9228_v25 = vld [vmem:[#allocation22 + $0x118] sm:$0xff] }
 0xbef   :  { %v5036_v38 = vadd.f32 1.0, %v6499_v36  ;;  %v9139_v36 = vld [vmem:[#allocation22 + $0x1c8] sm:$0xff] }
 0xbf0   :  { %5342 = vmatpush.msra.mxu2 %v9139_v36 }
 0xbf1   :  { %v6501_v32 = vpop.eup %6500  ;;  %6504 = vrcp.f32 %v5036_v38  ;;  %v5048_v23 = vand.u32 2147483648, %v5036_v38  ;;  %v5046_v5 = vand.u32 2147483647, %v5036_v38  ;;  %vm5042_vm8 = vweird.f32 %v5036_v38 }
 0xbf2   :  { %v5019_v50 = vmul.f32 %v6501_v32, %v5017_v55  ;;  %v6503_v17 = vpop.eup %6502  ;;  %vm5024_vm4 = vweird.f32 %v6501_v32  ;;  %6506 = vtanh.f32 %v5012_v18  ;;  %v9135_v55 = vld [vmem:[#allocation22 + $0x1f8] sm:$0xff]  ;;  %v9163_v18 = vld [vmem:[#allocation22 + $0x188] sm:$0xff]  ;;  %5343 = vmatpush.msra.mxu2 %v9151_v47 }
 0xbf3   :  { %v5058_v26 = vmul.f32 %v6503_v17, %v5056_v6  ;;  %vm5025_vm6 = vmor %vm5023_vm5, %vm5024_vm4  ;;  %v5049_v52 = vor.u32 1.1754944e-38, %v5048_v23  ;;  %vm5047_vm11 = vcmp.eq.f32.partialorder %v5046_v5, 8.507059e+37  ;;  %vm5063_vm12 = vweird.f32 %v6503_v17  ;;  %v9137_v6 = vld [vmem:[#allocation22 + $0x1c0] sm:$0xff]  ;;  %5381 = vmatpush.msra.mxu0 %v9135_v55  ;;  %v9184_v23 = vld [vmem:[#allocation22 + $0x178] sm:$0xff] }
 0xbf4   :  { %v5020_v15 = vsub.f32 1.0, %v5019_v50  ;;  %vm5064_vm14 = vmor %vm5062_vm13, %vm5063_vm12  ;;  %5322 = vmatpush.msrb.mxu1 %v9137_v6  ;;  %5344 = vmatpush.msra.mxu2 %v9163_v18 }
 0xbf5   :  { %v5059_v41 = vsub.f32 1.0, %v5058_v26  ;;  %5382 = vmatpush.msra.mxu0 %v9145_v13  ;;  %v9174_v26 = vld [vmem:[#allocation22 + $0x160] sm:$0xff] }
 0xbf6   :  { %v5021_v42 = vmul.f32 %v6501_v32, %v5020_v15  ;;  %v9153_v15 = vld [vmem:[#allocation22 + $0x1b0] sm:$0xff]  ;;  %5345 = vmatpush.msra.mxu2 %v9176_v11 }
 0xbf7   :  { %v6505_v49 = vpop.eup %6504  ;;  %v5060_v12 = vmul.f32 %v6503_v17, %v5059_v41  ;;  %v9194_v41 = vld [vmem:[#allocation22 + $0x150] sm:$0xff] }
 0xbf8   :  { %v5038_v53 = vmul.f32 %v6505_v49, %v5036_v38  ;;  %v5022_v44 = vadd.f32 %v6501_v32, %v5021_v42  ;;  %vm5043_vm7 = vweird.f32 %v6505_v49  ;;  %v6507_v33 = vpop.eup %6506  ;;  %v9143_v38 = vld [vmem:[#allocation22 + $0x1d0] sm:$0xff] }
 0xbf9   :  { %vm5044_vm10 = vmor %vm5042_vm8, %vm5043_vm7  ;;  %v5061_v48 = vadd.f32 %v6503_v17, %v5060_v12  ;;  %5362 = vmatpush.msra.mxu3 %v9143_v38 }
 0xbfa   :  { %v5039_v57 = vsub.f32 1.0, %v5038_v53  ;;  %v5026_v56 = vsel %vm5025_vm6, %v6501_v32, %v5022_v44  ;;  %v9147_v32 = vld [vmem:[#allocation22 + $0x1a0] sm:$0xff]  ;;  %v9167_v53 = vld [vmem:[#allocation22 + $0x190] sm:$0xff]  ;;  %v9169_v44 = vld [vmem:[#allocation22 + $0x198] sm:$0xff] }
 0xbfb   :  { %v5031_v40 = vsel %vm5028_vm9, %v5030_v0, %v5026_v56  ;;  %v5065_v60 = vsel %vm5064_vm14, %v6503_v17, %v5061_v48  ;;  %v9155_v17 = vld [vmem:[#allocation22 + $0x1b8] sm:$0xff]  ;;  %5323 = vmatpush.msrb.mxu1 %v9147_v32  ;;  %5363 = vmatpush.msra.mxu3 %v9153_v15  ;;  %v9190_v56 = vld [vmem:[#allocation22 + $0x148] sm:$0xff]  ;;  %v9226_v48 = vld [vmem:[#allocation22 + $0x110] sm:$0xff] }
 0xbfc   :  { %v5040_v24 = vmul.f32 %v6505_v49, %v5039_v57  ;;  %v5076_v20 = vmul.f32 %v6507_v33, %v5031_v40  ;;  %v5070_v4 = vsel %vm5067_vm15, %v5069_v58, %v5065_v60  ;;  %5383 = vmatpush.msra.mxu0 %v9155_v17  ;;  %v9196_v0 = vld [vmem:[#allocation22 + $0x158] sm:$0xff]  ;;  %v9204_v40 = vld [vmem:[#allocation22 + $0x128] sm:$0xff]  ;;  %5346 = vmatpush.msra.mxu2 %v9190_v56  ;;  %v9232_v60 = vld [vmem:[#allocation22 + $0xe0] sm:$0xff] }
 0xbfd   :  { %5364 = vmatpush.msra.mxu3 %v9167_v53  ;;  %v9211_v33 = vld [vmem:[#allocation22 + $0x138] sm:$0xff]  ;;  %v9234_v58 = vld [vmem:[#allocation22 + $0xe8] sm:$0xff] }
 0xbfe   :  { %v5041_v31 = vadd.f32 %v6505_v49, %v5040_v24  ;;  %5384 = vmatpush.msra.mxu0 %v9169_v44  ;;  %v9188_v24 = vld [vmem:[#allocation22 + $0x140] sm:$0xff]  ;;  %5347 = vmatpush.msra.mxu2 %v9204_v40 }
 0xbff   :  { %5365 = vmatpush.msra.mxu3 %v9182_v16 }
 0xc00   :  { %v5045_v21 = vsel %vm5044_vm10, %v6505_v49, %v5041_v31  ;;  %v9161_v49 = vld [vmem:[#allocation22 + $0x180] sm:$0xff]  ;;  %5385 = vmatpush.msra.mxu0 %v9184_v23 }
 0xc01   :  { %v5050_v39 = vsel %vm5047_vm11, %v5049_v52, %v5045_v21  ;;  %5324 = vmatpush.msrb.mxu1 %v9161_v49  ;;  %v9202_v52 = vld [vmem:[#allocation22 + $0x120] sm:$0xff]  ;;  %v9209_v21 = vld [vmem:[#allocation22 + $0x130] sm:$0xff]  ;;  %5366 = vmatpush.msra.mxu3 %v9194_v41 }
 0xc02   :  { %v5075_v14 = vmul.f32 %v5073_v29, %v5050_v39  ;;  %5386 = vmatpush.msra.mxu0 %v9196_v0  ;;  %v9218_v39 = vld [vmem:[#allocation22 + $0x100] sm:$0xff] }
 0xc03   :  { %5325 = vmatpush.msrb.mxu1 %v9174_v26  ;;  %5367 = vmatpush.msra.mxu3 %v9209_v21 }
 0xc04   :  { %v9124_v27 = vadd.f32 %v5076_v20, %v5075_v14  ;;  %v9220_v14 = vld [vmem:[#allocation22 + $0x108] sm:$0xff]  ;;  %5387 = vmatpush.msra.mxu0 %v9211_v33 }
 0xc05   :  { %5326 = vmatpush.msrb.mxu1 %v9188_v24  ;;  %5348 = vmatpush.msra.mxu2 %v9220_v14 }
 0xc06   :  { %6508 = vtanh.f32 %v9124_v27  ;;  %5368 = vmatpush.msra.mxu3 %v9226_v48  ;;  %5388 = vmatpush.msra.mxu0 %v9228_v25 }
 0xc07   :  { %5327 = vmatpush.msrb.mxu1 %v9202_v52  ;;  %5349 = vmatpush.msra.mxu2 %v9234_v58 }
 0xc09   :  { %5328 = vmatpush.msrb.mxu1 %v9218_v39 }
 0xc0b   :  { %5329 = vmatpush.msrb.mxu1 %v9232_v60 }
 0xc0c   :  { %v6509_v7 = vpop.eup %6508 }
 0xc0d   :  { %v5079_v9 = vmul.f32 %v6509_v7, %v5070_v4  ;;  %v9238_v4 = vld [vmem:[#allocation22 + $0xf0] sm:$0xff] }
 0xc0e   :  { %5369 = vmatpush.msra.mxu3 %v9238_v4 }
 0xc0f   :  { %v5085_v54 = vrot.slane %v5079_v9, 4  ;;  %v9240_v9 = vld [vmem:[#allocation22 + $0xf8] sm:$0xff] }
 0xc10   :  { %5389 = vmatpush.msra.mxu0 %v9240_v9 }
 0xc11   :  { %5103 = vmatmul.f32.vlgmr.msra.gmra.mxu1 %v5085_v54  ;;  %5123 = vmatmul.f32.vlgmr.msrb.gmra.mxu2 %v5085_v54 }
 0xc12   :  { %5143 = vmatmul.f32.vlgmr.msrb.gmra.mxu3 %v5085_v54  ;;  %5163 = vmatmul.f32.vlgmr.msrb.gmra.mxu0 %v5085_v54  ;;  %v9244_v54 = vld [vmem:[#allocation22 + $0xc0] sm:$0xff] }
 0xc13   :  { %5330 = vmatpush.msrb.mxu1 %v9244_v54 }
 0xc8e   :  { %v5104_v61 = vpop.f32.mrf.mxu1 }
 0xc8f   :  { %v5171_v2 = vrot.slane %v5104_v61, 2  ;;  %v5164_v10 = vpop.f32.mrf.mxu0  ;;  %v9246_v61 = vld [vmem:[#allocation22 + $0xc8] sm:$0xff] }
 0xc90   :  { %v5174_v45 = vrot.slane %v5164_v10, 2  ;;  %9918 = vst [vmem:[#allocation35_spill] sm:$0xff] %v9246_v61  ;;  %v5082_v10 = vld [vmem:[#allocation7 + $0x18] sm:$0xc0]  ;;  %5350 = vmatpush.msra.mxu2 %v9246_v61 }
 0xc91   :  { %v5179_v35 = vadd.f32 %v5171_v2, %v5080_v28 }
 0xc92   :  { %v5182_v34 = vadd.f32 %v5174_v45, %v5083_v19  ;;  %v9253_v45 = vld [vmem:[#allocation22 + $0xd0] sm:$0xff] }
 0xc93   :  { %v6289_v37 = vmul.f32 -1.442695, %v5179_v35  ;;  %9919 = vst [vmem:[#allocation63_spill] sm:$0xff] %v9253_v45  ;;  %v9255_v35 = vld [vmem:[#allocation22 + $0xd8] sm:$0xff]  ;;  %5370 = vmatpush.msra.mxu3 %v9253_v45 }
 0xc94   :  { %v6291_v22 = vmul.f32 -1.442695, %v5182_v34  ;;  %v5124_v59 = vpop.f32.mrf.mxu2  ;;  %9920 = vst [vmem:[#allocation36_spill] sm:$0xff] %v9255_v35  ;;  %5390 = vmatpush.msra.mxu0 %v9255_v35 }
 0xc95   :  { %6510 = vpow2.f32 %v6289_v37  ;;  %v5172_v8 = vrot.slane %v5124_v59, 2  ;;  %v5144_v29 = vpop.f32.mrf.mxu3  ;;  %v9261_v37 = vld [vmem:[#allocation22 + $0xa0] sm:$0xff] }
 0xc96   :  { %6512 = vpow2.f32 %v6291_v22  ;;  %v5173_v46 = vrot.slane %v5144_v29, 2  ;;  %9921 = vst [vmem:[#allocation37_spill] sm:$0xff] %v9261_v37  ;;  %v9263_v22 = vld [vmem:[#allocation22 + $0xa8] sm:$0xff]  ;;  %5331 = vmatpush.msrb.mxu1 %v9261_v37 }
 0xc97   :  { %v5180_v63 = vadd.f32 %v5172_v8, %v5081_v51  ;;  %9922 = vst [vmem:[#allocation38_spill] sm:$0xff] %v9263_v22  ;;  %v9271_v51 = vld [vmem:[#allocation22 + $0xb0] sm:$0xff]  ;;  %5351 = vmatpush.msra.mxu2 %v9263_v22 }
 0xc98   :  { %v5181_v34 = vadd.f32 %v5173_v46, %v5082_v10  ;;  %9923 = vst [vmem:[#allocation39_spill] sm:$0xff] %v9271_v51  ;;  %v9288_v46 = vld [vmem:[#allocation22 + $0x90] sm:$0xff]  ;;  %5371 = vmatpush.msra.mxu3 %v9271_v51 }
 0xc99   :  { %v6290_v3 = vmul.f32 -1.442695, %v5180_v63  ;;  %v9273_v63 = vld [vmem:[#allocation22 + $0xb8] sm:$0xff]  ;;  %9927 = vst [vmem:[#allocation43_spill] sm:$0xff] %v9288_v46 }
 0xc9a   :  { %9924 = vst [vmem:[#allocation40_spill] sm:$0xff] %v9273_v63  ;;  %5391 = vmatpush.msra.mxu0 %v9273_v63  ;;  %v9315_v63 = vld [vmem:[#allocation22 + $0x78] sm:$0xff]  ;;  %5372 = vmatpush.msra.mxu3 %v9288_v46 }
 0xc9b   :  { %v6511_v50 = vpop.eup %6510  ;;  %6514 = vpow2.f32 %v6290_v3  ;;  %9934 = vst [vmem:[#allocation48_spill] sm:$0xff] %v9315_v63 }
 0xc9c   :  { %v6513_v1 = vpop.eup %6512  ;;  %v9157_v42 = vadd.f32 1.0, %v6511_v50 }
 0xc9d   :  { %v9178_v57 = vadd.f32 1.0, %v6513_v1  ;;  %v9280_v1 = vld [vmem:[#allocation22 + $0x80] sm:$0xff] }
 0xc9e   :  { %6516 = vrcp.f32 %v9157_v42  ;;  %v5198_v50 = vand.u32 2147483648, %v9157_v42  ;;  %9925 = vst [vmem:[#allocation41_spill] sm:$0xff] %v9280_v1  ;;  %vm5192_vm1 = vweird.f32 %v9157_v42  ;;  %5332 = vmatpush.msrb.mxu1 %v9280_v1 }
 0xc9f   :  { %6518 = vrcp.f32 %v9178_v57  ;;  %vm5231_vm9 = vweird.f32 %v9178_v57 }
 0xca0   :  { %v5199_v45 = vor.u32 1.1754944e-38, %v5198_v50  ;;  %v9362_v50 = vld [vmem:[#allocation22 + $0x10] sm:$0xff] }
 0xca1   :  { %v6515_v5 = vpop.eup %6514  ;;  %9947 = vst [vmem:[#allocation59_spill] sm:$0xff] %v9362_v50 }
 0xca2   :  { %v9198_v31 = vadd.f32 1.0, %v6515_v5  ;;  %v9282_v5 = vld [vmem:[#allocation22 + $0x88] sm:$0xff] }
 0xca3   :  { %9926 = vst [vmem:[#allocation42_spill] sm:$0xff] %v9282_v5  ;;  %5352 = vmatpush.msra.mxu2 %v9282_v5 }
 0xca4   :  { %v9213_v12 = vpop.eup %6516  ;;  %6520 = vrcp.f32 %v9198_v31  ;;  %v5217_v10 = vand.u32 2147483648, %v9198_v31  ;;  %v5215_v35 = vand.u32 2147483647, %v9198_v31  ;;  %vm5211_vm4 = vweird.f32 %v9198_v31 }
 0xca5   :  { %v5188_v20 = vmul.f32 %v9213_v12, %v9157_v42  ;;  %v9248_v2 = vpop.eup %6518  ;;  %vm5193_vm0 = vweird.f32 %v9213_v12  ;;  %6522 = vtanh.f32 %v5181_v34  ;;  %v9313_v34 = vld [vmem:[#allocation22 + $0x70] sm:$0xff] }
 0xca6   :  { %v5227_v3 = vmul.f32 %v9248_v2, %v9178_v57  ;;  %vm9295_vm2 = vmor %vm5192_vm1, %vm5193_vm0  ;;  %9933 = vst [vmem:[#allocation47_spill] sm:$0xff] %v9313_v34  ;;  %5373 = vmatpush.msra.mxu3 %v9313_v34  ;;  %vm5216_vm7 = vcmp.eq.f32.partialorder %v5215_v35, 8.507059e+37  ;;  %vm5232_vm8 = vweird.f32 %v9248_v2 }
 0xca7   :  { %v5189_v7 = vsub.f32 1.0, %v5188_v20  ;;  %v5196_v20 = vand.u32 2147483647, %v9157_v42  ;;  %v9301_v42 = vld [vmem:[#allocation22 + $0x60] sm:$0xff]  ;;  %vm5233_vm10 = vmor %vm5231_vm9, %vm5232_vm8 }
 0xca8   :  { %9931 = vst [vmem:[#allocation45_spill] sm:$0xff] %v9301_v42  ;;  %v5228_v51 = vsub.f32 1.0, %v5227_v3  ;;  %5333 = vmatpush.msrb.mxu1 %v9301_v42  ;;  %v9329_v3 = vld [vmem:[#allocation22 + $0x58] sm:$0xff] }
 0xca9   :  { %v5190_v28 = vmul.f32 %v9213_v12, %v5189_v7  ;;  %v9290_v7 = vld [vmem:[#allocation22 + $0x98] sm:$0xff]  ;;  %vm5197_vm5 = vcmp.eq.f32.partialorder %v5196_v20, 8.507059e+37  ;;  %9938 = vst [vmem:[#allocation52_spill] sm:$0xff] %v9329_v3  ;;  %v5242_v20 = vrot.slane %v9124_v27, 6  ;;  %v9356_v27 = vld [vmem:[#allocation22] sm:$0xff] }
 0xcaa   :  { %v9257_v19 = vpop.eup %6520  ;;  %9928 = vst [vmem:[#allocation44_spill] sm:$0xff] %v9290_v7  ;;  %5392 = vmatpush.msra.mxu0 %v9290_v7  ;;  %v5218_v7 = vor.u32 1.1754944e-38, %v5217_v10 }
 0xcab   :  { %v5207_v59 = vmul.f32 %v9257_v19, %v9198_v31  ;;  %v5191_v8 = vadd.f32 %v9213_v12, %v5190_v28  ;;  %vm5212_vm3 = vweird.f32 %v9257_v19  ;;  %v9321_v28 = vld [vmem:[#allocation22 + $0x48] sm:$0xff]  ;;  %v9339_v31 = vld [vmem:[#allocation22 + $0x20] sm:$0xff]  ;;  %v6523_v10 = vpop.eup %6522  ;;  %9945 = vst [vmem:[#allocation57_spill] sm:$0xff] %v9356_v27 }
 0xcac   :  { %9936 = vst [vmem:[#allocation50_spill] sm:$0xff] %v9321_v28  ;;  %vm9333_vm6 = vmor %vm5211_vm4, %vm5212_vm3  ;;  %5393 = vmatpush.msra.mxu0 %v9315_v63  ;;  %v5229_v63 = vmul.f32 %v9248_v2, %v5228_v51 }
 0xcad   :  { %v5208_v29 = vsub.f32 1.0, %v5207_v59  ;;  %v9303_v59 = vld [vmem:[#allocation22 + $0x68] sm:$0xff]  ;;  %v5195_v37 = vsel %vm9295_vm2, %v9213_v12, %v5191_v8  ;;  %v9327_v8 = vld [vmem:[#allocation22 + $0x50] sm:$0xff]  ;;  %9941 = vst [vmem:[#allocation53_spill] sm:$0xff] %v9339_v31 }
 0xcae   :  { %9932 = vst [vmem:[#allocation46_spill] sm:$0xff] %v9303_v59  ;;  %5353 = vmatpush.msra.mxu2 %v9303_v59  ;;  %v5200_v46 = vsel %vm5197_vm5, %v5199_v45, %v5195_v37  ;;  %v9349_v45 = vld [vmem:[#allocation22 + $0x30] sm:$0xff]  ;;  %v9351_v37 = vld [vmem:[#allocation22 + $0x38] sm:$0xff]  ;;  %5374 = vmatpush.msra.mxu3 %v9327_v8 }
 0xcaf   :  { %v5209_v22 = vmul.f32 %v9257_v19, %v5208_v29  ;;  %v9319_v29 = vld [vmem:[#allocation22 + $0x40] sm:$0xff]  ;;  %9937 = vst [vmem:[#allocation51_spill] sm:$0xff] %v9327_v8  ;;  %5394 = vmatpush.msra.mxu0 %v9329_v3 }
 0xcb0   :  { %9935 = vst [vmem:[#allocation49_spill] sm:$0xff] %v9319_v29  ;;  %5334 = vmatpush.msrb.mxu1 %v9319_v29  ;;  %5354 = vmatpush.msra.mxu2 %v9321_v28  ;;  %v9364_v28 = vld [vmem:[#allocation22 + $0x18] sm:$0xff] }
 0xcb1   :  { %v5210_v12 = vadd.f32 %v9257_v19, %v5209_v22  ;;  %v9341_v22 = vld [vmem:[#allocation22 + $0x28] sm:$0xff]  ;;  %9943 = vst [vmem:[#allocation55_spill] sm:$0xff] %v9349_v45  ;;  %5375 = vmatpush.msra.mxu3 %v9349_v45  ;;  %5395 = vmatpush.msra.mxu0 %v9351_v37 }
 0xcb2   :  { %9942 = vst [vmem:[#allocation54_spill] sm:$0xff] %v9341_v22  ;;  %5335 = vmatpush.msrb.mxu1 %v9339_v31  ;;  %5355 = vmatpush.msra.mxu2 %v9341_v22 }
 0xcb3   :  { %v5214_v59 = vsel %vm9333_vm6, %v9257_v19, %v5210_v12  ;;  %9944 = vst [vmem:[#allocation56_spill] sm:$0xff] %v9351_v37  ;;  %v9358_v19 = vld [vmem:[#allocation22 + $0x8] sm:$0xff]  ;;  %v5245_v12 = vmul.f32 %v6523_v10, %v5200_v46  ;;  %5376 = vmatpush.msra.mxu3 %v9362_v50  ;;  %5396 = vmatpush.msra.mxu0 %v9364_v28 }
 0xcb4   :  { %v5219_v34 = vsel %vm5216_vm7, %v5218_v7, %v5214_v59  ;;  %9946 = vst [vmem:[#allocation58_spill] sm:$0xff] %v9358_v19  ;;  %5336 = vmatpush.msrb.mxu1 %v9356_v27  ;;  %5356 = vmatpush.msra.mxu2 %v9358_v19  ;;  %v5230_v46 = vadd.f32 %v9248_v2, %v5229_v63  ;;  %v5237_v7 = vand.u32 2147483648, %v9178_v57  ;;  %v5235_v59 = vand.u32 2147483647, %v9178_v57 }
 0xcb5   :  { %v5244_v35 = vmul.f32 %v5242_v20, %v5219_v34  ;;  %9948 = vst [vmem:[#allocation60_spill] sm:$0xff] %v9364_v28  ;;  %5515 = vmatpush.msrb.mxu3 %v9131_v30  ;;  %5535 = vmatpush.msrb.mxu0 %v9135_v55 }
 0xcb6   :  { %5475 = vmatpush.msra.mxu1 %v9127_v43  ;;  %5495 = vmatpush.msrb.mxu2 %v9129_v62  ;;  %v5234_v63 = vsel %vm5233_vm10, %v9248_v2, %v5230_v46  ;;  %v5238_v34 = vor.u32 1.1754944e-38, %v5237_v7  ;;  %vm5236_vm11 = vcmp.eq.f32.partialorder %v5235_v59, 8.507059e+37  ;;  %v9952_v46 = vld [vmem:[#allocation37_spill] sm:$0xff]  ;;  %v9953_v7 = vld [vmem:[#allocation38_spill] sm:$0xff]  ;;  %v9954_v59 = vld [vmem:[#allocation39_spill] sm:$0xff] }
 0xcb7   :  { %v9368_v51 = vadd.f32 %v5245_v12, %v5244_v35  ;;  %5516 = vmatpush.msrb.mxu3 %v9143_v38  ;;  %5536 = vmatpush.msrb.mxu0 %v9145_v13  ;;  %v9950_v35 = vld [vmem:[#allocation63_spill] sm:$0xff]  ;;  %v9951_v12 = vld [vmem:[#allocation36_spill] sm:$0xff] }
 0xcb8   :  { %5476 = vmatpush.msra.mxu1 %v9137_v6  ;;  %5496 = vmatpush.msrb.mxu2 %v9139_v36  ;;  %v5239_v20 = vsel %vm5236_vm11, %v5238_v34, %v5234_v63  ;;  %v9955_v63 = vld [vmem:[#allocation40_spill] sm:$0xff]  ;;  %v9956_v34 = vld [vmem:[#allocation43_spill] sm:$0xff] }
 0xcb9   :  { %9949 = vst [vmem:[#allocation61_spill] sm:$0xff] %v9368_v51  ;;  %6524 = vtanh.f32 %v9368_v51  ;;  %5517 = vmatpush.msrb.mxu3 %v9153_v15  ;;  %5537 = vmatpush.msrb.mxu0 %v9155_v17  ;;  %v9961_v51 = vld [vmem:[#allocation50_spill] sm:$0xff] }
 0xcba   :  { %5477 = vmatpush.msra.mxu1 %v9147_v32  ;;  %5497 = vmatpush.msrb.mxu2 %v9151_v47 }
 0xcbb   :  { %5518 = vmatpush.msrb.mxu3 %v9167_v53  ;;  %5538 = vmatpush.msrb.mxu0 %v9169_v44 }
 0xcbc   :  { %5478 = vmatpush.msra.mxu1 %v9161_v49  ;;  %5498 = vmatpush.msrb.mxu2 %v9163_v18 }
 0xcbd   :  { %5519 = vmatpush.msrb.mxu3 %v9182_v16  ;;  %5539 = vmatpush.msrb.mxu0 %v9184_v23 }
 0xcbe   :  { %5479 = vmatpush.msra.mxu1 %v9174_v26  ;;  %5499 = vmatpush.msrb.mxu2 %v9176_v11 }
 0xcbf   :  { %v6525_v57 = vpop.eup %6524  ;;  %5520 = vmatpush.msrb.mxu3 %v9194_v41  ;;  %5540 = vmatpush.msrb.mxu0 %v9196_v0 }
 0xcc0   :  { %v5248_v2 = vmul.f32 %v6525_v57, %v5239_v20  ;;  %5480 = vmatpush.msra.mxu1 %v9188_v24  ;;  %5500 = vmatpush.msrb.mxu2 %v9190_v56  ;;  %v9957_v57 = vld [vmem:[#allocation44_spill] sm:$0xff]  ;;  %v9958_v20 = vld [vmem:[#allocation46_spill] sm:$0xff] }
 0xcc1   :  { %5521 = vmatpush.msrb.mxu3 %v9209_v21  ;;  %5541 = vmatpush.msrb.mxu0 %v9211_v33 }
 0xcc2   :  { %5249 = vst [vmem:[#allocation9 - $0x7] sm:$0x80] %v5248_v2  ;;  %v5319_v10 = vrot.slane %v5248_v2, 6  ;;  %5481 = vmatpush.msra.mxu1 %v9202_v52  ;;  %5501 = vmatpush.msrb.mxu2 %v9204_v40  ;;  %v9959_v2 = vld [vmem:[#allocation47_spill] sm:$0xff] }
 0xcc3   :  { %5522 = vmatpush.msrb.mxu3 %v9226_v48  ;;  %5542 = vmatpush.msrb.mxu0 %v9228_v25 }
 0xcc4   :  { %5337 = vmatmul.f32.vlgmr.msrb.gmra.mxu1 %v5319_v10  ;;  %5357 = vmatmul.f32.vlgmr.msra.gmra.mxu2 %v5319_v10 }
 0xcc5   :  { %5377 = vmatmul.f32.vlgmr.msra.gmra.mxu3 %v5319_v10  ;;  %5397 = vmatmul.f32.vlgmr.msra.gmra.mxu0 %v5319_v10  ;;  %v9960_v10 = vld [vmem:[#allocation48_spill] sm:$0xff] }
 0xcc6   :  { %5482 = vmatpush.msra.mxu1 %v9218_v39  ;;  %5502 = vmatpush.msrb.mxu2 %v9220_v14 }
 0xcc7   :  { %5523 = vmatpush.msrb.mxu3 %v9238_v4  ;;  %5543 = vmatpush.msrb.mxu0 %v9240_v9 }
 0xcc8   :  { %5483 = vmatpush.msra.mxu1 %v9232_v60  ;;  %5503 = vmatpush.msrb.mxu2 %v9234_v58 }
 0xcc9   :  { %5524 = vmatpush.msrb.mxu3 %v9950_v35  ;;  %5544 = vmatpush.msrb.mxu0 %v9951_v12 }
 0xcca   :  { %5484 = vmatpush.msra.mxu1 %v9244_v54  ;;  %5504 = vmatpush.msrb.mxu2 %v9246_v61 }
 0xccb   :  { %5525 = vmatpush.msrb.mxu3 %v9954_v59  ;;  %5545 = vmatpush.msrb.mxu0 %v9955_v63 }
 0xccc   :  { %5485 = vmatpush.msra.mxu1 %v9952_v46  ;;  %5505 = vmatpush.msrb.mxu2 %v9953_v7 }
 0xccd   :  { %5526 = vmatpush.msrb.mxu3 %v9956_v34  ;;  %5546 = vmatpush.msrb.mxu0 %v9957_v57 }
 0xcce   :  { %5486 = vmatpush.msra.mxu1 %v9280_v1  ;;  %5506 = vmatpush.msrb.mxu2 %v9282_v5 }
 0xccf   :  { %5527 = vmatpush.msrb.mxu3 %v9959_v2  ;;  %5547 = vmatpush.msrb.mxu0 %v9960_v10 }
 0xcd0   :  { %5487 = vmatpush.msra.mxu1 %v9301_v42  ;;  %5507 = vmatpush.msrb.mxu2 %v9958_v20 }
 0xcd1   :  { %5528 = vmatpush.msrb.mxu3 %v9327_v8  ;;  %5548 = vmatpush.msrb.mxu0 %v9329_v3 }
 0xcd2   :  { %5488 = vmatpush.msra.mxu1 %v9319_v29  ;;  %5508 = vmatpush.msrb.mxu2 %v9961_v51 }
 0xcd3   :  { %5529 = vmatpush.msrb.mxu3 %v9349_v45  ;;  %5549 = vmatpush.msrb.mxu0 %v9351_v37 }
 0xcd4   :  { %5489 = vmatpush.msra.mxu1 %v9339_v31  ;;  %5509 = vmatpush.msrb.mxu2 %v9341_v22 }
 0xcd5   :  { %5530 = vmatpush.msrb.mxu3 %v9362_v50  ;;  %5550 = vmatpush.msrb.mxu0 %v9364_v28 }
 0xcd6   :  { %5490 = vmatpush.msra.mxu1 %v9356_v27  ;;  %5510 = vmatpush.msrb.mxu2 %v9358_v19 }
 0xcd7   :  { %5684 = vmatpush.msra.mxu3 %v9131_v30  ;;  %5704 = vmatpush.msra.mxu0 %v9135_v55 }
 0xcd8   :  { %5644 = vmatpush.msrb.mxu1 %v9127_v43  ;;  %5664 = vmatpush.msra.mxu2 %v9129_v62 }
 0xcd9   :  { %5685 = vmatpush.msra.mxu3 %v9143_v38  ;;  %5705 = vmatpush.msra.mxu0 %v9145_v13 }
 0xcda   :  { %5645 = vmatpush.msrb.mxu1 %v9137_v6  ;;  %5665 = vmatpush.msra.mxu2 %v9139_v36 }
 0xcdb   :  { %5686 = vmatpush.msra.mxu3 %v9153_v15  ;;  %5706 = vmatpush.msra.mxu0 %v9155_v17 }
 0xcdc   :  { %5646 = vmatpush.msrb.mxu1 %v9147_v32  ;;  %5666 = vmatpush.msra.mxu2 %v9151_v47 }
 0xcdd   :  { %5687 = vmatpush.msra.mxu3 %v9167_v53  ;;  %5707 = vmatpush.msra.mxu0 %v9169_v44 }
 0xcde   :  { %5647 = vmatpush.msrb.mxu1 %v9161_v49  ;;  %5667 = vmatpush.msra.mxu2 %v9163_v18 }
 0xcdf   :  { %5688 = vmatpush.msra.mxu3 %v9182_v16  ;;  %5708 = vmatpush.msra.mxu0 %v9184_v23 }
 0xce0   :  { %5648 = vmatpush.msrb.mxu1 %v9174_v26  ;;  %5668 = vmatpush.msra.mxu2 %v9176_v11 }
 0xce1   :  { %5689 = vmatpush.msra.mxu3 %v9194_v41  ;;  %5709 = vmatpush.msra.mxu0 %v9196_v0 }
 0xce2   :  { %5649 = vmatpush.msrb.mxu1 %v9188_v24  ;;  %5669 = vmatpush.msra.mxu2 %v9190_v56 }
 0xce3   :  { %5690 = vmatpush.msra.mxu3 %v9209_v21  ;;  %5710 = vmatpush.msra.mxu0 %v9211_v33 }
 0xce4   :  { %5650 = vmatpush.msrb.mxu1 %v9202_v52  ;;  %5670 = vmatpush.msra.mxu2 %v9204_v40 }
 0xce5   :  { %5691 = vmatpush.msra.mxu3 %v9226_v48  ;;  %5711 = vmatpush.msra.mxu0 %v9228_v25 }
 0xce6   :  { %5651 = vmatpush.msrb.mxu1 %v9218_v39  ;;  %5671 = vmatpush.msra.mxu2 %v9220_v14 }
 0xce7   :  { %5692 = vmatpush.msra.mxu3 %v9238_v4  ;;  %5712 = vmatpush.msra.mxu0 %v9240_v9 }
 0xce8   :  { %5652 = vmatpush.msrb.mxu1 %v9232_v60  ;;  %5672 = vmatpush.msra.mxu2 %v9234_v58 }
 0xce9   :  { %5693 = vmatpush.msra.mxu3 %v9950_v35  ;;  %5713 = vmatpush.msra.mxu0 %v9951_v12 }
 0xcea   :  { %5653 = vmatpush.msrb.mxu1 %v9244_v54  ;;  %5673 = vmatpush.msra.mxu2 %v9246_v61 }
 0xceb   :  { %5694 = vmatpush.msra.mxu3 %v9954_v59  ;;  %5714 = vmatpush.msra.mxu0 %v9955_v63 }
 0xcec   :  { %5654 = vmatpush.msrb.mxu1 %v9952_v46  ;;  %5674 = vmatpush.msra.mxu2 %v9953_v7 }
 0xced   :  { %5695 = vmatpush.msra.mxu3 %v9956_v34  ;;  %5715 = vmatpush.msra.mxu0 %v9957_v57 }
 0xcee   :  { %5655 = vmatpush.msrb.mxu1 %v9280_v1  ;;  %5675 = vmatpush.msra.mxu2 %v9282_v5 }
 0xcef   :  { %5696 = vmatpush.msra.mxu3 %v9959_v2  ;;  %5716 = vmatpush.msra.mxu0 %v9960_v10 }
 0xcf0   :  { %5656 = vmatpush.msrb.mxu1 %v9301_v42  ;;  %5676 = vmatpush.msra.mxu2 %v9958_v20 }
 0xcf1   :  { %5697 = vmatpush.msra.mxu3 %v9327_v8  ;;  %5717 = vmatpush.msra.mxu0 %v9329_v3  ;;  %v5253_v3 = vld [vmem:[#allocation7 + $0x38] sm:$0x3] }
 0xcf2   :  { %5657 = vmatpush.msrb.mxu1 %v9319_v29  ;;  %5677 = vmatpush.msra.mxu2 %v9961_v51  ;;  %v5250_v51 = vld [vmem:[#allocation7 + $0x8] sm:$0x3] }
 0xcf3   :  { %5698 = vmatpush.msra.mxu3 %v9349_v45  ;;  %5718 = vmatpush.msra.mxu0 %v9351_v37  ;;  %v5251_v45 = vld [vmem:[#allocation7 + $0x20] sm:$0x3] }
 0xcf4   :  { %5658 = vmatpush.msrb.mxu1 %v9339_v31  ;;  %5678 = vmatpush.msra.mxu2 %v9341_v22 }
 0xcf5   :  { %5699 = vmatpush.msra.mxu3 %v9362_v50  ;;  %5719 = vmatpush.msra.mxu0 %v9364_v28 }
 0xcf6   :  { %5659 = vmatpush.msrb.mxu1 %v9356_v27  ;;  %5679 = vmatpush.msra.mxu2 %v9358_v19 }
 0xd41   :  { %v5338_v8 = vpop.f32.mrf.mxu1 }
 0xd42   :  { %v5401_v29 = vadd.f32 %v5338_v8, %v5250_v51  ;;  %v5398_v10 = vpop.f32.mrf.mxu0 }
 0xd43   :  { %v5404_v31 = vadd.f32 %v5398_v10, %v5253_v3 }
 0xd44   :  { %v6292_v2 = vmul.f32 -1.442695, %v5401_v29 }
 0xd45   :  { %v6294_v22 = vmul.f32 -1.442695, %v5404_v31 }
 0xd46   :  { %6526 = vpow2.f32 %v6292_v2 }
 0xd47   :  { %6528 = vpow2.f32 %v6294_v22  ;;  %v5358_v37 = vpop.f32.mrf.mxu2  ;;  %v5252_v22 = vld [vmem:[#allocation7 + $0x28] sm:$0x3] }
 0xd48   :  { %v5402_v20 = vadd.f32 %v5358_v37, %v5251_v45  ;;  %v5378_v31 = vpop.f32.mrf.mxu3 }
 0xd49   :  { %v5403_v45 = vadd.f32 %v5378_v31, %v5252_v22 }
 0xd4a   :  { %v6293_v27 = vmul.f32 -1.442695, %v5402_v20 }
 0xd4c   :  { %v6527_v42 = vpop.eup %6526  ;;  %6530 = vpow2.f32 %v6293_v27 }
 0xd4d   :  { %v6529_v19 = vpop.eup %6528  ;;  %v5408_v50 = vadd.f32 1.0, %v6527_v42 }
 0xd4e   :  { %v5447_v28 = vadd.f32 1.0, %v6529_v19 }
 0xd4f   :  { %6532 = vrcp.f32 %v5408_v50  ;;  %v5420_v42 = vand.u32 2147483648, %v5408_v50  ;;  %vm5414_vm13 = vweird.f32 %v5408_v50  ;;  %v5418_v19 = vand.u32 2147483647, %v5408_v50 }
 0xd50   :  { %6534 = vrcp.f32 %v5447_v28  ;;  %vm5453_vm5 = vweird.f32 %v5447_v28 }
 0xd51   :  { %v5421_v7 = vor.u32 1.1754944e-38, %v5420_v42  ;;  %vm5419_vm1 = vcmp.eq.f32.partialorder %v5418_v19, 8.507059e+37 }
 0xd52   :  { %v6531_v57 = vpop.eup %6530 }
 0xd53   :  { %v5427_v34 = vadd.f32 1.0, %v6531_v57 }
 0xd55   :  { %v6533_v8 = vpop.eup %6532  ;;  %6536 = vrcp.f32 %v5427_v34  ;;  %v5439_v57 = vand.u32 2147483648, %v5427_v34  ;;  %v5437_v63 = vand.u32 2147483647, %v5427_v34  ;;  %vm5433_vm0 = vweird.f32 %v5427_v34 }
 0xd56   :  { %v5410_v3 = vmul.f32 %v6533_v8, %v5408_v50  ;;  %v6535_v51 = vpop.eup %6534  ;;  %vm5415_vm12 = vweird.f32 %v6533_v8  ;;  %6538 = vtanh.f32 %v5403_v45 }
 0xd57   :  { %v5449_v27 = vmul.f32 %v6535_v51, %v5447_v28  ;;  %vm5416_vm14 = vmor %vm5414_vm13, %vm5415_vm12  ;;  %v5440_v31 = vor.u32 1.1754944e-38, %v5439_v57  ;;  %vm5438_vm3 = vcmp.eq.f32.partialorder %v5437_v63, 8.507059e+37  ;;  %vm5454_vm4 = vweird.f32 %v6535_v51 }
 0xd58   :  { %v5411_v29 = vsub.f32 1.0, %v5410_v3  ;;  %vm5455_vm6 = vmor %vm5453_vm5, %vm5454_vm4 }
 0xd59   :  { %v5450_v59 = vsub.f32 1.0, %v5449_v27 }
 0xd5a   :  { %v5412_v2 = vmul.f32 %v6533_v8, %v5411_v29 }
 0xd5b   :  { %v6537_v10 = vpop.eup %6536  ;;  %v5451_v12 = vmul.f32 %v6535_v51, %v5450_v59 }
 0xd5c   :  { %v5429_v37 = vmul.f32 %v6537_v10, %v5427_v34  ;;  %v5413_v20 = vadd.f32 %v6533_v8, %v5412_v2  ;;  %vm5434_vm15 = vweird.f32 %v6537_v10  ;;  %v6539_v50 = vpop.eup %6538 }
 0xd5d   :  { %vm5435_vm2 = vmor %vm5433_vm0, %vm5434_vm15 }
 0xd5e   :  { %v5430_v5 = vsub.f32 1.0, %v5429_v37  ;;  %v5417_v3 = vsel %vm5416_vm14, %v6533_v8, %v5413_v20  ;;  %v9962_v37 = vld [vmem:[#allocation61_spill] sm:$0xff]  ;;  %v5452_v8 = vadd.f32 %v6535_v51, %v5451_v12  ;;  %v5459_v20 = vand.u32 2147483648, %v5447_v28  ;;  %v5472_v12 = vld [vmem:[#allocation7 + $0x20] sm:$0xc] }
 0xd5f   :  { %v5422_v22 = vsel %vm5419_vm1, %v5421_v7, %v5417_v3  ;;  %v5464_v46 = vrot.slane %v9962_v37, 6 }
 0xd60   :  { %v5431_v1 = vmul.f32 %v6537_v10, %v5430_v5  ;;  %v5467_v5 = vmul.f32 %v6539_v50, %v5422_v22  ;;  %v5456_v7 = vsel %vm5455_vm6, %v6535_v51, %v5452_v8  ;;  %v5460_v34 = vor.u32 1.1754944e-38, %v5459_v20 }
 0xd62   :  { %v5432_v29 = vadd.f32 %v6537_v10, %v5431_v1  ;;  %v5457_v1 = vand.u32 2147483647, %v5447_v28 }
 0xd64   :  { %v5436_v2 = vsel %vm5435_vm2, %v6537_v10, %v5432_v29  ;;  %vm5458_vm7 = vcmp.eq.f32.partialorder %v5457_v1, 8.507059e+37 }
 0xd65   :  { %v5441_v35 = vsel %vm5438_vm3, %v5440_v31, %v5436_v2  ;;  %v5461_v10 = vsel %vm5458_vm7, %v5460_v34, %v5456_v7 }
 0xd66   :  { %v5466_v45 = vmul.f32 %v5464_v46, %v5441_v35 }
 0xd68   :  { %v9510_v61 = vadd.f32 %v5467_v5, %v5466_v45  ;;  %v5473_v5 = vld [vmem:[#allocation7 + $0x28] sm:$0xc] }
 0xd6a   :  { %6540 = vtanh.f32 %v9510_v61 }
 0xd70   :  { %v6541_v63 = vpop.eup %6540 }
 0xd71   :  { %v5470_v27 = vmul.f32 %v6541_v63, %v5461_v10 }
 0xd73   :  { %5491 = vmatmul.f32.vlgmr.msra.gmra.mxu1 %v5470_v27  ;;  %5511 = vmatmul.f32.vlgmr.msrb.gmra.mxu2 %v5470_v27 }
 0xd74   :  { %5531 = vmatmul.f32.vlgmr.msrb.gmra.mxu3 %v5470_v27  ;;  %5551 = vmatmul.f32.vlgmr.msrb.gmra.mxu0 %v5470_v27 }
 0xd75   :  { %5813 = vmatpush.msra.mxu1 %v9127_v43  ;;  %5833 = vmatpush.msrb.mxu2 %v9129_v62  ;;  %v9963_v43 = vld [vmem:[#allocation35_spill] sm:$0xff] }
 0xd76   :  { %5853 = vmatpush.msrb.mxu3 %v9131_v30  ;;  %5873 = vmatpush.msrb.mxu0 %v9135_v55  ;;  %v9964_v62 = vld [vmem:[#allocation63_spill] sm:$0xff]  ;;  %v9965_v30 = vld [vmem:[#allocation36_spill] sm:$0xff]  ;;  %v9966_v55 = vld [vmem:[#allocation37_spill] sm:$0xff] }
 0xd77   :  { %5814 = vmatpush.msra.mxu1 %v9137_v6  ;;  %5834 = vmatpush.msrb.mxu2 %v9139_v36  ;;  %v9967_v6 = vld [vmem:[#allocation38_spill] sm:$0xff]  ;;  %v9968_v36 = vld [vmem:[#allocation39_spill] sm:$0xff] }
 0xd78   :  { %5854 = vmatpush.msrb.mxu3 %v9143_v38  ;;  %5874 = vmatpush.msrb.mxu0 %v9145_v13  ;;  %v9969_v38 = vld [vmem:[#allocation40_spill] sm:$0xff]  ;;  %v9970_v13 = vld [vmem:[#allocation41_spill] sm:$0xff] }
 0xd79   :  { %5815 = vmatpush.msra.mxu1 %v9147_v32  ;;  %5835 = vmatpush.msrb.mxu2 %v9151_v47  ;;  %v9971_v32 = vld [vmem:[#allocation42_spill] sm:$0xff]  ;;  %v9972_v47 = vld [vmem:[#allocation43_spill] sm:$0xff] }
 0xd7a   :  { %5855 = vmatpush.msrb.mxu3 %v9153_v15  ;;  %5875 = vmatpush.msrb.mxu0 %v9155_v17  ;;  %v9973_v15 = vld [vmem:[#allocation44_spill] sm:$0xff]  ;;  %v9974_v17 = vld [vmem:[#allocation45_spill] sm:$0xff] }
 0xd7b   :  { %5816 = vmatpush.msra.mxu1 %v9161_v49  ;;  %5836 = vmatpush.msrb.mxu2 %v9163_v18  ;;  %v9975_v49 = vld [vmem:[#allocation46_spill] sm:$0xff]  ;;  %v9976_v18 = vld [vmem:[#allocation47_spill] sm:$0xff] }
 0xd7c   :  { %5856 = vmatpush.msrb.mxu3 %v9167_v53  ;;  %5876 = vmatpush.msrb.mxu0 %v9169_v44  ;;  %v9977_v53 = vld [vmem:[#allocation48_spill] sm:$0xff]  ;;  %v9978_v44 = vld [vmem:[#allocation49_spill] sm:$0xff] }
 0xd7d   :  { %5817 = vmatpush.msra.mxu1 %v9174_v26  ;;  %5837 = vmatpush.msrb.mxu2 %v9176_v11  ;;  %v9979_v26 = vld [vmem:[#allocation50_spill] sm:$0xff]  ;;  %v9980_v11 = vld [vmem:[#allocation51_spill] sm:$0xff] }
 0xd7e   :  { %5857 = vmatpush.msrb.mxu3 %v9182_v16  ;;  %5877 = vmatpush.msrb.mxu0 %v9184_v23  ;;  %v9981_v16 = vld [vmem:[#allocation52_spill] sm:$0xff]  ;;  %v9982_v23 = vld [vmem:[#allocation53_spill] sm:$0xff] }
 0xd7f   :  { %5818 = vmatpush.msra.mxu1 %v9188_v24  ;;  %5838 = vmatpush.msrb.mxu2 %v9190_v56  ;;  %v9983_v24 = vld [vmem:[#allocation54_spill] sm:$0xff]  ;;  %v9984_v56 = vld [vmem:[#allocation55_spill] sm:$0xff] }
 0xd80   :  { %5858 = vmatpush.msrb.mxu3 %v9194_v41  ;;  %5878 = vmatpush.msrb.mxu0 %v9196_v0  ;;  %v9985_v41 = vld [vmem:[#allocation56_spill] sm:$0xff]  ;;  %v9986_v0 = vld [vmem:[#allocation57_spill] sm:$0xff] }
 0xd81   :  { %5819 = vmatpush.msra.mxu1 %v9202_v52  ;;  %5839 = vmatpush.msrb.mxu2 %v9204_v40  ;;  %v9987_v52 = vld [vmem:[#allocation58_spill] sm:$0xff]  ;;  %v9988_v40 = vld [vmem:[#allocation59_spill] sm:$0xff] }
 0xd82   :  { %5859 = vmatpush.msrb.mxu3 %v9209_v21  ;;  %5879 = vmatpush.msrb.mxu0 %v9211_v33  ;;  %v9989_v21 = vld [vmem:[#allocation60_spill] sm:$0xff] }
 0xd83   :  { %5820 = vmatpush.msra.mxu1 %v9218_v39  ;;  %5840 = vmatpush.msrb.mxu2 %v9220_v14 }
 0xd84   :  { %5860 = vmatpush.msrb.mxu3 %v9226_v48  ;;  %5880 = vmatpush.msrb.mxu0 %v9228_v25  ;;  %v5471_v48 = vld [vmem:[#allocation7 + $0x8] sm:$0xc] }
 0xd85   :  { %5821 = vmatpush.msra.mxu1 %v9232_v60  ;;  %5841 = vmatpush.msrb.mxu2 %v9234_v58  ;;  %v5474_v58 = vld [vmem:[#allocation7 + $0x38] sm:$0xc] }
 0xd86   :  { %5861 = vmatpush.msrb.mxu3 %v9238_v4  ;;  %5881 = vmatpush.msrb.mxu0 %v9240_v9 }
 0xd87   :  { %5822 = vmatpush.msra.mxu1 %v9244_v54  ;;  %5842 = vmatpush.msrb.mxu2 %v9963_v43 }
 0xd88   :  { %5862 = vmatpush.msrb.mxu3 %v9964_v62  ;;  %5882 = vmatpush.msrb.mxu0 %v9965_v30 }
 0xd89   :  { %5823 = vmatpush.msra.mxu1 %v9966_v55  ;;  %5843 = vmatpush.msrb.mxu2 %v9967_v6 }
 0xd8a   :  { %5863 = vmatpush.msrb.mxu3 %v9968_v36  ;;  %5883 = vmatpush.msrb.mxu0 %v9969_v38 }
 0xd8b   :  { %5824 = vmatpush.msra.mxu1 %v9970_v13  ;;  %5844 = vmatpush.msrb.mxu2 %v9971_v32 }
 0xd8c   :  { %5864 = vmatpush.msrb.mxu3 %v9972_v47  ;;  %5884 = vmatpush.msrb.mxu0 %v9973_v15  ;;  %v5630_v15 = vrot.slane %v9510_v61, 6 }
 0xd8d   :  { %5825 = vmatpush.msra.mxu1 %v9974_v17  ;;  %5845 = vmatpush.msrb.mxu2 %v9975_v49 }
 0xd8e   :  { %5865 = vmatpush.msrb.mxu3 %v9976_v18  ;;  %5885 = vmatpush.msrb.mxu0 %v9977_v53 }
 0xd8f   :  { %5826 = vmatpush.msra.mxu1 %v9978_v44  ;;  %5846 = vmatpush.msrb.mxu2 %v9979_v26 }
 0xd90   :  { %5866 = vmatpush.msrb.mxu3 %v9980_v11  ;;  %5886 = vmatpush.msrb.mxu0 %v9981_v16 }
 0xd91   :  { %5827 = vmatpush.msra.mxu1 %v9982_v23  ;;  %5847 = vmatpush.msrb.mxu2 %v9983_v24 }
 0xd92   :  { %5867 = vmatpush.msrb.mxu3 %v9984_v56  ;;  %5887 = vmatpush.msrb.mxu0 %v9985_v41 }
 0xd93   :  { %5828 = vmatpush.msra.mxu1 %v9986_v0  ;;  %5848 = vmatpush.msrb.mxu2 %v9987_v52 }
 0xd94   :  { %5868 = vmatpush.msrb.mxu3 %v9988_v40  ;;  %5888 = vmatpush.msrb.mxu0 %v9989_v21 }
 0xdf0   :  { %v5492_v33 = vpop.f32.mrf.mxu1 }
 0xdf1   :  { %v5559_v39 = vrot.slane %v5492_v33, 6  ;;  %v5552_v14 = vpop.f32.mrf.mxu0 }
 0xdf2   :  { %v5562_v25 = vrot.slane %v5552_v14, 6  ;;  %v5637_v14 = vld [vmem:[#allocation7 + $0x8] sm:$0x30] }
 0xdf3   :  { %v5567_v60 = vadd.f32 %v5559_v39, %v5471_v48 }
 0xdf4   :  { %v5570_v4 = vadd.f32 %v5562_v25, %v5474_v58 }
 0xdf5   :  { %v6295_v9 = vmul.f32 -1.442695, %v5567_v60  ;;  %v5640_v60 = vld [vmem:[#allocation7 + $0x38] sm:$0x30] }
 0xdf6   :  { %v6297_v54 = vmul.f32 -1.442695, %v5570_v4  ;;  %v5512_v28 = vpop.f32.mrf.mxu2 }
 0xdf7   :  { %6542 = vpow2.f32 %v6295_v9  ;;  %v5560_v35 = vrot.slane %v5512_v28, 6  ;;  %v5532_v31 = vpop.f32.mrf.mxu3 }
 0xdf8   :  { %6544 = vpow2.f32 %v6297_v54  ;;  %v5561_v37 = vrot.slane %v5532_v31, 6 }
 0xdf9   :  { %v5568_v46 = vadd.f32 %v5560_v35, %v5472_v12  ;;  %v5638_v35 = vld [vmem:[#allocation7 + $0x20] sm:$0x30] }
 0xdfa   :  { %v5569_v1 = vadd.f32 %v5561_v37, %v5473_v5 }
 0xdfb   :  { %v6296_v59 = vmul.f32 -1.442695, %v5568_v46 }
 0xdfd   :  { %v6543_v51 = vpop.eup %6542  ;;  %6546 = vpow2.f32 %v6296_v59 }
 0xdfe   :  { %v6545_v42 = vpop.eup %6544  ;;  %v5574_v19 = vadd.f32 1.0, %v6543_v51 }
 0xdff   :  { %v5613_v57 = vadd.f32 1.0, %v6545_v42 }
 0xe00   :  { %6548 = vrcp.f32 %v5574_v19  ;;  %v5586_v10 = vand.u32 2147483648, %v5574_v19  ;;  %vm5580_vm9 = vweird.f32 %v5574_v19  ;;  %v5584_v43 = vand.u32 2147483647, %v5574_v19 }
 0xe01   :  { %6550 = vrcp.f32 %v5613_v57  ;;  %v5625_v23 = vand.u32 2147483648, %v5613_v57  ;;  %vm5619_vm1 = vweird.f32 %v5613_v57  ;;  %v5623_v24 = vand.u32 2147483647, %v5613_v57 }
 0xe02   :  { %v5587_v38 = vor.u32 1.1754944e-38, %v5586_v10  ;;  %vm5585_vm13 = vcmp.eq.f32.partialorder %v5584_v43, 8.507059e+37 }
 0xe03   :  { %v6547_v3 = vpop.eup %6546  ;;  %v5626_v41 = vor.u32 1.1754944e-38, %v5625_v23  ;;  %vm5624_vm3 = vcmp.eq.f32.partialorder %v5623_v24, 8.507059e+37 }
 0xe04   :  { %v5593_v29 = vadd.f32 1.0, %v6547_v3 }
 0xe06   :  { %v6549_v22 = vpop.eup %6548  ;;  %6552 = vrcp.f32 %v5593_v29  ;;  %v5605_v62 = vand.u32 2147483648, %v5593_v29  ;;  %v5603_v6 = vand.u32 2147483647, %v5593_v29  ;;  %vm5599_vm12 = vweird.f32 %v5593_v29 }
 0xe07   :  { %v5576_v2 = vmul.f32 %v6549_v22, %v5574_v19  ;;  %v6551_v45 = vpop.eup %6550  ;;  %vm5581_vm8 = vweird.f32 %v6549_v22  ;;  %6554 = vtanh.f32 %v5569_v1 }
 0xe08   :  { %v5615_v63 = vmul.f32 %v6551_v45, %v5613_v57  ;;  %vm5582_vm10 = vmor %vm5580_vm9, %vm5581_vm8  ;;  %v5606_v32 = vor.u32 1.1754944e-38, %v5605_v62  ;;  %vm5604_vm15 = vcmp.eq.f32.partialorder %v5603_v6, 8.507059e+37  ;;  %vm5620_vm0 = vweird.f32 %v6551_v45 }
 0xe09   :  { %v5577_v50 = vsub.f32 1.0, %v5576_v2  ;;  %vm5621_vm2 = vmor %vm5619_vm1, %vm5620_vm0 }
 0xe0a   :  { %v5616_v36 = vsub.f32 1.0, %v5615_v63 }
 0xe0b   :  { %v5578_v8 = vmul.f32 %v6549_v22, %v5577_v50 }
 0xe0c   :  { %v6553_v20 = vpop.eup %6552  ;;  %v5617_v18 = vmul.f32 %v6551_v45, %v5616_v36 }
 0xe0d   :  { %v5595_v7 = vmul.f32 %v6553_v20, %v5593_v29  ;;  %v5579_v34 = vadd.f32 %v6549_v22, %v5578_v8  ;;  %vm5600_vm11 = vweird.f32 %v6553_v20  ;;  %v6555_v49 = vpop.eup %6554 }
 0xe0e   :  { %vm5601_vm14 = vmor %vm5599_vm12, %vm5600_vm11  ;;  %v5618_v16 = vadd.f32 %v6551_v45, %v5617_v18 }
 0xe0f   :  { %v5596_v27 = vsub.f32 1.0, %v5595_v7  ;;  %v5583_v55 = vsel %vm5582_vm10, %v6549_v22, %v5579_v34 }
 0xe10   :  { %v5588_v47 = vsel %vm5585_vm13, %v5587_v38, %v5583_v55  ;;  %v5622_v56 = vsel %vm5621_vm2, %v6551_v45, %v5618_v16  ;;  %v5639_v45 = vld [vmem:[#allocation7 + $0x28] sm:$0x30] }
 0xe11   :  { %v5597_v30 = vmul.f32 %v6553_v20, %v5596_v27  ;;  %v5633_v26 = vmul.f32 %v6555_v49, %v5588_v47  ;;  %v5627_v0 = vsel %vm5624_vm3, %v5626_v41, %v5622_v56 }
 0xe13   :  { %v5598_v13 = vadd.f32 %v6553_v20, %v5597_v30 }
 0xe15   :  { %v5602_v17 = vsel %vm5601_vm14, %v6553_v20, %v5598_v13 }
 0xe16   :  { %v5607_v53 = vsel %vm5604_vm15, %v5606_v32, %v5602_v17 }
 0xe17   :  { %v5632_v44 = vmul.f32 %v5630_v15, %v5607_v53 }
 0xe19   :  { %v9578_v11 = vadd.f32 %v5633_v26, %v5632_v44 }
 0xe1b   :  { %6556 = vtanh.f32 %v9578_v11  ;;  %v5799_v47 = vrot.slane %v9578_v11, 6 }
 0xe21   :  { %v6557_v61 = vpop.eup %6556 }
 0xe22   :  { %v5636_v52 = vmul.f32 %v6557_v61, %v5627_v0 }
 0xe24   :  { %v5642_v40 = vrot.slane %v5636_v52, 2 }
 0xe26   :  { %5660 = vmatmul.f32.vlgmr.msrb.gmra.mxu1 %v5642_v40  ;;  %5680 = vmatmul.f32.vlgmr.msra.gmra.mxu2 %v5642_v40 }
 0xe27   :  { %5700 = vmatmul.f32.vlgmr.msra.gmra.mxu3 %v5642_v40  ;;  %5720 = vmatmul.f32.vlgmr.msra.gmra.mxu0 %v5642_v40 }
 0xea3   :  { %v5661_v21 = vpop.f32.mrf.mxu1 }
 0xea4   :  { %v5728_v33 = vrot.slane %v5661_v21, 4  ;;  %v5721_v39 = vpop.f32.mrf.mxu0 }
 0xea5   :  { %v5731_v48 = vrot.slane %v5721_v39, 4  ;;  %v5806_v39 = vld [vmem:[#allocation7 + $0x8] sm:$0xc0] }
 0xea6   :  { %v5736_v25 = vadd.f32 %v5728_v33, %v5637_v14 }
 0xea7   :  { %v5739_v58 = vadd.f32 %v5731_v48, %v5640_v60 }
 0xea8   :  { %v6298_v4 = vmul.f32 -1.442695, %v5736_v25  ;;  %v5809_v25 = vld [vmem:[#allocation7 + $0x38] sm:$0xc0] }
 0xea9   :  { %v6300_v9 = vmul.f32 -1.442695, %v5739_v58  ;;  %v5681_v54 = vpop.f32.mrf.mxu2 }
 0xeaa   :  { %6558 = vpow2.f32 %v6298_v4  ;;  %v5729_v28 = vrot.slane %v5681_v54, 4  ;;  %v5701_v29 = vpop.f32.mrf.mxu3 }
 0xeab   :  { %6560 = vpow2.f32 %v6300_v9  ;;  %v5730_v2 = vrot.slane %v5701_v29, 4 }
 0xeac   :  { %v5737_v12 = vadd.f32 %v5729_v28, %v5638_v35  ;;  %v5807_v28 = vld [vmem:[#allocation7 + $0x20] sm:$0xc0] }
 0xead   :  { %v5738_v20 = vadd.f32 %v5730_v2, %v5639_v45  ;;  %v5989_v2 = vld [vmem:[%s9681_s15 + $0x60] sm:$0xff] }
 0xeae   :  { %v6299_v46 = vmul.f32 -1.442695, %v5737_v12 }
 0xeb0   :  { %v6559_v59 = vpop.eup %6558  ;;  %6562 = vpow2.f32 %v6299_v46 }
 0xeb1   :  { %v6561_v51 = vpop.eup %6560  ;;  %v5743_v42 = vadd.f32 1.0, %v6559_v59 }
 0xeb2   :  { %v5782_v19 = vadd.f32 1.0, %v6561_v51 }
 0xeb3   :  { %6564 = vrcp.f32 %v5743_v42  ;;  %v5755_v63 = vand.u32 2147483648, %v5743_v42  ;;  %vm5749_vm5 = vweird.f32 %v5743_v42  ;;  %v5753_v27 = vand.u32 2147483647, %v5743_v42 }
 0xeb4   :  { %6566 = vrcp.f32 %v5782_v19  ;;  %v5794_v23 = vand.u32 2147483648, %v5782_v19  ;;  %vm5788_vm13 = vweird.f32 %v5782_v19  ;;  %v5792_v24 = vand.u32 2147483647, %v5782_v19 }
 0xeb5   :  { %v5756_v36 = vor.u32 1.1754944e-38, %v5755_v63  ;;  %vm5754_vm9 = vcmp.eq.f32.partialorder %v5753_v27, 8.507059e+37 }
 0xeb6   :  { %v6563_v57 = vpop.eup %6562  ;;  %v5795_v41 = vor.u32 1.1754944e-38, %v5794_v23  ;;  %vm5793_vm15 = vcmp.eq.f32.partialorder %v5792_v24, 8.507059e+37 }
 0xeb7   :  { %v5762_v3 = vadd.f32 1.0, %v6563_v57  ;;  %v5991_v57 = vld [vmem:[%s9681_s15 + $0x70] sm:$0xff] }
 0xeb9   :  { %v6565_v31 = vpop.eup %6564  ;;  %6568 = vrcp.f32 %v5762_v3  ;;  %v5774_v43 = vand.u32 2147483648, %v5762_v3  ;;  %v5772_v55 = vand.u32 2147483647, %v5762_v3  ;;  %vm5768_vm8 = vweird.f32 %v5762_v3 }
 0xeba   :  { %v5745_v22 = vmul.f32 %v6565_v31, %v5743_v42  ;;  %v6567_v50 = vpop.eup %6566  ;;  %vm5750_vm4 = vweird.f32 %v6565_v31  ;;  %6570 = vtanh.f32 %v5738_v20  ;;  %v5992_v42 = vld [vmem:[%s9681_s15 + $0x78] sm:$0xff] }
 0xebb   :  { %v5784_v34 = vmul.f32 %v6567_v50, %v5782_v19  ;;  %vm5751_vm6 = vmor %vm5749_vm5, %vm5750_vm4  ;;  %v5775_v13 = vor.u32 1.1754944e-38, %v5774_v43  ;;  %vm5773_vm11 = vcmp.eq.f32.partialorder %v5772_v55, 8.507059e+37  ;;  %vm5789_vm12 = vweird.f32 %v6567_v50  ;;  %5997 = vmatpush.msrb.mxu1 %v5992_v42  ;;  %v5985_v43 = vld [vmem:[%s9681_s15 + $0x40] sm:$0xff] }
 0xebc   :  { %v5746_v37 = vsub.f32 1.0, %v5745_v22  ;;  %vm5790_vm14 = vmor %vm5788_vm13, %vm5789_vm12  ;;  %vm6017_vm12 = vcmask 66560  }
 0xebd   :  { %v5785_v6 = vsub.f32 1.0, %v5784_v34  ;;  %5998 = vmatpush.msrb.mxu1 %v5991_v57  ;;  %v5808_v34 = vld [vmem:[#allocation7 + $0x28] sm:$0xc0] }
 0xebe   :  { %v5747_v5 = vmul.f32 %v6565_v31, %v5746_v37 }
 0xebf   :  { %v6569_v8 = vpop.eup %6568  ;;  %v5786_v49 = vmul.f32 %v6567_v50, %v5785_v6 }
 0xec0   :  { %v5764_v1 = vmul.f32 %v6569_v8, %v5762_v3  ;;  %v5748_v7 = vadd.f32 %v6565_v31, %v5747_v5  ;;  %vm5769_vm7 = vweird.f32 %v6569_v8  ;;  %v6571_v17 = vpop.eup %6570 }
 0xec1   :  { %vm5770_vm10 = vmor %vm5768_vm8, %vm5769_vm7  ;;  %v5787_v16 = vadd.f32 %v6567_v50, %v5786_v49 }
 0xec2   :  { %v5765_v10 = vsub.f32 1.0, %v5764_v1  ;;  %v5752_v30 = vsel %vm5751_vm6, %v6565_v31, %v5748_v7  ;;  %v5990_v31 = vld [vmem:[%s9681_s15 + $0x68] sm:$0xff] }
 0xec3   :  { %v5757_v32 = vsel %vm5754_vm9, %v5756_v36, %v5752_v30  ;;  %v5791_v56 = vsel %vm5790_vm14, %v6567_v50, %v5787_v16  ;;  %5999 = vmatpush.msrb.mxu1 %v5990_v31  ;;  %v5988_v50 = vld [vmem:[%s9681_s15 + $0x58] sm:$0xff]  ;;  %v5986_v1 = vld [vmem:[%s9681_s15 + $0x48] sm:$0xff] }
 0xec4   :  { %v5766_v62 = vmul.f32 %v6569_v8, %v5765_v10  ;;  %v5802_v44 = vmul.f32 %v6571_v17, %v5757_v32  ;;  %v5796_v61 = vsel %vm5793_vm15, %v5795_v41, %v5791_v56  ;;  %v5984_v36 = vld [vmem:[%s9681_s15 + $0x38] sm:$0xff]  ;;  %v5982_v16 = vld [vmem:[%s9681_s15 + $0x28] sm:$0xff]  ;;  %v5981_v41 = vld [vmem:[%s9681_s15 + $0x20] sm:$0xff] }
 0xec5   :  { %6000 = vmatpush.msrb.mxu1 %v5989_v2 }
 0xec6   :  { %v5767_v38 = vadd.f32 %v6569_v8, %v5766_v62 }
 0xec7   :  { %6001 = vmatpush.msrb.mxu1 %v5988_v50 }
 0xec8   :  { %v5771_v15 = vsel %vm5770_vm10, %v6569_v8, %v5767_v38  ;;  %v5987_v8 = vld [vmem:[%s9681_s15 + $0x50] sm:$0xff] }
 0xec9   :  { %v5776_v18 = vsel %vm5773_vm11, %v5775_v13, %v5771_v15  ;;  %6002 = vmatpush.msrb.mxu1 %v5987_v8  ;;  %v5983_v15 = vld [vmem:[%s9681_s15 + $0x30] sm:$0xff] }
 0xeca   :  { %v5801_v53 = vmul.f32 %v5799_v47, %v5776_v18 }
 0xecb   :  { %6003 = vmatpush.msrb.mxu1 %v5986_v1 }
 0xecc   :  { %v9582_v26 = vadd.f32 %v5802_v44, %v5801_v53 }
 0xecd   :  { %6004 = vmatpush.msrb.mxu1 %v5985_v43 }
 0xece   :  { %6572 = vtanh.f32 %v9582_v26 }
 0xecf   :  { %6005 = vmatpush.msrb.mxu1 %v5984_v36 }
 0xed1   :  { %6006 = vmatpush.msrb.mxu1 %v5983_v15 }
 0xed3   :  { %6007 = vmatpush.msrb.mxu1 %v5982_v16 }
 0xed4   :  { %v6573_v11 = vpop.eup %6572 }
 0xed5   :  { %v5805_v0 = vmul.f32 %v6573_v11, %v5796_v61  ;;  %v5968_v11 = vrot.slane %v9582_v26, 6  ;;  %6008 = vmatpush.msrb.mxu1 %v5981_v41 }
 0xed7   :  { %v5811_v52 = vrot.slane %v5805_v0, 4 }
 0xed9   :  { %5829 = vmatmul.f32.vlgmr.msra.gmra.mxu1 %v5811_v52  ;;  %5849 = vmatmul.f32.vlgmr.msrb.gmra.mxu2 %v5811_v52 }
 0xeda   :  { %5869 = vmatmul.f32.vlgmr.msrb.gmra.mxu3 %v5811_v52  ;;  %5889 = vmatmul.f32.vlgmr.msrb.gmra.mxu0 %v5811_v52 }
 0xf56   :  { %v5830_v40 = vpop.f32.mrf.mxu1 }
 0xf57   :  { %v5897_v21 = vrot.slane %v5830_v40, 2  ;;  %v5890_v33 = vpop.f32.mrf.mxu0 }
 0xf58   :  { %v5900_v14 = vrot.slane %v5890_v33, 2 }
 0xf59   :  { %v5905_v48 = vadd.f32 %v5897_v21, %v5806_v39  ;;  %v5980_v21 = vld [vmem:[%s9681_s15 + $0x18] sm:$0xff] }
 0xf5a   :  { %v5908_v60 = vadd.f32 %v5900_v14, %v5809_v25  ;;  %v5979_v14 = vld [vmem:[%s9681_s15 + $0x10] sm:$0xff]  ;;  %6009 = vmatpush.msrb.mxu1 %v5980_v21  ;;  %v5978_v25 = vld [vmem:[%s9681_s15 + $0x8] sm:$0xff] }
 0xf5b   :  { %v6301_v58 = vmul.f32 -1.442695, %v5905_v48 }
 0xf5c   :  { %v6303_v4 = vmul.f32 -1.442695, %v5908_v60  ;;  %v5850_v9 = vpop.f32.mrf.mxu2  ;;  %6010 = vmatpush.msrb.mxu1 %v5979_v14 }
 0xf5d   :  { %6574 = vpow2.f32 %v6301_v58  ;;  %v5898_v54 = vrot.slane %v5850_v9, 2  ;;  %v5870_v22 = vpop.f32.mrf.mxu3 }
 0xf5e   :  { %6576 = vpow2.f32 %v6303_v4  ;;  %v5899_v5 = vrot.slane %v5870_v22, 2  ;;  %v5977_v4 = vld [vmem:[%s9681_s15] sm:$0xff]  ;;  %6011 = vmatpush.msrb.mxu1 %v5978_v25 }
 0xf5f   :  { %v5906_v35 = vadd.f32 %v5898_v54, %v5807_v28 }
 0xf60   :  { %v5907_v27 = vadd.f32 %v5899_v5, %v5808_v34  ;;  %6012 = vmatpush.msrb.mxu1 %v5977_v4 }
 0xf61   :  { %v6302_v12 = vmul.f32 -1.442695, %v5906_v35 }
 0xf63   :  { %v6575_v46 = vpop.eup %6574  ;;  %6578 = vpow2.f32 %v6302_v12 }
 0xf64   :  { %v6577_v59 = vpop.eup %6576  ;;  %v5912_v51 = vadd.f32 1.0, %v6575_v46 }
 0xf65   :  { %v9588_v19 = vadd.f32 1.0, %v6577_v59  ;;  %v6333_v59 = vld [vmem:[%s9682_s16] ss:$0 sm:$0xff] }
 0xf66   :  { %6580 = vrcp.f32 %v5912_v51  ;;  %v5924_v6 = vand.u32 2147483648, %v5912_v51  ;;  %vm5918_vm1 = vweird.f32 %v5912_v51  ;;  %v5922_v13 = vand.u32 2147483647, %v5912_v51 }
 0xf67   :  { %6582 = vrcp.f32 %v9588_v19  ;;  %v5963_v60 = vand.u32 2147483648, %v9588_v19  ;;  %vm5957_vm9 = vweird.f32 %v9588_v19  ;;  %v5961_v58 = vand.u32 2147483647, %v9588_v19 }
 0xf68   :  { %v5925_v44 = vor.u32 1.1754944e-38, %v5924_v6  ;;  %vm5923_vm5 = vcmp.eq.f32.partialorder %v5922_v13, 8.507059e+37 }
 0xf69   :  { %v6579_v3 = vpop.eup %6578  ;;  %v5964_v54 = vor.u32 1.1754944e-38, %v5963_v60  ;;  %vm5962_vm11 = vcmp.eq.f32.partialorder %v5961_v58, 8.507059e+37 }
 0xf6a   :  { %v5931_v29 = vadd.f32 1.0, %v6579_v3 }
 0xf6c   :  { %v6581_v37 = vpop.eup %6580  ;;  %6584 = vrcp.f32 %v5931_v29  ;;  %v5943_v32 = vand.u32 2147483648, %v5931_v29  ;;  %v5941_v18 = vand.u32 2147483647, %v5931_v29  ;;  %vm5937_vm4 = vweird.f32 %v5931_v29 }
 0xf6d   :  { %v5914_v45 = vmul.f32 %v6581_v37, %v5912_v51  ;;  %v9609_v7 = vpop.eup %6582  ;;  %vm5919_vm0 = vweird.f32 %v6581_v37  ;;  %6586 = vtanh.f32 %v5907_v27 }
 0xf6e   :  { %v5953_v55 = vmul.f32 %v9609_v7, %v9588_v19  ;;  %vm9619_vm2 = vmor %vm5918_vm1, %vm5919_vm0  ;;  %v5944_v24 = vor.u32 1.1754944e-38, %v5943_v32  ;;  %vm5942_vm7 = vcmp.eq.f32.partialorder %v5941_v18, 8.507059e+37  ;;  %vm5958_vm8 = vweird.f32 %v9609_v7 }
 0xf6f   :  { %v5915_v20 = vsub.f32 1.0, %v5914_v45  ;;  %vm5959_vm10 = vmor %vm5957_vm9, %vm5958_vm8 }
 0xf70   :  { %v5954_v53 = vsub.f32 1.0, %v5953_v55 }
 0xf71   :  { %v5916_v63 = vmul.f32 %v6581_v37, %v5915_v20 }
 0xf72   :  { %v6585_v10 = vpop.eup %6584  ;;  %v5955_v52 = vmul.f32 %v9609_v7, %v5954_v53 }
 0xf73   :  { %v5933_v62 = vmul.f32 %v6585_v10, %v5931_v29  ;;  %v5917_v30 = vadd.f32 %v6581_v37, %v5916_v63  ;;  %vm5938_vm3 = vweird.f32 %v6585_v10  ;;  %v6587_v0 = vpop.eup %6586 }
 0xf74   :  { %vm5939_vm6 = vmor %vm5937_vm4, %vm5938_vm3  ;;  %v5956_v26 = vadd.f32 %v9609_v7, %v5955_v52 }
 0xf75   :  { %v5934_v38 = vsub.f32 1.0, %v5933_v62  ;;  %v5921_v49 = vsel %vm9619_vm2, %v6581_v37, %v5917_v30 }
 0xf76   :  { %v5926_v56 = vsel %vm5923_vm5, %v5925_v44, %v5921_v49  ;;  %v5960_v9 = vsel %vm5959_vm10, %v9609_v7, %v5956_v26 }
 0xf77   :  { %v5935_v17 = vmul.f32 %v6585_v10, %v5934_v38  ;;  %v5971_v39 = vmul.f32 %v6587_v0, %v5926_v56  ;;  %v5965_v35 = vsel %vm5962_vm11, %v5964_v54, %v5960_v9 }
 0xf79   :  { %v5936_v23 = vadd.f32 %v6585_v10, %v5935_v17 }
 0xf7b   :  { %v5940_v61 = vsel %vm5939_vm6, %v6585_v10, %v5936_v23 }
 0xf7c   :  { %v5945_v40 = vsel %vm5942_vm7, %v5944_v24, %v5940_v61 }
 0xf7d   :  { %v5970_v33 = vmul.f32 %v5968_v11, %v5945_v40 }
 0xf7f   :  { %v5972_v48 = vadd.f32 %v5971_v39, %v5970_v33 }
 0xf81   :  { %6588 = vtanh.f32 %v5972_v48  ;;  %6020 = vst [vmem:[#allocation27 - $0x6] sm:$0xc0] %v5972_v48 }
 0xf87   :  { %v6589_v28 = vpop.eup %6588 }
 0xf88   :  { %v5974_v12 = vmul.f32 %v6589_v28, %v5965_v35 }
 0xf8a   :  { %5975 = vst [vmem:[#allocation9 - $0x6] sm:$0x80] %v5974_v12 }
 0xf8b   :  { %6019 = vst [vmem:[#allocation25 - $0x6] sm:$0xc0] %v5974_v12 }
 0xf8c   :  { %6042 = dma.vmem_to_hbm [thread:$0]  %s6038_s29, 32, %s6040_s26, [#allocation26]  }
 0xf8d   :  { %6053 = dma.vmem_to_hbm [thread:$0]  %s6049_s4, 32, %s6051_s2, [#allocation26]  }
 0xf91   :  { %v5976_v46 = vld [vmem:[#allocation9] sm:$0x3] }
 0xf92   :  { %6013 = vmatmul.f32.vlgmr.msrb.gmra.mxu1 %v5976_v46 }
0x100f   :  { %v6014_v51 = vpop.f32.mrf.mxu1 }
0x1010   :  { %v6015_v42 = vadd.f32 %v6333_v59, %v6014_v51 }
0x1012   :  { %6018 = vst.msk [vmem:[#allocation24] sm:$0x3] %vm6017_vm12, %v6015_v42 }
0x1013   :  { %6031 = dma.vmem_to_hbm [thread:$0]  %s6027_s1, 32, %s6029_s0, [#allocation12]  }
0x1014   :  { %6864 = dma.done.wait [#allocation12], 32  }
0x1015   :  { %6865 = vsyncadd [#allocation12], 4294967264 }
0x1016   :  { %6866 = dma.done.wait [#allocation26], 64  }
0x1017   :  { %6867 = vsyncadd [#allocation26], 4294967232 }
0x1018   :  { %6066 = vsyncpa [#allocation11], 1 }
0x1019   :  { %6067 = vsyncpa [#allocation14], 1 }
0x101a   :  { %6068 = vsyncpa [#allocation17], 1 }
0x101b   :  { %6069 = vsyncpa [#allocation20], 1 }
0x101c   :  { %6070 = vsyncpa [#allocation23], 1 }
0x101d   :  { %6071 = vsyncpa [#allocation12], 1 }
0x101e   :  { %6072 = vsyncpa [#allocation26], 1 }

</bundles_post_ra>
